<compile_context>
chip_gen: v7x
topology: tpu7x:2x2x1
jax: 0.10.0
libtpu: 0.0.40
codegen_flags: <defaults>
</compile_context>

<pallas_src>
import jax
import jax.numpy as jnp
import numpy as np
from jax import lax
from jax.experimental import pallas as pl
from jax.experimental.pallas import tpu as pltpu


# ----------------------------------------------------------------------------- geometry
# Input must be 40x40 because fc1 expects 32*10*10 features (as in the PyTorch module).
H_IN, W_IN, C_IN = 40, 40, 6
C1, C2 = 16, 32
H2, W2 = H_IN // 2, W_IN // 2          # 20x20 after pool1
H3, W3 = H2 // 2, W2 // 2              # 10x10 after pool2
FEAT = H3 * W3 * C2                    # 3200

K1 = 9 * C_IN                          # 54  conv1 im2col depth
K1P = 64                               # zero-padded to 64 lanes
K2 = 9 * C1                            # 144 conv2 im2col depth
NP1 = H2 * W2                          # 400 pooled pixels per image (= pool1 output)

# conv2 input slab: interior pixel (h2, w2) lives at row h2*WP2 + A0 + w2.
WP2 = 24                               # row pitch, multiple of 8
A0 = 32                                # interior base, multiple of 8
SLAB2 = 544                            # covers all 9 tap reads [7, 537), mult of 8
N2 = H2 * WP2                          # 480 conv2 anchors (incl. 4 pad cols per row)
NV = N2 - WP2                          # 456 rows after vertical pair max
NM = NV - 1                            # 455 rows after horizontal pair max


# ----------------------------------------------------------------------------- kernels
def conv_tower_kernel(xcol_ref, w1_ref, b1_ref, w2_ref, b2_ref, o_ref, x2s, ma2):
    # xcol_ref: (1600, 64)  conv1 patches, rows = (dy*2+dx)*400 + ph*20 + pw,
    #                       feature = (ky*3+kx)*6 + cin (zero-padded 54 -> 64)
    # w1_ref  : (64, 16)    conv1 im2col weights (rows match features)
    # w2_ref  : (144, 32)   conv2 im2col weights, row = (ky*3+kx)*16 + cin
    # o_ref   : (100, 32)   pooled features, row = ph3*10 + pw3, lanes = channel
    # x2s     : (544, 16)   zero-padded conv2 input slab (8-aligned geometry)
    # ma2     : (456, 32)   pool2 2x2-window maxes (anchor-indexed)
    w1 = w1_ref[...]
    b1 = b1_ref[...]

    # ---- conv1 + pool1: one matmul per 2x2-window corner, running elementwise
    #      max over the 4 contiguous chunks -> (400,16) pooled image (h2*20+w2).
    def corner(q):
        z = jnp.dot(xcol_ref[q * NP1:(q + 1) * NP1, :], w1,
                    preferred_element_type=jnp.float32)
        return jnp.maximum(z + b1, 0.0)

    p1 = corner(0)
    for q in range(1, 4):
        p1 = jnp.maximum(p1, corner(q))

    # ---- scatter pooled rows into the zero slab (8-aligned destination starts).
    #      Full re-zero each step keeps all non-interior rows exactly 0 (that is
    #      what gives conv2 its zero padding) and is megacore-safe.
    x2s[...] = jnp.zeros_like(x2s)
    for h2 in range(H2):
        x2s[pl.ds(h2 * WP2 + A0, W2), :] = p1[h2 * W2:(h2 + 1) * W2, :]

    # ---- conv2: 9 accumulated shifted matmuls straight from the slab.
    #      Output anchor i sits at slab row A0+i, i.e. (h2, w2') = (i//24, i%24);
    #      w2' in [20,24) are pad junk that pool2 never reads.
    w2 = w2_ref[...]
    b2 = b2_ref[...]
    acc = None
    for tap in range(9):
        ky, kx = divmod(tap, 3)
        src = x2s[pl.ds(A0 + (ky - 1) * WP2 + (kx - 1), N2), :]
        t = jnp.dot(src, w2[tap * C1:(tap + 1) * C1, :],
                    preferred_element_type=jnp.float32)
        acc = t if acc is None else acc + t
    y2 = jnp.maximum(acc + b2, 0.0)                       # (480, 32)

    # ---- pool2: vertical + horizontal pair maxes on contiguous slices, then a
    #      per-output-row stride-2 compaction from 8-aligned starts.
    v = jnp.maximum(y2[0:NV], y2[WP2:N2])                 # max over dy  (456, 32)
    m = jnp.maximum(v[0:NM], v[1:NV])                     # max over dx  (455, 32)
    ma2[0:NM, :] = m
    for ph3 in range(H3):
        o_ref[pl.ds(ph3 * W3, W3), :] = ma2[pl.ds(2 * ph3 * WP2, W3, stride=2), :]


def fc_head_kernel(x_ref, w1_ref, b1_ref, w2_ref, b2_ref, o_ref):
    # x: (2B, 3200)  w1: (3200, 128)  b1: (1, 128)  w2: (128, 8)  b2: (1, 8)
    # o: (B, 24) = [e1 | e2 | e1 - e2]   (siamese combine fused in-kernel)
    h = jnp.dot(x_ref[...], w1_ref[...], preferred_element_type=jnp.float32) + b1_ref[...]
    h = jnp.maximum(h, 0.0)
    e = jnp.dot(h, w2_ref[...], preferred_element_type=jnp.float32) + b2_ref[...]
    bsz = o_ref.shape[0]
    e1 = e[:bsz]
    e2 = e[bsz:]
    # three tiny 8-lane stores (negligible per review; lowest-risk lowering)
    o_ref[:, 0:8] = e1
    o_ref[:, 8:16] = e2
    o_ref[:, 16:24] = e1 - e2


# ----------------------------------------------------------------------------- wrappers
def conv_tower(xcol, w1i, b1, w2i, b2):
    nb = xcol.shape[0]
    return pl.pallas_call(
        conv_tower_kernel,
        out_shape=jax.ShapeDtypeStruct((nb, H3 * W3, C2), jnp.float32),
        grid=(nb,),
        in_specs=[
            pl.BlockSpec((None, 4 * NP1, K1P), lambda b: (b, 0, 0)),
            pl.BlockSpec((K1P, C1), lambda b: (0, 0)),
            pl.BlockSpec((1, C1), lambda b: (0, 0)),
            pl.BlockSpec((K2, C2), lambda b: (0, 0)),
            pl.BlockSpec((1, C2), lambda b: (0, 0)),
        ],
        out_specs=pl.BlockSpec((None, H3 * W3, C2), lambda b: (b, 0, 0)),
        scratch_shapes=[
            pltpu.VMEM((SLAB2, C1), jnp.float32),   # conv2 padded input slab
            pltpu.VMEM((NV, C2), jnp.float32),      # pool2 window maxes
        ],
        compiler_params=pltpu.CompilerParams(dimension_semantics=("parallel",)),
    )(xcol, w1i, b1, w2i, b2)


def fc_head(feats, w1p, fc1_b, w2t, fc2_b, out_b):
    return pl.pallas_call(
        fc_head_kernel,
        out_shape=jax.ShapeDtypeStruct((out_b, 24), jnp.float32),
        in_specs=[pl.BlockSpec(memory_space=pltpu.MemorySpace.VMEM)] * 5,
        out_specs=pl.BlockSpec(memory_space=pltpu.MemorySpace.VMEM),
    )(feats, w1p, fc1_b, w2t, fc2_b)


# ----------------------------------------------------------------------------- params
def init_params(key):
    ks = jax.random.split(key, 8)
    return {
        "w1_oihw": jax.random.normal(ks[0], (C1, C_IN, 3, 3), jnp.float32) / np.sqrt(C_IN * 9),
        "b1_vec": jax.random.normal(ks[1], (C1,), jnp.float32) * 0.1,
        "w2_oihw": jax.random.normal(ks[2], (C2, C1, 3, 3), jnp.float32) / np.sqrt(C1 * 9),
        "b2_vec": jax.random.normal(ks[3], (C2,), jnp.float32) * 0.1,
        "fc1_w": jax.random.normal(ks[4], (128, FEAT), jnp.float32) / np.sqrt(FEAT),
        "fc1_b_vec": jax.random.normal(ks[5], (128,), jnp.float32) * 0.1,
        "fc2_w": jax.random.normal(ks[6], (8, 128), jnp.float32) / np.sqrt(128),
        "fc2_b_vec": jax.random.normal(ks[7], (8,), jnp.float32) * 0.1,
    }


def prepare_params(p):
    """One-time re-layout of PyTorch-style params into kernel layouts."""
    # OIHW -> (ky, kx, cin, cout) -> (9*Cin, Cout); conv1 rows zero-padded 54->64.
    w1i = jnp.transpose(p["w1_oihw"], (2, 3, 1, 0)).reshape(K1, C1)
    w1i = jnp.pad(w1i, ((0, K1P - K1), (0, 0)))
    w2i = jnp.transpose(p["w2_oihw"], (2, 3, 1, 0)).reshape(K2, C2)
    b1 = p["b1_vec"].reshape(1, C1)
    b2 = p["b2_vec"].reshape(1, C2)
    # torch flatten order is c*100 + h*10 + w; our feature order is
    # (h*10 + w)*32 + c, so permute fc1 rows once here (free at runtime).
    w1p = jnp.transpose(p["fc1_w"].reshape(128, C2, H3 * W3), (2, 1, 0)).reshape(FEAT, 128)
    fc1_b = p["fc1_b_vec"].reshape(1, 128)
    w2t = p["fc2_w"].T
    fc2_b = p["fc2_b_vec"].reshape(1, 8)
    return {"w1i": w1i, "b1": b1, "w2i": w2i, "b2": b2,
            "w1p": w1p, "fc1_b": fc1_b, "w2t": w2t, "fc2_b": fc2_b}


# ----------------------------------------------------------------------------- forward
def siamese_forward(x1, x2, kp):
    bsz = x1.shape[0]
    n = 2 * bsz
    xs = jnp.concatenate([x1, x2], axis=0)                  # (2B, 6, 40, 40): one tower pass
    x = jnp.transpose(xs, (0, 2, 3, 1))                     # NHWC
    xp = jnp.pad(x, ((0, 0), (1, 1), (1, 1), (0, 0)))       # (2B, 42, 42, 6)
    # conv1 patches (layout plumbing, done by XLA): feature order (ky, kx, cin),
    # row order (dy, dx, ph, pw) so pool1 is a max over 4 contiguous chunks.
    pats = jnp.stack([xp[:, ky:ky + H_IN, kx:kx + W_IN, :]
                      for ky in range(3) for kx in range(3)], axis=3)   # (2B,40,40,9,6)
    pats = pats.reshape(n, H2, 2, W2, 2, K1)                 # (n, ph, dy, pw, dx, 54)
    pats = jnp.transpose(pats, (0, 2, 4, 1, 3, 5))           # (n, dy, dx, ph, pw, 54)
    xcol = jnp.pad(pats.reshape(n, 4 * NP1, K1), ((0, 0), (0, 0), (0, K1P - K1)))

    feats = conv_tower(xcol, kp["w1i"], kp["b1"], kp["w2i"], kp["b2"])  # (2B, 100, 32)
    feats = feats.reshape(n, FEAT)
    return fc_head(feats, kp["w1p"], kp["fc1_b"], kp["w2t"], kp["fc2_b"], bsz)  # (B, 24)


# ----------------------------------------------------------------------------- reference
def ref_forward_one(x, p):
    dn = ("NCHW", "OIHW", "NCHW")
    y = lax.conv_general_dilated(x, p["w1_oihw"], (1, 1), ((1, 1), (1, 1)),
                                 dimension_numbers=dn)
    y = jnp.maximum(y + p["b1_vec"][None, :, None, None], 0.0)
    y = lax.reduce_window(y, -jnp.inf, lax.max, (1, 1, 2, 2), (1, 1, 2, 2), "VALID")
    z = lax.conv_general_dilated(y, p["w2_oihw"], (1, 1), ((1, 1), (1, 1)),
                                 dimension_numbers=dn)
    z = jnp.maximum(z + p["b2_vec"][None, :, None, None], 0.0)
    z = lax.reduce_window(z, -jnp.inf, lax.max, (1, 1, 2, 2), (1, 1, 2, 2), "VALID")
    f = z.reshape(z.shape[0], -1)
    h = jnp.maximum(f @ p["fc1_w"].T + p["fc1_b_vec"], 0.0)
    return h @ p["fc2_w"].T + p["fc2_b_vec"]


def ref_forward(x1, x2, p):
    e1 = ref_forward_one(x1, p)
    e2 = ref_forward_one(x2, p)
    return jnp.concatenate([e1, e2, e1 - e2], axis=1)


# ----------------------------------------------------------------------------- main
if __name__ == "__main__":
    key = jax.random.PRNGKey(0)
    kp_, k1_, k2_ = jax.random.split(key, 3)
    params = init_params(kp_)
    kparams = prepare_params(params)            # weight re-layouts hoisted out of forward

    B = 2
    x1 = jax.random.normal(k1_, (B, 6, 40, 40), jnp.float32)
    x2 = jax.random.normal(k2_, (B, 6, 40, 40), jnp.float32)

    fwd = jax.jit(siamese_forward)
    out = jax.block_until_ready(fwd(x1, x2, kparams))
    assert out.shape == (B, 24), out.shape

    with jax.default_matmul_precision("float32"):
        ref = jax.block_until_ready(jax.jit(ref_forward)(x1, x2, params))

    if not np.allclose(np.asarray(out), np.asarray(ref), rtol=1e-3, atol=1e-3):
        err = float(np.max(np.abs(np.asarray(out) - np.asarray(ref))))
        raise AssertionError(f"Pallas output does not match JAX reference (max abs err {err})")

    print("KERNEL_OK")
</pallas_src>

<mosaic_0001>
module attributes {stable_mosaic.version = 11 : i64} {
  func.func @conv_tower_kernel(%arg0: i32, %arg1: memref<1x1600x64xf32, #tpu.memory_space<vmem>>, %arg2: memref<64x16xf32, #tpu.memory_space<vmem>>, %arg3: memref<1x16xf32, #tpu.memory_space<vmem>>, %arg4: memref<144x32xf32, #tpu.memory_space<vmem>>, %arg5: memref<1x32xf32, #tpu.memory_space<vmem>>, %arg6: memref<1x100x32xf32, #tpu.memory_space<vmem>>, %arg7: memref<544x16xf32, #tpu.memory_space<vmem>>, %arg8: memref<456x32xf32, #tpu.memory_space<vmem>>) attributes {dimension_semantics = [#tpu.dimension_semantics<parallel>], iteration_bounds = array<i64: 4>, scalar_prefetch = 0 : i64, scratch_operands = 2 : i64, tpu.core_type = #tpu.core_type<tc>, window_params = [{transform_indices = @transform_0, window_bounds = array<i64: 1, 1600, 64>}, {pipeline_mode = #tpu.pipeline_mode<synchronous>, transform_indices = @transform_1, window_bounds = array<i64: 64, 16>}, {pipeline_mode = #tpu.pipeline_mode<synchronous>, transform_indices = @transform_2, window_bounds = array<i64: 1, 16>}, {pipeline_mode = #tpu.pipeline_mode<synchronous>, transform_indices = @transform_3, window_bounds = array<i64: 144, 32>}, {pipeline_mode = #tpu.pipeline_mode<synchronous>, transform_indices = @transform_4, window_bounds = array<i64: 1, 32>}, {transform_indices = @transform_5, window_bounds = array<i64: 1, 100, 32>}]} {
    %c0 = arith.constant 0 : index
    %c0_0 = arith.constant 0 : index
    %0 = vector.load %arg2[%c0, %c0_0] : memref<64x16xf32, #tpu.memory_space<vmem>>, vector<64x16xf32>
    %c0_1 = arith.constant 0 : index
    %c0_2 = arith.constant 0 : index
    %1 = vector.load %arg3[%c0_1, %c0_2] : memref<1x16xf32, #tpu.memory_space<vmem>>, vector<1x16xf32>
    %c0_3 = arith.constant 0 : index
    %c0_4 = arith.constant 0 : index
    %c0_5 = arith.constant 0 : index
    %2 = vector.load %arg1[%c0_3, %c0_4, %c0_5] : memref<1x1600x64xf32, #tpu.memory_space<vmem>>, vector<1x400x64xf32>
    %3 = vector.shape_cast %2 : vector<1x400x64xf32> to vector<400x64xf32>
    %cst = arith.constant dense<0.000000e+00> : vector<400x16xf32>
    %4 = tpu.matmul %3, %0, %cst {dimension_numbers = #tpu.dot_dimension_numbers<[1], [0], [0], [1], [0, 0, 1, 1], [], []>} : vector<400x64xf32>, vector<64x16xf32>, vector<400x16xf32> -> vector<400x16xf32>
    %5 = vector.broadcast %1 : vector<1x16xf32> to vector<400x16xf32>
    %6 = arith.addf %4, %5 : vector<400x16xf32>
    %cst_6 = arith.constant 0.000000e+00 : f32
    %7 = vector.broadcast %cst_6 : f32 to vector<400x16xf32>
    %8 = arith.maximumf %6, %7 : vector<400x16xf32>
    %c0_7 = arith.constant 0 : index
    %c400 = arith.constant 400 : index
    %c0_8 = arith.constant 0 : index
    %9 = vector.load %arg1[%c0_7, %c400, %c0_8] : memref<1x1600x64xf32, #tpu.memory_space<vmem>>, vector<1x400x64xf32>
    %10 = vector.shape_cast %9 : vector<1x400x64xf32> to vector<400x64xf32>
    %cst_9 = arith.constant dense<0.000000e+00> : vector<400x16xf32>
    %11 = tpu.matmul %10, %0, %cst_9 {dimension_numbers = #tpu.dot_dimension_numbers<[1], [0], [0], [1], [0, 0, 1, 1], [], []>} : vector<400x64xf32>, vector<64x16xf32>, vector<400x16xf32> -> vector<400x16xf32>
    %12 = vector.broadcast %1 : vector<1x16xf32> to vector<400x16xf32>
    %13 = arith.addf %11, %12 : vector<400x16xf32>
    %cst_10 = arith.constant 0.000000e+00 : f32
    %14 = vector.broadcast %cst_10 : f32 to vector<400x16xf32>
    %15 = arith.maximumf %13, %14 : vector<400x16xf32>
    %16 = arith.maximumf %8, %15 : vector<400x16xf32>
    %c0_11 = arith.constant 0 : index
    %c800 = arith.constant 800 : index
    %c0_12 = arith.constant 0 : index
    %17 = vector.load %arg1[%c0_11, %c800, %c0_12] : memref<1x1600x64xf32, #tpu.memory_space<vmem>>, vector<1x400x64xf32>
    %18 = vector.shape_cast %17 : vector<1x400x64xf32> to vector<400x64xf32>
    %cst_13 = arith.constant dense<0.000000e+00> : vector<400x16xf32>
    %19 = tpu.matmul %18, %0, %cst_13 {dimension_numbers = #tpu.dot_dimension_numbers<[1], [0], [0], [1], [0, 0, 1, 1], [], []>} : vector<400x64xf32>, vector<64x16xf32>, vector<400x16xf32> -> vector<400x16xf32>
    %20 = vector.broadcast %1 : vector<1x16xf32> to vector<400x16xf32>
    %21 = arith.addf %19, %20 : vector<400x16xf32>
    %cst_14 = arith.constant 0.000000e+00 : f32
    %22 = vector.broadcast %cst_14 : f32 to vector<400x16xf32>
    %23 = arith.maximumf %21, %22 : vector<400x16xf32>
    %24 = arith.maximumf %16, %23 : vector<400x16xf32>
    %c0_15 = arith.constant 0 : index
    %c1200 = arith.constant 1200 : index
    %c0_16 = arith.constant 0 : index
    %25 = vector.load %arg1[%c0_15, %c1200, %c0_16] : memref<1x1600x64xf32, #tpu.memory_space<vmem>>, vector<1x400x64xf32>
    %26 = vector.shape_cast %25 : vector<1x400x64xf32> to vector<400x64xf32>
    %cst_17 = arith.constant dense<0.000000e+00> : vector<400x16xf32>
    %27 = tpu.matmul %26, %0, %cst_17 {dimension_numbers = #tpu.dot_dimension_numbers<[1], [0], [0], [1], [0, 0, 1, 1], [], []>} : vector<400x64xf32>, vector<64x16xf32>, vector<400x16xf32> -> vector<400x16xf32>
    %28 = vector.broadcast %1 : vector<1x16xf32> to vector<400x16xf32>
    %29 = arith.addf %27, %28 : vector<400x16xf32>
    %cst_18 = arith.constant 0.000000e+00 : f32
    %30 = vector.broadcast %cst_18 : f32 to vector<400x16xf32>
    %31 = arith.maximumf %29, %30 : vector<400x16xf32>
    %32 = arith.maximumf %24, %31 : vector<400x16xf32>
    %cst_19 = arith.constant 0.000000e+00 : f32
    %33 = vector.broadcast %cst_19 : f32 to vector<544x16xf32>
    %c0_20 = arith.constant 0 : index
    %c0_21 = arith.constant 0 : index
    %34 = vector.load %arg7[%c0_20, %c0_21] : memref<544x16xf32, #tpu.memory_space<vmem>>, vector<544x16xf32>
    tpu.vector_store %arg7[%c0_20, %c0_21], %33 {strides = array<i32>} : memref<544x16xf32, #tpu.memory_space<vmem>>, vector<544x16xf32>,
    %35 = vector.extract_strided_slice %32 {offsets = [0, 0], sizes = [20, 16], strides = [1, 1]} : vector<400x16xf32> to vector<20x16xf32>
    %c32 = arith.constant 32 : index
    %c0_22 = arith.constant 0 : index
    %36 = vector.load %arg7[%c32, %c0_22] : memref<544x16xf32, #tpu.memory_space<vmem>>, vector<20x16xf32>
    tpu.vector_store %arg7[%c32, %c0_22], %35 {strides = array<i32>} : memref<544x16xf32, #tpu.memory_space<vmem>>, vector<20x16xf32>,
    %37 = vector.extract_strided_slice %32 {offsets = [20, 0], sizes = [20, 16], strides = [1, 1]} : vector<400x16xf32> to vector<20x16xf32>
    %c56 = arith.constant 56 : index
    %c0_23 = arith.constant 0 : index
    %38 = vector.load %arg7[%c56, %c0_23] : memref<544x16xf32, #tpu.memory_space<vmem>>, vector<20x16xf32>
    tpu.vector_store %arg7[%c56, %c0_23], %37 {strides = array<i32>} : memref<544x16xf32, #tpu.memory_space<vmem>>, vector<20x16xf32>,
    %39 = vector.extract_strided_slice %32 {offsets = [40, 0], sizes = [20, 16], strides = [1, 1]} : vector<400x16xf32> to vector<20x16xf32>
    %c80 = arith.constant 80 : index
    %c0_24 = arith.constant 0 : index
    %40 = vector.load %arg7[%c80, %c0_24] : memref<544x16xf32, #tpu.memory_space<vmem>>, vector<20x16xf32>
    tpu.vector_store %arg7[%c80, %c0_24], %39 {strides = array<i32>} : memref<544x16xf32, #tpu.memory_space<vmem>>, vector<20x16xf32>,
    %41 = vector.extract_strided_slice %32 {offsets = [60, 0], sizes = [20, 16], strides = [1, 1]} : vector<400x16xf32> to vector<20x16xf32>
    %c104 = arith.constant 104 : index
    %c0_25 = arith.constant 0 : index
    %42 = vector.load %arg7[%c104, %c0_25] : memref<544x16xf32, #tpu.memory_space<vmem>>, vector<20x16xf32>
    tpu.vector_store %arg7[%c104, %c0_25], %41 {strides = array<i32>} : memref<544x16xf32, #tpu.memory_space<vmem>>, vector<20x16xf32>,
    %43 = vector.extract_strided_slice %32 {offsets = [80, 0], sizes = [20, 16], strides = [1, 1]} : vector<400x16xf32> to vector<20x16xf32>
    %c128 = arith.constant 128 : index
    %c0_26 = arith.constant 0 : index
    %44 = vector.load %arg7[%c128, %c0_26] : memref<544x16xf32, #tpu.memory_space<vmem>>, vector<20x16xf32>
    tpu.vector_store %arg7[%c128, %c0_26], %43 {strides = array<i32>} : memref<544x16xf32, #tpu.memory_space<vmem>>, vector<20x16xf32>,
    %45 = vector.extract_strided_slice %32 {offsets = [100, 0], sizes = [20, 16], strides = [1, 1]} : vector<400x16xf32> to vector<20x16xf32>
    %c152 = arith.constant 152 : index
    %c0_27 = arith.constant 0 : index
    %46 = vector.load %arg7[%c152, %c0_27] : memref<544x16xf32, #tpu.memory_space<vmem>>, vector<20x16xf32>
    tpu.vector_store %arg7[%c152, %c0_27], %45 {strides = array<i32>} : memref<544x16xf32, #tpu.memory_space<vmem>>, vector<20x16xf32>,
    %47 = vector.extract_strided_slice %32 {offsets = [120, 0], sizes = [20, 16], strides = [1, 1]} : vector<400x16xf32> to vector<20x16xf32>
    %c176 = arith.constant 176 : index
    %c0_28 = arith.constant 0 : index
    %48 = vector.load %arg7[%c176, %c0_28] : memref<544x16xf32, #tpu.memory_space<vmem>>, vector<20x16xf32>
    tpu.vector_store %arg7[%c176, %c0_28], %47 {strides = array<i32>} : memref<544x16xf32, #tpu.memory_space<vmem>>, vector<20x16xf32>,
    %49 = vector.extract_strided_slice %32 {offsets = [140, 0], sizes = [20, 16], strides = [1, 1]} : vector<400x16xf32> to vector<20x16xf32>
    %c200 = arith.constant 200 : index
    %c0_29 = arith.constant 0 : index
    %50 = vector.load %arg7[%c200, %c0_29] : memref<544x16xf32, #tpu.memory_space<vmem>>, vector<20x16xf32>
    tpu.vector_store %arg7[%c200, %c0_29], %49 {strides = array<i32>} : memref<544x16xf32, #tpu.memory_space<vmem>>, vector<20x16xf32>,
    %51 = vector.extract_strided_slice %32 {offsets = [160, 0], sizes = [20, 16], strides = [1, 1]} : vector<400x16xf32> to vector<20x16xf32>
    %c224 = arith.constant 224 : index
    %c0_30 = arith.constant 0 : index
    %52 = vector.load %arg7[%c224, %c0_30] : memref<544x16xf32, #tpu.memory_space<vmem>>, vector<20x16xf32>
    tpu.vector_store %arg7[%c224, %c0_30], %51 {strides = array<i32>} : memref<544x16xf32, #tpu.memory_space<vmem>>, vector<20x16xf32>,
    %53 = vector.extract_strided_slice %32 {offsets = [180, 0], sizes = [20, 16], strides = [1, 1]} : vector<400x16xf32> to vector<20x16xf32>
    %c248 = arith.constant 248 : index
    %c0_31 = arith.constant 0 : index
    %54 = vector.load %arg7[%c248, %c0_31] : memref<544x16xf32, #tpu.memory_space<vmem>>, vector<20x16xf32>
    tpu.vector_store %arg7[%c248, %c0_31], %53 {strides = array<i32>} : memref<544x16xf32, #tpu.memory_space<vmem>>, vector<20x16xf32>,
    %55 = vector.extract_strided_slice %32 {offsets = [200, 0], sizes = [20, 16], strides = [1, 1]} : vector<400x16xf32> to vector<20x16xf32>
    %c272 = arith.constant 272 : index
    %c0_32 = arith.constant 0 : index
    %56 = vector.load %arg7[%c272, %c0_32] : memref<544x16xf32, #tpu.memory_space<vmem>>, vector<20x16xf32>
    tpu.vector_store %arg7[%c272, %c0_32], %55 {strides = array<i32>} : memref<544x16xf32, #tpu.memory_space<vmem>>, vector<20x16xf32>,
    %57 = vector.extract_strided_slice %32 {offsets = [220, 0], sizes = [20, 16], strides = [1, 1]} : vector<400x16xf32> to vector<20x16xf32>
    %c296 = arith.constant 296 : index
    %c0_33 = arith.constant 0 : index
    %58 = vector.load %arg7[%c296, %c0_33] : memref<544x16xf32, #tpu.memory_space<vmem>>, vector<20x16xf32>
    tpu.vector_store %arg7[%c296, %c0_33], %57 {strides = array<i32>} : memref<544x16xf32, #tpu.memory_space<vmem>>, vector<20x16xf32>,
    %59 = vector.extract_strided_slice %32 {offsets = [240, 0], sizes = [20, 16], strides = [1, 1]} : vector<400x16xf32> to vector<20x16xf32>
    %c320 = arith.constant 320 : index
    %c0_34 = arith.constant 0 : index
    %60 = vector.load %arg7[%c320, %c0_34] : memref<544x16xf32, #tpu.memory_space<vmem>>, vector<20x16xf32>
    tpu.vector_store %arg7[%c320, %c0_34], %59 {strides = array<i32>} : memref<544x16xf32, #tpu.memory_space<vmem>>, vector<20x16xf32>,
    %61 = vector.extract_strided_slice %32 {offsets = [260, 0], sizes = [20, 16], strides = [1, 1]} : vector<400x16xf32> to vector<20x16xf32>
    %c344 = arith.constant 344 : index
    %c0_35 = arith.constant 0 : index
    %62 = vector.load %arg7[%c344, %c0_35] : memref<544x16xf32, #tpu.memory_space<vmem>>, vector<20x16xf32>
    tpu.vector_store %arg7[%c344, %c0_35], %61 {strides = array<i32>} : memref<544x16xf32, #tpu.memory_space<vmem>>, vector<20x16xf32>,
    %63 = vector.extract_strided_slice %32 {offsets = [280, 0], sizes = [20, 16], strides = [1, 1]} : vector<400x16xf32> to vector<20x16xf32>
    %c368 = arith.constant 368 : index
    %c0_36 = arith.constant 0 : index
    %64 = vector.load %arg7[%c368, %c0_36] : memref<544x16xf32, #tpu.memory_space<vmem>>, vector<20x16xf32>
    tpu.vector_store %arg7[%c368, %c0_36], %63 {strides = array<i32>} : memref<544x16xf32, #tpu.memory_space<vmem>>, vector<20x16xf32>,
    %65 = vector.extract_strided_slice %32 {offsets = [300, 0], sizes = [20, 16], strides = [1, 1]} : vector<400x16xf32> to vector<20x16xf32>
    %c392 = arith.constant 392 : index
    %c0_37 = arith.constant 0 : index
    %66 = vector.load %arg7[%c392, %c0_37] : memref<544x16xf32, #tpu.memory_space<vmem>>, vector<20x16xf32>
    tpu.vector_store %arg7[%c392, %c0_37], %65 {strides = array<i32>} : memref<544x16xf32, #tpu.memory_space<vmem>>, vector<20x16xf32>,
    %67 = vector.extract_strided_slice %32 {offsets = [320, 0], sizes = [20, 16], strides = [1, 1]} : vector<400x16xf32> to vector<20x16xf32>
    %c416 = arith.constant 416 : index
    %c0_38 = arith.constant 0 : index
    %68 = vector.load %arg7[%c416, %c0_38] : memref<544x16xf32, #tpu.memory_space<vmem>>, vector<20x16xf32>
    tpu.vector_store %arg7[%c416, %c0_38], %67 {strides = array<i32>} : memref<544x16xf32, #tpu.memory_space<vmem>>, vector<20x16xf32>,
    %69 = vector.extract_strided_slice %32 {offsets = [340, 0], sizes = [20, 16], strides = [1, 1]} : vector<400x16xf32> to vector<20x16xf32>
    %c440 = arith.constant 440 : index
    %c0_39 = arith.constant 0 : index
    %70 = vector.load %arg7[%c440, %c0_39] : memref<544x16xf32, #tpu.memory_space<vmem>>, vector<20x16xf32>
    tpu.vector_store %arg7[%c440, %c0_39], %69 {strides = array<i32>} : memref<544x16xf32, #tpu.memory_space<vmem>>, vector<20x16xf32>,
    %71 = vector.extract_strided_slice %32 {offsets = [360, 0], sizes = [20, 16], strides = [1, 1]} : vector<400x16xf32> to vector<20x16xf32>
    %c464 = arith.constant 464 : index
    %c0_40 = arith.constant 0 : index
    %72 = vector.load %arg7[%c464, %c0_40] : memref<544x16xf32, #tpu.memory_space<vmem>>, vector<20x16xf32>
    tpu.vector_store %arg7[%c464, %c0_40], %71 {strides = array<i32>} : memref<544x16xf32, #tpu.memory_space<vmem>>, vector<20x16xf32>,
    %73 = vector.extract_strided_slice %32 {offsets = [380, 0], sizes = [20, 16], strides = [1, 1]} : vector<400x16xf32> to vector<20x16xf32>
    %c488 = arith.constant 488 : index
    %c0_41 = arith.constant 0 : index
    %74 = vector.load %arg7[%c488, %c0_41] : memref<544x16xf32, #tpu.memory_space<vmem>>, vector<20x16xf32>
    tpu.vector_store %arg7[%c488, %c0_41], %73 {strides = array<i32>} : memref<544x16xf32, #tpu.memory_space<vmem>>, vector<20x16xf32>,
    %c0_42 = arith.constant 0 : index
    %c0_43 = arith.constant 0 : index
    %75 = vector.load %arg4[%c0_42, %c0_43] : memref<144x32xf32, #tpu.memory_space<vmem>>, vector<144x32xf32>
    %c0_44 = arith.constant 0 : index
    %c0_45 = arith.constant 0 : index
    %76 = vector.load %arg5[%c0_44, %c0_45] : memref<1x32xf32, #tpu.memory_space<vmem>>, vector<1x32xf32>
    %c7 = arith.constant 7 : index
    %c0_46 = arith.constant 0 : index
    %77 = vector.load %arg7[%c7, %c0_46] : memref<544x16xf32, #tpu.memory_space<vmem>>, vector<480x16xf32>
    %78 = vector.extract_strided_slice %75 {offsets = [0, 0], sizes = [16, 32], strides = [1, 1]} : vector<144x32xf32> to vector<16x32xf32>
    %cst_47 = arith.constant dense<0.000000e+00> : vector<480x32xf32>
    %79 = tpu.matmul %77, %78, %cst_47 {dimension_numbers = #tpu.dot_dimension_numbers<[1], [0], [0], [1], [0, 0, 1, 1], [], []>} : vector<480x16xf32>, vector<16x32xf32>, vector<480x32xf32> -> vector<480x32xf32>
    %c8 = arith.constant 8 : index
    %c0_48 = arith.constant 0 : index
    %80 = vector.load %arg7[%c8, %c0_48] : memref<544x16xf32, #tpu.memory_space<vmem>>, vector<480x16xf32>
    %81 = vector.extract_strided_slice %75 {offsets = [16, 0], sizes = [16, 32], strides = [1, 1]} : vector<144x32xf32> to vector<16x32xf32>
    %cst_49 = arith.constant dense<0.000000e+00> : vector<480x32xf32>
    %82 = tpu.matmul %80, %81, %cst_49 {dimension_numbers = #tpu.dot_dimension_numbers<[1], [0], [0], [1], [0, 0, 1, 1], [], []>} : vector<480x16xf32>, vector<16x32xf32>, vector<480x32xf32> -> vector<480x32xf32>
    %83 = arith.addf %79, %82 : vector<480x32xf32>
    %c9 = arith.constant 9 : index
    %c0_50 = arith.constant 0 : index
    %84 = vector.load %arg7[%c9, %c0_50] : memref<544x16xf32, #tpu.memory_space<vmem>>, vector<480x16xf32>
    %85 = vector.extract_strided_slice %75 {offsets = [32, 0], sizes = [16, 32], strides = [1, 1]} : vector<144x32xf32> to vector<16x32xf32>
    %cst_51 = arith.constant dense<0.000000e+00> : vector<480x32xf32>
    %86 = tpu.matmul %84, %85, %cst_51 {dimension_numbers = #tpu.dot_dimension_numbers<[1], [0], [0], [1], [0, 0, 1, 1], [], []>} : vector<480x16xf32>, vector<16x32xf32>, vector<480x32xf32> -> vector<480x32xf32>
    %87 = arith.addf %83, %86 : vector<480x32xf32>
    %c31 = arith.constant 31 : index
    %c0_52 = arith.constant 0 : index
    %88 = vector.load %arg7[%c31, %c0_52] : memref<544x16xf32, #tpu.memory_space<vmem>>, vector<480x16xf32>
    %89 = vector.extract_strided_slice %75 {offsets = [48, 0], sizes = [16, 32], strides = [1, 1]} : vector<144x32xf32> to vector<16x32xf32>
    %cst_53 = arith.constant dense<0.000000e+00> : vector<480x32xf32>
    %90 = tpu.matmul %88, %89, %cst_53 {dimension_numbers = #tpu.dot_dimension_numbers<[1], [0], [0], [1], [0, 0, 1, 1], [], []>} : vector<480x16xf32>, vector<16x32xf32>, vector<480x32xf32> -> vector<480x32xf32>
    %91 = arith.addf %87, %90 : vector<480x32xf32>
    %c32_54 = arith.constant 32 : index
    %c0_55 = arith.constant 0 : index
    %92 = vector.load %arg7[%c32_54, %c0_55] : memref<544x16xf32, #tpu.memory_space<vmem>>, vector<480x16xf32>
    %93 = vector.extract_strided_slice %75 {offsets = [64, 0], sizes = [16, 32], strides = [1, 1]} : vector<144x32xf32> to vector<16x32xf32>
    %cst_56 = arith.constant dense<0.000000e+00> : vector<480x32xf32>
    %94 = tpu.matmul %92, %93, %cst_56 {dimension_numbers = #tpu.dot_dimension_numbers<[1], [0], [0], [1], [0, 0, 1, 1], [], []>} : vector<480x16xf32>, vector<16x32xf32>, vector<480x32xf32> -> vector<480x32xf32>
    %95 = arith.addf %91, %94 : vector<480x32xf32>
    %c33 = arith.constant 33 : index
    %c0_57 = arith.constant 0 : index
    %96 = vector.load %arg7[%c33, %c0_57] : memref<544x16xf32, #tpu.memory_space<vmem>>, vector<480x16xf32>
    %97 = vector.extract_strided_slice %75 {offsets = [80, 0], sizes = [16, 32], strides = [1, 1]} : vector<144x32xf32> to vector<16x32xf32>
    %cst_58 = arith.constant dense<0.000000e+00> : vector<480x32xf32>
    %98 = tpu.matmul %96, %97, %cst_58 {dimension_numbers = #tpu.dot_dimension_numbers<[1], [0], [0], [1], [0, 0, 1, 1], [], []>} : vector<480x16xf32>, vector<16x32xf32>, vector<480x32xf32> -> vector<480x32xf32>
    %99 = arith.addf %95, %98 : vector<480x32xf32>
    %c55 = arith.constant 55 : index
    %c0_59 = arith.constant 0 : index
    %100 = vector.load %arg7[%c55, %c0_59] : memref<544x16xf32, #tpu.memory_space<vmem>>, vector<480x16xf32>
    %101 = vector.extract_strided_slice %75 {offsets = [96, 0], sizes = [16, 32], strides = [1, 1]} : vector<144x32xf32> to vector<16x32xf32>
    %cst_60 = arith.constant dense<0.000000e+00> : vector<480x32xf32>
    %102 = tpu.matmul %100, %101, %cst_60 {dimension_numbers = #tpu.dot_dimension_numbers<[1], [0], [0], [1], [0, 0, 1, 1], [], []>} : vector<480x16xf32>, vector<16x32xf32>, vector<480x32xf32> -> vector<480x32xf32>
    %103 = arith.addf %99, %102 : vector<480x32xf32>
    %c56_61 = arith.constant 56 : index
    %c0_62 = arith.constant 0 : index
    %104 = vector.load %arg7[%c56_61, %c0_62] : memref<544x16xf32, #tpu.memory_space<vmem>>, vector<480x16xf32>
    %105 = vector.extract_strided_slice %75 {offsets = [112, 0], sizes = [16, 32], strides = [1, 1]} : vector<144x32xf32> to vector<16x32xf32>
    %cst_63 = arith.constant dense<0.000000e+00> : vector<480x32xf32>
    %106 = tpu.matmul %104, %105, %cst_63 {dimension_numbers = #tpu.dot_dimension_numbers<[1], [0], [0], [1], [0, 0, 1, 1], [], []>} : vector<480x16xf32>, vector<16x32xf32>, vector<480x32xf32> -> vector<480x32xf32>
    %107 = arith.addf %103, %106 : vector<480x32xf32>
    %c57 = arith.constant 57 : index
    %c0_64 = arith.constant 0 : index
    %108 = vector.load %arg7[%c57, %c0_64] : memref<544x16xf32, #tpu.memory_space<vmem>>, vector<480x16xf32>
    %109 = vector.extract_strided_slice %75 {offsets = [128, 0], sizes = [16, 32], strides = [1, 1]} : vector<144x32xf32> to vector<16x32xf32>
    %cst_65 = arith.constant dense<0.000000e+00> : vector<480x32xf32>
    %110 = tpu.matmul %108, %109, %cst_65 {dimension_numbers = #tpu.dot_dimension_numbers<[1], [0], [0], [1], [0, 0, 1, 1], [], []>} : vector<480x16xf32>, vector<16x32xf32>, vector<480x32xf32> -> vector<480x32xf32>
    %111 = arith.addf %107, %110 : vector<480x32xf32>
    %112 = vector.broadcast %76 : vector<1x32xf32> to vector<480x32xf32>
    %113 = arith.addf %111, %112 : vector<480x32xf32>
    %cst_66 = arith.constant 0.000000e+00 : f32
    %114 = vector.broadcast %cst_66 : f32 to vector<480x32xf32>
    %115 = arith.maximumf %113, %114 : vector<480x32xf32>
    %116 = vector.extract_strided_slice %115 {offsets = [0, 0], sizes = [456, 32], strides = [1, 1]} : vector<480x32xf32> to vector<456x32xf32>
    %117 = vector.extract_strided_slice %115 {offsets = [24, 0], sizes = [456, 32], strides = [1, 1]} : vector<480x32xf32> to vector<456x32xf32>
    %118 = arith.maximumf %116, %117 : vector<456x32xf32>
    %119 = vector.extract_strided_slice %118 {offsets = [0, 0], sizes = [455, 32], strides = [1, 1]} : vector<456x32xf32> to vector<455x32xf32>
    %120 = vector.extract_strided_slice %118 {offsets = [1, 0], sizes = [455, 32], strides = [1, 1]} : vector<456x32xf32> to vector<455x32xf32>
    %121 = arith.maximumf %119, %120 : vector<455x32xf32>
    %c0_67 = arith.constant 0 : index
    %c0_68 = arith.constant 0 : index
    %122 = vector.load %arg8[%c0_67, %c0_68] : memref<456x32xf32, #tpu.memory_space<vmem>>, vector<455x32xf32>
    tpu.vector_store %arg8[%c0_67, %c0_68], %121 {strides = array<i32>} : memref<456x32xf32, #tpu.memory_space<vmem>>, vector<455x32xf32>,
    %c0_69 = arith.constant 0 : index
    %c0_70 = arith.constant 0 : index
    %123 = tpu.strided_load %arg8[%c0_69, %c0_70] {strides = array<i32: 2, 1>} : memref<456x32xf32, #tpu.memory_space<vmem>>, vector<10x32xf32>
    %c0_71 = arith.constant 0 : index
    %c0_72 = arith.constant 0 : index
    %c0_73 = arith.constant 0 : index
    %124 = vector.load %arg6[%c0_71, %c0_72, %c0_73] : memref<1x100x32xf32, #tpu.memory_space<vmem>>, vector<1x10x32xf32>
    %125 = vector.shape_cast %124 : vector<1x10x32xf32> to vector<10x32xf32>
    %126 = vector.shape_cast %123 : vector<10x32xf32> to vector<1x10x32xf32>
    tpu.vector_store %arg6[%c0_71, %c0_72, %c0_73], %126 {strides = array<i32>} : memref<1x100x32xf32, #tpu.memory_space<vmem>>, vector<1x10x32xf32>,
    %c48 = arith.constant 48 : index
    %c0_74 = arith.constant 0 : index
    %127 = tpu.strided_load %arg8[%c48, %c0_74] {strides = array<i32: 2, 1>} : memref<456x32xf32, #tpu.memory_space<vmem>>, vector<10x32xf32>
    %c0_75 = arith.constant 0 : index
    %c10 = arith.constant 10 : index
    %c0_76 = arith.constant 0 : index
    %128 = vector.load %arg6[%c0_75, %c10, %c0_76] : memref<1x100x32xf32, #tpu.memory_space<vmem>>, vector<1x10x32xf32>
    %129 = vector.shape_cast %128 : vector<1x10x32xf32> to vector<10x32xf32>
    %130 = vector.shape_cast %127 : vector<10x32xf32> to vector<1x10x32xf32>
    tpu.vector_store %arg6[%c0_75, %c10, %c0_76], %130 {strides = array<i32>} : memref<1x100x32xf32, #tpu.memory_space<vmem>>, vector<1x10x32xf32>,
    %c96 = arith.constant 96 : index
    %c0_77 = arith.constant 0 : index
    %131 = tpu.strided_load %arg8[%c96, %c0_77] {strides = array<i32: 2, 1>} : memref<456x32xf32, #tpu.memory_space<vmem>>, vector<10x32xf32>
    %c0_78 = arith.constant 0 : index
    %c20 = arith.constant 20 : index
    %c0_79 = arith.constant 0 : index
    %132 = vector.load %arg6[%c0_78, %c20, %c0_79] : memref<1x100x32xf32, #tpu.memory_space<vmem>>, vector<1x10x32xf32>
    %133 = vector.shape_cast %132 : vector<1x10x32xf32> to vector<10x32xf32>
    %134 = vector.shape_cast %131 : vector<10x32xf32> to vector<1x10x32xf32>
    tpu.vector_store %arg6[%c0_78, %c20, %c0_79], %134 {strides = array<i32>} : memref<1x100x32xf32, #tpu.memory_space<vmem>>, vector<1x10x32xf32>,
    %c144 = arith.constant 144 : index
    %c0_80 = arith.constant 0 : index
    %135 = tpu.strided_load %arg8[%c144, %c0_80] {strides = array<i32: 2, 1>} : memref<456x32xf32, #tpu.memory_space<vmem>>, vector<10x32xf32>
    %c0_81 = arith.constant 0 : index
    %c30 = arith.constant 30 : index
    %c0_82 = arith.constant 0 : index
    %136 = vector.load %arg6[%c0_81, %c30, %c0_82] : memref<1x100x32xf32, #tpu.memory_space<vmem>>, vector<1x10x32xf32>
    %137 = vector.shape_cast %136 : vector<1x10x32xf32> to vector<10x32xf32>
    %138 = vector.shape_cast %135 : vector<10x32xf32> to vector<1x10x32xf32>
    tpu.vector_store %arg6[%c0_81, %c30, %c0_82], %138 {strides = array<i32>} : memref<1x100x32xf32, #tpu.memory_space<vmem>>, vector<1x10x32xf32>,
    %c192 = arith.constant 192 : index
    %c0_83 = arith.constant 0 : index
    %139 = tpu.strided_load %arg8[%c192, %c0_83] {strides = array<i32: 2, 1>} : memref<456x32xf32, #tpu.memory_space<vmem>>, vector<10x32xf32>
    %c0_84 = arith.constant 0 : index
    %c40 = arith.constant 40 : index
    %c0_85 = arith.constant 0 : index
    %140 = vector.load %arg6[%c0_84, %c40, %c0_85] : memref<1x100x32xf32, #tpu.memory_space<vmem>>, vector<1x10x32xf32>
    %141 = vector.shape_cast %140 : vector<1x10x32xf32> to vector<10x32xf32>
    %142 = vector.shape_cast %139 : vector<10x32xf32> to vector<1x10x32xf32>
    tpu.vector_store %arg6[%c0_84, %c40, %c0_85], %142 {strides = array<i32>} : memref<1x100x32xf32, #tpu.memory_space<vmem>>, vector<1x10x32xf32>,
    %c240 = arith.constant 240 : index
    %c0_86 = arith.constant 0 : index
    %143 = tpu.strided_load %arg8[%c240, %c0_86] {strides = array<i32: 2, 1>} : memref<456x32xf32, #tpu.memory_space<vmem>>, vector<10x32xf32>
    %c0_87 = arith.constant 0 : index
    %c50 = arith.constant 50 : index
    %c0_88 = arith.constant 0 : index
    %144 = vector.load %arg6[%c0_87, %c50, %c0_88] : memref<1x100x32xf32, #tpu.memory_space<vmem>>, vector<1x10x32xf32>
    %145 = vector.shape_cast %144 : vector<1x10x32xf32> to vector<10x32xf32>
    %146 = vector.shape_cast %143 : vector<10x32xf32> to vector<1x10x32xf32>
    tpu.vector_store %arg6[%c0_87, %c50, %c0_88], %146 {strides = array<i32>} : memref<1x100x32xf32, #tpu.memory_space<vmem>>, vector<1x10x32xf32>,
    %c288 = arith.constant 288 : index
    %c0_89 = arith.constant 0 : index
    %147 = tpu.strided_load %arg8[%c288, %c0_89] {strides = array<i32: 2, 1>} : memref<456x32xf32, #tpu.memory_space<vmem>>, vector<10x32xf32>
    %c0_90 = arith.constant 0 : index
    %c60 = arith.constant 60 : index
    %c0_91 = arith.constant 0 : index
    %148 = vector.load %arg6[%c0_90, %c60, %c0_91] : memref<1x100x32xf32, #tpu.memory_space<vmem>>, vector<1x10x32xf32>
    %149 = vector.shape_cast %148 : vector<1x10x32xf32> to vector<10x32xf32>
    %150 = vector.shape_cast %147 : vector<10x32xf32> to vector<1x10x32xf32>
    tpu.vector_store %arg6[%c0_90, %c60, %c0_91], %150 {strides = array<i32>} : memref<1x100x32xf32, #tpu.memory_space<vmem>>, vector<1x10x32xf32>,
    %c336 = arith.constant 336 : index
    %c0_92 = arith.constant 0 : index
    %151 = tpu.strided_load %arg8[%c336, %c0_92] {strides = array<i32: 2, 1>} : memref<456x32xf32, #tpu.memory_space<vmem>>, vector<10x32xf32>
    %c0_93 = arith.constant 0 : index
    %c70 = arith.constant 70 : index
    %c0_94 = arith.constant 0 : index
    %152 = vector.load %arg6[%c0_93, %c70, %c0_94] : memref<1x100x32xf32, #tpu.memory_space<vmem>>, vector<1x10x32xf32>
    %153 = vector.shape_cast %152 : vector<1x10x32xf32> to vector<10x32xf32>
    %154 = vector.shape_cast %151 : vector<10x32xf32> to vector<1x10x32xf32>
    tpu.vector_store %arg6[%c0_93, %c70, %c0_94], %154 {strides = array<i32>} : memref<1x100x32xf32, #tpu.memory_space<vmem>>, vector<1x10x32xf32>,
    %c384 = arith.constant 384 : index
    %c0_95 = arith.constant 0 : index
    %155 = tpu.strided_load %arg8[%c384, %c0_95] {strides = array<i32: 2, 1>} : memref<456x32xf32, #tpu.memory_space<vmem>>, vector<10x32xf32>
    %c0_96 = arith.constant 0 : index
    %c80_97 = arith.constant 80 : index
    %c0_98 = arith.constant 0 : index
    %156 = vector.load %arg6[%c0_96, %c80_97, %c0_98] : memref<1x100x32xf32, #tpu.memory_space<vmem>>, vector<1x10x32xf32>
    %157 = vector.shape_cast %156 : vector<1x10x32xf32> to vector<10x32xf32>
    %158 = vector.shape_cast %155 : vector<10x32xf32> to vector<1x10x32xf32>
    tpu.vector_store %arg6[%c0_96, %c80_97, %c0_98], %158 {strides = array<i32>} : memref<1x100x32xf32, #tpu.memory_space<vmem>>, vector<1x10x32xf32>,
    %c432 = arith.constant 432 : index
    %c0_99 = arith.constant 0 : index
    %159 = tpu.strided_load %arg8[%c432, %c0_99] {strides = array<i32: 2, 1>} : memref<456x32xf32, #tpu.memory_space<vmem>>, vector<10x32xf32>
    %c0_100 = arith.constant 0 : index
    %c90 = arith.constant 90 : index
    %c0_101 = arith.constant 0 : index
    %160 = vector.load %arg6[%c0_100, %c90, %c0_101] : memref<1x100x32xf32, #tpu.memory_space<vmem>>, vector<1x10x32xf32>
    %161 = vector.shape_cast %160 : vector<1x10x32xf32> to vector<10x32xf32>
    %162 = vector.shape_cast %159 : vector<10x32xf32> to vector<1x10x32xf32>
    tpu.vector_store %arg6[%c0_100, %c90, %c0_101], %162 {strides = array<i32>} : memref<1x100x32xf32, #tpu.memory_space<vmem>>, vector<1x10x32xf32>,
    return
  }
  func.func @transform_0(%arg0: i32) -> (i32, i32, i32) {
    %c0_i32 = arith.constant 0 : i32
    %c0_i32_0 = arith.constant 0 : i32
    %c0_i32_1 = arith.constant 0 : i32
    return %arg0, %c0_i32, %c0_i32_0 : i32, i32, i32
  }
  func.func @transform_1(%arg0: i32) -> (i32, i32) {
    %c0_i32 = arith.constant 0 : i32
    %c0_i32_0 = arith.constant 0 : i32
    %c0_i32_1 = arith.constant 0 : i32
    return %c0_i32, %c0_i32_0 : i32, i32
  }
  func.func @transform_2(%arg0: i32) -> (i32, i32) {
    %c0_i32 = arith.constant 0 : i32
    %c0_i32_0 = arith.constant 0 : i32
    %c0_i32_1 = arith.constant 0 : i32
    return %c0_i32, %c0_i32_0 : i32, i32
  }
  func.func @transform_3(%arg0: i32) -> (i32, i32) {
    %c0_i32 = arith.constant 0 : i32
    %c0_i32_0 = arith.constant 0 : i32
    %c0_i32_1 = arith.constant 0 : i32
    return %c0_i32, %c0_i32_0 : i32, i32
  }
  func.func @transform_4(%arg0: i32) -> (i32, i32) {
    %c0_i32 = arith.constant 0 : i32
    %c0_i32_0 = arith.constant 0 : i32
    %c0_i32_1 = arith.constant 0 : i32
    return %c0_i32, %c0_i32_0 : i32, i32
  }
  func.func @transform_5(%arg0: i32) -> (i32, i32, i32) {
    %c0_i32 = arith.constant 0 : i32
    %c0_i32_0 = arith.constant 0 : i32
    %c0_i32_1 = arith.constant 0 : i32
    return %arg0, %c0_i32, %c0_i32_0 : i32, i32, i32
  }
}

module attributes {stable_mosaic.version = 11 : i64} {
  func.func @fc_head_kernel(%arg0: memref<4x3200xf32, #tpu.memory_space<vmem>>, %arg1: memref<3200x128xf32, #tpu.memory_space<vmem>>, %arg2: memref<1x128xf32, #tpu.memory_space<vmem>>, %arg3: memref<128x8xf32, #tpu.memory_space<vmem>>, %arg4: memref<1x8xf32, #tpu.memory_space<vmem>>, %arg5: memref<2x24xf32, #tpu.memory_space<vmem>>) attributes {dimension_semantics = [], scalar_prefetch = 0 : i64, scratch_operands = 0 : i64, tpu.core_type = #tpu.core_type<tc>} {
    %c0 = arith.constant 0 : index
    %c0_0 = arith.constant 0 : index
    %0 = vector.load %arg0[%c0, %c0_0] : memref<4x3200xf32, #tpu.memory_space<vmem>>, vector<4x3200xf32>
    %c0_1 = arith.constant 0 : index
    %c0_2 = arith.constant 0 : index
    %1 = vector.load %arg1[%c0_1, %c0_2] : memref<3200x128xf32, #tpu.memory_space<vmem>>, vector<3200x128xf32>
    %cst = arith.constant dense<0.000000e+00> : vector<4x128xf32>
    %2 = tpu.matmul %0, %1, %cst {dimension_numbers = #tpu.dot_dimension_numbers<[1], [0], [0], [1], [0, 0, 1, 1], [], []>} : vector<4x3200xf32>, vector<3200x128xf32>, vector<4x128xf32> -> vector<4x128xf32>
    %c0_3 = arith.constant 0 : index
    %c0_4 = arith.constant 0 : index
    %3 = vector.load %arg2[%c0_3, %c0_4] : memref<1x128xf32, #tpu.memory_space<vmem>>, vector<1x128xf32>
    %4 = vector.broadcast %3 : vector<1x128xf32> to vector<4x128xf32>
    %5 = arith.addf %2, %4 : vector<4x128xf32>
    %cst_5 = arith.constant 0.000000e+00 : f32
    %6 = vector.broadcast %cst_5 : f32 to vector<4x128xf32>
    %7 = arith.maximumf %5, %6 : vector<4x128xf32>
    %c0_6 = arith.constant 0 : index
    %c0_7 = arith.constant 0 : index
    %8 = vector.load %arg3[%c0_6, %c0_7] : memref<128x8xf32, #tpu.memory_space<vmem>>, vector<128x8xf32>
    %cst_8 = arith.constant dense<0.000000e+00> : vector<4x8xf32>
    %9 = tpu.matmul %7, %8, %cst_8 {dimension_numbers = #tpu.dot_dimension_numbers<[1], [0], [0], [1], [0, 0, 1, 1], [], []>} : vector<4x128xf32>, vector<128x8xf32>, vector<4x8xf32> -> vector<4x8xf32>
    %c0_9 = arith.constant 0 : index
    %c0_10 = arith.constant 0 : index
    %10 = vector.load %arg4[%c0_9, %c0_10] : memref<1x8xf32, #tpu.memory_space<vmem>>, vector<1x8xf32>
    %11 = vector.broadcast %10 : vector<1x8xf32> to vector<4x8xf32>
    %12 = arith.addf %9, %11 : vector<4x8xf32>
    %13 = vector.extract_strided_slice %12 {offsets = [0, 0], sizes = [2, 8], strides = [1, 1]} : vector<4x8xf32> to vector<2x8xf32>
    %14 = vector.extract_strided_slice %12 {offsets = [2, 0], sizes = [2, 8], strides = [1, 1]} : vector<4x8xf32> to vector<2x8xf32>
    %c0_11 = arith.constant 0 : index
    %c0_12 = arith.constant 0 : index
    %15 = vector.load %arg5[%c0_11, %c0_12] : memref<2x24xf32, #tpu.memory_space<vmem>>, vector<2x8xf32>
    tpu.vector_store %arg5[%c0_11, %c0_12], %13 {strides = array<i32>} : memref<2x24xf32, #tpu.memory_space<vmem>>, vector<2x8xf32>,
    %c0_13 = arith.constant 0 : index
    %c8 = arith.constant 8 : index
    %16 = vector.load %arg5[%c0_13, %c8] : memref<2x24xf32, #tpu.memory_space<vmem>>, vector<2x8xf32>
    tpu.vector_store %arg5[%c0_13, %c8], %14 {strides = array<i32>} : memref<2x24xf32, #tpu.memory_space<vmem>>, vector<2x8xf32>,
    %17 = arith.subf %13, %14 : vector<2x8xf32>
    %c0_14 = arith.constant 0 : index
    %c16 = arith.constant 16 : index
    %18 = vector.load %arg5[%c0_14, %c16] : memref<2x24xf32, #tpu.memory_space<vmem>>, vector<2x8xf32>
    tpu.vector_store %arg5[%c0_14, %c16], %17 {strides = array<i32>} : memref<2x24xf32, #tpu.memory_space<vmem>>, vector<2x8xf32>,
    return
  }
}

</mosaic_0001>

<bundles_post_ra>
// kernel: siamese_forward.3
= control target key start
LH: loop header
LB: loop body
LE: loop exit
PB: predicated region body
PF: predicated region fallthrough
CT: control target
= control target key end

     0   :  { %s3924_s0 = inlined_call_operand.vmem [shape: f32[4,3200], index: 0, kind: input, shape index: {}]   ;;  %s3925_s1 = inlined_call_operand.vmem [shape: f32[3200,128], index: 1, kind: input, shape index: {}]   ;;  %s3926_s2 = inlined_call_operand.vmem [shape: f32[1,128], index: 2, kind: input, shape index: {}]   ;;  %s3927_s3 = inlined_call_operand.vmem [shape: f32[128,8], index: 3, kind: input, shape index: {}]   ;;  %s3928_s4 = inlined_call_operand.vmem [shape: f32[1,8], index: 4, kind: input, shape index: {}]   ;;  %s3929_s5 = inlined_call_operand.hbm [shape: f32[2,24], index: 5, kind: output, shape index: {}]  }
   0x1   :  { %v50_v0 = vld [vmem:[%s3925_s1 + $0x80] sm:$0xff]  ;;  %v51_v1 = vld [vmem:[%s3925_s1 + $0x88] sm:$0xff]  ;;  %v52_v11 = vld [vmem:[%s3925_s1 + $0x90] sm:$0xff] }
   0x2   :  { %v34_v2 = vld [vmem:[%s3925_s1] sm:$0xff]  ;;  %v2038_v3 = vpack.c.bf16 %v51_v1, %v50_v0  ;;  %v35_v4 = vld [vmem:[%s3925_s1 + $0x8] sm:$0xff]  ;;  %v53_v13 = vld [vmem:[%s3925_s1 + $0x98] sm:$0xff] }
   0x3   :  { %v82_v5 = vld [vmem:[%s3925_s1 + $0x180] sm:$0xff]  ;;  %v83_v6 = vld [vmem:[%s3925_s1 + $0x188] sm:$0xff]  ;;  %v2040_v7 = vpack.c.bf16 %v35_v4, %v34_v2  ;;  %v36_v14 = vld [vmem:[%s3925_s1 + $0x10] sm:$0xff]  ;;  %v2042_v16 = vpack.c.bf16 %v53_v13, %v52_v11 }
   0x4   :  { %v2070_v8 = vpack.c.bf16 %v83_v6, %v82_v5  ;;  %v66_v9 = vld [vmem:[%s3925_s1 + $0x100] sm:$0xff]  ;;  %v67_v10 = vld [vmem:[%s3925_s1 + $0x108] sm:$0xff]  ;;  %2039 = vmatprep.subr.bf16.mxu0 %v2038_v3  ;;  %v37_v15 = vld [vmem:[%s3925_s1 + $0x18] sm:$0xff] }
   0x5   :  { %v2072_v12 = vpack.c.bf16 %v67_v10, %v66_v9  ;;  %2041 = vmatpush3.bf16.msra.mxu0 %v2040_v7  ;;  %v2044_v17 = vpack.c.bf16 %v37_v15, %v36_v14  ;;  %v84_v18 = vld [vmem:[%s3925_s1 + $0x190] sm:$0xff]  ;;  %v85_v19 = vld [vmem:[%s3925_s1 + $0x198] sm:$0xff]  ;;  %v54_v23 = vld [vmem:[%s3925_s1 + $0xa0] sm:$0xff] }
   0x6   :  { %2071 = vmatprep.subr.bf16.mxu1 %v2070_v8  ;;  %v68_v20 = vld [vmem:[%s3925_s1 + $0x110] sm:$0xff]  ;;  %v2074_v21 = vpack.c.bf16 %v85_v19, %v84_v18  ;;  %v69_v22 = vld [vmem:[%s3925_s1 + $0x118] sm:$0xff]  ;;  %v55_v24 = vld [vmem:[%s3925_s1 + $0xa8] sm:$0xff]  ;;  %2043 = vmatprep.subr.bf16.mxu0 %v2042_v16 }
   0x7   :  { %2073 = vmatpush3.bf16.msra.mxu1 %v2072_v12  ;;  %v2076_v25 = vpack.c.bf16 %v69_v22, %v68_v20  ;;  %v2046_v26 = vpack.c.bf16 %v55_v24, %v54_v23  ;;  %v38_v27 = vld [vmem:[%s3925_s1 + $0x20] sm:$0xff]  ;;  %v39_v28 = vld [vmem:[%s3925_s1 + $0x28] sm:$0xff]  ;;  %v56_v35 = vld [vmem:[%s3925_s1 + $0xb0] sm:$0xff] }
   0x8   :  { %v86_v29 = vld [vmem:[%s3925_s1 + $0x1a0] sm:$0xff]  ;;  %2075 = vmatprep.subr.bf16.mxu1 %v2074_v21  ;;  %v87_v30 = vld [vmem:[%s3925_s1 + $0x1a8] sm:$0xff]  ;;  %v2048_v33 = vpack.c.bf16 %v39_v28, %v38_v27  ;;  %v57_v36 = vld [vmem:[%s3925_s1 + $0xb8] sm:$0xff] }
   0x9   :  { %v70_v31 = vld [vmem:[%s3925_s1 + $0x120] sm:$0xff]  ;;  %v71_v32 = vld [vmem:[%s3925_s1 + $0x128] sm:$0xff]  ;;  %2045 = vmatpush3.bf16.msra.mxu0 %v2044_v17  ;;  %v2078_v34 = vpack.c.bf16 %v87_v30, %v86_v29  ;;  %v40_v37 = vld [vmem:[%s3925_s1 + $0x30] sm:$0xff]  ;;  %v2050_v39 = vpack.c.bf16 %v57_v36, %v56_v35 }
   0xa   :  { %2047 = vmatprep.subr.bf16.mxu0 %v2046_v26  ;;  %v2080_v38 = vpack.c.bf16 %v71_v32, %v70_v31  ;;  %v41_v40 = vld [vmem:[%s3925_s1 + $0x38] sm:$0xff]  ;;  %v88_v41 = vld [vmem:[%s3925_s1 + $0x1b0] sm:$0xff]  ;;  %v58_v46 = vld [vmem:[%s3925_s1 + $0xc0] sm:$0xff] }
   0xb   :  { %2077 = vmatpush3.bf16.msra.mxu1 %v2076_v25  ;;  %v89_v42 = vld [vmem:[%s3925_s1 + $0x1b8] sm:$0xff]  ;;  %v72_v44 = vld [vmem:[%s3925_s1 + $0x130] sm:$0xff]  ;;  %v59_v47 = vld [vmem:[%s3925_s1 + $0xc8] sm:$0xff]  ;;  %v2052_v48 = vpack.c.bf16 %v41_v40, %v40_v37 }
   0xc   :  { %2079 = vmatprep.subr.bf16.mxu1 %v2078_v34  ;;  %v2082_v43 = vpack.c.bf16 %v89_v42, %v88_v41  ;;  %v73_v45 = vld [vmem:[%s3925_s1 + $0x138] sm:$0xff]  ;;  %v90_v49 = vld [vmem:[%s3925_s1 + $0x1c0] sm:$0xff]  ;;  %v91_v50 = vld [vmem:[%s3925_s1 + $0x1c8] sm:$0xff]  ;;  %v2054_v52 = vpack.c.bf16 %v59_v47, %v58_v46 }
   0xd   :  { %2049 = vmatpush3.bf16.msra.mxu0 %v2048_v33  ;;  %v2084_v51 = vpack.c.bf16 %v73_v45, %v72_v44  ;;  %v42_v53 = vld [vmem:[%s3925_s1 + $0x40] sm:$0xff]  ;;  %v43_v54 = vld [vmem:[%s3925_s1 + $0x48] sm:$0xff]  ;;  %v2086_v56 = vpack.c.bf16 %v91_v50, %v90_v49  ;;  %v60_v58 = vld [vmem:[%s3925_s1 + $0xd0] sm:$0xff] }
   0xe   :  { %2051 = vmatprep.subr.bf16.mxu0 %v2050_v39  ;;  %v74_v55 = vld [vmem:[%s3925_s1 + $0x140] sm:$0xff]  ;;  %v75_v57 = vld [vmem:[%s3925_s1 + $0x148] sm:$0xff]  ;;  %v61_v59 = vld [vmem:[%s3925_s1 + $0xd8] sm:$0xff]  ;;  %v2056_v62 = vpack.c.bf16 %v43_v54, %v42_v53 }
   0xf   :  { %2081 = vmatpush3.bf16.msra.mxu1 %v2080_v38  ;;  %v92_v60 = vld [vmem:[%s3925_s1 + $0x1d0] sm:$0xff]  ;;  %v93_v61 = vld [vmem:[%s3925_s1 + $0x1d8] sm:$0xff]  ;;  %v2088_v63 = vpack.c.bf16 %v75_v57, %v74_v55  ;;  %v2058_v0 = vpack.c.bf16 %v61_v59, %v60_v58  ;;  %v62_v6 = vld [vmem:[%s3925_s1 + $0xe0] sm:$0xff] }
  0x10   :  { %2083 = vmatprep.subr.bf16.mxu1 %v2082_v43  ;;  %v44_v1 = vld [vmem:[%s3925_s1 + $0x50] sm:$0xff]  ;;  %v45_v2 = vld [vmem:[%s3925_s1 + $0x58] sm:$0xff]  ;;  %v2090_v4 = vpack.c.bf16 %v93_v61, %v92_v60  ;;  %v63_v7 = vld [vmem:[%s3925_s1 + $0xe8] sm:$0xff] }
  0x11   :  { %2053 = vmatpush3.bf16.msra.mxu0 %v2052_v48  ;;  %v76_v3 = vld [vmem:[%s3925_s1 + $0x150] sm:$0xff]  ;;  %v77_v5 = vld [vmem:[%s3925_s1 + $0x158] sm:$0xff]  ;;  %v94_v8 = vld [vmem:[%s3925_s1 + $0x1e0] sm:$0xff]  ;;  %v2060_v10 = vpack.c.bf16 %v45_v2, %v44_v1  ;;  %v2062_v14 = vpack.c.bf16 %v63_v7, %v62_v6 }
  0x12   :  { %2055 = vmatprep.subr.bf16.mxu0 %v2054_v52  ;;  %v95_v9 = vld [vmem:[%s3925_s1 + $0x1e8] sm:$0xff]  ;;  %v46_v11 = vld [vmem:[%s3925_s1 + $0x60] sm:$0xff]  ;;  %v2092_v13 = vpack.c.bf16 %v77_v5, %v76_v3  ;;  %v64_v20 = vld [vmem:[%s3925_s1 + $0xf0] sm:$0xff] }
  0x13   :  { %2085 = vmatpush3.bf16.msra.mxu1 %v2084_v51  ;;  %v2710_v12 = vld [vmem:[%s3924_s0] sm:$0xff]  ;;  %v47_v15 = vld [vmem:[%s3925_s1 + $0x68] sm:$0xff]  ;;  %v2094_v19 = vpack.c.bf16 %v95_v9, %v94_v8  ;;  %v65_v21 = vld [vmem:[%s3925_s1 + $0xf8] sm:$0xff] }
  0x14   :  { %2087 = vmatprep.subr.bf16.mxu1 %v2086_v56  ;;  %v78_v16 = vld [vmem:[%s3925_s1 + $0x160] sm:$0xff]  ;;  %v79_v17 = vld [vmem:[%s3925_s1 + $0x168] sm:$0xff]  ;;  %v453_v18 = vcombine.high %v2710_v12, %v2710_v12  ;;  %v96_v23 = vld [vmem:[%s3925_s1 + $0x1f0] sm:$0xff]  ;;  %v2064_v26 = vpack.c.bf16 %v47_v15, %v46_v11  ;;  %v2066_v28 = vpack.c.bf16 %v65_v21, %v64_v20 }
  0x15   :  { %2057 = vmatpush3.bf16.msra.mxu0 %v2056_v62  ;;  %v22_v22 = vld [vmem:[%s3924_s0 + $0x8] sm:$0xff]  ;;  %v97_v24 = vld [vmem:[%s3925_s1 + $0x1f8] sm:$0xff]  ;;  %v2096_v27 = vpack.c.bf16 %v79_v17, %v78_v16  ;;  %v48_v29 = vld [vmem:[%s3925_s1 + $0x70] sm:$0xff] }
  0x16   :  { %2059 = vmatprep.subr.bf16.mxu0 %v2058_v0  ;;  %541 = vmatprep.mubr.f32.mxu0 %v453_v18  ;;  %v454_v25 = vcombine.high %v22_v22, %v22_v22  ;;  %v49_v30 = vld [vmem:[%s3925_s1 + $0x78] sm:$0xff]  ;;  %v80_v31 = vld [vmem:[%s3925_s1 + $0x170] sm:$0xff]  ;;  %v2098_v32 = vpack.c.bf16 %v97_v24, %v96_v23  ;;  %v114_v34 = vld [vmem:[%s3925_s1 + $0x280] sm:$0xff] }
  0x17   :  { %2089 = vmatpush3.bf16.msra.mxu1 %v2088_v63  ;;  %v81_v33 = vld [vmem:[%s3925_s1 + $0x178] sm:$0xff]  ;;  %v115_v35 = vld [vmem:[%s3925_s1 + $0x288] sm:$0xff]  ;;  %v146_v36 = vld [vmem:[%s3925_s1 + $0x380] sm:$0xff]  ;;  %v2068_v38 = vpack.c.bf16 %v49_v30, %v48_v29 }
  0x18   :  { %2091 = vmatprep.subr.bf16.mxu1 %v2090_v4  ;;  %611 = vmatprep.mubr.f32.mxu1 %v454_v25  ;;  %v147_v37 = vld [vmem:[%s3925_s1 + $0x388] sm:$0xff]  ;;  %v2100_v39 = vpack.c.bf16 %v81_v33, %v80_v31  ;;  %v2102_v40 = vpack.c.bf16 %v115_v35, %v114_v34  ;;  %v98_v41 = vld [vmem:[%s3925_s1 + $0x200] sm:$0xff]  ;;  %v116_v46 = vld [vmem:[%s3925_s1 + $0x290] sm:$0xff] }
  0x19   :  { %2061 = vmatpush3.bf16.msra.mxu0 %v2060_v10  ;;  %v99_v42 = vld [vmem:[%s3925_s1 + $0x208] sm:$0xff]  ;;  %v130_v43 = vld [vmem:[%s3925_s1 + $0x300] sm:$0xff]  ;;  %v2134_v44 = vpack.c.bf16 %v147_v37, %v146_v36  ;;  %v117_v47 = vld [vmem:[%s3925_s1 + $0x298] sm:$0xff] }
  0x1a   :  { %2063 = vmatprep.subr.bf16.mxu0 %v2062_v14  ;;  %v131_v45 = vld [vmem:[%s3925_s1 + $0x308] sm:$0xff]  ;;  %v148_v48 = vld [vmem:[%s3925_s1 + $0x390] sm:$0xff]  ;;  %v149_v49 = vld [vmem:[%s3925_s1 + $0x398] sm:$0xff]  ;;  %v2104_v50 = vpack.c.bf16 %v99_v42, %v98_v41  ;;  %v2106_v52 = vpack.c.bf16 %v117_v47, %v116_v46 }
  0x1b   :  { %2093 = vmatpush3.bf16.msra.mxu1 %v2092_v13  ;;  %v2136_v51 = vpack.c.bf16 %v131_v45, %v130_v43  ;;  %v100_v53 = vld [vmem:[%s3925_s1 + $0x210] sm:$0xff]  ;;  %v101_v54 = vld [vmem:[%s3925_s1 + $0x218] sm:$0xff]  ;;  %v2138_v56 = vpack.c.bf16 %v149_v49, %v148_v48  ;;  %v118_v58 = vld [vmem:[%s3925_s1 + $0x2a0] sm:$0xff] }
  0x1c   :  { %2095 = vmatprep.subr.bf16.mxu1 %v2094_v19  ;;  %v132_v55 = vld [vmem:[%s3925_s1 + $0x310] sm:$0xff]  ;;  %v133_v57 = vld [vmem:[%s3925_s1 + $0x318] sm:$0xff]  ;;  %v119_v59 = vld [vmem:[%s3925_s1 + $0x2a8] sm:$0xff]  ;;  %v2108_v62 = vpack.c.bf16 %v101_v54, %v100_v53 }
  0x1d   :  { %2065 = vmatpush3.bf16.msra.mxu0 %v2064_v26  ;;  %v150_v60 = vld [vmem:[%s3925_s1 + $0x3a0] sm:$0xff]  ;;  %v151_v61 = vld [vmem:[%s3925_s1 + $0x3a8] sm:$0xff]  ;;  %v2140_v63 = vpack.c.bf16 %v133_v57, %v132_v55  ;;  %v2110_v0 = vpack.c.bf16 %v119_v59, %v118_v58  ;;  %v120_v6 = vld [vmem:[%s3925_s1 + $0x2b0] sm:$0xff] }
  0x1e   :  { %2067 = vmatprep.subr.bf16.mxu0 %v2066_v28  ;;  %v102_v1 = vld [vmem:[%s3925_s1 + $0x220] sm:$0xff]  ;;  %v103_v2 = vld [vmem:[%s3925_s1 + $0x228] sm:$0xff]  ;;  %v2142_v4 = vpack.c.bf16 %v151_v61, %v150_v60  ;;  %v121_v7 = vld [vmem:[%s3925_s1 + $0x2b8] sm:$0xff] }
  0x1f   :  { %2097 = vmatpush3.bf16.msra.mxu1 %v2096_v27  ;;  %v134_v3 = vld [vmem:[%s3925_s1 + $0x320] sm:$0xff]  ;;  %v135_v5 = vld [vmem:[%s3925_s1 + $0x328] sm:$0xff]  ;;  %v152_v8 = vld [vmem:[%s3925_s1 + $0x3b0] sm:$0xff]  ;;  %v2112_v10 = vpack.c.bf16 %v103_v2, %v102_v1  ;;  %v2114_v13 = vpack.c.bf16 %v121_v7, %v120_v6 }
  0x20   :  { %2099 = vmatprep.subr.bf16.mxu1 %v2098_v32  ;;  %v153_v9 = vld [vmem:[%s3925_s1 + $0x3b8] sm:$0xff]  ;;  %v104_v11 = vld [vmem:[%s3925_s1 + $0x230] sm:$0xff]  ;;  %v122_v18 = vld [vmem:[%s3925_s1 + $0x2c0] sm:$0xff] }
  0x21   :  { %2069 = vmatpush3.bf16.msra.mxu0 %v2068_v38  ;;  %v105_v14 = vld [vmem:[%s3925_s1 + $0x238] sm:$0xff]  ;;  %v136_v15 = vld [vmem:[%s3925_s1 + $0x330] sm:$0xff]  ;;  %v2146_v17 = vpack.c.bf16 %v153_v9, %v152_v8  ;;  %v123_v19 = vld [vmem:[%s3925_s1 + $0x2c8] sm:$0xff] }
  0x22   :  { %2103 = vmatprep.subr.bf16.mxu0 %v2102_v40  ;;  %v137_v16 = vld [vmem:[%s3925_s1 + $0x338] sm:$0xff]  ;;  %v2856_v20 = vld [vmem:[%s3924_s0 + $0x10] sm:$0xff]  ;;  %v154_v21 = vld [vmem:[%s3925_s1 + $0x3c0] sm:$0xff]  ;;  %v2116_v24 = vpack.c.bf16 %v105_v14, %v104_v11  ;;  %v2118_v27 = vpack.c.bf16 %v123_v19, %v122_v18 }
  0x23   :  { %2101 = vmatpush3.bf16.msra.mxu1 %v2100_v39  ;;  %v455_v23 = vcombine.high %v2856_v20, %v2856_v20  ;;  %v2869_v25 = vld [vmem:[%s3924_s0 + $0x18] sm:$0xff]  ;;  %v2148_v26 = vpack.c.bf16 %v137_v16, %v136_v15  ;;  %v106_v28 = vld [vmem:[%s3925_s1 + $0x240] sm:$0xff]  ;;  %v107_v29 = vld [vmem:[%s3925_s1 + $0x248] sm:$0xff] }
  0x24   :  { %2135 = vmatprep.subr.bf16.mxu1 %v2134_v44  ;;  %542 = vmatmul.mubr.f32.vlgmr.msra.gmra.mrb[0].mxu0 %v2710_v12  ;;  %v2144_v12 = vpack.c.bf16 %v135_v5, %v134_v3  ;;  %v138_v30 = vld [vmem:[%s3925_s1 + $0x340] sm:$0xff]  ;;  %v456_v31 = vcombine.high %v2869_v25, %v2869_v25  ;;  %v139_v33 = vld [vmem:[%s3925_s1 + $0x348] sm:$0xff]  ;;  %v124_v34 = vld [vmem:[%s3925_s1 + $0x2d0] sm:$0xff]  ;;  %v2120_v38 = vpack.c.bf16 %v107_v29, %v106_v28 }
  0x25   :  { %2105 = vmatpush3.bf16.msra.mxu0 %v2104_v50  ;;  %v125_v35 = vld [vmem:[%s3925_s1 + $0x2d8] sm:$0xff]  ;;  %681 = vmatprep.mubr.f32.mxu0 %v455_v23  ;;  %v156_v36 = vld [vmem:[%s3925_s1 + $0x3d0] sm:$0xff]  ;;  %v2152_v39 = vpack.c.bf16 %v139_v33, %v138_v30  ;;  %v126_v46 = vld [vmem:[%s3925_s1 + $0x2e0] sm:$0xff] }
  0x26   :  { %612 = vmatmul.mubr.f32.vlgmr.msra.gmra.mrb[0].mxu1 %v22_v22  ;;  %2107 = vmatprep.subr.bf16.mxu0 %v2106_v52  ;;  %v155_v22 = vld [vmem:[%s3925_s1 + $0x3c8] sm:$0xff]  ;;  %v157_v37 = vld [vmem:[%s3925_s1 + $0x3d8] sm:$0xff]  ;;  %v2122_v40 = vpack.c.bf16 %v125_v35, %v124_v34  ;;  %v108_v41 = vld [vmem:[%s3925_s1 + $0x250] sm:$0xff] }
  0x27   :  { %2137 = vmatpush3.bf16.msra.mxu1 %v2136_v51  ;;  %v2150_v32 = vpack.c.bf16 %v155_v22, %v154_v21  ;;  %751 = vmatprep.mubr.f32.mxu1 %v456_v31  ;;  %v109_v42 = vld [vmem:[%s3925_s1 + $0x258] sm:$0xff]  ;;  %v140_v43 = vld [vmem:[%s3925_s1 + $0x350] sm:$0xff]  ;;  %v2154_v44 = vpack.c.bf16 %v157_v37, %v156_v36  ;;  %v127_v47 = vld [vmem:[%s3925_s1 + $0x2e8] sm:$0xff] }
  0x28   :  { %2139 = vmatprep.subr.bf16.mxu1 %v2138_v56  ;;  %v141_v45 = vld [vmem:[%s3925_s1 + $0x358] sm:$0xff]  ;;  %v158_v48 = vld [vmem:[%s3925_s1 + $0x3e0] sm:$0xff]  ;;  %v159_v49 = vld [vmem:[%s3925_s1 + $0x3e8] sm:$0xff]  ;;  %v2124_v50 = vpack.c.bf16 %v109_v42, %v108_v41  ;;  %v2126_v52 = vpack.c.bf16 %v127_v47, %v126_v46 }
  0x29   :  { %2109 = vmatpush3.bf16.msra.mxu0 %v2108_v62  ;;  %v2156_v51 = vpack.c.bf16 %v141_v45, %v140_v43  ;;  %v110_v53 = vld [vmem:[%s3925_s1 + $0x260] sm:$0xff]  ;;  %v111_v54 = vld [vmem:[%s3925_s1 + $0x268] sm:$0xff]  ;;  %v2158_v56 = vpack.c.bf16 %v159_v49, %v158_v48  ;;  %v128_v58 = vld [vmem:[%s3925_s1 + $0x2f0] sm:$0xff] }
  0x2a   :  { %2111 = vmatprep.subr.bf16.mxu0 %v2110_v0  ;;  %v142_v55 = vld [vmem:[%s3925_s1 + $0x360] sm:$0xff]  ;;  %v143_v57 = vld [vmem:[%s3925_s1 + $0x368] sm:$0xff]  ;;  %v129_v59 = vld [vmem:[%s3925_s1 + $0x2f8] sm:$0xff]  ;;  %v2128_v62 = vpack.c.bf16 %v111_v54, %v110_v53 }
  0x2b   :  { %2141 = vmatpush3.bf16.msra.mxu1 %v2140_v63  ;;  %v160_v60 = vld [vmem:[%s3925_s1 + $0x3f0] sm:$0xff]  ;;  %v161_v61 = vld [vmem:[%s3925_s1 + $0x3f8] sm:$0xff]  ;;  %v2160_v63 = vpack.c.bf16 %v143_v57, %v142_v55  ;;  %v2130_v0 = vpack.c.bf16 %v129_v59, %v128_v58  ;;  %v178_v6 = vld [vmem:[%s3925_s1 + $0x480] sm:$0xff] }
  0x2c   :  { %2143 = vmatprep.subr.bf16.mxu1 %v2142_v4  ;;  %v112_v1 = vld [vmem:[%s3925_s1 + $0x270] sm:$0xff]  ;;  %v113_v2 = vld [vmem:[%s3925_s1 + $0x278] sm:$0xff]  ;;  %v2162_v4 = vpack.c.bf16 %v161_v61, %v160_v60  ;;  %v179_v7 = vld [vmem:[%s3925_s1 + $0x488] sm:$0xff] }
  0x2d   :  { %2113 = vmatpush3.bf16.msra.mxu0 %v2112_v10  ;;  %v144_v3 = vld [vmem:[%s3925_s1 + $0x370] sm:$0xff]  ;;  %v145_v5 = vld [vmem:[%s3925_s1 + $0x378] sm:$0xff]  ;;  %v210_v8 = vld [vmem:[%s3925_s1 + $0x580] sm:$0xff]  ;;  %v2132_v10 = vpack.c.bf16 %v113_v2, %v112_v1 }
  0x2e   :  { %2115 = vmatprep.subr.bf16.mxu0 %v2114_v13  ;;  %v211_v9 = vld [vmem:[%s3925_s1 + $0x588] sm:$0xff]  ;;  %v2164_v11 = vpack.c.bf16 %v145_v5, %v144_v3  ;;  %v162_v13 = vld [vmem:[%s3925_s1 + $0x400] sm:$0xff]  ;;  %v180_v18 = vld [vmem:[%s3925_s1 + $0x490] sm:$0xff] }
  0x2f   :  { %2145 = vmatpush3.bf16.msra.mxu1 %v2144_v12  ;;  %v2166_v12 = vpack.c.bf16 %v179_v7, %v178_v6  ;;  %v163_v14 = vld [vmem:[%s3925_s1 + $0x408] sm:$0xff]  ;;  %v194_v15 = vld [vmem:[%s3925_s1 + $0x500] sm:$0xff]  ;;  %v2198_v16 = vpack.c.bf16 %v211_v9, %v210_v8  ;;  %v181_v19 = vld [vmem:[%s3925_s1 + $0x498] sm:$0xff] }
  0x30   :  { %2147 = vmatprep.subr.bf16.mxu1 %v2146_v17  ;;  %v195_v17 = vld [vmem:[%s3925_s1 + $0x508] sm:$0xff]  ;;  %v212_v21 = vld [vmem:[%s3925_s1 + $0x590] sm:$0xff]  ;;  %v213_v22 = vld [vmem:[%s3925_s1 + $0x598] sm:$0xff]  ;;  %v2168_v23 = vpack.c.bf16 %v163_v14, %v162_v13  ;;  %v2170_v28 = vpack.c.bf16 %v181_v19, %v180_v18 }
  0x31   :  { %2117 = vmatpush3.bf16.msra.mxu0 %v2116_v24  ;;  %v164_v24 = vld [vmem:[%s3925_s1 + $0x410] sm:$0xff]  ;;  %v165_v29 = vld [vmem:[%s3925_s1 + $0x418] sm:$0xff]  ;;  %v182_v33 = vld [vmem:[%s3925_s1 + $0x4a0] sm:$0xff] }
  0x32   :  { %2119 = vmatprep.subr.bf16.mxu0 %v2118_v27  ;;  %v2200_v27 = vpack.c.bf16 %v195_v17, %v194_v15  ;;  %v196_v30 = vld [vmem:[%s3925_s1 + $0x510] sm:$0xff]  ;;  %v197_v31 = vld [vmem:[%s3925_s1 + $0x518] sm:$0xff]  ;;  %v183_v34 = vld [vmem:[%s3925_s1 + $0x4a8] sm:$0xff] }
  0x33   :  { %2149 = vmatpush3.bf16.msra.mxu1 %v2148_v26  ;;  %v2999_v26 = vld [vmem:[%s3924_s0 + $0x20] sm:$0xff]  ;;  %v3021_v36 = vld [vmem:[%s3924_s0 + $0x28] sm:$0xff]  ;;  %v2204_v41 = vpack.c.bf16 %v197_v31, %v196_v30  ;;  %v2174_v42 = vpack.c.bf16 %v183_v34, %v182_v33  ;;  %v184_v46 = vld [vmem:[%s3925_s1 + $0x4b0] sm:$0xff] }
  0x34   :  { %2151 = vmatprep.subr.bf16.mxu1 %v2150_v32  ;;  %v2202_v32 = vpack.c.bf16 %v213_v22, %v212_v21  ;;  %v457_v35 = vcombine.high %v2999_v26, %v2999_v26  ;;  %v214_v37 = vld [vmem:[%s3925_s1 + $0x5a0] sm:$0xff]  ;;  %v167_v43 = vld [vmem:[%s3925_s1 + $0x428] sm:$0xff]  ;;  %v185_v47 = vld [vmem:[%s3925_s1 + $0x4b8] sm:$0xff] }
  0x35   :  { %2121 = vmatpush3.bf16.msra.mxu0 %v2120_v38  ;;  %v215_v38 = vld [vmem:[%s3925_s1 + $0x5a8] sm:$0xff]  ;;  %v216_v48 = vld [vmem:[%s3925_s1 + $0x5b0] sm:$0xff]  ;;  %v217_v49 = vld [vmem:[%s3925_s1 + $0x5b8] sm:$0xff] }
  0x36   :  { %2123 = vmatprep.subr.bf16.mxu0 %v2122_v40  ;;  %v2172_v40 = vpack.c.bf16 %v165_v29, %v164_v24  ;;  %v2206_v45 = vpack.c.bf16 %v215_v38, %v214_v37  ;;  %v168_v53 = vld [vmem:[%s3925_s1 + $0x430] sm:$0xff]  ;;  %v169_v54 = vld [vmem:[%s3925_s1 + $0x438] sm:$0xff]  ;;  %v186_v58 = vld [vmem:[%s3925_s1 + $0x4c0] sm:$0xff] }
  0x37   :  { %2153 = vmatpush3.bf16.msra.mxu1 %v2152_v39  ;;  %v458_v39 = vcombine.high %v3021_v36, %v3021_v36  ;;  %v200_v55 = vld [vmem:[%s3925_s1 + $0x530] sm:$0xff]  ;;  %v201_v57 = vld [vmem:[%s3925_s1 + $0x538] sm:$0xff]  ;;  %v187_v59 = vld [vmem:[%s3925_s1 + $0x4c8] sm:$0xff] }
  0x38   :  { %2155 = vmatprep.subr.bf16.mxu1 %v2154_v44  ;;  %v198_v44 = vld [vmem:[%s3925_s1 + $0x520] sm:$0xff]  ;;  %v219_v61 = vld [vmem:[%s3925_s1 + $0x5c8] sm:$0xff]  ;;  %v188_v6 = vld [vmem:[%s3925_s1 + $0x4d0] sm:$0xff] }
  0x39   :  { %2125 = vmatpush3.bf16.msra.mxu0 %v2124_v50  ;;  %v218_v60 = vld [vmem:[%s3925_s1 + $0x5c0] sm:$0xff]  ;;  %v171_v2 = vld [vmem:[%s3925_s1 + $0x448] sm:$0xff]  ;;  %v189_v7 = vld [vmem:[%s3925_s1 + $0x4d8] sm:$0xff] }
  0x3a   :  { %2127 = vmatprep.subr.bf16.mxu0 %v2126_v52  ;;  %v2178_v52 = vpack.c.bf16 %v185_v47, %v184_v46  ;;  %v170_v1 = vld [vmem:[%s3925_s1 + $0x440] sm:$0xff]  ;;  %v203_v5 = vld [vmem:[%s3925_s1 + $0x548] sm:$0xff]  ;;  %v220_v8 = vld [vmem:[%s3925_s1 + $0x5d0] sm:$0xff] }
  0x3b   :  { %2157 = vmatpush3.bf16.msra.mxu1 %v2156_v51  ;;  %v202_v3 = vld [vmem:[%s3925_s1 + $0x540] sm:$0xff]  ;;  %v221_v9 = vld [vmem:[%s3925_s1 + $0x5d8] sm:$0xff]  ;;  %v172_v13 = vld [vmem:[%s3925_s1 + $0x450] sm:$0xff] }
  0x3c   :  { %2159 = vmatprep.subr.bf16.mxu1 %v2158_v56  ;;  %v2210_v56 = vpack.c.bf16 %v217_v49, %v216_v48  ;;  %v173_v14 = vld [vmem:[%s3925_s1 + $0x458] sm:$0xff]  ;;  %v204_v15 = vld [vmem:[%s3925_s1 + $0x550] sm:$0xff]  ;;  %v190_v18 = vld [vmem:[%s3925_s1 + $0x4e0] sm:$0xff] }
  0x3d   :  { %2129 = vmatpush3.bf16.msra.mxu0 %v2128_v62  ;;  %v2180_v62 = vpack.c.bf16 %v169_v54, %v168_v53  ;;  %v205_v17 = vld [vmem:[%s3925_s1 + $0x558] sm:$0xff]  ;;  %v191_v19 = vld [vmem:[%s3925_s1 + $0x4e8] sm:$0xff]  ;;  %v222_v21 = vld [vmem:[%s3925_s1 + $0x5e0] sm:$0xff] }
  0x3e   :  { %2131 = vmatprep.subr.bf16.mxu0 %v2130_v0  ;;  %v2182_v0 = vpack.c.bf16 %v187_v59, %v186_v58  ;;  %v223_v22 = vld [vmem:[%s3925_s1 + $0x5e8] sm:$0xff]  ;;  %v2220_v24 = vpack.c.bf16 %v205_v17, %v204_v15  ;;  %v206_v30 = vld [vmem:[%s3925_s1 + $0x560] sm:$0xff]  ;;  %v192_v33 = vld [vmem:[%s3925_s1 + $0x4f0] sm:$0xff] }
  0x3f   :  { %2161 = vmatpush3.bf16.msra.mxu1 %v2160_v63  ;;  %v2212_v63 = vpack.c.bf16 %v201_v57, %v200_v55  ;;  %v175_v29 = vld [vmem:[%s3925_s1 + $0x468] sm:$0xff]  ;;  %v2222_v31 = vpack.c.bf16 %v223_v22, %v222_v21  ;;  %v193_v34 = vld [vmem:[%s3925_s1 + $0x4f8] sm:$0xff]  ;;  %v274_v46 = vld [vmem:[%s3925_s1 + $0x780] sm:$0xff] }
  0x40   :  { %2163 = vmatprep.subr.bf16.mxu1 %v2162_v4  ;;  %v2214_v4 = vpack.c.bf16 %v219_v61, %v218_v60  ;;  %v225_v37 = vld [vmem:[%s3925_s1 + $0x5f8] sm:$0xff]  ;;  %v275_v47 = vld [vmem:[%s3925_s1 + $0x788] sm:$0xff]  ;;  %v258_v53 = vld [vmem:[%s3925_s1 + $0x700] sm:$0xff] }
  0x41   :  { %2133 = vmatpush3.bf16.msra.mxu0 %v2132_v10  ;;  %v2184_v10 = vpack.c.bf16 %v171_v2, %v170_v1  ;;  %v2262_v54 = vpack.c.bf16 %v275_v47, %v274_v46  ;;  %v259_v55 = vld [vmem:[%s3925_s1 + $0x708] sm:$0xff]  ;;  %v245_v57 = vld [vmem:[%s3925_s1 + $0x698] sm:$0xff]  ;;  %v276_v58 = vld [vmem:[%s3925_s1 + $0x790] sm:$0xff] }
  0x42   :  { %2167 = vmatprep.subr.bf16.mxu0 %v2166_v12  ;;  %v2186_v12 = vpack.c.bf16 %v189_v7, %v188_v6  ;;  %v277_v59 = vld [vmem:[%s3925_s1 + $0x798] sm:$0xff]  ;;  %v3204_v60 = vld [vmem:[%s3924_s0 + $0x30] sm:$0xff]  ;;  %v246_v6 = vld [vmem:[%s3925_s1 + $0x6a0] sm:$0xff] }
  0x43   :  { %2165 = vmatpush3.bf16.msra.mxu1 %v2164_v11  ;;  %v2216_v11 = vpack.c.bf16 %v203_v5, %v202_v3  ;;  %v228_v1 = vld [vmem:[%s3925_s1 + $0x610] sm:$0xff]  ;;  %v229_v2 = vld [vmem:[%s3925_s1 + $0x618] sm:$0xff]  ;;  %v247_v7 = vld [vmem:[%s3925_s1 + $0x6a8] sm:$0xff] }
  0x44   :  { %2199 = vmatprep.subr.bf16.mxu1 %v2198_v16  ;;  %682 = vmatmul.mubr.f32.vlgmr.msra.gmra.mrb[2].mxu0 %v2856_v20  ;;  %v166_v20 = vld [vmem:[%s3925_s1 + $0x420] sm:$0xff]  ;;  %v2218_v16 = vpack.c.bf16 %v221_v9, %v220_v8  ;;  %v260_v3 = vld [vmem:[%s3925_s1 + $0x710] sm:$0xff]  ;;  %v261_v5 = vld [vmem:[%s3925_s1 + $0x718] sm:$0xff]  ;;  %v459_v8 = vcombine.high %v3204_v60, %v3204_v60 }
  0x45   :  { %2169 = vmatpush3.bf16.msra.mxu0 %v2168_v23  ;;  %821 = vmatprep.mubr.f32.mxu0 %v457_v35  ;;  %v2176_v50 = vpack.c.bf16 %v167_v43, %v166_v20  ;;  %v2188_v23 = vpack.c.bf16 %v173_v14, %v172_v13  ;;  %v224_v35 = vld [vmem:[%s3925_s1 + $0x5f0] sm:$0xff]  ;;  %v278_v9 = vld [vmem:[%s3925_s1 + $0x7a0] sm:$0xff]  ;;  %v2268_v13 = vpack.c.bf16 %v261_v5, %v260_v3  ;;  %v231_v15 = vld [vmem:[%s3925_s1 + $0x628] sm:$0xff] }
  0x46   :  { %752 = vmatmul.mubr.f32.vlgmr.msra.gmra.mrb[2].mxu1 %v2869_v25  ;;  %2171 = vmatprep.subr.bf16.mxu0 %v2170_v28  ;;  %v199_v25 = vld [vmem:[%s3925_s1 + $0x528] sm:$0xff]  ;;  %v174_v28 = vld [vmem:[%s3925_s1 + $0x460] sm:$0xff]  ;;  %v208_v20 = vld [vmem:[%s3925_s1 + $0x570] sm:$0xff]  ;;  %v2226_v43 = vpack.c.bf16 %v225_v37, %v224_v35  ;;  %v2238_v14 = vpack.c.bf16 %v247_v7, %v246_v6 }
  0x47   :  { %2201 = vmatpush3.bf16.msra.mxu1 %v2200_v27  ;;  %891 = vmatprep.mubr.f32.mxu1 %v458_v39  ;;  %v2208_v51 = vpack.c.bf16 %v199_v25, %v198_v44  ;;  %v2190_v27 = vpack.c.bf16 %v191_v19, %v190_v18  ;;  %v2192_v38 = vpack.c.bf16 %v175_v29, %v174_v28  ;;  %v209_v44 = vld [vmem:[%s3925_s1 + $0x578] sm:$0xff]  ;;  %v243_v25 = vld [vmem:[%s3925_s1 + $0x688] sm:$0xff]  ;;  %v248_v18 = vld [vmem:[%s3925_s1 + $0x6b0] sm:$0xff] }
  0x48   :  { %2203 = vmatprep.subr.bf16.mxu1 %v2202_v32  ;;  %v207_v32 = vld [vmem:[%s3925_s1 + $0x568] sm:$0xff]  ;;  %v2228_v49 = vpack.c.bf16 %v209_v44, %v208_v20  ;;  %v249_v19 = vld [vmem:[%s3925_s1 + $0x6b8] sm:$0xff]  ;;  %v280_v21 = vld [vmem:[%s3925_s1 + $0x7b0] sm:$0xff] }
  0x49   :  { %2173 = vmatpush3.bf16.msra.mxu0 %v2172_v40  ;;  %v2224_v39 = vpack.c.bf16 %v207_v32, %v206_v30  ;;  %v2194_v40 = vpack.c.bf16 %v193_v34, %v192_v33  ;;  %v281_v22 = vld [vmem:[%s3925_s1 + $0x7b8] sm:$0xff]  ;;  %v232_v28 = vld [vmem:[%s3925_s1 + $0x630] sm:$0xff]  ;;  %v250_v33 = vld [vmem:[%s3925_s1 + $0x6c0] sm:$0xff] }
  0x4a   :  { %2175 = vmatprep.subr.bf16.mxu0 %v2174_v42  ;;  %v177_v42 = vld [vmem:[%s3925_s1 + $0x478] sm:$0xff]  ;;  %v264_v30 = vld [vmem:[%s3925_s1 + $0x730] sm:$0xff]  ;;  %v251_v34 = vld [vmem:[%s3925_s1 + $0x6c8] sm:$0xff] }
  0x4b   :  { %2205 = vmatpush3.bf16.msra.mxu1 %v2204_v41  ;;  %v176_v41 = vld [vmem:[%s3925_s1 + $0x470] sm:$0xff]  ;;  %v233_v29 = vld [vmem:[%s3925_s1 + $0x638] sm:$0xff]  ;;  %v282_v35 = vld [vmem:[%s3925_s1 + $0x7c0] sm:$0xff] }
  0x4c   :  { %2207 = vmatprep.subr.bf16.mxu1 %v2206_v45  ;;  %v242_v45 = vld [vmem:[%s3925_s1 + $0x680] sm:$0xff]  ;;  %v2196_v48 = vpack.c.bf16 %v177_v42, %v176_v41  ;;  %v265_v32 = vld [vmem:[%s3925_s1 + $0x738] sm:$0xff]  ;;  %v283_v37 = vld [vmem:[%s3925_s1 + $0x7c8] sm:$0xff] }
  0x4d   :  { %2177 = vmatpush3.bf16.msra.mxu0 %v2176_v50  ;;  %v2230_v50 = vpack.c.bf16 %v243_v25, %v242_v45  ;;  %v234_v41 = vld [vmem:[%s3925_s1 + $0x640] sm:$0xff]  ;;  %v235_v42 = vld [vmem:[%s3925_s1 + $0x648] sm:$0xff]  ;;  %v252_v45 = vld [vmem:[%s3925_s1 + $0x6d0] sm:$0xff] }
  0x4e   :  { %2179 = vmatprep.subr.bf16.mxu0 %v2178_v52  ;;  %v227_v52 = vld [vmem:[%s3925_s1 + $0x608] sm:$0xff]  ;;  %v266_v20 = vld [vmem:[%s3925_s1 + $0x740] sm:$0xff]  ;;  %v253_v25 = vld [vmem:[%s3925_s1 + $0x6d8] sm:$0xff] }
  0x4f   :  { %2209 = vmatpush3.bf16.msra.mxu1 %v2208_v51  ;;  %v226_v51 = vld [vmem:[%s3925_s1 + $0x600] sm:$0xff]  ;;  %v267_v44 = vld [vmem:[%s3925_s1 + $0x748] sm:$0xff]  ;;  %v284_v46 = vld [vmem:[%s3925_s1 + $0x7d0] sm:$0xff] }
  0x50   :  { %2211 = vmatprep.subr.bf16.mxu1 %v2210_v56  ;;  %v244_v56 = vld [vmem:[%s3925_s1 + $0x690] sm:$0xff]  ;;  %v2232_v61 = vpack.c.bf16 %v227_v52, %v226_v51  ;;  %v285_v47 = vld [vmem:[%s3925_s1 + $0x7d8] sm:$0xff]  ;;  %v270_v3 = vld [vmem:[%s3925_s1 + $0x760] sm:$0xff] }
  0x51   :  { %2181 = vmatpush3.bf16.msra.mxu0 %v2180_v62  ;;  %v3209_v62 = vld [vmem:[%s3924_s0 + $0x38] sm:$0xff]  ;;  %v236_v51 = vld [vmem:[%s3925_s1 + $0x650] sm:$0xff]  ;;  %v271_v5 = vld [vmem:[%s3925_s1 + $0x768] sm:$0xff] }
  0x52   :  { %2183 = vmatprep.subr.bf16.mxu0 %v2182_v0  ;;  %v2234_v0 = vpack.c.bf16 %v245_v57, %v244_v56  ;;  %v237_v52 = vld [vmem:[%s3925_s1 + $0x658] sm:$0xff]  ;;  %v254_v56 = vld [vmem:[%s3925_s1 + $0x6e0] sm:$0xff]  ;;  %v255_v57 = vld [vmem:[%s3925_s1 + $0x6e8] sm:$0xff] }
  0x53   :  { %2213 = vmatpush3.bf16.msra.mxu1 %v2212_v63  ;;  %v2264_v63 = vpack.c.bf16 %v259_v55, %v258_v53  ;;  %v268_v53 = vld [vmem:[%s3925_s1 + $0x750] sm:$0xff]  ;;  %v269_v55 = vld [vmem:[%s3925_s1 + $0x758] sm:$0xff] }
  0x54   :  { %2215 = vmatprep.subr.bf16.mxu1 %v2214_v4  ;;  %v2266_v4 = vpack.c.bf16 %v277_v59, %v276_v58  ;;  %v286_v58 = vld [vmem:[%s3925_s1 + $0x7e0] sm:$0xff]  ;;  %v287_v59 = vld [vmem:[%s3925_s1 + $0x7e8] sm:$0xff]  ;;  %v256_v6 = vld [vmem:[%s3925_s1 + $0x6f0] sm:$0xff] }
  0x55   :  { %2185 = vmatpush3.bf16.msra.mxu0 %v2184_v10  ;;  %v279_v10 = vld [vmem:[%s3925_s1 + $0x7a8] sm:$0xff]  ;;  %v257_v7 = vld [vmem:[%s3925_s1 + $0x6f8] sm:$0xff] }
  0x56   :  { %2187 = vmatprep.subr.bf16.mxu0 %v2186_v12  ;;  %v2236_v12 = vpack.c.bf16 %v229_v2, %v228_v1  ;;  %v2270_v17 = vpack.c.bf16 %v279_v10, %v278_v9  ;;  %v238_v1 = vld [vmem:[%s3925_s1 + $0x660] sm:$0xff]  ;;  %v239_v2 = vld [vmem:[%s3925_s1 + $0x668] sm:$0xff]  ;;  %v289_v9 = vld [vmem:[%s3925_s1 + $0x7f8] sm:$0xff] }
  0x57   :  { %2217 = vmatpush3.bf16.msra.mxu1 %v2216_v11  ;;  %v460_v11 = vcombine.high %v3209_v62, %v3209_v62  ;;  %v2256_v10 = vpack.c.bf16 %v239_v2, %v238_v1  ;;  %v297_v2 = vld [vmem:[%s3925_s1 + $0x838] sm:$0xff] }
  0x58   :  { %2219 = vmatprep.subr.bf16.mxu1 %v2218_v16  ;;  %v262_v16 = vld [vmem:[%s3925_s1 + $0x720] sm:$0xff] }
  0x59   :  { %2189 = vmatpush3.bf16.msra.mxu0 %v2188_v23 }
  0x5a   :  { %2191 = vmatprep.subr.bf16.mxu0 %v2190_v27  ;;  %v2242_v27 = vpack.c.bf16 %v249_v19, %v248_v18  ;;  %v338_v18 = vld [vmem:[%s3925_s1 + $0x980] sm:$0xff]  ;;  %v339_v19 = vld [vmem:[%s3925_s1 + $0x988] sm:$0xff] }
  0x5b   :  { %2221 = vmatpush3.bf16.msra.mxu1 %v2220_v24 }
  0x5c   :  { %2223 = vmatprep.subr.bf16.mxu1 %v2222_v31  ;;  %v2274_v31 = vpack.c.bf16 %v281_v22, %v280_v21 }
  0x5d   :  { %2193 = vmatpush3.bf16.msra.mxu0 %v2192_v38  ;;  %v2244_v38 = vpack.c.bf16 %v233_v29, %v232_v28  ;;  %v322_v28 = vld [vmem:[%s3925_s1 + $0x900] sm:$0xff]  ;;  %v2326_v29 = vpack.c.bf16 %v339_v19, %v338_v18 }
  0x5e   :  { %2195 = vmatprep.subr.bf16.mxu0 %v2194_v40  ;;  %v2246_v40 = vpack.c.bf16 %v251_v34, %v250_v33  ;;  %v340_v33 = vld [vmem:[%s3925_s1 + $0x990] sm:$0xff]  ;;  %v341_v34 = vld [vmem:[%s3925_s1 + $0x998] sm:$0xff] }
  0x5f   :  { %2225 = vmatpush3.bf16.msra.mxu1 %v2224_v39  ;;  %v2276_v39 = vpack.c.bf16 %v265_v32, %v264_v30  ;;  %v323_v30 = vld [vmem:[%s3925_s1 + $0x908] sm:$0xff]  ;;  %v309_v32 = vld [vmem:[%s3925_s1 + $0x898] sm:$0xff] }
  0x60   :  { %2227 = vmatprep.subr.bf16.mxu1 %v2226_v43  ;;  %v2278_v43 = vpack.c.bf16 %v283_v37, %v282_v35  ;;  %v3412_v35 = vld [vmem:[%s3924_s0 + $0x40] sm:$0xff] }
  0x61   :  { %2197 = vmatpush3.bf16.msra.mxu0 %v2196_v48  ;;  %v2248_v48 = vpack.c.bf16 %v235_v42, %v234_v41  ;;  %v292_v41 = vld [vmem:[%s3925_s1 + $0x810] sm:$0xff]  ;;  %v293_v42 = vld [vmem:[%s3925_s1 + $0x818] sm:$0xff] }
  0x62   :  { %2231 = vmatprep.subr.bf16.mxu0 %v2230_v50  ;;  %v2250_v50 = vpack.c.bf16 %v253_v25, %v252_v45  ;;  %v310_v45 = vld [vmem:[%s3925_s1 + $0x8a0] sm:$0xff]  ;;  %v311_v25 = vld [vmem:[%s3925_s1 + $0x8a8] sm:$0xff] }
  0x63   :  { %2229 = vmatpush3.bf16.msra.mxu1 %v2228_v49  ;;  %v2280_v49 = vpack.c.bf16 %v267_v44, %v266_v20  ;;  %v324_v20 = vld [vmem:[%s3925_s1 + $0x910] sm:$0xff]  ;;  %v325_v44 = vld [vmem:[%s3925_s1 + $0x918] sm:$0xff] }
  0x64   :  { %2263 = vmatprep.subr.bf16.mxu1 %v2262_v54  ;;  %822 = vmatmul.mubr.f32.vlgmr.msra.gmra.mrb[4].mxu0 %v2999_v26  ;;  %v230_v26 = vld [vmem:[%s3925_s1 + $0x620] sm:$0xff]  ;;  %v2282_v54 = vpack.c.bf16 %v285_v47, %v284_v46  ;;  %v461_v46 = vcombine.high %v3412_v35, %v3412_v35 }
  0x65   :  { %2233 = vmatpush3.bf16.msra.mxu0 %v2232_v61  ;;  %961 = vmatprep.mubr.f32.mxu0 %v459_v8  ;;  %v2240_v23 = vpack.c.bf16 %v231_v15, %v230_v26  ;;  %v2252_v61 = vpack.c.bf16 %v237_v52, %v236_v51  ;;  %v288_v8 = vld [vmem:[%s3925_s1 + $0x7f0] sm:$0xff]  ;;  %v342_v47 = vld [vmem:[%s3925_s1 + $0x9a0] sm:$0xff]  ;;  %v2332_v51 = vpack.c.bf16 %v325_v44, %v324_v20 }
  0x66   :  { %892 = vmatmul.mubr.f32.vlgmr.msra.gmra.mrb[4].mxu1 %v3021_v36  ;;  %2235 = vmatprep.subr.bf16.mxu0 %v2234_v0  ;;  %v263_v36 = vld [vmem:[%s3925_s1 + $0x728] sm:$0xff]  ;;  %v2254_v0 = vpack.c.bf16 %v255_v57, %v254_v56  ;;  %v272_v26 = vld [vmem:[%s3925_s1 + $0x770] sm:$0xff]  ;;  %v2290_v15 = vpack.c.bf16 %v289_v9, %v288_v8  ;;  %v2302_v52 = vpack.c.bf16 %v311_v25, %v310_v45  ;;  %v313_v57 = vld [vmem:[%s3925_s1 + $0x8b8] sm:$0xff] }
  0x67   :  { %2265 = vmatpush3.bf16.msra.mxu1 %v2264_v63  ;;  %1031 = vmatprep.mubr.f32.mxu1 %v460_v11  ;;  %v2272_v24 = vpack.c.bf16 %v263_v36, %v262_v16  ;;  %v2284_v63 = vpack.c.bf16 %v269_v55, %v268_v53  ;;  %v2288_v11 = vpack.c.bf16 %v271_v5, %v270_v3  ;;  %v273_v16 = vld [vmem:[%s3925_s1 + $0x778] sm:$0xff]  ;;  %v307_v36 = vld [vmem:[%s3925_s1 + $0x888] sm:$0xff]  ;;  %v312_v56 = vld [vmem:[%s3925_s1 + $0x8b0] sm:$0xff] }
  0x68   :  { %2267 = vmatprep.subr.bf16.mxu1 %v2266_v4  ;;  %v2286_v4 = vpack.c.bf16 %v287_v59, %v286_v58  ;;  %v2292_v22 = vpack.c.bf16 %v273_v16, %v272_v26  ;;  %v295_v53 = vld [vmem:[%s3925_s1 + $0x828] sm:$0xff]  ;;  %v344_v58 = vld [vmem:[%s3925_s1 + $0x9b0] sm:$0xff]  ;;  %v345_v59 = vld [vmem:[%s3925_s1 + $0x9b8] sm:$0xff]  ;;  %v2306_v1 = vpack.c.bf16 %v313_v57, %v312_v56 }
  0x69   :  { %2237 = vmatpush3.bf16.msra.mxu0 %v2236_v12  ;;  %v2258_v12 = vpack.c.bf16 %v257_v7, %v256_v6  ;;  %v328_v3 = vld [vmem:[%s3925_s1 + $0x930] sm:$0xff]  ;;  %v2338_v5 = vpack.c.bf16 %v345_v59, %v344_v58  ;;  %v314_v6 = vld [vmem:[%s3925_s1 + $0x8c0] sm:$0xff]  ;;  %v315_v7 = vld [vmem:[%s3925_s1 + $0x8c8] sm:$0xff] }
  0x6a   :  { %2239 = vmatprep.subr.bf16.mxu0 %v2238_v14  ;;  %v241_v14 = vld [vmem:[%s3925_s1 + $0x678] sm:$0xff] }
  0x6b   :  { %2269 = vmatpush3.bf16.msra.mxu1 %v2268_v13  ;;  %v240_v13 = vld [vmem:[%s3925_s1 + $0x670] sm:$0xff] }
  0x6c   :  { %2271 = vmatprep.subr.bf16.mxu1 %v2270_v17  ;;  %v306_v17 = vld [vmem:[%s3925_s1 + $0x880] sm:$0xff]  ;;  %v2260_v21 = vpack.c.bf16 %v241_v14, %v240_v13 }
  0x6d   :  { %2241 = vmatpush3.bf16.msra.mxu0 %v2240_v23  ;;  %v2294_v23 = vpack.c.bf16 %v307_v36, %v306_v17 }
  0x6e   :  { %2243 = vmatprep.subr.bf16.mxu0 %v2242_v27  ;;  %v291_v27 = vld [vmem:[%s3925_s1 + $0x808] sm:$0xff] }
  0x6f   :  { %2273 = vmatpush3.bf16.msra.mxu1 %v2272_v24  ;;  %v290_v24 = vld [vmem:[%s3925_s1 + $0x800] sm:$0xff] }
  0x70   :  { %2275 = vmatprep.subr.bf16.mxu1 %v2274_v31  ;;  %v308_v31 = vld [vmem:[%s3925_s1 + $0x890] sm:$0xff]  ;;  %v2296_v37 = vpack.c.bf16 %v291_v27, %v290_v24 }
  0x71   :  { %2245 = vmatpush3.bf16.msra.mxu0 %v2244_v38  ;;  %v3417_v38 = vld [vmem:[%s3924_s0 + $0x48] sm:$0xff] }
  0x72   :  { %2247 = vmatprep.subr.bf16.mxu0 %v2246_v40  ;;  %v2298_v40 = vpack.c.bf16 %v309_v32, %v308_v31 }
  0x73   :  { %2277 = vmatpush3.bf16.msra.mxu1 %v2276_v39  ;;  %v2328_v39 = vpack.c.bf16 %v323_v30, %v322_v28 }
  0x74   :  { %2279 = vmatprep.subr.bf16.mxu1 %v2278_v43  ;;  %v2330_v43 = vpack.c.bf16 %v341_v34, %v340_v33 }
  0x75   :  { %2249 = vmatpush3.bf16.msra.mxu0 %v2248_v48  ;;  %v343_v48 = vld [vmem:[%s3925_s1 + $0x9a8] sm:$0xff] }
  0x76   :  { %2251 = vmatprep.subr.bf16.mxu0 %v2250_v50  ;;  %v2300_v50 = vpack.c.bf16 %v293_v42, %v292_v41  ;;  %v2334_v55 = vpack.c.bf16 %v343_v48, %v342_v47 }
  0x77   :  { %2281 = vmatpush3.bf16.msra.mxu1 %v2280_v49  ;;  %v462_v49 = vcombine.high %v3417_v38, %v3417_v38 }
  0x78   :  { %2283 = vmatprep.subr.bf16.mxu1 %v2282_v54  ;;  %v326_v54 = vld [vmem:[%s3925_s1 + $0x920] sm:$0xff] }
  0x79   :  { %2253 = vmatpush3.bf16.msra.mxu0 %v2252_v61 }
  0x7a   :  { %2255 = vmatprep.subr.bf16.mxu0 %v2254_v0 }
  0x7b   :  { %2285 = vmatpush3.bf16.msra.mxu1 %v2284_v63  ;;  %v296_v63 = vld [vmem:[%s3925_s1 + $0x830] sm:$0xff] }
  0x7c   :  { %2287 = vmatprep.subr.bf16.mxu1 %v2286_v4  ;;  %v329_v4 = vld [vmem:[%s3925_s1 + $0x938] sm:$0xff] }
  0x7d   :  { %2257 = vmatpush3.bf16.msra.mxu0 %v2256_v10 }
  0x7e   :  { %2259 = vmatprep.subr.bf16.mxu0 %v2258_v12 }
  0x7f   :  { %2289 = vmatpush3.bf16.msra.mxu1 %v2288_v11 }
  0x80   :  { %2291 = vmatprep.subr.bf16.mxu1 %v2290_v15 }
  0x81   :  { %2261 = vmatpush3.bf16.msra.mxu0 %v2260_v21 }
  0x82   :  { %2295 = vmatprep.subr.bf16.mxu0 %v2294_v23 }
  0x83   :  { %2293 = vmatpush3.bf16.msra.mxu1 %v2292_v22 }
  0x84   :  { %2327 = vmatprep.subr.bf16.mxu1 %v2326_v29  ;;  %962 = vmatmul.mubr.f32.vlgmr.msra.gmra.mrb[6].mxu0 %v3204_v60  ;;  %v294_v60 = vld [vmem:[%s3925_s1 + $0x820] sm:$0xff] }
  0x85   :  { %2297 = vmatpush3.bf16.msra.mxu0 %v2296_v37  ;;  %1101 = vmatprep.mubr.f32.mxu0 %v461_v46  ;;  %v2304_v61 = vpack.c.bf16 %v295_v53, %v294_v60 }
  0x86   :  { %1032 = vmatmul.mubr.f32.vlgmr.msra.gmra.mrb[6].mxu1 %v3209_v62  ;;  %2299 = vmatprep.subr.bf16.mxu0 %v2298_v40  ;;  %v327_v62 = vld [vmem:[%s3925_s1 + $0x928] sm:$0xff] }
  0x87   :  { %2329 = vmatpush3.bf16.msra.mxu1 %v2328_v39  ;;  %1171 = vmatprep.mubr.f32.mxu1 %v462_v49  ;;  %v2336_v0 = vpack.c.bf16 %v327_v62, %v326_v54 }
  0x88   :  { %2331 = vmatprep.subr.bf16.mxu1 %v2330_v43 }
  0x89   :  { %2301 = vmatpush3.bf16.msra.mxu0 %v2300_v50 }
  0x8a   :  { %2303 = vmatprep.subr.bf16.mxu0 %v2302_v52 }
  0x8b   :  { %2333 = vmatpush3.bf16.msra.mxu1 %v2332_v51 }
  0x8c   :  { %2335 = vmatprep.subr.bf16.mxu1 %v2334_v55 }
  0x8d   :  { %10 = vsyncpa [#allocation3], 0  ;;  %v346_v8 = vld [vmem:[%s3925_s1 + $0x9c0] sm:$0xff]  ;;  %v347_v9 = vld [vmem:[%s3925_s1 + $0x9c8] sm:$0xff]  ;;  %2305 = vmatpush3.bf16.msra.mxu0 %v2304_v61  ;;  %v2308_v10 = vpack.c.bf16 %v297_v2, %v296_v63  ;;  %v2340_v11 = vpack.c.bf16 %v329_v4, %v328_v3  ;;  %v2310_v12 = vpack.c.bf16 %v315_v7, %v314_v6  ;;  %vm2513_vm0 = vmmov 0   ;;  %s2515_s23 = smov 8  }
  0x8e   :  { %2307 = vmatprep.subr.bf16.mxu0 %v2306_v1  ;;  %v298_v13 = vld [vmem:[%s3925_s1 + $0x840] sm:$0xff]  ;;  %v299_v14 = vld [vmem:[%s3925_s1 + $0x848] sm:$0xff]  ;;  %v2342_v15 = vpack.c.bf16 %v347_v9, %v346_v8  ;;  %v316_v17 = vld [vmem:[%s3925_s1 + $0x8d0] sm:$0xff]  ;;  %vm1481_vm1 = vcmask 58368   ;;  %s2516_s24 = smov 16   ;;  %vm1487_vm2 = vcmask 126018  }
  0x8f   :  { %2337 = vmatpush3.bf16.msra.mxu1 %v2336_v0  ;;  %v330_v26 = vld [vmem:[%s3925_s1 + $0x940] sm:$0xff]  ;;  %v331_v16 = vld [vmem:[%s3925_s1 + $0x948] sm:$0xff]  ;;  %v317_v36 = vld [vmem:[%s3925_s1 + $0x8d8] sm:$0xff]  ;;  %v2312_v21 = vpack.c.bf16 %v299_v14, %v298_v13  ;;  %s2517_s25 = smov [#allocation2]   ;;  %vm1496_vm3 = vcmask 189568  }
  0x90   :  { %2339 = vmatprep.subr.bf16.mxu1 %v2338_v5  ;;  %v348_v18 = vld [vmem:[%s3925_s1 + $0x9d0] sm:$0xff]  ;;  %v349_v19 = vld [vmem:[%s3925_s1 + $0x9d8] sm:$0xff]  ;;  %v2344_v22 = vpack.c.bf16 %v331_v16, %v330_v26  ;;  %v2314_v23 = vpack.c.bf16 %v317_v36, %v316_v17  ;;  %v318_v31 = vld [vmem:[%s3925_s1 + $0x8e0] sm:$0xff]  ;;  %s1504_s26 = sshll.u32 %s2517_s25, 4  ;;  %s1505_s26 = int_to_ptr.vmem [resolvable:$true] %s1504_s26 }
  0x91   :  { %2309 = vmatpush3.bf16.msra.mxu0 %v2308_v10  ;;  %v300_v24 = vld [vmem:[%s3925_s1 + $0x850] sm:$0xff]  ;;  %v301_v27 = vld [vmem:[%s3925_s1 + $0x858] sm:$0xff]  ;;  %v2346_v29 = vpack.c.bf16 %v349_v19, %v348_v18  ;;  %v319_v32 = vld [vmem:[%s3925_s1 + $0x8e8] sm:$0xff]  ;;  %p2493_p1 = scmp.lt.s32.totalorder %s1505_s26, %s1505_s26 }
  0x92   :  { %2311 = vmatprep.subr.bf16.mxu0 %v2310_v12  ;;  %v332_v28 = vld [vmem:[%s3925_s1 + $0x950] sm:$0xff]  ;;  %v333_v30 = vld [vmem:[%s3925_s1 + $0x958] sm:$0xff]  ;;  %v350_v33 = vld [vmem:[%s3925_s1 + $0x9e0] sm:$0xff]  ;;  %v2316_v37 = vpack.c.bf16 %v301_v27, %v300_v24  ;;  %v2318_v40 = vpack.c.bf16 %v319_v32, %v318_v31 }
  0x93   :  { %2341 = vmatpush3.bf16.msra.mxu1 %v2340_v11  ;;  %v351_v34 = vld [vmem:[%s3925_s1 + $0x9e8] sm:$0xff]  ;;  %v2348_v39 = vpack.c.bf16 %v333_v30, %v332_v28  ;;  %v302_v41 = vld [vmem:[%s3925_s1 + $0x860] sm:$0xff]  ;;  %v320_v45 = vld [vmem:[%s3925_s1 + $0x8f0] sm:$0xff] }
  0x94   :  { %2343 = vmatprep.subr.bf16.mxu1 %v2342_v15  ;;  %v303_v42 = vld [vmem:[%s3925_s1 + $0x868] sm:$0xff]  ;;  %v334_v20 = vld [vmem:[%s3925_s1 + $0x960] sm:$0xff]  ;;  %v2350_v43 = vpack.c.bf16 %v351_v34, %v350_v33  ;;  %v321_v25 = vld [vmem:[%s3925_s1 + $0x8f8] sm:$0xff] }
  0x95   :  { %2313 = vmatpush3.bf16.msra.mxu0 %v2312_v21  ;;  %v335_v44 = vld [vmem:[%s3925_s1 + $0x968] sm:$0xff]  ;;  %v352_v46 = vld [vmem:[%s3925_s1 + $0x9f0] sm:$0xff]  ;;  %v353_v47 = vld [vmem:[%s3925_s1 + $0x9f8] sm:$0xff]  ;;  %v2320_v48 = vpack.c.bf16 %v303_v42, %v302_v41  ;;  %v2322_v50 = vpack.c.bf16 %v321_v25, %v320_v45 }
  0x96   :  { %2315 = vmatprep.subr.bf16.mxu0 %v2314_v23  ;;  %v2352_v49 = vpack.c.bf16 %v335_v44, %v334_v20  ;;  %v304_v51 = vld [vmem:[%s3925_s1 + $0x870] sm:$0xff]  ;;  %v305_v52 = vld [vmem:[%s3925_s1 + $0x878] sm:$0xff]  ;;  %v2354_v53 = vpack.c.bf16 %v353_v47, %v352_v46  ;;  %v370_v55 = vld [vmem:[%s3925_s1 + $0xa80] sm:$0xff] }
  0x97   :  { %2345 = vmatpush3.bf16.msra.mxu1 %v2344_v22  ;;  %v336_v60 = vld [vmem:[%s3925_s1 + $0x970] sm:$0xff]  ;;  %v337_v54 = vld [vmem:[%s3925_s1 + $0x978] sm:$0xff]  ;;  %v371_v62 = vld [vmem:[%s3925_s1 + $0xa88] sm:$0xff]  ;;  %v2324_v58 = vpack.c.bf16 %v305_v52, %v304_v51 }
  0x98   :  { %2347 = vmatprep.subr.bf16.mxu1 %v2346_v29  ;;  %v402_v56 = vld [vmem:[%s3925_s1 + $0xb80] sm:$0xff]  ;;  %v403_v57 = vld [vmem:[%s3925_s1 + $0xb88] sm:$0xff]  ;;  %v2356_v59 = vpack.c.bf16 %v337_v54, %v336_v60  ;;  %v2358_v61 = vpack.c.bf16 %v371_v62, %v370_v55  ;;  %v372_v4 = vld [vmem:[%s3925_s1 + $0xa90] sm:$0xff] }
  0x99   :  { %2317 = vmatpush3.bf16.msra.mxu0 %v2316_v37  ;;  %v354_v63 = vld [vmem:[%s3925_s1 + $0xa00] sm:$0xff]  ;;  %v355_v0 = vld [vmem:[%s3925_s1 + $0xa08] sm:$0xff]  ;;  %v2390_v2 = vpack.c.bf16 %v403_v57, %v402_v56  ;;  %v373_v5 = vld [vmem:[%s3925_s1 + $0xa98] sm:$0xff] }
  0x9a   :  { %2319 = vmatprep.subr.bf16.mxu0 %v2318_v40  ;;  %v386_v1 = vld [vmem:[%s3925_s1 + $0xb00] sm:$0xff]  ;;  %v387_v3 = vld [vmem:[%s3925_s1 + $0xb08] sm:$0xff]  ;;  %v404_v6 = vld [vmem:[%s3925_s1 + $0xb90] sm:$0xff]  ;;  %v2360_v9 = vpack.c.bf16 %v355_v0, %v354_v63  ;;  %v2362_v12 = vpack.c.bf16 %v373_v5, %v372_v4 }
  0x9b   :  { %2349 = vmatpush3.bf16.msra.mxu1 %v2348_v39  ;;  %v405_v7 = vld [vmem:[%s3925_s1 + $0xb98] sm:$0xff]  ;;  %v3620_v8 = vld [vmem:[%s3924_s0 + $0x50] sm:$0xff]  ;;  %v2392_v11 = vpack.c.bf16 %v387_v3, %v386_v1  ;;  %v374_v17 = vld [vmem:[%s3925_s1 + $0xaa0] sm:$0xff] }
  0x9c   :  { %2351 = vmatprep.subr.bf16.mxu1 %v2350_v43  ;;  %v3625_v10 = vld [vmem:[%s3924_s0 + $0x58] sm:$0xff]  ;;  %v356_v13 = vld [vmem:[%s3925_s1 + $0xa10] sm:$0xff]  ;;  %v2394_v15 = vpack.c.bf16 %v405_v7, %v404_v6  ;;  %v375_v36 = vld [vmem:[%s3925_s1 + $0xaa8] sm:$0xff]  ;;  %v463_v18 = vcombine.high %v3620_v8, %v3620_v8 }
  0x9d   :  { %2321 = vmatpush3.bf16.msra.mxu0 %v2320_v48  ;;  %v357_v14 = vld [vmem:[%s3925_s1 + $0xa18] sm:$0xff]  ;;  %v388_v26 = vld [vmem:[%s3925_s1 + $0xb10] sm:$0xff]  ;;  %v406_v19 = vld [vmem:[%s3925_s1 + $0xba0] sm:$0xff]  ;;  %v464_v22 = vcombine.high %v3625_v10, %v3625_v10  ;;  %v2366_v27 = vpack.c.bf16 %v375_v36, %v374_v17 }
  0x9e   :  { %2323 = vmatprep.subr.bf16.mxu0 %v2322_v50  ;;  %v389_v16 = vld [vmem:[%s3925_s1 + $0xb18] sm:$0xff]  ;;  %v407_v21 = vld [vmem:[%s3925_s1 + $0xba8] sm:$0xff]  ;;  %v2364_v23 = vpack.c.bf16 %v357_v14, %v356_v13  ;;  %v390_v29 = vld [vmem:[%s3925_s1 + $0xb20] sm:$0xff] }
  0x9f   :  { %2353 = vmatpush3.bf16.msra.mxu1 %v2352_v49  ;;  %v2396_v24 = vpack.c.bf16 %v389_v16, %v388_v26  ;;  %v359_v28 = vld [vmem:[%s3925_s1 + $0xa28] sm:$0xff]  ;;  %v2398_v30 = vpack.c.bf16 %v407_v21, %v406_v19  ;;  %v376_v31 = vld [vmem:[%s3925_s1 + $0xab0] sm:$0xff]  ;;  %v377_v32 = vld [vmem:[%s3925_s1 + $0xab8] sm:$0xff] }
  0xa0   :  { %2355 = vmatprep.subr.bf16.mxu1 %v2354_v53  ;;  %v408_v33 = vld [vmem:[%s3925_s1 + $0xbb0] sm:$0xff]  ;;  %v409_v34 = vld [vmem:[%s3925_s1 + $0xbb8] sm:$0xff]  ;;  %v2370_v40 = vpack.c.bf16 %v377_v32, %v376_v31  ;;  %v378_v45 = vld [vmem:[%s3925_s1 + $0xac0] sm:$0xff] }
  0xa1   :  { %2325 = vmatpush3.bf16.msra.mxu0 %v2324_v58  ;;  %v360_v41 = vld [vmem:[%s3925_s1 + $0xa30] sm:$0xff]  ;;  %v361_v42 = vld [vmem:[%s3925_s1 + $0xa38] sm:$0xff]  ;;  %v2402_v43 = vpack.c.bf16 %v409_v34, %v408_v33  ;;  %v379_v25 = vld [vmem:[%s3925_s1 + $0xac8] sm:$0xff]  ;;  %v2512_v34 = vmov 0.0|0.0  }
  0xa2   :  { %2359 = vmatprep.subr.bf16.mxu0 %v2358_v61  ;;  %v392_v20 = vld [vmem:[%s3925_s1 + $0xb30] sm:$0xff]  ;;  %v393_v44 = vld [vmem:[%s3925_s1 + $0xb38] sm:$0xff]  ;;  %v410_v46 = vld [vmem:[%s3925_s1 + $0xbc0] sm:$0xff]  ;;  %v2372_v48 = vpack.c.bf16 %v361_v42, %v360_v41  ;;  %v2374_v50 = vpack.c.bf16 %v379_v25, %v378_v45 }
  0xa3   :  { %2357 = vmatpush3.bf16.msra.mxu1 %v2356_v59  ;;  %v411_v47 = vld [vmem:[%s3925_s1 + $0xbc8] sm:$0xff]  ;;  %v2404_v49 = vpack.c.bf16 %v393_v44, %v392_v20  ;;  %v362_v51 = vld [vmem:[%s3925_s1 + $0xa40] sm:$0xff]  ;;  %v380_v55 = vld [vmem:[%s3925_s1 + $0xad0] sm:$0xff]  ;;  %v2514_v20 = vmov 0.0  }
  0xa4   :  { %2391 = vmatprep.subr.bf16.mxu1 %v2390_v2  ;;  %1102 = vmatmul.mubr.f32.vlgmr.msra.gmra.mrb[8].mxu0 %v3412_v35  ;;  %v358_v35 = vld [vmem:[%s3925_s1 + $0xa20] sm:$0xff]  ;;  %v363_v52 = vld [vmem:[%s3925_s1 + $0xa48] sm:$0xff]  ;;  %v2406_v53 = vpack.c.bf16 %v411_v47, %v410_v46  ;;  %v381_v62 = vld [vmem:[%s3925_s1 + $0xad8] sm:$0xff] }
  0xa5   :  { %2361 = vmatpush3.bf16.msra.mxu0 %v2360_v9  ;;  %1241 = vmatprep.mubr.f32.mxu0 %v463_v18  ;;  %v2368_v37 = vpack.c.bf16 %v359_v28, %v358_v35  ;;  %v394_v60 = vld [vmem:[%s3925_s1 + $0xb40] sm:$0xff]  ;;  %v395_v54 = vld [vmem:[%s3925_s1 + $0xb48] sm:$0xff]  ;;  %v412_v56 = vld [vmem:[%s3925_s1 + $0xbd0] sm:$0xff]  ;;  %v2376_v58 = vpack.c.bf16 %v363_v52, %v362_v51  ;;  %v2378_v61 = vpack.c.bf16 %v381_v62, %v380_v55 }
  0xa6   :  { %1172 = vmatmul.mubr.f32.vlgmr.msra.gmra.mrb[8].mxu1 %v3417_v38  ;;  %2363 = vmatprep.subr.bf16.mxu0 %v2362_v12  ;;  %v391_v38 = vld [vmem:[%s3925_s1 + $0xb28] sm:$0xff]  ;;  %v413_v57 = vld [vmem:[%s3925_s1 + $0xbd8] sm:$0xff]  ;;  %v2408_v59 = vpack.c.bf16 %v395_v54, %v394_v60  ;;  %v364_v63 = vld [vmem:[%s3925_s1 + $0xa50] sm:$0xff] }
  0xa7   :  { %2393 = vmatpush3.bf16.msra.mxu1 %v2392_v11  ;;  %1311 = vmatprep.mubr.f32.mxu1 %v464_v22  ;;  %v2400_v39 = vpack.c.bf16 %v391_v38, %v390_v29  ;;  %v365_v0 = vld [vmem:[%s3925_s1 + $0xa58] sm:$0xff]  ;;  %v396_v1 = vld [vmem:[%s3925_s1 + $0xb50] sm:$0xff]  ;;  %v2410_v2 = vpack.c.bf16 %v413_v57, %v412_v56  ;;  %v382_v4 = vld [vmem:[%s3925_s1 + $0xae0] sm:$0xff] }
  0xa8   :  { %2395 = vmatprep.subr.bf16.mxu1 %v2394_v15  ;;  %v397_v3 = vld [vmem:[%s3925_s1 + $0xb58] sm:$0xff]  ;;  %v383_v5 = vld [vmem:[%s3925_s1 + $0xae8] sm:$0xff]  ;;  %v414_v6 = vld [vmem:[%s3925_s1 + $0xbe0] sm:$0xff]  ;;  %v2380_v9 = vpack.c.bf16 %v365_v0, %v364_v63 }
  0xa9   :  { %2365 = vmatpush3.bf16.msra.mxu0 %v2364_v23  ;;  %v415_v7 = vld [vmem:[%s3925_s1 + $0xbe8] sm:$0xff]  ;;  %v2412_v11 = vpack.c.bf16 %v397_v3, %v396_v1  ;;  %v2382_v12 = vpack.c.bf16 %v383_v5, %v382_v4  ;;  %v366_v13 = vld [vmem:[%s3925_s1 + $0xa60] sm:$0xff]  ;;  %v384_v17 = vld [vmem:[%s3925_s1 + $0xaf0] sm:$0xff] }
  0xaa   :  { %2367 = vmatprep.subr.bf16.mxu0 %v2366_v27  ;;  %v367_v14 = vld [vmem:[%s3925_s1 + $0xa68] sm:$0xff]  ;;  %v398_v26 = vld [vmem:[%s3925_s1 + $0xb60] sm:$0xff]  ;;  %v2414_v15 = vpack.c.bf16 %v415_v7, %v414_v6  ;;  %v385_v36 = vld [vmem:[%s3925_s1 + $0xaf8] sm:$0xff] }
  0xab   :  { %2397 = vmatpush3.bf16.msra.mxu1 %v2396_v24  ;;  %v399_v16 = vld [vmem:[%s3925_s1 + $0xb68] sm:$0xff]  ;;  %v416_v18 = vld [vmem:[%s3925_s1 + $0xbf0] sm:$0xff]  ;;  %v417_v19 = vld [vmem:[%s3925_s1 + $0xbf8] sm:$0xff]  ;;  %v2384_v21 = vpack.c.bf16 %v367_v14, %v366_v13  ;;  %v2386_v23 = vpack.c.bf16 %v385_v36, %v384_v17 }
  0xac   :  { %2399 = vmatprep.subr.bf16.mxu1 %v2398_v30  ;;  %v2416_v22 = vpack.c.bf16 %v399_v16, %v398_v26  ;;  %v368_v24 = vld [vmem:[%s3925_s1 + $0xa70] sm:$0xff]  ;;  %v369_v27 = vld [vmem:[%s3925_s1 + $0xa78] sm:$0xff]  ;;  %v2418_v35 = vpack.c.bf16 %v417_v19, %v416_v18  ;;  %v418_v31 = vld [vmem:[%s3925_s1 + $0xc00] sm:$0xff] }
  0xad   :  { %2369 = vmatpush3.bf16.msra.mxu0 %v2368_v37  ;;  %v400_v28 = vld [vmem:[%s3925_s1 + $0xb70] sm:$0xff]  ;;  %v401_v29 = vld [vmem:[%s3925_s1 + $0xb78] sm:$0xff]  ;;  %v2388_v30 = vpack.c.bf16 %v369_v27, %v368_v24  ;;  %v419_v32 = vld [vmem:[%s3925_s1 + $0xc08] sm:$0xff] }
  0xae   :  { %2371 = vmatprep.subr.bf16.mxu0 %v2370_v40  ;;  %v2420_v38 = vpack.c.bf16 %v401_v29, %v400_v28  ;;  %v2423_v33 = vpack.c.bf16 %v419_v32, %v418_v31  ;;  %v420_v37 = vld [vmem:[%s3925_s1 + $0xc10] sm:$0xff]  ;;  %v422_v41 = vld [vmem:[%s3925_s1 + $0xc20] sm:$0xff]  ;;  %v423_v42 = vld [vmem:[%s3925_s1 + $0xc28] sm:$0xff] }
  0xaf   :  { %2401 = vmatpush3.bf16.msra.mxu1 %v2400_v39  ;;  %v421_v39 = vld [vmem:[%s3925_s1 + $0xc18] sm:$0xff]  ;;  %v426_v45 = vld [vmem:[%s3925_s1 + $0xc40] sm:$0xff]  ;;  %v427_v25 = vld [vmem:[%s3925_s1 + $0xc48] sm:$0xff] }
  0xb0   :  { %2403 = vmatprep.subr.bf16.mxu1 %v2402_v43  ;;  %v2426_v40 = vpack.c.bf16 %v421_v39, %v420_v37  ;;  %v425_v43 = vld [vmem:[%s3925_s1 + $0xc38] sm:$0xff]  ;;  %v2435_v46 = vpack.c.bf16 %v427_v25, %v426_v45  ;;  %v428_v47 = vld [vmem:[%s3925_s1 + $0xc50] sm:$0xff]  ;;  %v431_v51 = vld [vmem:[%s3925_s1 + $0xc68] sm:$0xff] }
  0xb1   :  { %2373 = vmatpush3.bf16.msra.mxu0 %v2372_v48  ;;  %v429_v48 = vld [vmem:[%s3925_s1 + $0xc58] sm:$0xff]  ;;  %v432_v60 = vld [vmem:[%s3925_s1 + $0xc70] sm:$0xff]  ;;  %v33_v55 = vld [vmem:[%s3924_s0 + $0x60] sm:$0xf] }
  0xb2   :  { %2375 = vmatprep.subr.bf16.mxu0 %v2374_v50  ;;  %v430_v50 = vld [vmem:[%s3925_s1 + $0xc60] sm:$0xff]  ;;  %v1390_v14 = vld [vmem:[%s3927_s3 + $0x10] sm:$0xff]  ;;  %v1391_v26 = vld [vmem:[%s3927_s3 + $0x18] sm:$0xff] }
  0xb3   :  { %2405 = vmatpush3.bf16.msra.mxu1 %v2404_v49  ;;  %v2438_v49 = vpack.c.bf16 %v429_v48, %v428_v47  ;;  %v2441_v52 = vpack.c.bf16 %v431_v51, %v430_v50  ;;  %v1512_v56 = vld [vmem:[%s3926_s2] ss:$0 sm:$0xff]  ;;  %v2450_v16 = vpack.c.bf16 %v1391_v26, %v1390_v14  ;;  %v1393_v36 = vld [vmem:[%s3927_s3 + $0x28] sm:$0xff]  ;;  %v1394_v19 = vld [vmem:[%s3927_s3 + $0x30] sm:$0xff] }
  0xb4   :  { %2407 = vmatprep.subr.bf16.mxu1 %v2406_v53  ;;  %v433_v53 = vld [vmem:[%s3925_s1 + $0xc78] sm:$0xff]  ;;  %v1392_v17 = vld [vmem:[%s3927_s3 + $0x20] sm:$0xff]  ;;  %v1397_v24 = vld [vmem:[%s3927_s3 + $0x48] sm:$0xff] }
  0xb5   :  { %2377 = vmatpush3.bf16.msra.mxu0 %v2376_v58  ;;  %v2444_v54 = vpack.c.bf16 %v433_v53, %v432_v60  ;;  %v2453_v18 = vpack.c.bf16 %v1393_v36, %v1392_v17  ;;  %v1399_v28 = vld [vmem:[%s3927_s3 + $0x58] sm:$0xff]  ;;  %v1402_v32 = vld [vmem:[%s3927_s3 + $0x70] sm:$0xff] }
  0xb6   :  { %2379 = vmatprep.subr.bf16.mxu0 %v2378_v61 }
  0xb7   :  { %2409 = vmatpush3.bf16.msra.mxu1 %v2408_v59 }
  0xb8   :  { %2411 = vmatprep.subr.bf16.mxu1 %v2410_v2 }
  0xb9   :  { %2381 = vmatpush3.bf16.msra.mxu0 %v2380_v9  ;;  %v1388_v9 = vld [vmem:[%s3927_s3] sm:$0xff] }
  0xba   :  { %2383 = vmatprep.subr.bf16.mxu0 %v2382_v12 }
  0xbb   :  { %2413 = vmatpush3.bf16.msra.mxu1 %v2412_v11  ;;  %v1389_v11 = vld [vmem:[%s3927_s3 + $0x8] sm:$0xff] }
  0xbc   :  { %2415 = vmatprep.subr.bf16.mxu1 %v2414_v15  ;;  %v2447_v13 = vpack.c.bf16 %v1389_v11, %v1388_v9 }
  0xbd   :  { %2385 = vmatpush3.bf16.msra.mxu0 %v2384_v21  ;;  %v1395_v21 = vld [vmem:[%s3927_s3 + $0x38] sm:$0xff] }
  0xbe   :  { %2387 = vmatprep.subr.bf16.mxu0 %v2386_v23  ;;  %v1396_v23 = vld [vmem:[%s3927_s3 + $0x40] sm:$0xff] }
  0xbf   :  { %2417 = vmatpush3.bf16.msra.mxu1 %v2416_v22  ;;  %v2456_v22 = vpack.c.bf16 %v1395_v21, %v1394_v19  ;;  %v2459_v27 = vpack.c.bf16 %v1397_v24, %v1396_v23 }
  0xc0   :  { %2419 = vmatprep.subr.bf16.mxu1 %v2418_v35  ;;  %v1398_v35 = vld [vmem:[%s3927_s3 + $0x50] sm:$0xff] }
  0xc1   :  { %2389 = vmatpush3.bf16.msra.mxu0 %v2388_v30  ;;  %v2462_v29 = vpack.c.bf16 %v1399_v28, %v1398_v35  ;;  %v1400_v30 = vld [vmem:[%s3927_s3 + $0x60] sm:$0xff] }
  0xc2   :  { %2422 = vmatprep.subr.bf16.mxu0 %v2512_v34 }
  0xc3   :  { %2421 = vmatpush3.bf16.msra.mxu1 %v2420_v38  ;;  %v1401_v38 = vld [vmem:[%s3927_s3 + $0x68] sm:$0xff] }
  0xc4   :  { %2446 = vmatprep.subr.bf16.mxu1 %v2512_v34  ;;  %1242 = vmatmul.mubr.f32.vlgmr.msra.gmra.mrb[10].mxu0 %v3620_v8  ;;  %v2429_v8 = vpack.c.bf16 %v423_v42, %v422_v41  ;;  %v2465_v31 = vpack.c.bf16 %v1401_v38, %v1400_v30 }
  0xc5   :  { %2424 = vmatpush3.bf16.msra.mxu0 %v2423_v33  ;;  %2000 = vmatprep.mubr.msk.f32.mxu0 %vm2513_vm0, %v2514_v20  ;;  %v1403_v33 = vld [vmem:[%s3927_s3 + $0x78] sm:$0xff] }
  0xc6   :  { %1312 = vmatmul.mubr.f32.vlgmr.msra.gmra.mrb[10].mxu1 %v3625_v10  ;;  %2425 = vmatprep.subr.bf16.mxu0 %v2512_v34  ;;  %v424_v10 = vld [vmem:[%s3925_s1 + $0xc30] sm:$0xff]  ;;  %v2468_v39 = vpack.c.bf16 %v1403_v33, %v1402_v32 }
  0xc7   :  { %2035 = vmatprep.mubr.msk.f32.mxu1 %vm2513_vm0, %v2514_v20  ;;  %v2432_v44 = vpack.c.bf16 %v425_v43, %v424_v10  ;;  %2448 = vmatpush3.bf16.msra.mxu1 %v2447_v13 }
  0xc8   :  { %2449 = vmatprep.subr.bf16.mxu1 %v2512_v34 }
  0xc9   :  { %2427 = vmatpush3.bf16.msra.mxu0 %v2426_v40 }
  0xca   :  { %2428 = vmatprep.subr.bf16.mxu0 %v2512_v34 }
  0xcb   :  { %2451 = vmatpush3.bf16.msra.mxu1 %v2450_v16 }
  0xcc   :  { %2452 = vmatprep.subr.bf16.mxu1 %v2512_v34 }
  0xcd   :  { %2430 = vmatpush3.bf16.msra.mxu0 %v2429_v8 }
  0xce   :  { %2431 = vmatprep.subr.bf16.mxu0 %v2512_v34 }
  0xcf   :  { %2454 = vmatpush3.bf16.msra.mxu1 %v2453_v18 }
  0xd0   :  { %2455 = vmatprep.subr.bf16.mxu1 %v2512_v34 }
  0xd1   :  { %2433 = vmatpush3.bf16.msra.mxu0 %v2432_v44 }
  0xd2   :  { %2434 = vmatprep.subr.bf16.mxu0 %v2512_v34 }
  0xd3   :  { %2457 = vmatpush3.bf16.msra.mxu1 %v2456_v22 }
  0xd4   :  { %2458 = vmatprep.subr.bf16.mxu1 %v2512_v34 }
  0xd5   :  { %2436 = vmatpush3.bf16.msra.mxu0 %v2435_v46 }
  0xd6   :  { %2437 = vmatprep.subr.bf16.mxu0 %v2512_v34 }
  0xd7   :  { %2460 = vmatpush3.bf16.msra.mxu1 %v2459_v27 }
  0xd8   :  { %2461 = vmatprep.subr.bf16.mxu1 %v2512_v34 }
  0xd9   :  { %2439 = vmatpush3.bf16.msra.mxu0 %v2438_v49 }
  0xda   :  { %2440 = vmatprep.subr.bf16.mxu0 %v2512_v34 }
  0xdb   :  { %2463 = vmatpush3.bf16.msra.mxu1 %v2462_v29 }
  0xdc   :  { %2464 = vmatprep.subr.bf16.mxu1 %v2512_v34 }
  0xdd   :  { %2442 = vmatpush3.bf16.msra.mxu0 %v2441_v52 }
  0xde   :  { %2443 = vmatprep.subr.bf16.mxu0 %v2512_v34 }
  0xdf   :  { %2466 = vmatpush3.bf16.msra.mxu1 %v2465_v31 }
  0xe0   :  { %2467 = vmatprep.subr.bf16.mxu1 %v2512_v34 }
  0xe1   :  { %2445 = vmatpush3.bf16.msra.mxu0 %v2444_v54 }
  0xe3   :  { %2469 = vmatpush3.bf16.msra.mxu1 %v2468_v39 }
  0xe4   :  { %2001 = vmatmul.mubr.f32.vlgmr.msra.gmra.mrb[12].mxu0 %v33_v55 }
  0xf7   :  { %v1546_v62 = vpop.f32.mrb[0].mxu0 }
  0xf8   :  { %v1547_v57 = vpop.f32.mrb[1].mxu0 }
  0xf9   :  { %v1581_v58 = vpop.f32.mrb[0].mxu1  ;;  %v1548_v59 = vadd.f32 %v1547_v57, %v1546_v62 }
  0xfa   :  { %v1582_v61 = vpop.f32.mrb[1].mxu1 }
  0xfb   :  { %v1583_v63 = vadd.f32 %v1582_v61, %v1581_v58  ;;  %v544_v0 = vadd.f32 %v1548_v59, %v1512_v56 }
  0xfd   :  { %v614_v1 = vadd.f32 %v1583_v63, %v544_v0 }
 0x117   :  { %v1616_v2 = vpop.f32.mrb[2].mxu0 }
 0x118   :  { %v1617_v3 = vpop.f32.mrb[3].mxu0 }
 0x119   :  { %v1651_v4 = vpop.f32.mrb[2].mxu1  ;;  %v1618_v5 = vadd.f32 %v1617_v3, %v1616_v2 }
 0x11a   :  { %v1652_v6 = vpop.f32.mrb[3].mxu1 }
 0x11b   :  { %v1653_v7 = vadd.f32 %v1652_v6, %v1651_v4  ;;  %v684_v12 = vadd.f32 %v1618_v5, %v614_v1  ;;  %v1513_v6 = vld [vmem:[%s3928_s4] ss:$0 sm:$0xff]  ;;  %s2488_s4 = scalar_lea.vmem %s1505_s26, 32 }
 0x11c   :  { %p2489_p0 = scmp.ne.s32.totalorder %s1505_s26, %s2488_s4  ;;  %p2494_p2 = scmp.lt.s32.totalorder %s2488_s4, %s2488_s4 }
 0x11d   :  { %v754_v15 = vadd.f32 %v1653_v7, %v684_v12 }
 0x11e   :  { %p2495_p3 = por %p2494_p2, %p2493_p1 }
 0x120   :  { %p2496_p4 = pnand %p2495_p3, %p2489_p0 }
 0x137   :  { %v1686_v37 = vpop.f32.mrb[4].mxu0 }
 0x138   :  { %v1687_v40 = vpop.f32.mrb[5].mxu0 }
 0x139   :  { %v1721_v41 = vpop.f32.mrb[4].mxu1  ;;  %v1688_v42 = vadd.f32 %v1687_v40, %v1686_v37 }
 0x13a   :  { %v1722_v20 = vpop.f32.mrb[5].mxu1 }
 0x13b   :  { %v1723_v8 = vadd.f32 %v1722_v20, %v1721_v41  ;;  %v824_v10 = vadd.f32 %v1688_v42, %v754_v15 }
 0x13d   :  { %v894_v43 = vadd.f32 %v1723_v8, %v824_v10 }
 0x157   :  { %v1756_v44 = vpop.f32.mrb[6].mxu0 }
 0x158   :  { %v1757_v34 = vpop.f32.mrb[7].mxu0 }
 0x159   :  { %v1791_v45 = vpop.f32.mrb[6].mxu1  ;;  %v1758_v25 = vadd.f32 %v1757_v34, %v1756_v44 }
 0x15a   :  { %v1792_v46 = vpop.f32.mrb[7].mxu1 }
 0x15b   :  { %v1793_v47 = vadd.f32 %v1792_v46, %v1791_v45  ;;  %v964_v48 = vadd.f32 %v1758_v25, %v894_v43 }
 0x15d   :  { %v1034_v49 = vadd.f32 %v1793_v47, %v964_v48 }
 0x177   :  { %v1826_v50 = vpop.f32.mrb[8].mxu0 }
 0x178   :  { %v1827_v51 = vpop.f32.mrb[9].mxu0 }
 0x179   :  { %v1861_v52 = vpop.f32.mrb[8].mxu1  ;;  %v1828_v60 = vadd.f32 %v1827_v51, %v1826_v50 }
 0x17a   :  { %v1862_v53 = vpop.f32.mrb[9].mxu1 }
 0x17b   :  { %v1863_v54 = vadd.f32 %v1862_v53, %v1861_v52  ;;  %v1104_v55 = vadd.f32 %v1828_v60, %v1034_v49 }
 0x17d   :  { %v1174_v62 = vadd.f32 %v1863_v54, %v1104_v55 }
 0x197   :  { %v1896_v56 = vpop.f32.mrb[10].mxu0 }
 0x198   :  { %v1897_v57 = vpop.f32.mrb[11].mxu0 }
 0x199   :  { %v1931_v58 = vpop.f32.mrb[10].mxu1  ;;  %v1898_v59 = vadd.f32 %v1897_v57, %v1896_v56 }
 0x19a   :  { %v1932_v61 = vpop.f32.mrb[11].mxu1 }
 0x19b   :  { %v1933_v63 = vadd.f32 %v1932_v61, %v1931_v58  ;;  %v1244_v0 = vadd.f32 %v1898_v59, %v1174_v62 }
 0x19d   :  { %v1314_v1 = vadd.f32 %v1933_v63, %v1244_v0 }
 0x1b7   :  { %v1383_v2 = vpop.f32.mrb[12].mxu0 }
 0x1b8   :  { %v1384_v3 = vadd.f32 %v1383_v2, %v1314_v1  ;;  %v2002_v4 = vpop.f32.mrb[13].mxu0 }
 0x1ba   :  { %v1387_v5 = vmax.f32 %v1384_v3, 0.0 }
 0x1bc   :  { %2036 = vmatmul.mubr.f32.vlgmr.msra.gmra.mrb[12].mxu1 %v1387_v5 }
 0x28f   :  { %v1477_v7 = vpop.f32.mrb[12].mxu1 }
 0x290   :  { %v1478_v9 = vadd.f32 %v1513_v6, %v1477_v7  ;;  %v2037_v11 = vpop.f32.mrb[13].mxu1 }
 0x292   :  { %1484 = vrot.lane.b32.xlu0 %v1478_v9, %s2515_s23  ;;  %v1489_v12 = vrot.slane %v1478_v9, 2  ;;  %1482 = vst.msk [vmem:[#allocation2] sm:$0x3] %vm1481_vm1, %v1478_v9 }
 0x294   :  { %v1491_v13 = vsub.f32 %v1478_v9, %v1489_v12 }
 0x296   :  { %1493 = vrot.lane.b32.xlu0 %v1491_v13, %s2516_s24 }
 0x304   :  { %v1485_v14 = vpop.permute.xlu0 %1484 }
 0x305   :  { %1488 = vst.msk [vmem:[#allocation2 - $0x2] sm:$0xc] %vm1487_vm2, %v1485_v14 }
 0x308   :  { %v1494_v26 = vpop.permute.xlu0 %1493 }
 0x309   :  { %1497 = vst.msk [vmem:[#allocation2] sm:$0x3] %vm1496_vm3, %v1494_v26 }
 0x30a   :  { %2499 = shalt.err (!%p2496_p4)
}
 0x30b   :  { %s2500_s29 = scalar_lea.hbm %s3929_s5, 32 }
 0x30c   :  { %p2501_p5 = scmp.ne.s32.totalorder %s3929_s5, %s2500_s29  ;;  %p2504_p6 = scmp.lt.u32.totalorder %s2500_s29, %s3929_s5 }
 0x30e   :  { %p2506_p7 = pnand %p2504_p6, %p2501_p5 }
 0x310   :  { %2509 = shalt.err (!%p2506_p7)
}
 0x311   :  { %1507 = dma.vmem_to_hbm [thread:$0]  %s1505_s26, 32, %s3929_s5, [#allocation3]  }
 0x312   :  { %2510 = dma.done.wait [#allocation3], 32  }
 0x313   :  { %2511 = vsyncadd [#allocation3], 4294967264 }
 0x314   :  { %1511 = vsyncpa [#allocation3], 1 }

// kernel: siamese_forward.2
= control target key start
LH: loop header
LB: loop body
LE: loop exit
PB: predicated region body
PF: predicated region fallthrough
CT: control target
= control target key end

     0   :  { %s12699_s18 = smov 0   ;;  %s15515_s0 = inlined_call_operand.vmem [shape: f32[4,1600,64], index: 0, kind: input, shape index: {}]   ;;  %s15516_s1 = inlined_call_operand.vmem [shape: f32[64,16], index: 1, kind: input, shape index: {}]   ;;  %s15517_s2 = inlined_call_operand.vmem [shape: f32[1,16], index: 2, kind: input, shape index: {}]   ;;  %s15518_s3 = inlined_call_operand.vmem [shape: f32[144,32], index: 3, kind: input, shape index: {}]   ;;  %s15519_s4 = inlined_call_operand.vmem [shape: f32[1,32], index: 4, kind: input, shape index: {}]   ;;  %s15520_s5 = inlined_call_operand.vmem [shape: f32[4,100,32], index: 5, kind: output, shape index: {}]  }
   0x1 LB: > { %s9308_s19 = sadd.s32 4294967295, %s12666_s18   ;;  %p9312_p0 = scmp.ge.s32.totalorder %s12666_s18, 1  ;;  %s12666_s18 = sphi %s12699_s18, %s15_s18  }
   0x2   : > { %p187_p1 = scmp.lt.s32.totalorder %s12666_s18, 5 }
   0x4   : > { %p188_p2 = pnand %p9312_p0, %p187_p1 }
   0x6   : > { %191 = sbr.rel (%p188_p2) target bundleno = 1252 (0x4e4), region = 40 }
   0xd   : > { %v225_v0 = vld [vmem:[%s15516_s1] sm:$0xff]  ;;  %v226_v1 = vld [vmem:[%s15516_s1 + $0x8] sm:$0xff]  ;;  %v227_v2 = vld [vmem:[%s15516_s1 + $0x10] sm:$0xff]  ;;  %p215_p3 = scmp.lt.s32.totalorder %s9308_s19, 3  ;;  %vm290_vm0 = vcmask 523264   ;;  %vm2651_vm1 = vcmask 130048  }
   0xe   : > { %v12716_v3 = vpack.c.bf16 %v226_v1, %v225_v0  ;;  %v228_v4 = vld [vmem:[%s15516_s1 + $0x18] sm:$0xff]  ;;  %v229_v6 = vld [vmem:[%s15516_s1 + $0x20] sm:$0xff]  ;;  %v230_v7 = vld [vmem:[%s15516_s1 + $0x28] sm:$0xff]  ;;  %vm2722_vm2 = vcmask 125952   ;;  %vm2724_vm3 = vcmask 130052   ;;  %vm8906_vm4 = vcmask 1046528  }
   0xf   : > { %v12721_v5 = vpack.c.bf16 %v228_v4, %v227_v2  ;;  %s15816_s19 = smov (!%p215_p3, %s9308_s19), 3  ;;  %v12737_v8 = vpack.c.bf16 %v230_v7, %v229_v6  ;;  %v231_v9 = vld [vmem:[%s15516_s1 + $0x30] sm:$0xff]  ;;  %v232_v10 = vld [vmem:[%s15516_s1 + $0x38] sm:$0xff]  ;;  %vm9134_vm5 = vcmask 261120   ;;  %vm9197_vm6 = vcmask 254976  }
  0x10   : > { %12159 = vmatprep.subr.bf16.mxu1 %v12716_v3  ;;  %12060 = vmatprep.subr.bf16.mxu0 %v12716_v3  ;;  %s12647_s7 = smul.u32 1600, %s15816_s19  ;;  %v12755_v12 = vpack.c.bf16 %v232_v10, %v231_v9  ;;  %vm9191_vm7 = vcmask 260096  }
  0x11   : > { %12163 = vmatpush3.bf16.msra.mxu1 %v12716_v3  ;;  %12062 = vmatpush3.bf16.msra.mxu0 %v12716_v3  ;;  %s12648_s11 = smul.u32 104, %s15816_s19 }
  0x12   : > { %12160 = vmatprep.subr.bf16.mxu1 %v12721_v5  ;;  %12064 = vmatprep.subr.bf16.mxu0 %v12721_v5  ;;  %s12749_s14 = scalar_lea.vmem %s15515_s0, %s12647_s7 }
  0x13   : > { %v254_v11 = vld [vmem:[%s12749_s14 + $0xa0] sm:$0xff]  ;;  %v255_v14 = vld [vmem:[%s12749_s14 + $0xa8] sm:$0xff]  ;;  %v256_v15 = vld [vmem:[%s12749_s14 + $0xb0] sm:$0xff]  ;;  %s15324_s13 = scalar_lea.vmem %s15520_s5, %s12648_s11 }
  0x14   : > { %10895 = vmatprep.mubr.msk.f32.mxu1 %vm290_vm0, %v254_v11  ;;  %v234_v13 = vld [vmem:[%s12749_s14] sm:$0xff]  ;;  %v235_v16 = vld [vmem:[%s12749_s14 + $0x8] sm:$0xff]  ;;  %v236_v17 = vld [vmem:[%s12749_s14 + $0x10] sm:$0xff] }
  0x15   : > { %12164 = vmatpush3.bf16.msra.mxu1 %v12721_v5  ;;  %12066 = vmatpush3.bf16.msra.mxu0 %v12721_v5  ;;  %v257_v18 = vld [vmem:[%s12749_s14 + $0xb8] sm:$0xff]  ;;  %v258_v19 = vld [vmem:[%s12749_s14 + $0xc0] sm:$0xff]  ;;  %v259_v22 = vld [vmem:[%s12749_s14 + $0xc8] sm:$0xff] }
  0x16   : > { %12161 = vmatprep.subr.bf16.mxu1 %v12737_v8  ;;  %12068 = vmatprep.subr.bf16.mxu0 %v12737_v8  ;;  %v237_v20 = vld [vmem:[%s12749_s14 + $0x18] sm:$0xff]  ;;  %v238_v21 = vld [vmem:[%s12749_s14 + $0x20] sm:$0xff]  ;;  %v260_v23 = vld [vmem:[%s12749_s14 + $0xd0] sm:$0xff] }
  0x17   : > { %10865 = vmatprep.mubr.msk.f32.mxu0 %vm290_vm0, %v234_v13  ;;  %v239_v24 = vld [vmem:[%s12749_s14 + $0x28] sm:$0xff]  ;;  %v240_v25 = vld [vmem:[%s12749_s14 + $0x30] sm:$0xff]  ;;  %v261_v26 = vld [vmem:[%s12749_s14 + $0xd8] sm:$0xff] }
  0x18   : > { %v262_v27 = vld [vmem:[%s12749_s14 + $0xe0] sm:$0xff]  ;;  %v241_v28 = vld [vmem:[%s12749_s14 + $0x38] sm:$0xff]  ;;  %v263_v30 = vld [vmem:[%s12749_s14 + $0xe8] sm:$0xff] }
  0x19   : > { %12165 = vmatpush3.bf16.msra.mxu1 %v12737_v8  ;;  %12070 = vmatpush3.bf16.msra.mxu0 %v12737_v8  ;;  %v242_v29 = vld [vmem:[%s12749_s14 + $0x40] sm:$0xff]  ;;  %v264_v31 = vld [vmem:[%s12749_s14 + $0xf0] sm:$0xff]  ;;  %v243_v32 = vld [vmem:[%s12749_s14 + $0x48] sm:$0xff] }
  0x1a   : > { %12162 = vmatprep.subr.bf16.mxu1 %v12755_v12  ;;  %12072 = vmatprep.subr.bf16.mxu0 %v12755_v12  ;;  %v244_v33 = vld [vmem:[%s12749_s14 + $0x50] sm:$0xff]  ;;  %v265_v34 = vld [vmem:[%s12749_s14 + $0xf8] sm:$0xff]  ;;  %v266_v35 = vld [vmem:[%s12749_s14 + $0x100] sm:$0xff] }
  0x1b   : > { %v245_v36 = vld [vmem:[%s12749_s14 + $0x58] sm:$0xff]  ;;  %v246_v37 = vld [vmem:[%s12749_s14 + $0x60] sm:$0xff]  ;;  %v267_v38 = vld [vmem:[%s12749_s14 + $0x108] sm:$0xff] }
  0x1c   : > { %v268_v39 = vld [vmem:[%s12749_s14 + $0x110] sm:$0xff]  ;;  %v247_v40 = vld [vmem:[%s12749_s14 + $0x68] sm:$0xff]  ;;  %v269_v42 = vld [vmem:[%s12749_s14 + $0x118] sm:$0xff] }
  0x1d   : > { %12166 = vmatpush3.bf16.msra.mxu1 %v12755_v12  ;;  %12074 = vmatpush3.bf16.msra.mxu0 %v12755_v12  ;;  %v248_v41 = vld [vmem:[%s12749_s14 + $0x70] sm:$0xff]  ;;  %v270_v43 = vld [vmem:[%s12749_s14 + $0x120] sm:$0xff]  ;;  %v249_v44 = vld [vmem:[%s12749_s14 + $0x78] sm:$0xff] }
  0x1e   : > { %12076 = vmatprep.subr.bf16.mxu1 %v12716_v3  ;;  %12092 = vmatprep.subr.bf16.mxu0 %v12716_v3  ;;  %v250_v45 = vld [vmem:[%s12749_s14 + $0x80] sm:$0xff]  ;;  %v271_v46 = vld [vmem:[%s12749_s14 + $0x128] sm:$0xff]  ;;  %v272_v47 = vld [vmem:[%s12749_s14 + $0x130] sm:$0xff] }
  0x1f   : > { %v251_v48 = vld [vmem:[%s12749_s14 + $0x88] sm:$0xff]  ;;  %v252_v49 = vld [vmem:[%s12749_s14 + $0x90] sm:$0xff]  ;;  %v273_v50 = vld [vmem:[%s12749_s14 + $0x138] sm:$0xff] }
  0x20   : > { %10896 = vmatmul.mubr.msk.f32.vlgmr.msra.gmra.mrb[0].mxu1 %vm290_vm0, %v255_v14  ;;  %10866 = vmatmul.mubr.msk.f32.vlgmr.msra.gmra.mrb[0].mxu0 %vm290_vm0, %v235_v16  ;;  %v274_v51 = vld [vmem:[%s12749_s14 + $0x140] sm:$0xff]  ;;  %v253_v52 = vld [vmem:[%s12749_s14 + $0x98] sm:$0xff]  ;;  %v275_v54 = vld [vmem:[%s12749_s14 + $0x148] sm:$0xff] }
  0x21   : > { %12078 = vmatpush3.bf16.msra.mxu1 %v12716_v3  ;;  %10898 = vmatprep.mubr.msk.f32.mxu1 %vm290_vm0, %v256_v15  ;;  %v1421_v53 = vld [vmem:[%s12749_s14 + $0x320] sm:$0xff]  ;;  %v276_v55 = vld [vmem:[%s12749_s14 + $0x150] sm:$0xff]  ;;  %v1422_v56 = vld [vmem:[%s12749_s14 + $0x328] sm:$0xff] }
  0x22   : > { %12080 = vmatprep.subr.bf16.mxu1 %v12721_v5  ;;  %10868 = vmatprep.mubr.msk.f32.mxu0 %vm290_vm0, %v236_v17  ;;  %v1423_v57 = vld [vmem:[%s12749_s14 + $0x330] sm:$0xff]  ;;  %v277_v58 = vld [vmem:[%s12749_s14 + $0x158] sm:$0xff]  ;;  %v278_v59 = vld [vmem:[%s12749_s14 + $0x160] sm:$0xff] }
  0x23   : > { %12094 = vmatpush3.bf16.msra.mxu0 %v12716_v3  ;;  %v1424_v60 = vld [vmem:[%s12749_s14 + $0x338] sm:$0xff]  ;;  %v1425_v61 = vld [vmem:[%s12749_s14 + $0x340] sm:$0xff]  ;;  %v279_v62 = vld [vmem:[%s12749_s14 + $0x168] sm:$0xff] }
  0x24   : > { %10899 = vmatmul.mubr.msk.f32.gmra.mrb[2].mxu1 %vm290_vm0, %v257_v18  ;;  %12096 = vmatprep.subr.bf16.mxu0 %v12721_v5  ;;  %v280_v63 = vld [vmem:[%s12749_s14 + $0x170] sm:$0xff]  ;;  %v1426_v0 = vld [vmem:[%s12749_s14 + $0x348] sm:$0xff]  ;;  %v281_v2 = vld [vmem:[%s12749_s14 + $0x178] sm:$0xff] }
  0x25   : > { %10901 = vmatprep.mubr.msk.f32.mxu1 %vm290_vm0, %v258_v19  ;;  %12082 = vmatpush3.bf16.msra.mxu1 %v12721_v5  ;;  %v1427_v1 = vld [vmem:[%s12749_s14 + $0x350] sm:$0xff]  ;;  %v282_v4 = vld [vmem:[%s12749_s14 + $0x180] sm:$0xff]  ;;  %v1428_v6 = vld [vmem:[%s12749_s14 + $0x358] sm:$0xff] }
  0x26   : > { %10869 = vmatmul.mubr.msk.f32.gmra.mrb[2].mxu0 %vm290_vm0, %v237_v20  ;;  %12084 = vmatprep.subr.bf16.mxu1 %v12737_v8  ;;  %v1429_v7 = vld [vmem:[%s12749_s14 + $0x360] sm:$0xff]  ;;  %v283_v9 = vld [vmem:[%s12749_s14 + $0x188] sm:$0xff]  ;;  %v806_v10 = vld [vmem:[%s12749_s14 + $0x190] sm:$0xff] }
  0x27   : > { %10871 = vmatprep.mubr.msk.f32.mxu0 %vm290_vm0, %v238_v21  ;;  %12098 = vmatpush3.bf16.msra.mxu0 %v12721_v5  ;;  %v1430_v11 = vld [vmem:[%s12749_s14 + $0x368] sm:$0xff]  ;;  %v1431_v13 = vld [vmem:[%s12749_s14 + $0x370] sm:$0xff]  ;;  %v807_v14 = vld [vmem:[%s12749_s14 + $0x198] sm:$0xff] }
  0x28   : > { %10902 = vmatmul.mubr.msk.f32.gmra.mrb[4].mxu1 %vm290_vm0, %v259_v22  ;;  %12100 = vmatprep.subr.bf16.mxu0 %v12737_v8  ;;  %v808_v15 = vld [vmem:[%s12749_s14 + $0x1a0] sm:$0xff]  ;;  %v1432_v16 = vld [vmem:[%s12749_s14 + $0x378] sm:$0xff]  ;;  %v809_v18 = vld [vmem:[%s12749_s14 + $0x1a8] sm:$0xff] }
  0x29   : > { %10904 = vmatprep.mubr.msk.f32.mxu1 %vm290_vm0, %v260_v23  ;;  %12086 = vmatpush3.bf16.msra.mxu1 %v12737_v8  ;;  %v1433_v17 = vld [vmem:[%s12749_s14 + $0x380] sm:$0xff]  ;;  %v810_v19 = vld [vmem:[%s12749_s14 + $0x1b0] sm:$0xff]  ;;  %v1434_v20 = vld [vmem:[%s12749_s14 + $0x388] sm:$0xff] }
  0x2a   : > { %10872 = vmatmul.mubr.msk.f32.gmra.mrb[4].mxu0 %vm290_vm0, %v239_v24  ;;  %12088 = vmatprep.subr.bf16.mxu1 %v12755_v12  ;;  %v1435_v21 = vld [vmem:[%s12749_s14 + $0x390] sm:$0xff]  ;;  %v812_v22 = vld [vmem:[%s12749_s14 + $0x1c0] sm:$0xff]  ;;  %v1436_v23 = vld [vmem:[%s12749_s14 + $0x398] sm:$0xff] }
  0x2b   : > { %10874 = vmatprep.mubr.msk.f32.mxu0 %vm290_vm0, %v240_v25  ;;  %12102 = vmatpush3.bf16.msra.mxu0 %v12737_v8  ;;  %v1437_v24 = vld [vmem:[%s12749_s14 + $0x3a0] sm:$0xff]  ;;  %v813_v25 = vld [vmem:[%s12749_s14 + $0x1c8] sm:$0xff] }
  0x2c   : > { %10905 = vmatmul.mubr.msk.f32.gmra.mrb[6].mxu1 %vm290_vm0, %v261_v26  ;;  %12104 = vmatprep.subr.bf16.mxu0 %v12755_v12  ;;  %v1438_v26 = vld [vmem:[%s12749_s14 + $0x3a8] sm:$0xff] }
  0x2d   : > { %10907 = vmatprep.mubr.msk.f32.mxu1 %vm290_vm0, %v262_v27  ;;  %12090 = vmatpush3.bf16.msra.mxu1 %v12755_v12  ;;  %v1439_v27 = vld [vmem:[%s12749_s14 + $0x3b0] sm:$0xff] }
  0x2e   : > { %10875 = vmatmul.mubr.msk.f32.gmra.mrb[6].mxu0 %vm290_vm0, %v241_v28  ;;  %12108 = vmatprep.subr.bf16.mxu1 %v12716_v3  ;;  %v815_v28 = vld [vmem:[%s12749_s14 + $0x1d8] sm:$0xff] }
  0x2f   : > { %10877 = vmatprep.mubr.msk.f32.mxu0 %vm290_vm0, %v242_v29  ;;  %12106 = vmatpush3.bf16.msra.mxu0 %v12755_v12  ;;  %v1440_v29 = vld [vmem:[%s12749_s14 + $0x3b8] sm:$0xff] }
  0x30   : > { %10908 = vmatmul.mubr.msk.f32.gmra.mrb[8].mxu1 %vm290_vm0, %v263_v30  ;;  %v1441_v30 = vld [vmem:[%s12749_s14 + $0x3c0] sm:$0xff] }
  0x31   : > { %10910 = vmatprep.mubr.msk.f32.mxu1 %vm290_vm0, %v264_v31  ;;  %v817_v31 = vld [vmem:[%s12749_s14 + $0x1e8] sm:$0xff] }
  0x32   : > { %10878 = vmatmul.mubr.msk.f32.gmra.mrb[8].mxu0 %vm290_vm0, %v243_v32  ;;  %v818_v32 = vld [vmem:[%s12749_s14 + $0x1f0] sm:$0xff] }
  0x33   : > { %10880 = vmatprep.mubr.msk.f32.mxu0 %vm290_vm0, %v244_v33  ;;  %v1443_v33 = vld [vmem:[%s12749_s14 + $0x3d0] sm:$0xff] }
  0x34   : > { %10911 = vmatmul.mubr.msk.f32.gmra.mrb[10].mxu1 %vm290_vm0, %v265_v34  ;;  %v819_v34 = vld [vmem:[%s12749_s14 + $0x1f8] sm:$0xff] }
  0x35   : > { %10913 = vmatprep.mubr.msk.f32.mxu1 %vm290_vm0, %v266_v35  ;;  %v820_v35 = vld [vmem:[%s12749_s14 + $0x200] sm:$0xff] }
  0x36   : > { %10881 = vmatmul.mubr.msk.f32.gmra.mrb[10].mxu0 %vm290_vm0, %v245_v36  ;;  %v1444_v36 = vld [vmem:[%s12749_s14 + $0x3d8] sm:$0xff] }
  0x37   : > { %10883 = vmatprep.mubr.msk.f32.mxu0 %vm290_vm0, %v246_v37  ;;  %v1445_v37 = vld [vmem:[%s12749_s14 + $0x3e0] sm:$0xff] }
  0x38   : > { %10914 = vmatmul.mubr.msk.f32.gmra.mrb[12].mxu1 %vm290_vm0, %v267_v38  ;;  %v821_v38 = vld [vmem:[%s12749_s14 + $0x208] sm:$0xff] }
  0x39   : > { %10916 = vmatprep.mubr.msk.f32.mxu1 %vm290_vm0, %v268_v39  ;;  %v822_v39 = vld [vmem:[%s12749_s14 + $0x210] sm:$0xff] }
  0x3a   : > { %10884 = vmatmul.mubr.msk.f32.gmra.mrb[12].mxu0 %vm290_vm0, %v247_v40  ;;  %v1446_v40 = vld [vmem:[%s12749_s14 + $0x3e8] sm:$0xff] }
  0x3b   : > { %10886 = vmatprep.mubr.msk.f32.mxu0 %vm290_vm0, %v248_v41  ;;  %v1447_v41 = vld [vmem:[%s12749_s14 + $0x3f0] sm:$0xff] }
  0x3c   : > { %10917 = vmatmul.mubr.msk.f32.gmra.mrb[14].mxu1 %vm290_vm0, %v269_v42  ;;  %v823_v42 = vld [vmem:[%s12749_s14 + $0x218] sm:$0xff] }
  0x3d   : > { %10919 = vmatprep.mubr.msk.f32.mxu1 %vm290_vm0, %v270_v43  ;;  %v824_v43 = vld [vmem:[%s12749_s14 + $0x220] sm:$0xff] }
  0x3e   : > { %10887 = vmatmul.mubr.msk.f32.gmra.mrb[14].mxu0 %vm290_vm0, %v249_v44  ;;  %v1448_v44 = vld [vmem:[%s12749_s14 + $0x3f8] sm:$0xff] }
  0x3f   : > { %10889 = vmatprep.mubr.msk.f32.mxu0 %vm290_vm0, %v250_v45  ;;  %v1449_v45 = vld [vmem:[%s12749_s14 + $0x400] sm:$0xff] }
  0x40   : > { %10920 = vmatmul.mubr.msk.f32.gmra.mrb[16].mxu1 %vm290_vm0, %v271_v46  ;;  %v825_v46 = vld [vmem:[%s12749_s14 + $0x228] sm:$0xff] }
  0x41   : > { %10922 = vmatprep.mubr.msk.f32.mxu1 %vm290_vm0, %v272_v47  ;;  %v826_v47 = vld [vmem:[%s12749_s14 + $0x230] sm:$0xff] }
  0x42   : > { %10890 = vmatmul.mubr.msk.f32.gmra.mrb[16].mxu0 %vm290_vm0, %v251_v48  ;;  %v1450_v48 = vld [vmem:[%s12749_s14 + $0x408] sm:$0xff] }
  0x43   : > { %10892 = vmatprep.mubr.msk.f32.mxu0 %vm290_vm0, %v252_v49  ;;  %v1451_v49 = vld [vmem:[%s12749_s14 + $0x410] sm:$0xff] }
  0x44   : > { %10923 = vmatmul.mubr.msk.f32.gmra.mrb[18].mxu1 %vm290_vm0, %v273_v50  ;;  %v827_v50 = vld [vmem:[%s12749_s14 + $0x238] sm:$0xff] }
  0x45   : > { %10925 = vmatprep.mubr.msk.f32.mxu1 %vm290_vm0, %v274_v51  ;;  %v828_v51 = vld [vmem:[%s12749_s14 + $0x240] sm:$0xff] }
  0x46   : > { %10893 = vmatmul.mubr.msk.f32.gmra.mrb[18].mxu0 %vm290_vm0, %v253_v52  ;;  %v1452_v52 = vld [vmem:[%s12749_s14 + $0x418] sm:$0xff] }
  0x47   : > { %11047 = vmatprep.mubr.msk.f32.mxu0 %vm290_vm0, %v1421_v53  ;;  %v1453_v53 = vld [vmem:[%s12749_s14 + $0x420] sm:$0xff] }
  0x48   : > { %10926 = vmatmul.mubr.msk.f32.gmra.mrb[20].mxu1 %vm290_vm0, %v275_v54  ;;  %v829_v54 = vld [vmem:[%s12749_s14 + $0x248] sm:$0xff] }
  0x49   : > { %10928 = vmatprep.mubr.msk.f32.mxu1 %vm290_vm0, %v276_v55  ;;  %v830_v55 = vld [vmem:[%s12749_s14 + $0x250] sm:$0xff] }
  0x4a   : > { %11048 = vmatmul.mubr.msk.f32.vlgmr.msra.gmra.mrb[20].mxu0 %vm290_vm0, %v1422_v56  ;;  %v1454_v56 = vld [vmem:[%s12749_s14 + $0x428] sm:$0xff] }
  0x4b   : > { %11050 = vmatprep.mubr.msk.f32.mxu0 %vm290_vm0, %v1423_v57  ;;  %v1455_v57 = vld [vmem:[%s12749_s14 + $0x430] sm:$0xff] }
  0x4c   : > { %10929 = vmatmul.mubr.msk.f32.gmra.mrb[22].mxu1 %vm290_vm0, %v277_v58  ;;  %v831_v58 = vld [vmem:[%s12749_s14 + $0x258] sm:$0xff] }
  0x4d   : > { %10931 = vmatprep.mubr.msk.f32.mxu1 %vm290_vm0, %v278_v59  ;;  %v832_v59 = vld [vmem:[%s12749_s14 + $0x260] sm:$0xff] }
  0x4e   : > { %11051 = vmatmul.mubr.msk.f32.gmra.mrb[22].mxu0 %vm290_vm0, %v1424_v60  ;;  %v1456_v60 = vld [vmem:[%s12749_s14 + $0x438] sm:$0xff] }
  0x4f   : > { %11053 = vmatprep.mubr.msk.f32.mxu0 %vm290_vm0, %v1425_v61  ;;  %v1457_v61 = vld [vmem:[%s12749_s14 + $0x440] sm:$0xff] }
  0x50   : > { %10932 = vmatmul.mubr.msk.f32.gmra.mrb[24].mxu1 %vm290_vm0, %v279_v62  ;;  %v833_v62 = vld [vmem:[%s12749_s14 + $0x268] sm:$0xff] }
  0x51   : > { %10934 = vmatprep.mubr.msk.f32.mxu1 %vm290_vm0, %v280_v63  ;;  %v834_v63 = vld [vmem:[%s12749_s14 + $0x270] sm:$0xff] }
  0x52   : > { %11054 = vmatmul.mubr.msk.f32.gmra.mrb[24].mxu0 %vm290_vm0, %v1426_v0  ;;  %v1458_v0 = vld [vmem:[%s12749_s14 + $0x448] sm:$0xff] }
  0x53   : > { %11056 = vmatprep.mubr.msk.f32.mxu0 %vm290_vm0, %v1427_v1  ;;  %v1459_v1 = vld [vmem:[%s12749_s14 + $0x450] sm:$0xff] }
  0x54   : > { %10935 = vmatmul.mubr.msk.f32.gmra.mrb[26].mxu1 %vm290_vm0, %v281_v2  ;;  %v835_v2 = vld [vmem:[%s12749_s14 + $0x278] sm:$0xff] }
  0x55   : > { %10937 = vmatprep.mubr.msk.f32.mxu1 %vm290_vm0, %v282_v4  ;;  %v836_v4 = vld [vmem:[%s12749_s14 + $0x280] sm:$0xff] }
  0x56   : > { %11057 = vmatmul.mubr.msk.f32.gmra.mrb[26].mxu0 %vm290_vm0, %v1428_v6  ;;  %v1460_v6 = vld [vmem:[%s12749_s14 + $0x458] sm:$0xff] }
  0x57   : > { %11059 = vmatprep.mubr.msk.f32.mxu0 %vm290_vm0, %v1429_v7  ;;  %v1461_v7 = vld [vmem:[%s12749_s14 + $0x460] sm:$0xff] }
  0x58   : > { %10938 = vmatmul.mubr.msk.f32.gmra.mrb[28].mxu1 %vm290_vm0, %v283_v9  ;;  %v837_v9 = vld [vmem:[%s12749_s14 + $0x288] sm:$0xff] }
  0x59   : > { %10956 = vmatprep.mubr.msk.f32.mxu1 %vm290_vm0, %v806_v10  ;;  %v838_v10 = vld [vmem:[%s12749_s14 + $0x290] sm:$0xff] }
  0x5a   : > { %11060 = vmatmul.mubr.msk.f32.gmra.mrb[28].mxu0 %vm290_vm0, %v1430_v11  ;;  %v1462_v11 = vld [vmem:[%s12749_s14 + $0x468] sm:$0xff] }
  0x5b   : > { %11062 = vmatprep.mubr.msk.f32.mxu0 %vm290_vm0, %v1431_v13  ;;  %v1463_v13 = vld [vmem:[%s12749_s14 + $0x470] sm:$0xff] }
  0x5c   : > { %10957 = vmatmul.mubr.msk.f32.vlgmr.msra.gmra.mrb[30].mxu1 %vm290_vm0, %v807_v14  ;;  %v839_v14 = vld [vmem:[%s12749_s14 + $0x298] sm:$0xff] }
  0x5d   : > { %12110 = vmatpush3.bf16.msra.mxu1 %v12716_v3  ;;  %10959 = vmatprep.mubr.msk.f32.mxu1 %vm290_vm0, %v808_v15  ;;  %v811_v3 = vld [vmem:[%s12749_s14 + $0x1b8] sm:$0xff]  ;;  %v840_v15 = vld [vmem:[%s12749_s14 + $0x2a0] sm:$0xff] }
  0x5e   : > { %11063 = vmatmul.mubr.msk.f32.gmra.mrb[30].mxu0 %vm290_vm0, %v1432_v16  ;;  %12112 = vmatprep.subr.bf16.mxu1 %v12721_v5  ;;  %v1464_v16 = vld [vmem:[%s12749_s14 + $0x478] sm:$0xff] }
  0x5f   : > { %11065 = vmatprep.mubr.msk.f32.mxu0 %vm290_vm0, %v1433_v17  ;;  %v1465_v17 = vld [vmem:[%s12749_s14 + $0x480] sm:$0xff] }
  0x60   : > { %10960 = vmatmul.mubr.msk.f32.gmra.mrb[32].mxu1 %vm290_vm0, %v809_v18  ;;  %v841_v18 = vld [vmem:[%s12749_s14 + $0x2a8] sm:$0xff] }
  0x61   : > { %10962 = vmatprep.mubr.msk.f32.mxu1 %vm290_vm0, %v810_v19  ;;  %12114 = vmatpush3.bf16.msra.mxu1 %v12721_v5  ;;  %v814_v5 = vld [vmem:[%s12749_s14 + $0x1d0] sm:$0xff] }
  0x62   : > { %11066 = vmatmul.mubr.msk.f32.gmra.mrb[32].mxu0 %vm290_vm0, %v1434_v20  ;;  %12116 = vmatprep.subr.bf16.mxu1 %v12737_v8  ;;  %v842_v19 = vld [vmem:[%s12749_s14 + $0x2b0] sm:$0xff]  ;;  %v1466_v20 = vld [vmem:[%s12749_s14 + $0x488] sm:$0xff] }
  0x63   : > { %11068 = vmatprep.mubr.msk.f32.mxu0 %vm290_vm0, %v1435_v21  ;;  %v1467_v21 = vld [vmem:[%s12749_s14 + $0x490] sm:$0xff] }
  0x64   : > { %10963 = vmatmul.mubr.msk.f32.gmra.mrb[34].mxu1 %vm290_vm0, %v811_v3  ;;  %v843_v3 = vld [vmem:[%s12749_s14 + $0x2b8] sm:$0xff] }
  0x65   : > { %10965 = vmatprep.mubr.msk.f32.mxu1 %vm290_vm0, %v812_v22  ;;  %12118 = vmatpush3.bf16.msra.mxu1 %v12737_v8  ;;  %v816_v8 = vld [vmem:[%s12749_s14 + $0x1e0] sm:$0xff] }
  0x66   : > { %11069 = vmatmul.mubr.msk.f32.gmra.mrb[34].mxu0 %vm290_vm0, %v1436_v23  ;;  %12120 = vmatprep.subr.bf16.mxu1 %v12755_v12  ;;  %v844_v22 = vld [vmem:[%s12749_s14 + $0x2c0] sm:$0xff]  ;;  %v1468_v23 = vld [vmem:[%s12749_s14 + $0x498] sm:$0xff] }
  0x67   : > { %11071 = vmatprep.mubr.msk.f32.mxu0 %vm290_vm0, %v1437_v24  ;;  %v1469_v24 = vld [vmem:[%s12749_s14 + $0x4a0] sm:$0xff] }
  0x68   : > { %10966 = vmatmul.mubr.msk.f32.gmra.mrb[36].mxu1 %vm290_vm0, %v813_v25  ;;  %v845_v25 = vld [vmem:[%s12749_s14 + $0x2c8] sm:$0xff] }
  0x69   : > { %10968 = vmatprep.mubr.msk.f32.mxu1 %vm290_vm0, %v814_v5  ;;  %12122 = vmatpush3.bf16.msra.mxu1 %v12755_v12  ;;  %v1442_v12 = vld [vmem:[%s12749_s14 + $0x3c8] sm:$0xff]  ;;  %v846_v5 = vld [vmem:[%s12749_s14 + $0x2d0] sm:$0xff] }
  0x6a   : > { %11072 = vmatmul.mubr.msk.f32.gmra.mrb[36].mxu0 %vm290_vm0, %v1438_v26  ;;  %v1470_v26 = vld [vmem:[%s12749_s14 + $0x4a8] sm:$0xff] }
  0x6b   : > { %11074 = vmatprep.mubr.msk.f32.mxu0 %vm290_vm0, %v1439_v27  ;;  %v847_v27 = vld [vmem:[%s12749_s14 + $0x2d8] sm:$0xff] }
  0x6c   : > { %10969 = vmatmul.mubr.msk.f32.gmra.mrb[38].mxu1 %vm290_vm0, %v815_v28  ;;  %v848_v28 = vld [vmem:[%s12749_s14 + $0x2e0] sm:$0xff] }
  0x6d   : > { %10971 = vmatprep.mubr.msk.f32.mxu1 %vm290_vm0, %v816_v8  ;;  %v849_v8 = vld [vmem:[%s12749_s14 + $0x2e8] sm:$0xff] }
  0x6e   : > { %11075 = vmatmul.mubr.msk.f32.gmra.mrb[38].mxu0 %vm290_vm0, %v1440_v29  ;;  %v850_v29 = vld [vmem:[%s12749_s14 + $0x2f0] sm:$0xff] }
  0x6f   : > { %11077 = vmatprep.mubr.msk.f32.mxu0 %vm290_vm0, %v1441_v30  ;;  %v851_v30 = vld [vmem:[%s12749_s14 + $0x2f8] sm:$0xff] }
  0x70   : > { %10972 = vmatmul.mubr.msk.f32.gmra.mrb[40].mxu1 %vm290_vm0, %v817_v31  ;;  %v852_v31 = vld [vmem:[%s12749_s14 + $0x300] sm:$0xff] }
  0x71   : > { %10974 = vmatprep.mubr.msk.f32.mxu1 %vm290_vm0, %v818_v32  ;;  %v853_v32 = vld [vmem:[%s12749_s14 + $0x308] sm:$0xff] }
  0x72   : > { %11078 = vmatmul.mubr.msk.f32.gmra.mrb[40].mxu0 %vm290_vm0, %v1442_v12  ;;  %v854_v12 = vld [vmem:[%s12749_s14 + $0x310] sm:$0xff] }
  0x73   : > { %11080 = vmatprep.mubr.msk.f32.mxu0 %vm290_vm0, %v1443_v33  ;;  %v855_v33 = vld [vmem:[%s12749_s14 + $0x318] sm:$0xff] }
  0x74   : > { %10975 = vmatmul.mubr.msk.f32.gmra.mrb[42].mxu1 %vm290_vm0, %v819_v34  ;;  %v2036_v34 = vld [vmem:[%s12749_s14 + $0x4b0] sm:$0xff] }
  0x75   : > { %10977 = vmatprep.mubr.msk.f32.mxu1 %vm290_vm0, %v820_v35  ;;  %v2037_v35 = vld [vmem:[%s12749_s14 + $0x4b8] sm:$0xff] }
  0x76   : > { %11081 = vmatmul.mubr.msk.f32.gmra.mrb[42].mxu0 %vm290_vm0, %v1444_v36  ;;  %v2038_v36 = vld [vmem:[%s12749_s14 + $0x4c0] sm:$0xff] }
  0x77   : > { %11083 = vmatprep.mubr.msk.f32.mxu0 %vm290_vm0, %v1445_v37  ;;  %v2039_v37 = vld [vmem:[%s12749_s14 + $0x4c8] sm:$0xff] }
  0x78   : > { %10978 = vmatmul.mubr.msk.f32.gmra.mrb[44].mxu1 %vm290_vm0, %v821_v38  ;;  %v2040_v38 = vld [vmem:[%s12749_s14 + $0x4d0] sm:$0xff] }
  0x79   : > { %10980 = vmatprep.mubr.msk.f32.mxu1 %vm290_vm0, %v822_v39  ;;  %v2041_v39 = vld [vmem:[%s12749_s14 + $0x4d8] sm:$0xff] }
  0x7a   : > { %11084 = vmatmul.mubr.msk.f32.gmra.mrb[44].mxu0 %vm290_vm0, %v1446_v40  ;;  %v2790_v40 = vld [vmem:[%s15518_s3 + $0x40] sm:$0xff] }
  0x7b   : > { %11086 = vmatprep.mubr.msk.f32.mxu0 %vm290_vm0, %v1447_v41  ;;  %v2791_v41 = vld [vmem:[%s15518_s3 + $0x48] sm:$0xff] }
  0x7c   : > { %10981 = vmatmul.mubr.msk.f32.gmra.mrb[46].mxu1 %vm290_vm0, %v823_v42  ;;  %v2042_v42 = vld [vmem:[%s12749_s14 + $0x4e0] sm:$0xff] }
  0x7d   : > { %10983 = vmatprep.mubr.msk.f32.mxu1 %vm290_vm0, %v824_v43  ;;  %v12139_v43 = vpack.c.bf16 %v2791_v41, %v2790_v40  ;;  %v2077_v40 = vld [vmem:[%s12749_s14 + $0x5f8] sm:$0xff] }
  0x7e   : > { %11087 = vmatmul.mubr.msk.f32.gmra.mrb[46].mxu0 %vm290_vm0, %v1448_v44  ;;  %v2043_v44 = vld [vmem:[%s12749_s14 + $0x4e8] sm:$0xff] }
  0x7f   : > { %11089 = vmatprep.mubr.msk.f32.mxu0 %vm290_vm0, %v1449_v45  ;;  %12140 = vmatprep.subr.bf16.mxu0 %v12139_v43  ;;  %v2044_v45 = vld [vmem:[%s12749_s14 + $0x4f0] sm:$0xff] }
  0x80   : > { %10984 = vmatmul.mubr.msk.f32.gmra.mrb[48].mxu1 %vm290_vm0, %v825_v46  ;;  %12142 = vmatpush3.bf16.msra.mxu0 %v12139_v43  ;;  %v2045_v46 = vld [vmem:[%s12749_s14 + $0x4f8] sm:$0xff] }
  0x81   : > { %10986 = vmatprep.mubr.msk.f32.mxu1 %vm290_vm0, %v826_v47  ;;  %v2046_v47 = vld [vmem:[%s12749_s14 + $0x500] sm:$0xff] }
  0x82   : > { %11090 = vmatmul.mubr.msk.f32.gmra.mrb[48].mxu0 %vm290_vm0, %v1450_v48  ;;  %v2047_v48 = vld [vmem:[%s12749_s14 + $0x508] sm:$0xff] }
  0x83   : > { %11092 = vmatprep.mubr.msk.f32.mxu0 %vm290_vm0, %v1451_v49  ;;  %v2048_v49 = vld [vmem:[%s12749_s14 + $0x510] sm:$0xff] }
  0x84   : > { %10987 = vmatmul.mubr.msk.f32.gmra.mrb[50].mxu1 %vm290_vm0, %v827_v50  ;;  %v2049_v50 = vld [vmem:[%s12749_s14 + $0x518] sm:$0xff] }
  0x85   : > { %10989 = vmatprep.mubr.msk.f32.mxu1 %vm290_vm0, %v828_v51  ;;  %v2050_v51 = vld [vmem:[%s12749_s14 + $0x520] sm:$0xff] }
  0x86   : > { %11093 = vmatmul.mubr.msk.f32.gmra.mrb[50].mxu0 %vm290_vm0, %v1452_v52  ;;  %v2051_v52 = vld [vmem:[%s12749_s14 + $0x528] sm:$0xff] }
  0x87   : > { %11095 = vmatprep.mubr.msk.f32.mxu0 %vm290_vm0, %v1453_v53  ;;  %v2052_v53 = vld [vmem:[%s12749_s14 + $0x530] sm:$0xff] }
  0x88   : > { %10990 = vmatmul.mubr.msk.f32.gmra.mrb[52].mxu1 %vm290_vm0, %v829_v54  ;;  %v2053_v54 = vld [vmem:[%s12749_s14 + $0x538] sm:$0xff] }
  0x89   : > { %10992 = vmatprep.mubr.msk.f32.mxu1 %vm290_vm0, %v830_v55  ;;  %v2054_v55 = vld [vmem:[%s12749_s14 + $0x540] sm:$0xff] }
  0x8a   : > { %11096 = vmatmul.mubr.msk.f32.gmra.mrb[52].mxu0 %vm290_vm0, %v1454_v56  ;;  %v2055_v56 = vld [vmem:[%s12749_s14 + $0x548] sm:$0xff] }
  0x8b   : > { %11098 = vmatprep.mubr.msk.f32.mxu0 %vm290_vm0, %v1455_v57  ;;  %v2056_v57 = vld [vmem:[%s12749_s14 + $0x550] sm:$0xff] }
  0x8c   : > { %10993 = vmatmul.mubr.msk.f32.gmra.mrb[54].mxu1 %vm290_vm0, %v831_v58  ;;  %v2057_v58 = vld [vmem:[%s12749_s14 + $0x558] sm:$0xff] }
  0x8d   : > { %10995 = vmatprep.mubr.msk.f32.mxu1 %vm290_vm0, %v832_v59  ;;  %v2058_v59 = vld [vmem:[%s12749_s14 + $0x560] sm:$0xff] }
  0x8e   : > { %11099 = vmatmul.mubr.msk.f32.gmra.mrb[54].mxu0 %vm290_vm0, %v1456_v60  ;;  %v2059_v60 = vld [vmem:[%s12749_s14 + $0x568] sm:$0xff] }
  0x8f   : > { %11101 = vmatprep.mubr.msk.f32.mxu0 %vm290_vm0, %v1457_v61  ;;  %v2060_v61 = vld [vmem:[%s12749_s14 + $0x570] sm:$0xff] }
  0x90   : > { %10996 = vmatmul.mubr.msk.f32.gmra.mrb[56].mxu1 %vm290_vm0, %v833_v62  ;;  %v2061_v62 = vld [vmem:[%s12749_s14 + $0x578] sm:$0xff] }
  0x91   : > { %10998 = vmatprep.mubr.msk.f32.mxu1 %vm290_vm0, %v834_v63  ;;  %v2062_v63 = vld [vmem:[%s12749_s14 + $0x580] sm:$0xff] }
  0x92   : > { %11102 = vmatmul.mubr.msk.f32.gmra.mrb[56].mxu0 %vm290_vm0, %v1458_v0  ;;  %v2063_v0 = vld [vmem:[%s12749_s14 + $0x588] sm:$0xff] }
  0x93   : > { %11104 = vmatprep.mubr.msk.f32.mxu0 %vm290_vm0, %v1459_v1  ;;  %v2064_v1 = vld [vmem:[%s12749_s14 + $0x590] sm:$0xff] }
  0x94   : > { %10999 = vmatmul.mubr.msk.f32.gmra.mrb[58].mxu1 %vm290_vm0, %v835_v2 }
  0x95   : > { %11001 = vmatprep.mubr.msk.f32.mxu1 %vm290_vm0, %v836_v4 }
  0x96   : > { %11105 = vmatmul.mubr.msk.f32.gmra.mrb[58].mxu0 %vm290_vm0, %v1460_v6  ;;  %v2065_v6 = vld [vmem:[%s12749_s14 + $0x598] sm:$0xff] }
  0x97   : > { %11107 = vmatprep.mubr.msk.f32.mxu0 %vm290_vm0, %v1461_v7 }
  0x98   : > { %11002 = vmatmul.mubr.msk.f32.gmra.mrb[60].mxu1 %vm290_vm0, %v837_v9  ;;  %v2066_v9 = vld [vmem:[%s12749_s14 + $0x5a0] sm:$0xff] }
  0x99   : > { %11004 = vmatprep.mubr.msk.f32.mxu1 %vm290_vm0, %v838_v10 }
  0x9a   : > { %11108 = vmatmul.mubr.msk.f32.gmra.mrb[60].mxu0 %vm290_vm0, %v1462_v11 }
  0x9b   : > { %11110 = vmatprep.mubr.msk.f32.mxu0 %vm290_vm0, %v1463_v13 }
  0x9c   : > { %11005 = vmatmul.mubr.msk.f32.gmra.mrb[62].mxu1 %vm290_vm0, %v839_v14  ;;  %v2067_v14 = vld [vmem:[%s12749_s14 + $0x5a8] sm:$0xff] }
  0x9d   : > { %11007 = vmatprep.mubr.msk.f32.mxu1 %vm290_vm0, %v840_v15 }
  0x9e   : > { %11111 = vmatmul.mubr.msk.f32.gmra.mrb[62].mxu0 %vm290_vm0, %v1464_v16  ;;  %v2068_v16 = vld [vmem:[%s12749_s14 + $0x5b0] sm:$0xff] }
  0x9f   : > { %11113 = vmatprep.mubr.msk.f32.mxu0 %vm290_vm0, %v1465_v17 }
  0xa0   : > { %11008 = vmatmul.mubr.msk.f32.gmra.mrb[64].mxu1 %vm290_vm0, %v841_v18 }
  0xa1   : > { %11010 = vmatprep.mubr.msk.f32.mxu1 %vm290_vm0, %v842_v19 }
  0xa2   : > { %11114 = vmatmul.mubr.msk.f32.gmra.mrb[64].mxu0 %vm290_vm0, %v1466_v20  ;;  %v2069_v20 = vld [vmem:[%s12749_s14 + $0x5b8] sm:$0xff] }
  0xa3   : > { %11116 = vmatprep.mubr.msk.f32.mxu0 %vm290_vm0, %v1467_v21 }
  0xa4   : > { %11011 = vmatmul.mubr.msk.f32.gmra.mrb[66].mxu1 %vm290_vm0, %v843_v3  ;;  %v2070_v3 = vld [vmem:[%s12749_s14 + $0x5c0] sm:$0xff] }
  0xa5   : > { %11013 = vmatprep.mubr.msk.f32.mxu1 %vm290_vm0, %v844_v22 }
  0xa6   : > { %11117 = vmatmul.mubr.msk.f32.gmra.mrb[66].mxu0 %vm290_vm0, %v1468_v23 }
  0xa7   : > { %11119 = vmatprep.mubr.msk.f32.mxu0 %vm290_vm0, %v1469_v24 }
  0xa8   : > { %11014 = vmatmul.mubr.msk.f32.gmra.mrb[68].mxu1 %vm290_vm0, %v845_v25  ;;  %v2071_v25 = vld [vmem:[%s12749_s14 + $0x5c8] sm:$0xff] }
  0xa9   : > { %11016 = vmatprep.mubr.msk.f32.mxu1 %vm290_vm0, %v846_v5 }
  0xaa   : > { %11120 = vmatmul.mubr.msk.f32.gmra.mrb[68].mxu0 %vm290_vm0, %v1470_v26  ;;  %v2072_v26 = vld [vmem:[%s12749_s14 + $0x5d0] sm:$0xff] }
  0xac   : > { %11017 = vmatmul.mubr.msk.f32.gmra.mrb[70].mxu1 %vm290_vm0, %v847_v27 }
  0xad   : > { %11019 = vmatprep.mubr.msk.f32.mxu1 %vm290_vm0, %v848_v28 }
  0xb0   : > { %11020 = vmatmul.mubr.msk.f32.gmra.mrb[72].mxu1 %vm290_vm0, %v849_v8 }
  0xb1   : > { %11022 = vmatprep.mubr.msk.f32.mxu1 %vm290_vm0, %v850_v29  ;;  %v2073_v29 = vld [vmem:[%s12749_s14 + $0x5d8] sm:$0xff] }
  0xb4   : > { %11023 = vmatmul.mubr.msk.f32.gmra.mrb[74].mxu1 %vm290_vm0, %v851_v30 }
  0xb5   : > { %11025 = vmatprep.mubr.msk.f32.mxu1 %vm290_vm0, %v852_v31  ;;  %v2074_v31 = vld [vmem:[%s12749_s14 + $0x5e0] sm:$0xff] }
  0xb8   : > { %11026 = vmatmul.mubr.msk.f32.gmra.mrb[76].mxu1 %vm290_vm0, %v853_v32 }
  0xb9   : > { %11028 = vmatprep.mubr.msk.f32.mxu1 %vm290_vm0, %v854_v12 }
  0xbc   : > { %11029 = vmatmul.mubr.msk.f32.gmra.mrb[78].mxu1 %vm290_vm0, %v855_v33 }
  0xbd   : > { %11138 = vmatprep.mubr.msk.f32.mxu1 %vm290_vm0, %v2036_v34  ;;  %v2075_v34 = vld [vmem:[%s12749_s14 + $0x5e8] sm:$0xff] }
  0xc0   : > { %11139 = vmatmul.mubr.msk.f32.vlgmr.msra.gmra.mrb[80].mxu1 %vm290_vm0, %v2037_v35 }
  0xc1   : > { %11141 = vmatprep.mubr.msk.f32.mxu1 %vm290_vm0, %v2038_v36  ;;  %v2076_v36 = vld [vmem:[%s12749_s14 + $0x5f0] sm:$0xff] }
  0xc4   : > { %11142 = vmatmul.mubr.msk.f32.gmra.mrb[82].mxu1 %vm290_vm0, %v2039_v37 }
  0xc5   : > { %11144 = vmatprep.mubr.msk.f32.mxu1 %vm290_vm0, %v2040_v38 }
  0xc8   : > { %11145 = vmatmul.mubr.msk.f32.gmra.mrb[84].mxu1 %vm290_vm0, %v2041_v39 }
  0xc9   : > { %11147 = vmatprep.mubr.msk.f32.mxu1 %vm290_vm0, %v2042_v42  ;;  %v2078_v42 = vld [vmem:[%s12749_s14 + $0x600] sm:$0xff] }
  0xcc   : > { %11148 = vmatmul.mubr.msk.f32.gmra.mrb[86].mxu1 %vm290_vm0, %v2043_v44 }
  0xcd   : > { %11150 = vmatprep.mubr.msk.f32.mxu1 %vm290_vm0, %v2044_v45 }
  0xd0   : > { %11151 = vmatmul.mubr.msk.f32.gmra.mrb[88].mxu1 %vm290_vm0, %v2045_v46  ;;  %v2079_v46 = vld [vmem:[%s12749_s14 + $0x608] sm:$0xff] }
  0xd1   : > { %11153 = vmatprep.mubr.msk.f32.mxu1 %vm290_vm0, %v2046_v47 }
  0xd4   : > { %11154 = vmatmul.mubr.msk.f32.gmra.mrb[90].mxu1 %vm290_vm0, %v2047_v48  ;;  %v2080_v48 = vld [vmem:[%s12749_s14 + $0x610] sm:$0xff] }
  0xd5   : > { %11156 = vmatprep.mubr.msk.f32.mxu1 %vm290_vm0, %v2048_v49 }
  0xd8   : > { %11157 = vmatmul.mubr.msk.f32.gmra.mrb[92].mxu1 %vm290_vm0, %v2049_v50 }
  0xd9   : > { %11159 = vmatprep.mubr.msk.f32.mxu1 %vm290_vm0, %v2050_v51 }
  0xdc   : > { %11160 = vmatmul.mubr.msk.f32.gmra.mrb[94].mxu1 %vm290_vm0, %v2051_v52  ;;  %v13252_v52 = vld [vmem:[%s12749_s14 + $0x618] sm:$0xff] }
  0xdd   : > { %11162 = vmatprep.mubr.msk.f32.mxu1 %vm290_vm0, %v2052_v53 }
  0xe0   : > { %11163 = vmatmul.mubr.msk.f32.gmra.mrb[96].mxu1 %vm290_vm0, %v2053_v54  ;;  %v13257_v54 = vld [vmem:[%s12749_s14 + $0x620] sm:$0xff] }
  0xe1   : > { %11165 = vmatprep.mubr.msk.f32.mxu1 %vm290_vm0, %v2054_v55 }
  0xe4   : > { %11166 = vmatmul.mubr.msk.f32.gmra.mrb[98].mxu1 %vm290_vm0, %v2055_v56  ;;  %v12668_v56 = vmov 0.0  }
  0xe5   : > { %11168 = vmatprep.mubr.msk.f32.mxu1 %vm290_vm0, %v2056_v57  ;;  %2657 = vst.msk [vmem:[#allocation2 + $0x28] sm:$0xff] %vm2651_vm1, %v12668_v56  ;;  %2652 = vst.msk [vmem:[#allocation2] sm:$0xff] %vm2651_vm1, %v12668_v56 }
  0xe6   : > { %2653 = vst.msk [vmem:[#allocation2 + $0x8] sm:$0xff] %vm2651_vm1, %v12668_v56  ;;  %2654 = vst.msk [vmem:[#allocation2 + $0x10] sm:$0xff] %vm2651_vm1, %v12668_v56 }
  0xe7   : > { %2655 = vst.msk [vmem:[#allocation2 + $0x18] sm:$0xff] %vm2651_vm1, %v12668_v56  ;;  %2656 = vst.msk [vmem:[#allocation2 + $0x20] sm:$0xff] %vm2651_vm1, %v12668_v56 }
  0xe8   : > { %11169 = vmatmul.mubr.msk.f32.gmra.mrb[100].mxu1 %vm290_vm0, %v2057_v58  ;;  %2658 = vst.msk [vmem:[#allocation2 + $0x30] sm:$0xff] %vm2651_vm1, %v12668_v56  ;;  %2659 = vst.msk [vmem:[#allocation2 + $0x38] sm:$0xff] %vm2651_vm1, %v12668_v56 }
  0xe9   : > { %11171 = vmatprep.mubr.msk.f32.mxu1 %vm290_vm0, %v2058_v59  ;;  %2660 = vst.msk [vmem:[#allocation2 + $0x40] sm:$0xff] %vm2651_vm1, %v12668_v56  ;;  %2661 = vst.msk [vmem:[#allocation2 + $0x48] sm:$0xff] %vm2651_vm1, %v12668_v56  ;;  %v2784_v59 = vld [vmem:[%s15518_s3 + $0x10] sm:$0xff] }
  0xea   : > { %2662 = vst.msk [vmem:[#allocation2 + $0x50] sm:$0xff] %vm2651_vm1, %v12668_v56  ;;  %2663 = vst.msk [vmem:[#allocation2 + $0x58] sm:$0xff] %vm2651_vm1, %v12668_v56 }
  0xeb   : > { %2664 = vst.msk [vmem:[#allocation2 + $0x60] sm:$0xff] %vm2651_vm1, %v12668_v56  ;;  %2665 = vst.msk [vmem:[#allocation2 + $0x68] sm:$0xff] %vm2651_vm1, %v12668_v56 }
  0xec   : > { %11172 = vmatmul.mubr.msk.f32.gmra.mrb[102].mxu1 %vm290_vm0, %v2059_v60  ;;  %2666 = vst.msk [vmem:[#allocation2 + $0x70] sm:$0xff] %vm2651_vm1, %v12668_v56  ;;  %2667 = vst.msk [vmem:[#allocation2 + $0x78] sm:$0xff] %vm2651_vm1, %v12668_v56  ;;  %v2785_v60 = vld [vmem:[%s15518_s3 + $0x18] sm:$0xff] }
  0xed   : > { %11174 = vmatprep.mubr.msk.f32.mxu1 %vm290_vm0, %v2060_v61  ;;  %2668 = vst.msk [vmem:[#allocation2 + $0x80] sm:$0xff] %vm2651_vm1, %v12668_v56  ;;  %2669 = vst.msk [vmem:[#allocation2 + $0x88] sm:$0xff] %vm2651_vm1, %v12668_v56  ;;  %v2083_v61 = vld [vmem:[%s12749_s14 + $0x628] sm:$0xff] }
  0xee   : > { %2670 = vst.msk [vmem:[#allocation2 + $0x90] sm:$0xff] %vm2651_vm1, %v12668_v56  ;;  %2671 = vst.msk [vmem:[#allocation2 + $0x98] sm:$0xff] %vm2651_vm1, %v12668_v56 }
  0xef   : > { %2672 = vst.msk [vmem:[#allocation2 + $0xa0] sm:$0xff] %vm2651_vm1, %v12668_v56  ;;  %2673 = vst.msk [vmem:[#allocation2 + $0xa8] sm:$0xff] %vm2651_vm1, %v12668_v56 }
  0xf0   : > { %11175 = vmatmul.mubr.msk.f32.gmra.mrb[104].mxu1 %vm290_vm0, %v2061_v62  ;;  %2674 = vst.msk [vmem:[#allocation2 + $0xb0] sm:$0xff] %vm2651_vm1, %v12668_v56  ;;  %2675 = vst.msk [vmem:[#allocation2 + $0xb8] sm:$0xff] %vm2651_vm1, %v12668_v56 }
  0xf1   : > { %11177 = vmatprep.mubr.msk.f32.mxu1 %vm290_vm0, %v2062_v63  ;;  %2676 = vst.msk [vmem:[#allocation2 + $0xc0] sm:$0xff] %vm2651_vm1, %v12668_v56  ;;  %2677 = vst.msk [vmem:[#allocation2 + $0xc8] sm:$0xff] %vm2651_vm1, %v12668_v56  ;;  %v12123_v63 = vpack.c.bf16 %v2785_v60, %v2784_v59  ;;  %v13447_v60 = vld [vmem:[%s15517_s2] ss:$0 sm:$0xff] }
  0xf2   : > { %2678 = vst.msk [vmem:[#allocation2 + $0xd0] sm:$0xff] %vm2651_vm1, %v12668_v56  ;;  %2679 = vst.msk [vmem:[#allocation2 + $0xd8] sm:$0xff] %vm2651_vm1, %v12668_v56 }
  0xf3   : > { %v13149_v2 = vpop.f32.mrb[0].mxu1  ;;  %v13156_v7 = vpop.f32.mrb[0].mxu0  ;;  %2680 = vst.msk [vmem:[#allocation2 + $0xe0] sm:$0xff] %vm2651_vm1, %v12668_v56  ;;  %2681 = vst.msk [vmem:[#allocation2 + $0xe8] sm:$0xff] %vm2651_vm1, %v12668_v56  ;;  %12124 = vmatprep.subr.bf16.mxu1 %v12123_v63 }
  0xf4   : > { %v13151_v4 = vpop.f32.mrb[1].mxu1  ;;  %11178 = vmatmul.mubr.msk.f32.gmra.mrb[106].mxu1 %vm290_vm0, %v2063_v0  ;;  %v13159_v10 = vpop.f32.mrb[1].mxu0  ;;  %2682 = vst.msk [vmem:[#allocation2 + $0xf0] sm:$0xff] %vm2651_vm1, %v12668_v56  ;;  %2683 = vst.msk [vmem:[#allocation2 + $0xf8] sm:$0xff] %vm2651_vm1, %v12668_v56  ;;  %v2084_v0 = vld [vmem:[%s12749_s14 + $0x630] sm:$0xff] }
  0xf5   : > { %11180 = vmatprep.mubr.msk.f32.mxu1 %vm290_vm0, %v2064_v1  ;;  %2684 = vst.msk [vmem:[#allocation2 + $0x100] sm:$0xff] %vm2651_vm1, %v12668_v56  ;;  %2685 = vst.msk [vmem:[#allocation2 + $0x108] sm:$0xff] %vm2651_vm1, %v12668_v56  ;;  %12126 = vmatpush3.bf16.msra.mxu1 %v12123_v63  ;;  %v2792_v63 = vld [vmem:[%s15518_s3 + $0x50] sm:$0xff] }
  0xf6   : > { %2686 = vst.msk [vmem:[#allocation2 + $0x110] sm:$0xff] %vm2651_vm1, %v12668_v56  ;;  %2687 = vst.msk [vmem:[#allocation2 + $0x118] sm:$0xff] %vm2651_vm1, %v12668_v56 }
  0xf7   : > { %v13161_v11 = vpop.f32.mrb[2].mxu1  ;;  %2688 = vst.msk [vmem:[#allocation2 + $0x120] sm:$0xff] %vm2651_vm1, %v12668_v56  ;;  %2689 = vst.msk [vmem:[#allocation2 + $0x128] sm:$0xff] %vm2651_vm1, %v12668_v56 }
  0xf8   : > { %v13163_v13 = vpop.f32.mrb[3].mxu1  ;;  %11181 = vmatmul.mubr.msk.f32.gmra.mrb[108].mxu1 %vm290_vm0, %v2065_v6  ;;  %2690 = vst.msk [vmem:[#allocation2 + $0x130] sm:$0xff] %vm2651_vm1, %v12668_v56  ;;  %2691 = vst.msk [vmem:[#allocation2 + $0x138] sm:$0xff] %vm2651_vm1, %v12668_v56 }
  0xf9   : > { %11183 = vmatprep.mubr.msk.f32.mxu1 %vm290_vm0, %v2066_v9  ;;  %v13168_v15 = vpop.f32.mrb[2].mxu0  ;;  %2692 = vst.msk [vmem:[#allocation2 + $0x140] sm:$0xff] %vm2651_vm1, %v12668_v56  ;;  %2693 = vst.msk [vmem:[#allocation2 + $0x148] sm:$0xff] %vm2651_vm1, %v12668_v56 }
  0xfa   : > { %v13171_v17 = vpop.f32.mrb[3].mxu0  ;;  %2694 = vst.msk [vmem:[#allocation2 + $0x150] sm:$0xff] %vm2651_vm1, %v12668_v56  ;;  %2695 = vst.msk [vmem:[#allocation2 + $0x158] sm:$0xff] %vm2651_vm1, %v12668_v56 }
  0xfb   : > { %v13173_v18 = vpop.f32.mrb[4].mxu1  ;;  %2696 = vst.msk [vmem:[#allocation2 + $0x160] sm:$0xff] %vm2651_vm1, %v12668_v56  ;;  %2697 = vst.msk [vmem:[#allocation2 + $0x168] sm:$0xff] %vm2651_vm1, %v12668_v56 }
  0xfc   : > { %v13175_v19 = vpop.f32.mrb[5].mxu1  ;;  %11184 = vmatmul.mubr.msk.f32.gmra.mrb[110].mxu1 %vm290_vm0, %v2067_v14  ;;  %2698 = vst.msk [vmem:[#allocation2 + $0x170] sm:$0xff] %vm2651_vm1, %v12668_v56  ;;  %2699 = vst.msk [vmem:[#allocation2 + $0x178] sm:$0xff] %vm2651_vm1, %v12668_v56  ;;  %v2085_v14 = vld [vmem:[%s12749_s14 + $0x638] sm:$0xff] }
  0xfd   : > { %11186 = vmatprep.mubr.msk.f32.mxu1 %vm290_vm0, %v2068_v16  ;;  %v13180_v21 = vpop.f32.mrb[4].mxu0  ;;  %2700 = vst.msk [vmem:[#allocation2 + $0x180] sm:$0xff] %vm2651_vm1, %v12668_v56  ;;  %2701 = vst.msk [vmem:[#allocation2 + $0x188] sm:$0xff] %vm2651_vm1, %v12668_v56 }
  0xfe   : > { %v13183_v22 = vpop.f32.mrb[5].mxu0  ;;  %2702 = vst.msk [vmem:[#allocation2 + $0x190] sm:$0xff] %vm2651_vm1, %v12668_v56  ;;  %2703 = vst.msk [vmem:[#allocation2 + $0x198] sm:$0xff] %vm2651_vm1, %v12668_v56 }
  0xff   : > { %v13185_v23 = vpop.f32.mrb[6].mxu1  ;;  %2704 = vst.msk [vmem:[#allocation2 + $0x1a0] sm:$0xff] %vm2651_vm1, %v12668_v56  ;;  %2705 = vst.msk [vmem:[#allocation2 + $0x1a8] sm:$0xff] %vm2651_vm1, %v12668_v56 }
 0x100   : > { %v13187_v24 = vpop.f32.mrb[7].mxu1  ;;  %11187 = vmatmul.mubr.msk.f32.gmra.mrb[112].mxu1 %vm290_vm0, %v2069_v20  ;;  %2706 = vst.msk [vmem:[#allocation2 + $0x1b0] sm:$0xff] %vm2651_vm1, %v12668_v56  ;;  %2707 = vst.msk [vmem:[#allocation2 + $0x1b8] sm:$0xff] %vm2651_vm1, %v12668_v56 }
 0x101   : > { %11189 = vmatprep.mubr.msk.f32.mxu1 %vm290_vm0, %v2070_v3  ;;  %v13192_v5 = vpop.f32.mrb[6].mxu0  ;;  %2708 = vst.msk [vmem:[#allocation2 + $0x1c0] sm:$0xff] %vm2651_vm1, %v12668_v56  ;;  %2709 = vst.msk [vmem:[#allocation2 + $0x1c8] sm:$0xff] %vm2651_vm1, %v12668_v56  ;;  %v2861_v3 = vld [vmem:[#allocation2 + $0x8] sm:$0xff] }
 0x102   : > { %v13195_v27 = vpop.f32.mrb[7].mxu0  ;;  %2710 = vst.msk [vmem:[#allocation2 + $0x1d0] sm:$0xff] %vm2651_vm1, %v12668_v56  ;;  %2711 = vst.msk [vmem:[#allocation2 + $0x1d8] sm:$0xff] %vm2651_vm1, %v12668_v56 }
 0x103   : > { %v13197_v28 = vpop.f32.mrb[8].mxu1  ;;  %2712 = vst.msk [vmem:[#allocation2 + $0x1e0] sm:$0xff] %vm2651_vm1, %v12668_v56  ;;  %2713 = vst.msk [vmem:[#allocation2 + $0x1e8] sm:$0xff] %vm2651_vm1, %v12668_v56 }
 0x104   : > { %v13199_v8 = vpop.f32.mrb[9].mxu1  ;;  %11190 = vmatmul.mubr.msk.f32.gmra.mrb[114].mxu1 %vm290_vm0, %v2071_v25  ;;  %2714 = vst.msk [vmem:[#allocation2 + $0x1f0] sm:$0xff] %vm2651_vm1, %v12668_v56  ;;  %2715 = vst.msk [vmem:[#allocation2 + $0x1f8] sm:$0xff] %vm2651_vm1, %v12668_v56 }
 0x105   : > { %11192 = vmatprep.mubr.msk.f32.mxu1 %vm290_vm0, %v2072_v26  ;;  %v13204_v30 = vpop.f32.mrb[8].mxu0  ;;  %2716 = vst.msk [vmem:[#allocation2 + $0x200] sm:$0xff] %vm2651_vm1, %v12668_v56  ;;  %2717 = vst.msk [vmem:[#allocation2 + $0x208] sm:$0xff] %vm2651_vm1, %v12668_v56 }
 0x106   : > { %v13207_v32 = vpop.f32.mrb[9].mxu0  ;;  %2718 = vst.msk [vmem:[#allocation2 + $0x210] sm:$0xff] %vm2651_vm1, %v12668_v56  ;;  %2719 = vst.msk [vmem:[#allocation2 + $0x218] sm:$0xff] %vm2651_vm1, %v12668_v56 }
 0x107   : > { %v13209_v12 = vpop.f32.mrb[10].mxu1 }
 0x108   : > { %v13211_v33 = vpop.f32.mrb[11].mxu1  ;;  %11193 = vmatmul.mubr.msk.f32.gmra.mrb[116].mxu1 %vm290_vm0, %v2073_v29 }
 0x109   : > { %11195 = vmatprep.mubr.msk.f32.mxu1 %vm290_vm0, %v2074_v31  ;;  %v13216_v35 = vpop.f32.mrb[10].mxu0  ;;  %v2862_v31 = vld [vmem:[#allocation2 + $0x10] sm:$0xff] }
 0x10a   : > { %v13219_v37 = vpop.f32.mrb[11].mxu0 }
 0x10b   : > { %v13221_v38 = vpop.f32.mrb[12].mxu1 }
 0x10c   : > { %v13223_v39 = vpop.f32.mrb[13].mxu1  ;;  %11196 = vmatmul.mubr.msk.f32.gmra.mrb[118].mxu1 %vm290_vm0, %v2075_v34 }
 0x10d   : > { %11198 = vmatprep.mubr.msk.f32.mxu1 %vm290_vm0, %v2076_v36  ;;  %v13228_v41 = vpop.f32.mrb[12].mxu0  ;;  %v2863_v36 = vld [vmem:[#allocation2 + $0x18] sm:$0xff] }
 0x10e   : > { %v13231_v43 = vpop.f32.mrb[13].mxu0 }
 0x10f   : > { %v13233_v44 = vpop.f32.mrb[14].mxu1 }
 0x110   : > { %v13235_v45 = vpop.f32.mrb[15].mxu1  ;;  %11199 = vmatmul.mubr.msk.f32.gmra.mrb[120].mxu1 %vm290_vm0, %v2077_v40 }
 0x111   : > { %15611 = vst [vmem:[#allocation4_spill] sm:$0xff] %v13235_v45  ;;  %11201 = vmatprep.mubr.msk.f32.mxu1 %vm290_vm0, %v2078_v42  ;;  %v13240_v47 = vpop.f32.mrb[14].mxu0 }
 0x112   : > { %v13243_v49 = vpop.f32.mrb[15].mxu0 }
 0x113   : > { %v13245_v50 = vpop.f32.mrb[16].mxu1 }
 0x114   : > { %15612 = vst [vmem:[#allocation5_spill] sm:$0xff] %v13245_v50  ;;  %v13247_v51 = vpop.f32.mrb[17].mxu1  ;;  %11202 = vmatmul.mubr.msk.f32.gmra.mrb[122].mxu1 %vm290_vm0, %v2079_v46 }
 0x115   : > { %15613 = vst [vmem:[#allocation6_spill] sm:$0xff] %v13247_v51  ;;  %11204 = vmatprep.mubr.msk.f32.mxu1 %vm290_vm0, %v2080_v48  ;;  %v13254_v53 = vpop.f32.mrb[16].mxu0 }
 0x116   : > { %v13259_v55 = vpop.f32.mrb[17].mxu0 }
 0x117   : > { %v13397_v57 = vpop.f32.mrb[18].mxu1 }
 0x118   : > { %15614 = vst [vmem:[#allocation7_spill] sm:$0xff] %v13397_v57  ;;  %v13399_v58 = vpop.f32.mrb[19].mxu1  ;;  %11205 = vmatmul.mubr.msk.f32.gmra.mrb[124].mxu1 %vm290_vm0, %v13252_v52 }
 0x119   : > { %15615 = vst [vmem:[#allocation8_spill] sm:$0xff] %v13399_v58  ;;  %11207 = vmatprep.mubr.msk.f32.mxu1 %vm290_vm0, %v13257_v54  ;;  %v13412_v62 = vpop.f32.mrb[18].mxu0 }
 0x11a   : > { %v13415_v1 = vpop.f32.mrb[19].mxu0 }
 0x11b   : > { %v13417_v6 = vpop.f32.mrb[20].mxu1 }
 0x11c   : > { %15616 = vst [vmem:[#allocation9_spill] sm:$0xff] %v13417_v6  ;;  %v13419_v9 = vpop.f32.mrb[21].mxu1  ;;  %11208 = vmatmul.mubr.msk.f32.gmra.mrb[126].mxu1 %vm290_vm0, %v2083_v61 }
 0x11d   : > { %15617 = vst [vmem:[#allocation10_spill] sm:$0xff] %v13419_v9  ;;  %11210 = vmatprep.mubr.msk.f32.mxu1 %vm290_vm0, %v2084_v0  ;;  %v11049_v16 = vpop.f32.mrb[20].mxu0  ;;  %v2793_v0 = vld [vmem:[%s15518_s3 + $0x58] sm:$0xff] }
 0x11e   : > { %v1687_v20 = vpop.f32.mrb[21].mxu0 }
 0x11f   : > { %v13424_v25 = vpop.f32.mrb[22].mxu1 }
 0x120   : > { %15618 = vst [vmem:[#allocation11_spill] sm:$0xff] %v13424_v25  ;;  %v13426_v26 = vpop.f32.mrb[23].mxu1  ;;  %11211 = vmatmul.mubr.msk.f32.gmra.mrb[128].mxu1 %vm290_vm0, %v2085_v14  ;;  %v513_v14 = vadd.f32 %v13156_v7, %v13447_v60  ;;  %v523_v7 = vadd.f32 %v13168_v15, %v13447_v60 }
 0x121   : > { %15619 = vst [vmem:[#allocation12_spill] sm:$0xff] %v13426_v26  ;;  %v11052_v29 = vpop.f32.mrb[22].mxu0  ;;  %11217 = vmatprep.mubr.msk.f32.mxu1 %vm2651_vm1, %v2861_v3 }
 0x122   : > { %v1697_v34 = vpop.f32.mrb[23].mxu0  ;;  %v757_v26 = vmax.f32 %v513_v14, 0.0  ;;  %v1703_v6 = vadd.f32 %v11052_v29, %v13447_v60  ;;  %v759_v57 = vmax.f32 %v523_v7, 0.0 }
 0x123   : > { %v13430_v40 = vpop.f32.mrb[24].mxu1 }
 0x124   : > { %15620 = vst [vmem:[#allocation13_spill] sm:$0xff] %v13430_v40  ;;  %v13432_v42 = vpop.f32.mrb[25].mxu1  ;;  %11218 = vmatmul.mubr.msk.f32.vlgmr.msra.gmra.mrb[130].mxu1 %vm2651_vm1, %v2862_v31  ;;  %v13461_v31 = vpack.c.bf16 %v2793_v0, %v2792_v63  ;;  %v1688_v40 = vadd.f32 %v13447_v60, %v1687_v20  ;;  %v1939_v7 = vmax.f32 %v1703_v6, 0.0 }
 0x125   : > { %15621 = vst [vmem:[#allocation14_spill] sm:$0xff] %v13432_v42  ;;  %v11055_v46 = vpop.f32.mrb[24].mxu0  ;;  %11220 = vmatprep.mubr.msk.f32.mxu1 %vm2651_vm1, %v2863_v36  ;;  %v508_v36 = vadd.f32 %v13447_v60, %v13159_v10  ;;  %v518_v10 = vadd.f32 %v13447_v60, %v13171_v17 }
 0x126   : > { %v1707_v48 = vpop.f32.mrb[25].mxu0  ;;  %15626 = vst [vmem:[#allocation19_spill] sm:$0xff] %v13461_v31  ;;  %12144 = vmatprep.subr.bf16.mxu0 %v13461_v31  ;;  %v1936_v58 = vmax.f32 %v1688_v40, 0.0  ;;  %v1713_v45 = vadd.f32 %v11055_v46, %v13447_v60  ;;  %v538_v46 = vadd.f32 %v13447_v60, %v13195_v27 }
 0x127   : > { %v13436_v52 = vpop.f32.mrb[26].mxu1  ;;  %v758_v50 = vmax.f32 %v518_v10, 0.0 }
 0x128   : > { %15622 = vst [vmem:[#allocation15_spill] sm:$0xff] %v13436_v52  ;;  %v13438_v54 = vpop.f32.mrb[27].mxu1 }
 0x129   : > { %15623 = vst [vmem:[#allocation16_spill] sm:$0xff] %v13438_v54  ;;  %v13440_v56 = vpop.f32.mrb[26].mxu0 }
 0x12a   : > { %v13442_v59 = vpop.f32.mrb[27].mxu0 }
 0x12b   : > { %v13449_v61 = vpop.f32.mrb[28].mxu1  ;;  %v1718_v27 = vadd.f32 %v13447_v60, %v13442_v59 }
 0x12c   : > { %15624 = vst [vmem:[#allocation17_spill] sm:$0xff] %v13449_v61  ;;  %v13459_v3 = vpop.f32.mrb[29].mxu1  ;;  %v1693_v61 = vadd.f32 %v11049_v16, %v13447_v60 }
 0x12d   : > { %15625 = vst [vmem:[#allocation18_spill] sm:$0xff] %v13459_v3  ;;  %v13465_v54 = vpop.f32.mrb[28].mxu0  ;;  %v756_v3 = vmax.f32 %v508_v36, 0.0  ;;  %v533_v36 = vadd.f32 %v13180_v21, %v13447_v60 }
 0x12e   : > { %v13468_v52 = vpop.f32.mrb[29].mxu0  ;;  %v1937_v31 = vmax.f32 %v1693_v61, 0.0  ;;  %v528_v61 = vadd.f32 %v13447_v60, %v13183_v22  ;;  %v1708_v22 = vadd.f32 %v13447_v60, %v1707_v48 }
 0x12f   : > { %v10958_v42 = vpop.f32.mrb[30].mxu1 }
 0x130   : > { %v1078_v63 = vadd.f32 %v10958_v42, %v13447_v60  ;;  %v1072_v0 = vpop.f32.mrb[31].mxu1  ;;  %v1698_v42 = vadd.f32 %v13447_v60, %v1697_v34  ;;  %v760_v6 = vmax.f32 %v528_v61, 0.0 }
 0x131   : > { %v1073_v16 = vadd.f32 %v13447_v60, %v1072_v0  ;;  %v13478_v25 = vpop.f32.mrb[30].mxu0 }
 0x132   : > { %v1322_v9 = vmax.f32 %v1078_v63, 0.0  ;;  %v13481_v20 = vpop.f32.mrb[31].mxu0  ;;  %v1938_v10 = vmax.f32 %v1698_v42, 0.0 }
 0x133   : > { %v1321_v14 = vmax.f32 %v1073_v16, 0.0  ;;  %v10961_v15 = vpop.f32.mrb[32].mxu1 }
 0x134   : > { %v1372_v17 = vmax.f32 %v757_v26, %v1322_v9  ;;  %v1088_v0 = vadd.f32 %v10961_v15, %v13447_v60  ;;  %v1082_v51 = vpop.f32.mrb[33].mxu1 }
 0x135   : > { %v1371_v29 = vmax.f32 %v756_v3, %v1321_v14  ;;  %v1083_v63 = vadd.f32 %v13447_v60, %v1082_v51  ;;  %v13490_v16 = vpop.f32.mrb[32].mxu0  ;;  %v761_v3 = vmax.f32 %v533_v36, 0.0  ;;  %v543_v51 = vadd.f32 %v13192_v5, %v13447_v60 }
 0x136   : > { %v13492_v40 = vmax.f32 %v1372_v17, %v1937_v31  ;;  %v1324_v34 = vmax.f32 %v1088_v0, 0.0  ;;  %v13495_v21 = vpop.f32.mrb[33].mxu0  ;;  %v1941_v36 = vmax.f32 %v1713_v45, 0.0  ;;  %v1723_v5 = vadd.f32 %v13440_v56, %v13447_v60 }
 0x137   : > { %v13497_v9 = vmax.f32 %v1371_v29, %v1936_v58  ;;  %v1323_v26 = vmax.f32 %v1083_v63, 0.0  ;;  %v10964_v15 = vpop.f32.mrb[34].mxu1  ;;  %v548_v56 = vadd.f32 %v13447_v60, %v13207_v32  ;;  %v1728_v32 = vadd.f32 %v13447_v60, %v13468_v52 }
 0x138   : > { %v1374_v14 = vmax.f32 %v759_v57, %v1324_v34  ;;  %v1098_v31 = vadd.f32 %v10964_v15, %v13447_v60  ;;  %v1092_v17 = vpop.f32.mrb[35].mxu1  ;;  %v1940_v34 = vmax.f32 %v1708_v22, 0.0 }
 0x139   : > { %v1373_v0 = vmax.f32 %v758_v50, %v1323_v26  ;;  %v1093_v58 = vadd.f32 %v13447_v60, %v1092_v17  ;;  %v13506_v29 = vpop.f32.mrb[34].mxu0  ;;  %v763_v50 = vmax.f32 %v543_v51, 0.0  ;;  %v1943_v51 = vmax.f32 %v1723_v5, 0.0 }
 0x13a   : > { %v13508_v42 = vmax.f32 %v1374_v14, %v1939_v7  ;;  %v1326_v48 = vmax.f32 %v1098_v31, 0.0  ;;  %v13512_v57 = vpop.f32.mrb[35].mxu0  ;;  %v553_v7 = vadd.f32 %v13204_v30, %v13447_v60  ;;  %v762_v31 = vmax.f32 %v538_v46, 0.0 }
 0x13b   : > { %v13514_v63 = vmax.f32 %v1373_v0, %v1938_v10  ;;  %v1325_v61 = vmax.f32 %v1093_v58, 0.0  ;;  %v10967_v15 = vpop.f32.mrb[36].mxu1  ;;  %v1733_v30 = vadd.f32 %v13465_v54, %v13447_v60  ;;  %v558_v54 = vadd.f32 %v13447_v60, %v13219_v37 }
 0x13c   : > { %v1376_v26 = vmax.f32 %v761_v3, %v1326_v48  ;;  %v1108_v45 = vadd.f32 %v10967_v15, %v13447_v60  ;;  %v1102_v14 = vpop.f32.mrb[37].mxu1  ;;  %v1942_v48 = vmax.f32 %v1718_v27, 0.0  ;;  %v1738_v37 = vadd.f32 %v13447_v60, %v13481_v20 }
 0x13d   : > { %v1375_v10 = vmax.f32 %v760_v6, %v1325_v61  ;;  %v1103_v17 = vadd.f32 %v13447_v60, %v1102_v14  ;;  %v13524_v22 = vpop.f32.mrb[36].mxu0  ;;  %v765_v6 = vmax.f32 %v553_v7, 0.0  ;;  %v1945_v7 = vmax.f32 %v1733_v30, 0.0 }
 0x13e   : > { %v13526_v0 = vmax.f32 %v1376_v26, %v1941_v36  ;;  %v1328_v59 = vmax.f32 %v1108_v45, 0.0  ;;  %v13530_v3 = vpop.f32.mrb[37].mxu0  ;;  %v563_v36 = vadd.f32 %v13216_v35, %v13447_v60  ;;  %v764_v45 = vmax.f32 %v548_v56, 0.0 }
 0x13f   : > { %v13532_v58 = vmax.f32 %v1375_v10, %v1940_v34  ;;  %v1327_v46 = vmax.f32 %v1103_v17, 0.0  ;;  %v10970_v15 = vpop.f32.mrb[38].mxu1  ;;  %v1743_v35 = vadd.f32 %v13478_v25, %v13447_v60  ;;  %v568_v25 = vadd.f32 %v13447_v60, %v13231_v43 }
 0x140   : > { %v1378_v61 = vmax.f32 %v763_v50, %v1328_v59  ;;  %v1118_v5 = vadd.f32 %v10970_v15, %v13447_v60  ;;  %v1112_v26 = vpop.f32.mrb[39].mxu1  ;;  %v1944_v59 = vmax.f32 %v1728_v32, 0.0  ;;  %v1748_v43 = vadd.f32 %v13447_v60, %v13495_v21 }
 0x141   : > { %v1377_v34 = vmax.f32 %v762_v31, %v1327_v46  ;;  %v1113_v14 = vadd.f32 %v13447_v60, %v1112_v26  ;;  %v13542_v27 = vpop.f32.mrb[38].mxu0  ;;  %v767_v31 = vmax.f32 %v563_v36, 0.0  ;;  %v1947_v36 = vmax.f32 %v1743_v35, 0.0 }
 0x142   : > { %v13544_v10 = vmax.f32 %v1378_v61, %v1943_v51  ;;  %v1330_v52 = vmax.f32 %v1118_v5, 0.0  ;;  %v13548_v50 = vpop.f32.mrb[39].mxu0  ;;  %v573_v51 = vadd.f32 %v13228_v41, %v13447_v60  ;;  %v766_v5 = vmax.f32 %v558_v54, 0.0 }
 0x143   : > { %v13550_v17 = vmax.f32 %v1377_v34, %v1942_v48  ;;  %v1329_v56 = vmax.f32 %v1113_v14, 0.0  ;;  %v10973_v15 = vpop.f32.mrb[40].mxu1  ;;  %v1753_v41 = vadd.f32 %v13490_v16, %v13447_v60  ;;  %v578_v16 = vadd.f32 %v13447_v60, %v13243_v49 }
 0x144   : > { %v1380_v46 = vmax.f32 %v765_v6, %v1330_v52  ;;  %v1128_v30 = vadd.f32 %v10973_v15, %v13447_v60  ;;  %v1122_v61 = vpop.f32.mrb[41].mxu1  ;;  %v1946_v52 = vmax.f32 %v1738_v37, 0.0  ;;  %v1758_v49 = vadd.f32 %v13447_v60, %v13512_v57 }
 0x145   : > { %v1379_v48 = vmax.f32 %v764_v45, %v1329_v56  ;;  %v1123_v26 = vadd.f32 %v13447_v60, %v1122_v61  ;;  %v13560_v32 = vpop.f32.mrb[40].mxu0  ;;  %v769_v45 = vmax.f32 %v573_v51, 0.0  ;;  %v1949_v51 = vmax.f32 %v1753_v41, 0.0 }
 0x146   : > { %v13562_v34 = vmax.f32 %v1380_v46, %v1945_v7  ;;  %v1332_v20 = vmax.f32 %v1128_v30, 0.0  ;;  %v13566_v6 = vpop.f32.mrb[41].mxu0  ;;  %v583_v7 = vadd.f32 %v13240_v47, %v13447_v60  ;;  %v768_v30 = vmax.f32 %v568_v25, 0.0 }
 0x147   : > { %v13568_v14 = vmax.f32 %v1379_v48, %v1944_v59  ;;  %v1331_v54 = vmax.f32 %v1123_v26, 0.0  ;;  %v10976_v15 = vpop.f32.mrb[42].mxu1  ;;  %v1763_v47 = vadd.f32 %v13506_v29, %v13447_v60  ;;  %v588_v29 = vadd.f32 %v13447_v60, %v13259_v55 }
 0x148   : > { %v1382_v56 = vmax.f32 %v767_v31, %v1332_v20  ;;  %v1138_v35 = vadd.f32 %v10976_v15, %v13447_v60  ;;  %v1132_v46 = vpop.f32.mrb[43].mxu1  ;;  %v1948_v20 = vmax.f32 %v1748_v43, 0.0  ;;  %v1768_v55 = vadd.f32 %v13447_v60, %v13530_v3 }
 0x149   : > { %v1381_v59 = vmax.f32 %v766_v5, %v1331_v54  ;;  %v1133_v61 = vadd.f32 %v13447_v60, %v1132_v46  ;;  %v13578_v37 = vpop.f32.mrb[42].mxu0  ;;  %v771_v5 = vmax.f32 %v583_v7, 0.0  ;;  %v1951_v7 = vmax.f32 %v1763_v47, 0.0 }
 0x14a   : > { %v13580_v48 = vmax.f32 %v1382_v56, %v1947_v36  ;;  %v1334_v21 = vmax.f32 %v1138_v35, 0.0  ;;  %v13584_v31 = vpop.f32.mrb[43].mxu0  ;;  %v593_v36 = vadd.f32 %v13254_v53, %v13447_v60  ;;  %v770_v35 = vmax.f32 %v578_v16, 0.0 }
 0x14b   : > { %v13586_v26 = vmax.f32 %v1381_v59, %v1946_v52  ;;  %v1333_v25 = vmax.f32 %v1133_v61, 0.0  ;;  %v10979_v15 = vpop.f32.mrb[44].mxu1  ;;  %v1773_v53 = vadd.f32 %v13524_v22, %v13447_v60  ;;  %v598_v22 = vadd.f32 %v13447_v60, %v13415_v1 }
 0x14c   : > { %v1384_v54 = vmax.f32 %v769_v45, %v1334_v21  ;;  %v1148_v41 = vadd.f32 %v10979_v15, %v13447_v60  ;;  %v1142_v56 = vpop.f32.mrb[45].mxu1  ;;  %v1950_v21 = vmax.f32 %v1758_v49, 0.0  ;;  %v1778_v1 = vadd.f32 %v13447_v60, %v13548_v50 }
 0x14d   : > { %v1383_v52 = vmax.f32 %v768_v30, %v1333_v25  ;;  %v1143_v46 = vadd.f32 %v13447_v60, %v1142_v56  ;;  %v13596_v43 = vpop.f32.mrb[44].mxu0  ;;  %v773_v30 = vmax.f32 %v593_v36, 0.0  ;;  %v1953_v36 = vmax.f32 %v1773_v53, 0.0 }
 0x14e   : > { %v13598_v59 = vmax.f32 %v1384_v54, %v1949_v51  ;;  %v1336_v57 = vmax.f32 %v1148_v41, 0.0  ;;  %v13602_v45 = vpop.f32.mrb[45].mxu0  ;;  %v603_v51 = vadd.f32 %v13412_v62, %v13447_v60  ;;  %v772_v41 = vmax.f32 %v588_v29, 0.0 }
 0x14f   : > { %v13604_v61 = vmax.f32 %v1383_v52, %v1948_v20  ;;  %v1335_v16 = vmax.f32 %v1143_v46, 0.0  ;;  %v10982_v15 = vpop.f32.mrb[46].mxu1  ;;  %v1783_v62 = vadd.f32 %v13542_v27, %v13447_v60  ;;  %v608_v27 = vadd.f32 %v13447_v60, %v13151_v4 }
 0x150   : > { %v1386_v25 = vmax.f32 %v771_v5, %v1336_v57  ;;  %v1158_v47 = vadd.f32 %v10982_v15, %v13447_v60  ;;  %v1152_v54 = vpop.f32.mrb[47].mxu1  ;;  %v1952_v57 = vmax.f32 %v1768_v55, 0.0 }
 0x151   : > { %v1385_v20 = vmax.f32 %v770_v35, %v1335_v16  ;;  %v1153_v56 = vadd.f32 %v13447_v60, %v1152_v54  ;;  %v13614_v49 = vpop.f32.mrb[46].mxu0  ;;  %v613_v35 = vadd.f32 %v13149_v2, %v13447_v60  ;;  %v1793_v2 = vadd.f32 %v13560_v32, %v13447_v60 }
 0x152   : > { %v13616_v52 = vmax.f32 %v1386_v25, %v1951_v7  ;;  %v1338_v3 = vmax.f32 %v1158_v47, 0.0  ;;  %v13620_v5 = vpop.f32.mrb[47].mxu0  ;;  %v775_v7 = vmax.f32 %v603_v51, 0.0  ;;  %v774_v47 = vmax.f32 %v598_v22, 0.0 }
 0x153   : > { %v13622_v46 = vmax.f32 %v1385_v20, %v1950_v21  ;;  %v1337_v29 = vmax.f32 %v1153_v56, 0.0  ;;  %v10985_v15 = vpop.f32.mrb[48].mxu1  ;;  %v1955_v56 = vmax.f32 %v1783_v62, 0.0  ;;  %v623_v22 = vadd.f32 %v13161_v11, %v13447_v60 }
 0x154   : > { %v1388_v16 = vmax.f32 %v773_v30, %v1338_v3  ;;  %v1168_v53 = vadd.f32 %v10985_v15, %v13447_v60  ;;  %v1162_v25 = vpop.f32.mrb[49].mxu1  ;;  %v1954_v15 = vmax.f32 %v1778_v1, 0.0  ;;  %v1803_v11 = vadd.f32 %v13578_v37, %v13447_v60 }
 0x155   : > { %v1387_v21 = vmax.f32 %v772_v41, %v1337_v29  ;;  %v1163_v54 = vadd.f32 %v13447_v60, %v1162_v25  ;;  %v13632_v55 = vpop.f32.mrb[48].mxu0  ;;  %v1788_v41 = vadd.f32 %v13447_v60, %v13566_v6  ;;  %v628_v37 = vadd.f32 %v13447_v60, %v13175_v19 }
 0x156   : > { %v13634_v20 = vmax.f32 %v1388_v16, %v1953_v36  ;;  %v1340_v50 = vmax.f32 %v1168_v53, 0.0  ;;  %v13638_v30 = vpop.f32.mrb[49].mxu0  ;;  %v618_v36 = vadd.f32 %v13447_v60, %v13163_v13  ;;  %v777_v16 = vmax.f32 %v613_v35, 0.0 }
 0x157   : > { %v13640_v51 = vmax.f32 %v1387_v21, %v1952_v57  ;;  %v1339_v3 = vmax.f32 %v1163_v54, 0.0  ;;  %v10988_v4 = vpop.f32.mrb[50].mxu1  ;;  %v776_v53 = vmax.f32 %v608_v27, 0.0  ;;  %v1957_v54 = vmax.f32 %v1793_v2, 0.0 }
 0x158   : > { %v1390_v62 = vmax.f32 %v775_v7, %v1340_v50  ;;  %v1178_v29 = vadd.f32 %v10988_v4, %v13447_v60  ;;  %v1172_v32 = vpop.f32.mrb[51].mxu1  ;;  %v1956_v50 = vmax.f32 %v1788_v41, 0.0  ;;  %v1798_v27 = vadd.f32 %v13447_v60, %v13584_v31 }
 0x159   : > { %15627 = vst [vmem:[#allocation20_spill] sm:$0xff] %v13640_v51  ;;  %v1389_v57 = vmax.f32 %v774_v47, %v1339_v3  ;;  %v1173_v25 = vadd.f32 %v13447_v60, %v1172_v32  ;;  %v13650_v1 = vpop.f32.mrb[50].mxu0  ;;  %v779_v47 = vmax.f32 %v623_v22, 0.0  ;;  %v778_v3 = vmax.f32 %v618_v36, 0.0 }
 0x15a   : > { %v13652_v21 = vmax.f32 %v1390_v62, %v1955_v56  ;;  %v1342_v6 = vmax.f32 %v1178_v29, 0.0  ;;  %v13656_v51 = vpop.f32.mrb[51].mxu0  ;;  %v633_v2 = vadd.f32 %v13173_v18, %v13447_v60  ;;  %v1959_v22 = vmax.f32 %v1803_v11, 0.0 }
 0x15b   : > { %v13658_v13 = vmax.f32 %v1389_v57, %v1954_v15  ;;  %v1341_v7 = vmax.f32 %v1173_v25, 0.0  ;;  %v10991_v35 = vpop.f32.mrb[52].mxu1  ;;  %v1813_v36 = vadd.f32 %v13596_v43, %v13447_v60  ;;  %v1958_v25 = vmax.f32 %v1798_v27, 0.0 }
 0x15c   : > { %v1392_v4 = vmax.f32 %v777_v16, %v1342_v6  ;;  %v1188_v56 = vadd.f32 %v10991_v35, %v13447_v60  ;;  %v1182_v62 = vpop.f32.mrb[53].mxu1  ;;  %v1808_v19 = vadd.f32 %v13447_v60, %v13602_v45  ;;  %v781_v35 = vmax.f32 %v633_v2, 0.0 }
 0x15d   : > { %v1391_v15 = vmax.f32 %v776_v53, %v1341_v7  ;;  %v1183_v29 = vadd.f32 %v13447_v60, %v1182_v62  ;;  %v13668_v41 = vpop.f32.mrb[52].mxu0  ;;  %v643_v53 = vadd.f32 %v13185_v23, %v13447_v60  ;;  %v1823_v23 = vadd.f32 %v13614_v49, %v13447_v60 }
 0x15e   : > { %v13670_v32 = vmax.f32 %v1392_v4, %v1957_v54  ;;  %v1344_v31 = vmax.f32 %v1188_v56, 0.0  ;;  %v13674_v16 = vpop.f32.mrb[53].mxu0  ;;  %v638_v54 = vadd.f32 %v13447_v60, %v13187_v24  ;;  %v780_v4 = vmax.f32 %v628_v37, 0.0 }
 0x15f   : > { %v13676_v57 = vmax.f32 %v1391_v15, %v1956_v50  ;;  %v1343_v18 = vmax.f32 %v1183_v29, 0.0  ;;  %v10994_v6 = vpop.f32.mrb[54].mxu1  ;;  %v1961_v15 = vmax.f32 %v1813_v36, 0.0  ;;  %v783_v37 = vmax.f32 %v643_v53, 0.0 }
 0x160   : > { %v1394_v11 = vmax.f32 %v779_v47, %v1344_v31  ;;  %v1198_v7 = vadd.f32 %v10994_v6, %v13447_v60  ;;  %v1192_v43 = vpop.f32.mrb[55].mxu1  ;;  %v1960_v31 = vmax.f32 %v1808_v19, 0.0  ;;  %v653_v36 = vadd.f32 %v13197_v28, %v13447_v60 }
 0x161   : > { %v1393_v50 = vmax.f32 %v778_v3, %v1343_v18  ;;  %v1193_v56 = vadd.f32 %v13447_v60, %v1192_v43  ;;  %v13686_v27 = vpop.f32.mrb[54].mxu0  ;;  %v1818_v3 = vadd.f32 %v13447_v60, %v13620_v5  ;;  %v782_v18 = vmax.f32 %v638_v54, 0.0 }
 0x162   : > { %v13688_v62 = vmax.f32 %v1394_v11, %v1959_v22  ;;  %v1346_v45 = vmax.f32 %v1198_v7, 0.0  ;;  %v13692_v29 = vpop.f32.mrb[55].mxu0  ;;  %v648_v49 = vadd.f32 %v13447_v60, %v13199_v8  ;;  %v1963_v53 = vmax.f32 %v1823_v23, 0.0 }
 0x163   : > { %v13694_v24 = vmax.f32 %v1393_v50, %v1958_v25  ;;  %v1345_v47 = vmax.f32 %v1193_v56, 0.0  ;;  %v10997_v2 = vpop.f32.mrb[56].mxu1  ;;  %v1833_v54 = vadd.f32 %v13632_v55, %v13447_v60  ;;  %v1962_v56 = vmax.f32 %v1818_v3, 0.0 }
 0x164   : > { %v1396_v6 = vmax.f32 %v781_v35, %v1346_v45  ;;  %v1208_v22 = vadd.f32 %v10997_v2, %v13447_v60  ;;  %v1202_v11 = vpop.f32.mrb[57].mxu1  ;;  %v1828_v8 = vadd.f32 %v13447_v60, %v13638_v30  ;;  %v785_v2 = vmax.f32 %v653_v36, 0.0 }
 0x165   : > { %v1395_v25 = vmax.f32 %v780_v4, %v1345_v47  ;;  %v1203_v7 = vadd.f32 %v13447_v60, %v1202_v11  ;;  %v13704_v19 = vpop.f32.mrb[56].mxu0  ;;  %v663_v4 = vadd.f32 %v13209_v12, %v13447_v60  ;;  %v1843_v12 = vadd.f32 %v13650_v1, %v13447_v60 }
 0x166   : > { %v13706_v43 = vmax.f32 %v1396_v6, %v1961_v15  ;;  %v1348_v5 = vmax.f32 %v1208_v22, 0.0  ;;  %v13710_v35 = vpop.f32.mrb[57].mxu0  ;;  %v658_v15 = vadd.f32 %v13447_v60, %v13211_v33  ;;  %v784_v6 = vmax.f32 %v648_v49, 0.0 }
 0x167   : > { %v13712_v50 = vmax.f32 %v1395_v25, %v1960_v31  ;;  %v1347_v28 = vmax.f32 %v1203_v7, 0.0  ;;  %v11000_v45 = vpop.f32.mrb[58].mxu1  ;;  %v1965_v25 = vmax.f32 %v1833_v54, 0.0  ;;  %v787_v49 = vmax.f32 %v663_v4, 0.0 }
 0x168   : > { %v1398_v23 = vmax.f32 %v783_v37, %v1348_v5  ;;  %v1218_v47 = vadd.f32 %v11000_v45, %v13447_v60  ;;  %v1212_v55 = vpop.f32.mrb[59].mxu1  ;;  %v1964_v5 = vmax.f32 %v1828_v8, 0.0  ;;  %v673_v54 = vadd.f32 %v13221_v38, %v13447_v60 }
 0x169   : > { %v1397_v31 = vmax.f32 %v782_v18, %v1347_v28  ;;  %v1213_v22 = vadd.f32 %v13447_v60, %v1212_v55  ;;  %v13722_v3 = vpop.f32.mrb[58].mxu0  ;;  %v1838_v18 = vadd.f32 %v13447_v60, %v13656_v51  ;;  %v786_v28 = vmax.f32 %v658_v15, 0.0 }
 0x16a   : > { %v13724_v11 = vmax.f32 %v1398_v23, %v1963_v53  ;;  %v1350_v30 = vmax.f32 %v1218_v47, 0.0  ;;  %v13728_v7 = vpop.f32.mrb[59].mxu0  ;;  %v668_v1 = vadd.f32 %v13447_v60, %v13223_v39  ;;  %v1967_v4 = vmax.f32 %v1843_v12, 0.0 }
 0x16b   : > { %v13730_v33 = vmax.f32 %v1397_v31, %v1962_v56  ;;  %v1349_v37 = vmax.f32 %v1213_v22, 0.0  ;;  %v11003_v36 = vpop.f32.mrb[60].mxu1  ;;  %v1853_v15 = vadd.f32 %v13668_v41, %v13447_v60  ;;  %v1966_v22 = vmax.f32 %v1838_v18, 0.0 }
 0x16c   : > { %v1400_v45 = vmax.f32 %v785_v2, %v1350_v30  ;;  %v1228_v53 = vadd.f32 %v11003_v36, %v13447_v60  ;;  %v1222_v23 = vpop.f32.mrb[61].mxu1  ;;  %v1848_v39 = vadd.f32 %v13447_v60, %v13674_v16 }
 0x16d   : > { %v1399_v56 = vmax.f32 %v784_v6, %v1349_v37  ;;  %v1223_v47 = vadd.f32 %v13447_v60, %v1222_v23  ;;  %v13740_v8 = vpop.f32.mrb[60].mxu0  ;;  %v683_v6 = vadd.f32 %v13233_v44, %v13447_v60  ;;  %v1863_v44 = vadd.f32 %v13686_v27, %v13447_v60  ;;  %v15633_v27 = vld [vmem:[#allocation6_spill] sm:$0xff] }
 0x16e   : > { %v13742_v55 = vmax.f32 %v1400_v45, %v1965_v25  ;;  %v1352_v51 = vmax.f32 %v1228_v53, 0.0  ;;  %v13746_v2 = vpop.f32.mrb[61].mxu0  ;;  %v15629_v25 = vld [vmem:[#allocation4_spill] sm:$0xff]  ;;  %v789_v45 = vmax.f32 %v673_v54, 0.0  ;;  %v788_v53 = vmax.f32 %v668_v1, 0.0 }
 0x16f   : > { %v13748_v31 = vmax.f32 %v1399_v56, %v1964_v5  ;;  %v1351_v38 = vmax.f32 %v1223_v47, 0.0  ;;  %v11006_v30 = vpop.f32.mrb[62].mxu1  ;;  %v678_v37 = vadd.f32 %v13447_v60, %v15629_v25  ;;  %v1969_v47 = vmax.f32 %v1853_v15, 0.0  ;;  %v15632_v15 = vld [vmem:[#allocation5_spill] sm:$0xff] }
 0x170   : > { %v1402_v12 = vmax.f32 %v787_v49, %v1352_v51  ;;  %v1238_v36 = vadd.f32 %v11006_v30, %v13447_v60  ;;  %v1232_v41 = vpop.f32.mrb[63].mxu1  ;;  %v1968_v30 = vmax.f32 %v1848_v39, 0.0  ;;  %v791_v1 = vmax.f32 %v683_v6, 0.0 }
 0x171   : > { %15628 = vst [vmem:[#allocation21_spill] sm:$0xff] %v13748_v31  ;;  %v1401_v5 = vmax.f32 %v786_v28, %v1351_v38  ;;  %v1233_v23 = vadd.f32 %v13447_v60, %v1232_v41  ;;  %v13758_v18 = vpop.f32.mrb[62].mxu0  ;;  %v1858_v28 = vadd.f32 %v13447_v60, %v13692_v29  ;;  %v790_v38 = vmax.f32 %v678_v37, 0.0 }
 0x172   : > { %v13760_v56 = vmax.f32 %v1402_v12, %v1967_v4  ;;  %v1354_v16 = vmax.f32 %v1238_v36, 0.0  ;;  %v13764_v31 = vpop.f32.mrb[63].mxu0  ;;  %v693_v36 = vadd.f32 %v15632_v15, %v13447_v60  ;;  %v688_v41 = vadd.f32 %v13447_v60, %v15633_v27 }
 0x173   : > { %v13766_v49 = vmax.f32 %v1401_v5, %v1966_v22  ;;  %v1353_v51 = vmax.f32 %v1233_v23, 0.0  ;;  %v11009_v54 = vpop.f32.mrb[64].mxu1  ;;  %v1971_v6 = vmax.f32 %v1863_v44, 0.0  ;;  %v1873_v37 = vadd.f32 %v13704_v19, %v13447_v60 }
 0x174   : > { %15630 = vst [vmem:[#allocation4_spill] sm:$0xff] %v13760_v56  ;;  %v1404_v25 = vmax.f32 %v789_v45, %v1354_v16  ;;  %v1248_v4 = vadd.f32 %v11009_v54, %v13447_v60  ;;  %v1242_v12 = vpop.f32.mrb[65].mxu1  ;;  %v1970_v15 = vmax.f32 %v1858_v28, 0.0  ;;  %v793_v27 = vmax.f32 %v693_v36, 0.0 }
 0x175   : > { %15631 = vst [vmem:[#allocation22_spill] sm:$0xff] %v13766_v49  ;;  %v1403_v22 = vmax.f32 %v788_v53, %v1353_v51  ;;  %v1243_v5 = vadd.f32 %v13447_v60, %v1242_v12  ;;  %v13776_v39 = vpop.f32.mrb[64].mxu0  ;;  %v1868_v53 = vadd.f32 %v13447_v60, %v13710_v35  ;;  %v15636_v51 = vld [vmem:[#allocation7_spill] sm:$0xff] }
 0x176   : > { %v13778_v23 = vmax.f32 %v1404_v25, %v1969_v47  ;;  %v1356_v29 = vmax.f32 %v1248_v4, 0.0  ;;  %v13782_v45 = vpop.f32.mrb[65].mxu0  ;;  %v703_v12 = vadd.f32 %v15636_v51, %v13447_v60  ;;  %v15637_v47 = vld [vmem:[#allocation8_spill] sm:$0xff]  ;;  %v1883_v51 = vadd.f32 %v13722_v3, %v13447_v60  ;;  %v15641_v3 = vld [vmem:[#allocation10_spill] sm:$0xff] }
 0x177   : > { %v13784_v16 = vmax.f32 %v1403_v22, %v1968_v30  ;;  %v1355_v54 = vmax.f32 %v1243_v5, 0.0  ;;  %v11012_v49 = vpop.f32.mrb[66].mxu1  ;;  %v698_v25 = vadd.f32 %v13447_v60, %v15637_v47 }
 0x178   : > { %15634 = vst [vmem:[#allocation5_spill] sm:$0xff] %v13778_v23  ;;  %v1406_v44 = vmax.f32 %v791_v1, %v1356_v29  ;;  %v1258_v4 = vadd.f32 %v11012_v49, %v13447_v60  ;;  %v1252_v19 = vpop.f32.mrb[67].mxu1  ;;  %v792_v23 = vmax.f32 %v688_v41, 0.0  ;;  %v1972_v29 = vmax.f32 %v1868_v53, 0.0 }
 0x179   : > { %15635 = vst [vmem:[#allocation6_spill] sm:$0xff] %v13784_v16  ;;  %v1405_v30 = vmax.f32 %v790_v38, %v1355_v54  ;;  %v1253_v22 = vadd.f32 %v13447_v60, %v1252_v19  ;;  %v13794_v28 = vpop.f32.mrb[66].mxu0  ;;  %v1973_v16 = vmax.f32 %v1873_v37, 0.0  ;;  %v1878_v38 = vadd.f32 %v13447_v60, %v13728_v7  ;;  %v15640_v37 = vld [vmem:[#allocation9_spill] sm:$0xff] }
 0x17a   : > { %v13796_v5 = vmax.f32 %v1406_v44, %v1971_v6  ;;  %v1358_v35 = vmax.f32 %v1258_v4, 0.0  ;;  %v13800_v56 = vpop.f32.mrb[67].mxu0  ;;  %v795_v41 = vmax.f32 %v703_v12, 0.0  ;;  %v794_v54 = vmax.f32 %v698_v25, 0.0 }
 0x17b   : > { %v13802_v1 = vmax.f32 %v1405_v30, %v1970_v15  ;;  %v1357_v49 = vmax.f32 %v1253_v22, 0.0  ;;  %v11015_v36 = vpop.f32.mrb[68].mxu1  ;;  %v713_v4 = vadd.f32 %v15640_v37, %v13447_v60  ;;  %v708_v19 = vadd.f32 %v13447_v60, %v15641_v3 }
 0x17c   : > { %15638 = vst [vmem:[#allocation7_spill] sm:$0xff] %v13796_v5  ;;  %v1408_v47 = vmax.f32 %v793_v27, %v1358_v35  ;;  %v1268_v6 = vadd.f32 %v11015_v36, %v13447_v60  ;;  %v1262_v44 = vpop.f32.mrb[69].mxu1  ;;  %v1975_v12 = vmax.f32 %v1883_v51, 0.0  ;;  %v1893_v25 = vadd.f32 %v13740_v8, %v13447_v60 }
 0x17d   : > { %15639 = vst [vmem:[#allocation8_spill] sm:$0xff] %v13802_v1  ;;  %v1407_v15 = vmax.f32 %v792_v23, %v1357_v49  ;;  %v1263_v30 = vadd.f32 %v13447_v60, %v1262_v44  ;;  %v13812_v53 = vpop.f32.mrb[68].mxu0  ;;  %v1974_v37 = vmax.f32 %v1878_v38, 0.0  ;;  %v1888_v23 = vadd.f32 %v13447_v60, %v13746_v2  ;;  %v15644_v49 = vld [vmem:[#allocation11_spill] sm:$0xff] }
 0x17e   : > { %v13814_v22 = vmax.f32 %v1408_v47, %v1973_v16  ;;  %v1360_v7 = vmax.f32 %v1268_v6, 0.0  ;;  %v13818_v27 = vpop.f32.mrb[69].mxu0  ;;  %v723_v44 = vadd.f32 %v15644_v49, %v13447_v60  ;;  %v15645_v16 = vld [vmem:[#allocation12_spill] sm:$0xff]  ;;  %v797_v3 = vmax.f32 %v713_v4, 0.0 }
 0x17f   : > { %v13820_v35 = vmax.f32 %v1407_v15, %v1972_v29  ;;  %v1359_v36 = vmax.f32 %v1263_v30, 0.0  ;;  %v11018_v1 = vpop.f32.mrb[70].mxu1  ;;  %v718_v47 = vadd.f32 %v13447_v60, %v15645_v16  ;;  %v1903_v2 = vadd.f32 %v13758_v18, %v13447_v60 }
 0x180   : > { %15642 = vst [vmem:[#allocation9_spill] sm:$0xff] %v13814_v22  ;;  %v1410_v51 = vmax.f32 %v795_v41, %v1360_v7  ;;  %v1278_v6 = vadd.f32 %v11018_v1, %v13447_v60  ;;  %v1272_v8 = vpop.f32.mrb[71].mxu1  ;;  %v796_v22 = vmax.f32 %v708_v19, 0.0  ;;  %v1976_v16 = vmax.f32 %v1888_v23, 0.0 }
 0x181   : > { %15643 = vst [vmem:[#allocation10_spill] sm:$0xff] %v13820_v35  ;;  %v1409_v29 = vmax.f32 %v794_v54, %v1359_v36  ;;  %v1273_v15 = vadd.f32 %v13447_v60, %v1272_v8  ;;  %v1977_v35 = vmax.f32 %v1893_v25, 0.0  ;;  %v1898_v1 = vadd.f32 %v13447_v60, %v13764_v31  ;;  %v15646_v36 = vld [vmem:[#allocation13_spill] sm:$0xff] }
 0x182   : > { %v13830_v38 = vmax.f32 %v1410_v51, %v1975_v12  ;;  %v1362_v30 = vmax.f32 %v1278_v6, 0.0  ;;  %v799_v4 = vmax.f32 %v723_v44, 0.0  ;;  %v798_v19 = vmax.f32 %v718_v47, 0.0  ;;  %v15647_v51 = vld [vmem:[#allocation14_spill] sm:$0xff] }
 0x183   : > { %v13834_v49 = vmax.f32 %v1409_v29, %v1974_v37  ;;  %v1361_v5 = vmax.f32 %v1273_v15, 0.0  ;;  %v11021_v41 = vpop.f32.mrb[72].mxu1  ;;  %v733_v25 = vadd.f32 %v15646_v36, %v13447_v60  ;;  %v728_v18 = vadd.f32 %v13447_v60, %v15647_v51 }
 0x184   : > { %v1412_v54 = vmax.f32 %v797_v3, %v1362_v30  ;;  %v1288_v7 = vadd.f32 %v11021_v41, %v13447_v60  ;;  %v1282_v12 = vpop.f32.mrb[73].mxu1  ;;  %v1979_v29 = vmax.f32 %v1903_v2, 0.0  ;;  %v1913_v31 = vadd.f32 %v13776_v39, %v13447_v60  ;;  %v15648_v41 = vld [vmem:[#allocation15_spill] sm:$0xff] }
 0x185   : > { %v1411_v37 = vmax.f32 %v796_v22, %v1361_v5  ;;  %v1283_v6 = vadd.f32 %v13447_v60, %v1282_v12  ;;  %v1978_v3 = vmax.f32 %v1898_v1, 0.0  ;;  %v1908_v30 = vadd.f32 %v13447_v60, %v13782_v45  ;;  %v15649_v22 = vld [vmem:[#allocation16_spill] sm:$0xff] }
 0x186   : > { %v13844_v23 = vmax.f32 %v1412_v54, %v1977_v35  ;;  %v1364_v8 = vmax.f32 %v1288_v7, 0.0  ;;  %v743_v5 = vadd.f32 %v15648_v41, %v13447_v60  ;;  %v738_v35 = vadd.f32 %v13447_v60, %v15649_v22 }
 0x187   : > { %v13848_v44 = vmax.f32 %v1411_v37, %v1976_v16  ;;  %v1363_v47 = vmax.f32 %v1283_v6, 0.0  ;;  %v11024_v15 = vpop.f32.mrb[74].mxu1  ;;  %v801_v12 = vmax.f32 %v733_v25, 0.0  ;;  %v800_v39 = vmax.f32 %v728_v18, 0.0 }
 0x188   : > { %v1414_v54 = vmax.f32 %v799_v4, %v1364_v8  ;;  %v1298_v2 = vadd.f32 %v11024_v15, %v13447_v60  ;;  %v1292_v7 = vpop.f32.mrb[75].mxu1  ;;  %v1981_v37 = vmax.f32 %v1913_v31, 0.0  ;;  %v1923_v45 = vadd.f32 %v13794_v28, %v13447_v60  ;;  %v15650_v15 = vld [vmem:[#allocation17_spill] sm:$0xff] }
 0x189   : > { %v1413_v16 = vmax.f32 %v798_v19, %v1363_v47  ;;  %v1293_v36 = vadd.f32 %v13447_v60, %v1292_v7  ;;  %v1980_v22 = vmax.f32 %v1908_v30, 0.0  ;;  %v1918_v8 = vadd.f32 %v13447_v60, %v13800_v56 }
 0x18a   : > { %v13858_v1 = vmax.f32 %v1414_v54, %v1979_v29  ;;  %v1366_v51 = vmax.f32 %v1298_v2, 0.0  ;;  %v803_v25 = vmax.f32 %v743_v5, 0.0  ;;  %v802_v18 = vmax.f32 %v738_v35, 0.0  ;;  %v15651_v54 = vld [vmem:[#allocation18_spill] sm:$0xff] }
 0x18b   : > { %v13862_v6 = vmax.f32 %v1413_v16, %v1978_v3  ;;  %v1365_v41 = vmax.f32 %v1293_v36, 0.0  ;;  %v11027_v4 = vpop.f32.mrb[76].mxu1  ;;  %v753_v31 = vadd.f32 %v15650_v15, %v13447_v60  ;;  %v748_v28 = vadd.f32 %v13447_v60, %v15651_v54 }
 0x18c   : > { %v1416_v19 = vmax.f32 %v801_v12, %v1366_v51  ;;  %v1308_v47 = vadd.f32 %v11027_v4, %v13447_v60  ;;  %v1302_v29 = vpop.f32.mrb[77].mxu1  ;;  %v1983_v16 = vmax.f32 %v1923_v45, 0.0  ;;  %v1933_v56 = vadd.f32 %v13812_v53, %v13447_v60  ;;  %v2783_v53 = vld [vmem:[%s15518_s3 + $0x8] sm:$0xff] }
 0x18d   : > { %v1415_v3 = vmax.f32 %v800_v39, %v1365_v41  ;;  %v1303_v2 = vadd.f32 %v13447_v60, %v1302_v29  ;;  %v1982_v12 = vmax.f32 %v1918_v8, 0.0  ;;  %v1928_v51 = vadd.f32 %v13447_v60, %v13818_v27 }
 0x18e   : > { %v13872_v30 = vmax.f32 %v1416_v19, %v1981_v37  ;;  %v1368_v7 = vmax.f32 %v1308_v47, 0.0  ;;  %v2782_v37 = vld [vmem:[%s15518_s3] sm:$0xff]  ;;  %v805_v19 = vmax.f32 %v753_v31, 0.0  ;;  %v804_v29 = vmax.f32 %v748_v28, 0.0 }
 0x18f   : > { %v13876_v5 = vmax.f32 %v1415_v3, %v1980_v22  ;;  %v1367_v35 = vmax.f32 %v1303_v2, 0.0  ;;  %v11030_v36 = vpop.f32.mrb[78].mxu1  ;;  %v12127_v8 = vpack.c.bf16 %v2783_v53, %v2782_v37  ;;  %v1984_v3 = vmax.f32 %v1928_v51, 0.0  ;;  %v13902_v51 = vld [vmem:[%s15517_s2] ss:$0 sm:$0xff] }
 0x190   : > { %v1418_v4 = vmax.f32 %v803_v25, %v1368_v7  ;;  %v1318_v39 = vadd.f32 %v11030_v36, %v13447_v60  ;;  %v1312_v41 = vpop.f32.mrb[79].mxu1  ;;  %v1985_v25 = vmax.f32 %v1933_v56, 0.0 }
 0x191   : > { %15652 = vst [vmem:[#allocation11_spill] sm:$0xff] %v13876_v5  ;;  %v1417_v45 = vmax.f32 %v802_v18, %v1367_v35  ;;  %v1313_v22 = vadd.f32 %v13447_v60, %v1312_v41  ;;  %12128 = vmatprep.subr.bf16.mxu1 %v12127_v8 }
 0x192   : > { %v13888_v47 = vmax.f32 %v1418_v4, %v1983_v16  ;;  %v1370_v27 = vmax.f32 %v1318_v39, 0.0  ;;  %12130 = vmatpush3.bf16.msra.mxu1 %v12127_v8 }
 0x193   : > { %v13890_v15 = vmax.f32 %v1417_v45, %v1982_v12  ;;  %v1369_v54 = vmax.f32 %v1313_v22, 0.0  ;;  %v11140_v2 = vpop.f32.mrb[80].mxu1 }
 0x194   : > { %v1420_v7 = vmax.f32 %v805_v19, %v1370_v27  ;;  %v2308_v36 = vadd.f32 %v11140_v2, %v13447_v60  ;;  %v2302_v5 = vpop.f32.mrb[81].mxu1 }
 0x195   : > { %v1419_v18 = vmax.f32 %v804_v29, %v1369_v54  ;;  %v2303_v35 = vadd.f32 %v13447_v60, %v2302_v5  ;;  %v2795_v54 = vld [vmem:[%s15518_s3 + $0x68] sm:$0xff] }
 0x196   : > { %v13894_v31 = vmax.f32 %v1420_v7, %v1985_v25  ;;  %v2552_v16 = vmax.f32 %v2308_v36, 0.0 }
 0x197   : > { %v13896_v4 = vmax.f32 %v1419_v18, %v1984_v3  ;;  %v2551_v28 = vmax.f32 %v2303_v35, 0.0  ;;  %v11143_v56 = vpop.f32.mrb[82].mxu1 }
 0x198   : > { %v2602_v12 = vmax.f32 %v13492_v40, %v2552_v16  ;;  %v2318_v39 = vadd.f32 %v13902_v51, %v11143_v56  ;;  %v2312_v41 = vpop.f32.mrb[83].mxu1 }
 0x199   : > { %v2601_v37 = vmax.f32 %v13497_v9, %v2551_v28  ;;  %v2313_v60 = vadd.f32 %v13902_v51, %v2312_v41 }
 0x19a   : > { %2721 = vst.msk [vmem:[#allocation2 + $0x28] sm:$0xff] %vm2651_vm1, %v2602_v12  ;;  %v2554_v5 = vmax.f32 %v2318_v39, 0.0 }
 0x19b   : > { %2720 = vst.msk [vmem:[#allocation2 + $0x20] sm:$0xff] %vm2651_vm1, %v2601_v37  ;;  %v2553_v53 = vmax.f32 %v2313_v60, 0.0  ;;  %v11146_v45 = vpop.f32.mrb[84].mxu1  ;;  %v15653_v60 = vld [vmem:[#allocation19_spill] sm:$0xff] }
 0x19c   : > { %v2604_v40 = vmax.f32 %v13508_v42, %v2554_v5  ;;  %v2328_v22 = vadd.f32 %v13902_v51, %v11146_v45  ;;  %v2322_v8 = vpop.f32.mrb[85].mxu1  ;;  %v2794_v42 = vld [vmem:[%s15518_s3 + $0x60] sm:$0xff] }
 0x19d   : > { %v2603_v19 = vmax.f32 %v13514_v63, %v2553_v53  ;;  %v2323_v9 = vadd.f32 %v13902_v51, %v2322_v8  ;;  %v13927_v16 = vpack.c.bf16 %v2795_v54, %v2794_v42 }
 0x19e   : > { %2726 = vst.msk [vmem:[#allocation2 + $0x3c] sm:$0xff] %vm2651_vm1, %v2604_v40  ;;  %v2556_v27 = vmax.f32 %v2328_v22, 0.0 }
 0x19f   : > { %2723 = vst.msk [vmem:[#allocation2 + $0x30] sm:$0xf] %vm2722_vm2, %v2603_v19  ;;  %v2555_v25 = vmax.f32 %v2323_v9, 0.0  ;;  %v11149_v29 = vpop.f32.mrb[86].mxu1 }
 0x1a0   : > { %2725 = vst.msk [vmem:[#allocation2 + $0x34] sm:$0xf0] %vm2724_vm3, %v2603_v19  ;;  %v2606_v63 = vmax.f32 %v13526_v0, %v2556_v27  ;;  %v2338_v3 = vadd.f32 %v13902_v51, %v11149_v29  ;;  %v2332_v2 = vpop.f32.mrb[87].mxu1 }
 0x1a1   : > { %v2605_v7 = vmax.f32 %v13532_v58, %v2555_v25  ;;  %v2333_v36 = vadd.f32 %v13902_v51, %v2332_v2  ;;  %v2865_v0 = vld [vmem:[#allocation2 + $0x28] sm:$0xff] }
 0x1a2   : > { %2728 = vst.msk [vmem:[#allocation2 + $0x50] sm:$0xff] %vm2651_vm1, %v2606_v63  ;;  %v2558_v18 = vmax.f32 %v2338_v3, 0.0  ;;  %v2864_v35 = vld [vmem:[#allocation2 + $0x20] sm:$0xff] }
 0x1a3   : > { %2727 = vst.msk [vmem:[#allocation2 + $0x44] sm:$0xff] %vm2651_vm1, %v2605_v7  ;;  %v2557_v28 = vmax.f32 %v2333_v36, 0.0  ;;  %v11152_v56 = vpop.f32.mrb[88].mxu1  ;;  %11221 = vmatmul.mubr.msk.f32.gmra.mrb[132].mxu1 %vm2651_vm1, %v2864_v35  ;;  %11593 = vmatprep.mubr.msk.f32.mxu0 %vm2651_vm1, %v2864_v35 }
 0x1a4   : > { %v2608_v12 = vmax.f32 %v13544_v10, %v2558_v18  ;;  %v2348_v58 = vadd.f32 %v13902_v51, %v11152_v56  ;;  %v2342_v39 = vpop.f32.mrb[89].mxu1  ;;  %11223 = vmatprep.mubr.msk.f32.mxu1 %vm2651_vm1, %v2865_v0  ;;  %11594 = vmatmul.mubr.msk.f32.vlgmr.msra.gmra.mrb[70].mxu0 %vm2651_vm1, %v2865_v0 }
 0x1a5   : > { %v2607_v41 = vmax.f32 %v13550_v17, %v2557_v28  ;;  %v2343_v37 = vadd.f32 %v13902_v51, %v2342_v39  ;;  %12146 = vmatpush3.bf16.msra.mxu0 %v15653_v60 }
 0x1a6   : > { %2730 = vst.msk [vmem:[#allocation2 + $0x60] sm:$0xf] %vm2722_vm2, %v2608_v12  ;;  %v2560_v5 = vmax.f32 %v2348_v58, 0.0  ;;  %v2866_v53 = vld [vmem:[#allocation2 + $0x30] sm:$0xff]  ;;  %12148 = vmatprep.subr.bf16.mxu0 %v13927_v16 }
 0x1a7   : > { %2731 = vst.msk [vmem:[#allocation2 + $0x64] sm:$0xf0] %vm2724_vm3, %v2608_v12  ;;  %v2867_v10 = vld [vmem:[#allocation2 + $0x38] sm:$0xff]  ;;  %v2559_v45 = vmax.f32 %v2343_v37, 0.0  ;;  %v11155_v40 = vpop.f32.mrb[90].mxu1  ;;  %11224 = vmatmul.mubr.msk.f32.gmra.mrb[134].mxu1 %vm2651_vm1, %v2866_v53  ;;  %11596 = vmatprep.mubr.msk.f32.mxu0 %vm2651_vm1, %v2866_v53 }
 0x1a8   : > { %2729 = vst.msk [vmem:[#allocation2 + $0x58] sm:$0xff] %vm2651_vm1, %v2607_v41  ;;  %v2610_v17 = vmax.f32 %v13562_v34, %v2560_v5  ;;  %v2358_v22 = vadd.f32 %v13902_v51, %v11155_v40  ;;  %v2352_v8 = vpop.f32.mrb[91].mxu1  ;;  %11226 = vmatprep.mubr.msk.f32.mxu1 %vm2651_vm1, %v2867_v10  ;;  %11597 = vmatmul.mubr.msk.f32.gmra.mrb[72].mxu0 %vm2651_vm1, %v2867_v10 }
 0x1a9   : > { %v2609_v19 = vmax.f32 %v13568_v14, %v2559_v45  ;;  %v2353_v9 = vadd.f32 %v13902_v51, %v2352_v8  ;;  %v5347_v3 = vld [vmem:[#allocation2 + $0x50] sm:$0xff] }
 0x1aa   : > { %2733 = vst.msk [vmem:[#allocation2 + $0x74] sm:$0xff] %vm2651_vm1, %v2610_v17  ;;  %v2562_v27 = vmax.f32 %v2358_v22, 0.0  ;;  %v2868_v25 = vld [vmem:[#allocation2 + $0x40] sm:$0xff]  ;;  %v2869_v29 = vld [vmem:[#allocation2 + $0x48] sm:$0xff] }
 0x1ab   : > { %2732 = vst.msk [vmem:[#allocation2 + $0x6c] sm:$0xff] %vm2651_vm1, %v2609_v19  ;;  %v2561_v42 = vmax.f32 %v2353_v9, 0.0  ;;  %v11158_v34 = vpop.f32.mrb[92].mxu1  ;;  %11227 = vmatmul.mubr.msk.f32.gmra.mrb[136].mxu1 %vm2651_vm1, %v2868_v25  ;;  %11599 = vmatprep.mubr.msk.f32.mxu0 %vm2651_vm1, %v2868_v25 }
 0x1ac   : > { %v2612_v54 = vmax.f32 %v13580_v48, %v2562_v27  ;;  %v2368_v63 = vadd.f32 %v13902_v51, %v11158_v34  ;;  %v2362_v14 = vpop.f32.mrb[93].mxu1  ;;  %11229 = vmatprep.mubr.msk.f32.mxu1 %vm2651_vm1, %v2869_v29  ;;  %11600 = vmatmul.mubr.msk.f32.gmra.mrb[74].mxu0 %vm2651_vm1, %v2869_v29  ;;  %v15654_v27 = vld [vmem:[#allocation20_spill] sm:$0xff] }
 0x1ad   : > { %v2611_v2 = vmax.f32 %v13586_v26, %v2561_v42  ;;  %v2363_v7 = vadd.f32 %v13902_v51, %v2362_v14  ;;  %11602 = vmatprep.mubr.msk.f32.mxu0 %vm2651_vm1, %v5347_v3  ;;  %v5349_v26 = vld [vmem:[#allocation2 + $0x60] sm:$0xff] }
 0x1ae   : > { %2735 = vst.msk [vmem:[#allocation2 + $0x88] sm:$0xff] %vm2651_vm1, %v2612_v54  ;;  %v2564_v36 = vmax.f32 %v2368_v63, 0.0 }
 0x1af   : > { %v2871_v18 = vld [vmem:[#allocation2 + $0x58] sm:$0xff]  ;;  %2734 = vst.msk [vmem:[#allocation2 + $0x80] sm:$0xff] %vm2651_vm1, %v2611_v2  ;;  %v2563_v48 = vmax.f32 %v2363_v7, 0.0  ;;  %v11161_v35 = vpop.f32.mrb[94].mxu1  ;;  %11230 = vmatmul.mubr.msk.f32.gmra.mrb[138].mxu1 %vm2651_vm1, %v5347_v3 }
 0x1b0   : > { %v2614_v28 = vmax.f32 %v13598_v59, %v2564_v36  ;;  %v2378_v56 = vadd.f32 %v13902_v51, %v11161_v35  ;;  %v2372_v0 = vpop.f32.mrb[95].mxu1  ;;  %11232 = vmatprep.mubr.msk.f32.mxu1 %vm2651_vm1, %v2871_v18  ;;  %11603 = vmatmul.mubr.msk.f32.gmra.mrb[76].mxu0 %vm2651_vm1, %v2871_v18 }
 0x1b1   : > { %v2613_v12 = vmax.f32 %v13604_v61, %v2563_v48  ;;  %v2373_v58 = vadd.f32 %v13902_v51, %v2372_v0  ;;  %11605 = vmatprep.mubr.msk.f32.mxu0 %vm2651_vm1, %v5349_v26  ;;  %v2875_v22 = vld [vmem:[#allocation2 + $0x78] sm:$0xff] }
 0x1b2   : > { %2738 = vst.msk [vmem:[#allocation2 + $0x9c] sm:$0xff] %vm2651_vm1, %v2614_v28  ;;  %v2566_v39 = vmax.f32 %v2378_v56, 0.0  ;;  %v2873_v41 = vld [vmem:[#allocation2 + $0x68] sm:$0xff]  ;;  %v5351_v53 = vld [vmem:[#allocation2 + $0x70] sm:$0xff] }
 0x1b3   : > { %2736 = vst.msk [vmem:[#allocation2 + $0x90] sm:$0xf] %vm2722_vm2, %v2613_v12  ;;  %v2565_v59 = vmax.f32 %v2373_v58, 0.0  ;;  %v11164_v37 = vpop.f32.mrb[96].mxu1  ;;  %11233 = vmatmul.mubr.msk.f32.gmra.mrb[140].mxu1 %vm2651_vm1, %v5349_v26 }
 0x1b4   : > { %2737 = vst.msk [vmem:[#allocation2 + $0x94] sm:$0xf0] %vm2724_vm3, %v2613_v12  ;;  %v2616_v60 = vmax.f32 %v13616_v52, %v2566_v39  ;;  %v2388_v61 = vadd.f32 %v13902_v51, %v11164_v37  ;;  %v2382_v5 = vpop.f32.mrb[97].mxu1  ;;  %11235 = vmatprep.mubr.msk.f32.mxu1 %vm2651_vm1, %v2873_v41  ;;  %11606 = vmatmul.mubr.msk.f32.gmra.mrb[78].mxu0 %vm2651_vm1, %v2873_v41 }
 0x1b5   : > { %v2615_v10 = vmax.f32 %v13622_v46, %v2565_v59  ;;  %v2383_v45 = vadd.f32 %v13902_v51, %v2382_v5  ;;  %11608 = vmatprep.mubr.msk.f32.mxu0 %vm2651_vm1, %v5351_v53  ;;  %v2877_v54 = vld [vmem:[#allocation2 + $0x88] sm:$0xff] }
 0x1b6   : > { %2740 = vst.msk [vmem:[#allocation2 + $0xb0] sm:$0xff] %vm2651_vm1, %v2616_v60  ;;  %v2568_v40 = vmax.f32 %v2388_v61, 0.0  ;;  %v5353_v46 = vld [vmem:[#allocation2 + $0x80] sm:$0xff] }
 0x1b7   : > { %2739 = vst.msk [vmem:[#allocation2 + $0xa4] sm:$0xff] %vm2651_vm1, %v2615_v10  ;;  %v2567_v52 = vmax.f32 %v2383_v45, 0.0  ;;  %v11167_v17 = vpop.f32.mrb[98].mxu1  ;;  %11236 = vmatmul.mubr.msk.f32.gmra.mrb[142].mxu1 %vm2651_vm1, %v5351_v53 }
 0x1b8   : > { %v2618_v8 = vmax.f32 %v13634_v20, %v2568_v40  ;;  %v2398_v19 = vadd.f32 %v13902_v51, %v11167_v17  ;;  %v2392_v9 = vpop.f32.mrb[99].mxu1  ;;  %11238 = vmatprep.mubr.msk.f32.mxu1 %vm2651_vm1, %v2875_v22  ;;  %11609 = vmatmul.mubr.msk.f32.gmra.mrb[80].mxu0 %vm2651_vm1, %v2875_v22 }
 0x1b9   : > { %v2617_v25 = vmax.f32 %v15654_v27, %v2567_v52  ;;  %v2393_v29 = vadd.f32 %v13902_v51, %v2392_v9  ;;  %11611 = vmatprep.mubr.msk.f32.mxu0 %vm2651_vm1, %v5353_v46 }
 0x1ba   : > { %2742 = vst.msk [vmem:[#allocation2 + $0xc0] sm:$0xf] %vm2722_vm2, %v2618_v8  ;;  %v2570_v42 = vmax.f32 %v2398_v19, 0.0  ;;  %v5355_v2 = vld [vmem:[#allocation2 + $0x90] sm:$0xff] }
 0x1bb   : > { %2743 = vst.msk [vmem:[#allocation2 + $0xc4] sm:$0xf0] %vm2724_vm3, %v2618_v8  ;;  %v2569_v20 = vmax.f32 %v2393_v29, 0.0  ;;  %v11170_v34 = vpop.f32.mrb[100].mxu1  ;;  %11239 = vmatmul.mubr.msk.f32.gmra.mrb[144].mxu1 %vm2651_vm1, %v5353_v46  ;;  %v2879_v35 = vld [vmem:[#allocation2 + $0x98] sm:$0xff] }
 0x1bc   : > { %2741 = vst.msk [vmem:[#allocation2 + $0xb8] sm:$0xff] %vm2651_vm1, %v2617_v25  ;;  %v2620_v63 = vmax.f32 %v13652_v21, %v2570_v42  ;;  %v2408_v14 = vadd.f32 %v13902_v51, %v11170_v34  ;;  %v2402_v3 = vpop.f32.mrb[101].mxu1  ;;  %11241 = vmatprep.mubr.msk.f32.mxu1 %vm2651_vm1, %v2877_v54  ;;  %11612 = vmatmul.mubr.msk.f32.gmra.mrb[82].mxu0 %vm2651_vm1, %v2877_v54 }
 0x1bd   : > { %v2619_v7 = vmax.f32 %v13658_v13, %v2569_v20  ;;  %v2403_v36 = vadd.f32 %v13902_v51, %v2402_v3  ;;  %11614 = vmatprep.mubr.msk.f32.mxu0 %vm2651_vm1, %v5355_v2 }
 0x1be   : > { %2745 = vst.msk [vmem:[#allocation2 + $0xd4] sm:$0xff] %vm2651_vm1, %v2620_v63  ;;  %v2572_v18 = vmax.f32 %v2408_v14, 0.0  ;;  %v5357_v13 = vld [vmem:[#allocation2 + $0xa0] sm:$0xff]  ;;  %v2881_v41 = vld [vmem:[#allocation2 + $0xa8] sm:$0xff] }
 0x1bf   : > { %2744 = vst.msk [vmem:[#allocation2 + $0xcc] sm:$0xff] %vm2651_vm1, %v2619_v7  ;;  %v2571_v21 = vmax.f32 %v2403_v36, 0.0  ;;  %v11173_v48 = vpop.f32.mrb[102].mxu1  ;;  %11242 = vmatmul.mubr.msk.f32.gmra.mrb[146].mxu1 %vm2651_vm1, %v5355_v2  ;;  %v15655_v7 = vld [vmem:[#allocation21_spill] sm:$0xff] }
 0x1c0   : > { %v2622_v28 = vmax.f32 %v13670_v32, %v2572_v18  ;;  %v2418_v56 = vadd.f32 %v13902_v51, %v11173_v48  ;;  %v2412_v0 = vpop.f32.mrb[103].mxu1  ;;  %11244 = vmatprep.mubr.msk.f32.mxu1 %vm2651_vm1, %v2879_v35  ;;  %11615 = vmatmul.mubr.msk.f32.gmra.mrb[84].mxu0 %vm2651_vm1, %v2879_v35 }
 0x1c1   : > { %v2621_v26 = vmax.f32 %v13676_v57, %v2571_v21  ;;  %v2413_v12 = vadd.f32 %v13902_v51, %v2412_v0  ;;  %11617 = vmatprep.mubr.msk.f32.mxu0 %vm2651_vm1, %v5357_v13  ;;  %v5359_v57 = vld [vmem:[#allocation2 + $0xb0] sm:$0xff]  ;;  %v5361_v17 = vld [vmem:[#allocation2 + $0xc0] sm:$0xff] }
 0x1c2   : > { %2747 = vst.msk [vmem:[#allocation2 + $0xe8] sm:$0xff] %vm2651_vm1, %v2622_v28  ;;  %v2574_v58 = vmax.f32 %v2418_v56, 0.0  ;;  %v15656_v28 = vld [vmem:[#allocation4_spill] sm:$0xff] }
 0x1c3   : > { %2746 = vst.msk [vmem:[#allocation2 + $0xe0] sm:$0xff] %vm2651_vm1, %v2621_v26  ;;  %v2573_v32 = vmax.f32 %v2413_v12, 0.0  ;;  %v11176_v39 = vpop.f32.mrb[104].mxu1  ;;  %11245 = vmatmul.mubr.msk.f32.gmra.mrb[148].mxu1 %vm2651_vm1, %v5357_v13  ;;  %v2883_v45 = vld [vmem:[#allocation2 + $0xb8] sm:$0xff] }
 0x1c4   : > { %v2624_v59 = vmax.f32 %v13688_v62, %v2574_v58  ;;  %v2428_v37 = vadd.f32 %v13902_v51, %v11176_v39  ;;  %v2422_v60 = vpop.f32.mrb[105].mxu1  ;;  %11247 = vmatprep.mubr.msk.f32.mxu1 %vm2651_vm1, %v2881_v41  ;;  %11618 = vmatmul.mubr.msk.f32.gmra.mrb[86].mxu0 %vm2651_vm1, %v2881_v41  ;;  %v15657_v12 = vld [vmem:[#allocation22_spill] sm:$0xff] }
 0x1c5   : > { %v2623_v61 = vmax.f32 %v13694_v24, %v2573_v32  ;;  %v2423_v5 = vadd.f32 %v13902_v51, %v2422_v60  ;;  %11620 = vmatprep.mubr.msk.f32.mxu0 %vm2651_vm1, %v5359_v57  ;;  %v2887_v63 = vld [vmem:[#allocation2 + $0xd8] sm:$0xff]  ;;  %v15658_v60 = vld [vmem:[#allocation5_spill] sm:$0xff] }
 0x1c6   : > { %2750 = vst.msk [vmem:[#allocation2 + $0xfc] sm:$0xff] %vm2651_vm1, %v2624_v59  ;;  %v2576_v53 = vmax.f32 %v2428_v37, 0.0  ;;  %v2885_v46 = vld [vmem:[#allocation2 + $0xc8] sm:$0xff] }
 0x1c7   : > { %2748 = vst.msk [vmem:[#allocation2 + $0xf0] sm:$0xf] %vm2722_vm2, %v2623_v61  ;;  %v2575_v62 = vmax.f32 %v2423_v5, 0.0  ;;  %v11179_v10 = vpop.f32.mrb[106].mxu1  ;;  %11248 = vmatmul.mubr.msk.f32.gmra.mrb[150].mxu1 %vm2651_vm1, %v5359_v57 }
 0x1c8   : > { %2749 = vst.msk [vmem:[#allocation2 + $0xf4] sm:$0xf0] %vm2724_vm3, %v2623_v61  ;;  %v2626_v40 = vmax.f32 %v13706_v43, %v2576_v53  ;;  %v2438_v24 = vadd.f32 %v13902_v51, %v11179_v10  ;;  %v2432_v52 = vpop.f32.mrb[107].mxu1  ;;  %11250 = vmatprep.mubr.msk.f32.mxu1 %vm2651_vm1, %v2883_v45  ;;  %11621 = vmatmul.mubr.msk.f32.gmra.mrb[88].mxu0 %vm2651_vm1, %v2883_v45 }
 0x1c9   : > { %v2625_v22 = vmax.f32 %v13712_v50, %v2575_v62  ;;  %v2433_v8 = vadd.f32 %v13902_v51, %v2432_v52  ;;  %11623 = vmatprep.mubr.msk.f32.mxu0 %vm2651_vm1, %v5361_v17  ;;  %v5363_v50 = vld [vmem:[#allocation2 + $0xd0] sm:$0xff]  ;;  %v2889_v35 = vld [vmem:[#allocation2 + $0xe8] sm:$0xff]  ;;  %v15659_v62 = vld [vmem:[#allocation6_spill] sm:$0xff] }
 0x1ca   : > { %2752 = vst.msk [vmem:[#allocation2 + $0x110] sm:$0xff] %vm2651_vm1, %v2626_v40  ;;  %v2578_v19 = vmax.f32 %v2438_v24, 0.0  ;;  %v5365_v2 = vld [vmem:[#allocation2 + $0xe0] sm:$0xff] }
 0x1cb   : > { %2751 = vst.msk [vmem:[#allocation2 + $0x104] sm:$0xff] %vm2651_vm1, %v2625_v22  ;;  %v2577_v43 = vmax.f32 %v2433_v8, 0.0  ;;  %v11182_v9 = vpop.f32.mrb[108].mxu1  ;;  %11251 = vmatmul.mubr.msk.f32.gmra.mrb[152].mxu1 %vm2651_vm1, %v5361_v17  ;;  %v15660_v22 = vld [vmem:[#allocation7_spill] sm:$0xff] }
 0x1cc   : > { %v2628_v27 = vmax.f32 %v13724_v11, %v2578_v19  ;;  %v2448_v25 = vadd.f32 %v13902_v51, %v11182_v9  ;;  %v2442_v29 = vpop.f32.mrb[109].mxu1  ;;  %11253 = vmatprep.mubr.msk.f32.mxu1 %vm2651_vm1, %v2885_v46  ;;  %11624 = vmatmul.mubr.msk.f32.gmra.mrb[90].mxu0 %vm2651_vm1, %v2885_v46  ;;  %v15661_v46 = vld [vmem:[#allocation8_spill] sm:$0xff] }
 0x1cd   : > { %v2627_v42 = vmax.f32 %v13730_v33, %v2577_v43  ;;  %v2443_v20 = vadd.f32 %v13902_v51, %v2442_v29  ;;  %11626 = vmatprep.mubr.msk.f32.mxu0 %vm2651_vm1, %v5363_v50 }
 0x1ce   : > { %2754 = vst.msk [vmem:[#allocation2 + $0x120] sm:$0xf] %vm2722_vm2, %v2628_v27  ;;  %v2580_v34 = vmax.f32 %v2448_v25, 0.0  ;;  %v5367_v26 = vld [vmem:[#allocation2 + $0xf0] sm:$0xff] }
 0x1cf   : > { %2755 = vst.msk [vmem:[#allocation2 + $0x124] sm:$0xf0] %vm2724_vm3, %v2628_v27  ;;  %v2579_v11 = vmax.f32 %v2443_v20, 0.0  ;;  %v11185_v54 = vpop.f32.mrb[110].mxu1  ;;  %11254 = vmatmul.mubr.msk.f32.gmra.mrb[154].mxu1 %vm2651_vm1, %v5363_v50  ;;  %v2891_v37 = vld [vmem:[#allocation2 + $0xf8] sm:$0xff] }
 0x1d0   : > { %2753 = vst.msk [vmem:[#allocation2 + $0x118] sm:$0xff] %vm2651_vm1, %v2627_v42  ;;  %v2630_v14 = vmax.f32 %v13742_v55, %v2580_v34  ;;  %v2458_v33 = vadd.f32 %v13902_v51, %v11185_v54  ;;  %v2452_v3 = vpop.f32.mrb[111].mxu1  ;;  %11256 = vmatprep.mubr.msk.f32.mxu1 %vm2651_vm1, %v2887_v63  ;;  %11627 = vmatmul.mubr.msk.f32.gmra.mrb[92].mxu0 %vm2651_vm1, %v2887_v63  ;;  %v15662_v34 = vld [vmem:[#allocation9_spill] sm:$0xff] }
 0x1d1   : > { %v2629_v36 = vmax.f32 %v15655_v7, %v2579_v11  ;;  %v2453_v18 = vadd.f32 %v13902_v51, %v2452_v3  ;;  %11629 = vmatprep.mubr.msk.f32.mxu0 %vm2651_vm1, %v5365_v2  ;;  %v5371_v9 = vld [vmem:[#allocation2 + $0x110] sm:$0xff] }
 0x1d2   : > { %2757 = vst.msk [vmem:[#allocation2 + $0x134] sm:$0xff] %vm2651_vm1, %v2630_v14  ;;  %v2582_v21 = vmax.f32 %v2458_v33, 0.0  ;;  %v5369_v53 = vld [vmem:[#allocation2 + $0x100] sm:$0xff]  ;;  %v2893_v17 = vld [vmem:[#allocation2 + $0x108] sm:$0xff]  ;;  %v15663_v33 = vld [vmem:[#allocation10_spill] sm:$0xff] }
 0x1d3   : > { %2756 = vst.msk [vmem:[#allocation2 + $0x12c] sm:$0xff] %vm2651_vm1, %v2629_v36  ;;  %v2581_v55 = vmax.f32 %v2453_v18, 0.0  ;;  %v11188_v48 = vpop.f32.mrb[112].mxu1  ;;  %11257 = vmatmul.mubr.msk.f32.gmra.mrb[156].mxu1 %vm2651_vm1, %v5365_v2 }
 0x1d4   : > { %v2632_v56 = vmax.f32 %v15656_v28, %v2582_v21  ;;  %v2468_v0 = vadd.f32 %v13902_v51, %v11188_v48  ;;  %v2462_v13 = vpop.f32.mrb[113].mxu1  ;;  %11259 = vmatprep.mubr.msk.f32.mxu1 %vm2651_vm1, %v2889_v35  ;;  %11630 = vmatmul.mubr.msk.f32.gmra.mrb[94].mxu0 %vm2651_vm1, %v2889_v35 }
 0x1d5   : > { %v2631_v58 = vmax.f32 %v15657_v12, %v2581_v55  ;;  %v2463_v32 = vadd.f32 %v13902_v51, %v2462_v13  ;;  %11632 = vmatprep.mubr.msk.f32.mxu0 %vm2651_vm1, %v5367_v26  ;;  %v5373_v14 = vld [vmem:[#allocation2 + $0x120] sm:$0xff] }
 0x1d6   : > { %2759 = vst.msk [vmem:[#allocation2 + $0x148] sm:$0xff] %vm2651_vm1, %v2632_v56  ;;  %v2584_v39 = vmax.f32 %v2468_v0, 0.0 }
 0x1d7   : > { %2758 = vst.msk [vmem:[#allocation2 + $0x140] sm:$0xff] %vm2651_vm1, %v2631_v58  ;;  %v2583_v41 = vmax.f32 %v2463_v32, 0.0  ;;  %v11191_v59 = vpop.f32.mrb[114].mxu1  ;;  %11260 = vmatmul.mubr.msk.f32.gmra.mrb[158].mxu1 %vm2651_vm1, %v5367_v26  ;;  %v2895_v20 = vld [vmem:[#allocation2 + $0x118] sm:$0xff] }
 0x1d8   : > { %v2634_v57 = vmax.f32 %v15658_v60, %v2584_v39  ;;  %v2478_v61 = vadd.f32 %v13902_v51, %v11191_v59  ;;  %v2472_v5 = vpop.f32.mrb[115].mxu1  ;;  %11262 = vmatprep.mubr.msk.f32.mxu1 %vm2651_vm1, %v2891_v37  ;;  %11633 = vmatmul.mubr.msk.f32.gmra.mrb[96].mxu0 %vm2651_vm1, %v2891_v37 }
 0x1d9   : > { %v2633_v10 = vmax.f32 %v15659_v62, %v2583_v41  ;;  %v2473_v45 = vadd.f32 %v13902_v51, %v2472_v5  ;;  %11635 = vmatprep.mubr.msk.f32.mxu0 %vm2651_vm1, %v5369_v53  ;;  %v2899_v12 = vld [vmem:[#allocation2 + $0x138] sm:$0xff] }
 0x1da   : > { %2762 = vst.msk [vmem:[#allocation2 + $0x15c] sm:$0xff] %vm2651_vm1, %v2634_v57  ;;  %v2586_v40 = vmax.f32 %v2478_v61, 0.0  ;;  %v2897_v21 = vld [vmem:[#allocation2 + $0x128] sm:$0xff]  ;;  %v5375_v28 = vld [vmem:[#allocation2 + $0x130] sm:$0xff] }
 0x1db   : > { %2760 = vst.msk [vmem:[#allocation2 + $0x150] sm:$0xf] %vm2722_vm2, %v2633_v10  ;;  %v2585_v24 = vmax.f32 %v2473_v45, 0.0  ;;  %v11194_v52 = vpop.f32.mrb[116].mxu1  ;;  %11263 = vmatmul.mubr.msk.f32.gmra.mrb[160].mxu1 %vm2651_vm1, %v5369_v53 }
 0x1dc   : > { %2761 = vst.msk [vmem:[#allocation2 + $0x154] sm:$0xf0] %vm2724_vm3, %v2633_v10  ;;  %v2636_v8 = vmax.f32 %v15660_v22, %v2586_v40  ;;  %v2488_v19 = vadd.f32 %v13902_v51, %v11194_v52  ;;  %v2482_v43 = vpop.f32.mrb[117].mxu1  ;;  %11265 = vmatprep.mubr.msk.f32.mxu1 %vm2651_vm1, %v2893_v17  ;;  %11636 = vmatmul.mubr.msk.f32.gmra.mrb[98].mxu0 %vm2651_vm1, %v2893_v17 }
 0x1dd   : > { %v2635_v27 = vmax.f32 %v15661_v46, %v2585_v24  ;;  %v2483_v25 = vadd.f32 %v13902_v51, %v2482_v43  ;;  %11638 = vmatprep.mubr.msk.f32.mxu0 %vm2651_vm1, %v5371_v9  ;;  %v2901_v57 = vld [vmem:[#allocation2 + $0x148] sm:$0xff] }
 0x1de   : > { %2764 = vst.msk [vmem:[#allocation2 + $0x170] sm:$0xff] %vm2651_vm1, %v2636_v8  ;;  %v2588_v29 = vmax.f32 %v2488_v19, 0.0  ;;  %v15664_v8 = vld [vmem:[#allocation11_spill] sm:$0xff] }
 0x1df   : > { %2763 = vst.msk [vmem:[#allocation2 + $0x164] sm:$0xff] %vm2651_vm1, %v2635_v27  ;;  %v2587_v50 = vmax.f32 %v2483_v25, 0.0  ;;  %v11197_v42 = vpop.f32.mrb[118].mxu1  ;;  %11266 = vmatmul.mubr.msk.f32.gmra.mrb[162].mxu1 %vm2651_vm1, %v5371_v9 }
 0x1e0   : > { %v2638_v11 = vmax.f32 %v15662_v34, %v2588_v29  ;;  %v2498_v54 = vadd.f32 %v13902_v51, %v11197_v42  ;;  %v2492_v63 = vpop.f32.mrb[119].mxu1  ;;  %11268 = vmatprep.mubr.msk.f32.mxu1 %vm2651_vm1, %v2895_v20  ;;  %11639 = vmatmul.mubr.msk.f32.gmra.mrb[100].mxu0 %vm2651_vm1, %v2895_v20 }
 0x1e1   : > { %v2637_v3 = vmax.f32 %v15663_v33, %v2587_v50  ;;  %v2493_v2 = vadd.f32 %v13902_v51, %v2492_v63  ;;  %11641 = vmatprep.mubr.msk.f32.mxu0 %vm2651_vm1, %v5373_v14 }
 0x1e2   : > { %2766 = vst.msk [vmem:[#allocation2 + $0x180] sm:$0xf] %vm2722_vm2, %v2638_v11  ;;  %v2590_v7 = vmax.f32 %v2498_v54, 0.0 }
 0x1e3   : > { %2767 = vst.msk [vmem:[#allocation2 + $0x184] sm:$0xf0] %vm2724_vm3, %v2638_v11  ;;  %v2589_v36 = vmax.f32 %v2493_v2, 0.0  ;;  %v11200_v18 = vpop.f32.mrb[120].mxu1  ;;  %11269 = vmatmul.mubr.msk.f32.gmra.mrb[164].mxu1 %vm2651_vm1, %v5373_v14  ;;  %v2903_v24 = vld [vmem:[#allocation2 + $0x158] sm:$0xff] }
 0x1e4   : > { %2765 = vst.msk [vmem:[#allocation2 + $0x178] sm:$0xff] %vm2651_vm1, %v2637_v3  ;;  %v2640_v55 = vmax.f32 %v13830_v38, %v2590_v7  ;;  %v2508_v48 = vadd.f32 %v13902_v51, %v11200_v18  ;;  %v2502_v35 = vpop.f32.mrb[121].mxu1  ;;  %11271 = vmatprep.mubr.msk.f32.mxu1 %vm2651_vm1, %v2897_v21  ;;  %11642 = vmatmul.mubr.msk.f32.gmra.mrb[102].mxu0 %vm2651_vm1, %v2897_v21  ;;  %v2786_v18 = vld [vmem:[%s15518_s3 + $0x20] sm:$0xff]  ;;  %v2787_v21 = vld [vmem:[%s15518_s3 + $0x28] sm:$0xff] }
 0x1e5   : > { %v2639_v56 = vmax.f32 %v13834_v49, %v2589_v36  ;;  %v2503_v0 = vadd.f32 %v13902_v51, %v2502_v35  ;;  %11644 = vmatprep.mubr.msk.f32.mxu0 %vm2651_vm1, %v5375_v28  ;;  %v5377_v49 = vld [vmem:[#allocation2 + $0x140] sm:$0xff]  ;;  %v5383_v42 = vld [vmem:[#allocation2 + $0x170] sm:$0xff] }
 0x1e6   : > { %2769 = vst.msk [vmem:[#allocation2 + $0x194] sm:$0xff] %vm2651_vm1, %v2640_v55  ;;  %v2592_v13 = vmax.f32 %v2508_v48, 0.0  ;;  %v5381_v22 = vld [vmem:[#allocation2 + $0x160] sm:$0xff]  ;;  %v2905_v27 = vld [vmem:[#allocation2 + $0x168] sm:$0xff]  ;;  %v12131_v48 = vpack.c.bf16 %v2787_v21, %v2786_v18 }
 0x1e7   : > { %2768 = vst.msk [vmem:[#allocation2 + $0x18c] sm:$0xff] %vm2651_vm1, %v2639_v56  ;;  %v2591_v38 = vmax.f32 %v2503_v0, 0.0  ;;  %v11203_v26 = vpop.f32.mrb[122].mxu1  ;;  %11272 = vmatmul.mubr.msk.f32.gmra.mrb[166].mxu1 %vm2651_vm1, %v5375_v28  ;;  %v2801_v0 = vld [vmem:[#allocation2 + $0x7] sm:$0xff]  ;;  %v14403_v21 = vld [vmem:[#allocation2 + $0xdf] sm:$0xff] }
 0x1e8   : > { %v2642_v58 = vmax.f32 %v13844_v23, %v2592_v13  ;;  %v2518_v32 = vadd.f32 %v13902_v51, %v11203_v26  ;;  %v2512_v39 = vpop.f32.mrb[123].mxu1  ;;  %11274 = vmatprep.mubr.msk.f32.mxu1 %vm2651_vm1, %v2899_v12  ;;  %11645 = vmatmul.mubr.msk.f32.gmra.mrb[104].mxu0 %vm2651_vm1, %v2899_v12  ;;  %v2802_v26 = vld [vmem:[#allocation2 + $0xf] sm:$0xff]  ;;  %v2803_v12 = vld [vmem:[#allocation2 + $0x17] sm:$0xff]  ;;  %v14399_v18 = vld [vmem:[#allocation2 + $0xe1] sm:$0xff] }
 0x1e9   : > { %v2641_v41 = vmax.f32 %v13848_v44, %v2591_v38  ;;  %v2513_v59 = vadd.f32 %v13902_v51, %v2512_v39  ;;  %11647 = vmatprep.mubr.msk.f32.mxu0 %vm2651_vm1, %v5377_v49  ;;  %v5379_v44 = vld [vmem:[#allocation2 + $0x150] sm:$0xff]  ;;  %12132 = vmatprep.subr.bf16.mxu1 %v12131_v48  ;;  %v2797_v39 = vld [vmem:[%s15518_s3 + $0x78] sm:$0xff] }
 0x1ea   : > { %2771 = vst.msk [vmem:[#allocation2 + $0x1a8] sm:$0xff] %vm2651_vm1, %v2642_v58  ;;  %v2594_v37 = vmax.f32 %v2518_v32, 0.0  ;;  %v2796_v32 = vld [vmem:[%s15518_s3 + $0x70] sm:$0xff] }
 0x1eb   : > { %2770 = vst.msk [vmem:[#allocation2 + $0x1a0] sm:$0xff] %vm2651_vm1, %v2641_v41  ;;  %v2593_v23 = vmax.f32 %v2513_v59, 0.0  ;;  %v11206_v60 = vpop.f32.mrb[124].mxu1  ;;  %11275 = vmatmul.mubr.msk.f32.gmra.mrb[168].mxu1 %vm2651_vm1, %v5377_v49  ;;  %v2907_v54 = vld [vmem:[#allocation2 + $0x178] sm:$0xff]  ;;  %v14202_v49 = vld [vmem:[#allocation2 + $0x21] sm:$0xff]  ;;  %v14209_v59 = vpack.c.bf16 %v2797_v39, %v2796_v32  ;;  %v14451_v32 = vld [vmem:[#allocation2 + $0x10f] sm:$0xff] }
 0x1ec   : > { %v2644_v61 = vmax.f32 %v13858_v1, %v2594_v37  ;;  %v2528_v5 = vadd.f32 %v13902_v51, %v11206_v60  ;;  %v2522_v53 = vpop.f32.mrb[125].mxu1  ;;  %11277 = vmatprep.mubr.msk.f32.mxu1 %vm2651_vm1, %v2901_v57  ;;  %11648 = vmatmul.mubr.msk.f32.gmra.mrb[106].mxu0 %vm2651_vm1, %v2901_v57  ;;  %v14207_v41 = vld [vmem:[#allocation2 + $0x1f] sm:$0xff]  ;;  %v14213_v37 = vld [vmem:[#allocation2 + $0x27] sm:$0xff]  ;;  %v14221_v60 = vld [vmem:[#allocation2 + $0x31] sm:$0xff]  ;;  %15672 = vst [vmem:[#allocation19_spill] sm:$0xff] %v14451_v32 }
 0x1ed   : > { %v2643_v62 = vmax.f32 %v13862_v6, %v2593_v23  ;;  %v2523_v10 = vadd.f32 %v13902_v51, %v2522_v53  ;;  %11650 = vmatprep.mubr.msk.f32.mxu0 %vm2651_vm1, %v5379_v44  ;;  %v2911_v33 = vld [vmem:[#allocation2 + $0x198] sm:$0xff]  ;;  %15665 = vst [vmem:[#allocation12_spill] sm:$0xff] %v14207_v41  ;;  %15666 = vst [vmem:[#allocation13_spill] sm:$0xff] %v14213_v37  ;;  %v14215_v23 = vld [vmem:[#allocation2 + $0x29] sm:$0xff] }
 0x1ee   : > { %2774 = vst.msk [vmem:[#allocation2 + $0x1bc] sm:$0xff] %vm2651_vm1, %v2644_v61  ;;  %v2596_v45 = vmax.f32 %v2528_v5, 0.0  ;;  %v2909_v14 = vld [vmem:[#allocation2 + $0x188] sm:$0xff]  ;;  %v14231_v61 = vld [vmem:[#allocation2 + $0x37] sm:$0xff] }
 0x1ef   : > { %2772 = vst.msk [vmem:[#allocation2 + $0x1b0] sm:$0xf] %vm2722_vm2, %v2643_v62  ;;  %v2595_v1 = vmax.f32 %v2523_v10, 0.0  ;;  %v11209_v40 = vpop.f32.mrb[126].mxu1  ;;  %11278 = vmatmul.mubr.msk.f32.gmra.mrb[170].mxu1 %vm2651_vm1, %v5379_v44  ;;  %v14226_v57 = vld [vmem:[#allocation2 + $0x2f] sm:$0xff]  ;;  %v14233_v5 = vld [vmem:[#allocation2 + $0x39] sm:$0xff] }
 0x1f0   : > { %2773 = vst.msk [vmem:[#allocation2 + $0x1b4] sm:$0xf0] %vm2724_vm3, %v2643_v62  ;;  %v2646_v52 = vmax.f32 %v13872_v30, %v2596_v45  ;;  %v2538_v6 = vadd.f32 %v13902_v51, %v11209_v40  ;;  %v2532_v17 = vpop.f32.mrb[127].mxu1  ;;  %11280 = vmatprep.mubr.msk.f32.mxu1 %vm2651_vm1, %v2903_v24  ;;  %11651 = vmatmul.mubr.msk.f32.gmra.mrb[108].mxu0 %vm2651_vm1, %v2903_v24  ;;  %15667 = vst [vmem:[#allocation14_spill] sm:$0xff] %v14226_v57  ;;  %v14239_v53 = vld [vmem:[#allocation2 + $0x41] sm:$0xff]  ;;  %v14249_v62 = vld [vmem:[#allocation2 + $0x49] sm:$0xff] }
 0x1f1   : > { %v2645_v19 = vmax.f32 %v15664_v8, %v2595_v1  ;;  %v2533_v43 = vadd.f32 %v13902_v51, %v2532_v17  ;;  %11653 = vmatprep.mubr.msk.f32.mxu0 %vm2651_vm1, %v5381_v22  ;;  %v2913_v3 = vld [vmem:[#allocation2 + $0x1a8] sm:$0xff]  ;;  %v14255_v10 = vld [vmem:[#allocation2 + $0x51] sm:$0xff]  ;;  %v14265_v40 = vld [vmem:[#allocation2 + $0x59] sm:$0xff] }
 0x1f2   : > { %2776 = vst.msk [vmem:[#allocation2 + $0x1d0] sm:$0xff] %vm2651_vm1, %v2646_v52  ;;  %v2598_v9 = vmax.f32 %v2538_v6, 0.0  ;;  %v14247_v44 = vld [vmem:[#allocation2 + $0x47] sm:$0xff]  ;;  %v14259_v45 = vld [vmem:[#allocation2 + $0x4f] sm:$0xff]  ;;  %v14263_v1 = vld [vmem:[#allocation2 + $0x57] sm:$0xff] }
 0x1f3   : > { %2775 = vst.msk [vmem:[#allocation2 + $0x1c4] sm:$0xff] %vm2651_vm1, %v2645_v19  ;;  %v2597_v30 = vmax.f32 %v2533_v43, 0.0  ;;  %v11212_v46 = vpop.f32.mrb[128].mxu1  ;;  %11281 = vmatmul.mubr.msk.f32.gmra.mrb[172].mxu1 %vm2651_vm1, %v5381_v22  ;;  %v14271_v24 = vld [vmem:[#allocation2 + $0x61] sm:$0xff]  ;;  %v14281_v17 = vld [vmem:[#allocation2 + $0x69] sm:$0xff]  ;;  %v14287_v22 = vld [vmem:[#allocation2 + $0x71] sm:$0xff] }
 0x1f4   : > { %v2648_v25 = vmax.f32 %v13888_v47, %v2598_v9  ;;  %v2548_v29 = vadd.f32 %v13902_v51, %v11212_v46  ;;  %v2542_v50 = vpop.f32.mrb[129].mxu1  ;;  %11283 = vmatprep.mubr.msk.f32.mxu1 %vm2651_vm1, %v2905_v27  ;;  %11654 = vmatmul.mubr.msk.f32.gmra.mrb[110].mxu0 %vm2651_vm1, %v2905_v27  ;;  %v14275_v52 = vld [vmem:[#allocation2 + $0x5f] sm:$0xff]  ;;  %v14279_v6 = vld [vmem:[#allocation2 + $0x67] sm:$0xff]  ;;  %v14291_v8 = vld [vmem:[#allocation2 + $0x6f] sm:$0xff] }
 0x1f5   : > { %v2647_v20 = vmax.f32 %v13890_v15, %v2597_v30  ;;  %v2543_v34 = vadd.f32 %v13902_v51, %v2542_v50  ;;  %11656 = vmatprep.mubr.msk.f32.mxu0 %vm2651_vm1, %v5383_v42  ;;  %v5385_v15 = vld [vmem:[#allocation2 + $0x180] sm:$0xff]  ;;  %v14295_v19 = vld [vmem:[#allocation2 + $0x77] sm:$0xff]  ;;  %v14313_v27 = vld [vmem:[#allocation2 + $0x89] sm:$0xff] }
 0x1f6   : > { %2778 = vst.msk [vmem:[#allocation2 + $0x1e0] sm:$0xf] %vm2722_vm2, %v2648_v25  ;;  %v2600_v11 = vmax.f32 %v2548_v29, 0.0  ;;  %v5391_v2 = vld [vmem:[#allocation2 + $0x1b0] sm:$0xff]  ;;  %v14297_v43 = vld [vmem:[#allocation2 + $0x79] sm:$0xff]  ;;  %v14303_v9 = vld [vmem:[#allocation2 + $0x81] sm:$0xff] }
 0x1f7   : > { %2779 = vst.msk [vmem:[#allocation2 + $0x1e4] sm:$0xf0] %vm2724_vm3, %v2648_v25  ;;  %v2599_v47 = vmax.f32 %v2543_v34, 0.0  ;;  %11284 = vmatmul.mubr.msk.f32.gmra.mrb[174].mxu1 %vm2651_vm1, %v5383_v42  ;;  %v2915_v7 = vld [vmem:[#allocation2 + $0x1b8] sm:$0xff]  ;;  %v14311_v46 = vld [vmem:[#allocation2 + $0x87] sm:$0xff]  ;;  %v14323_v29 = vld [vmem:[#allocation2 + $0x8f] sm:$0xff] }
 0x1f8   : > { %2777 = vst.msk [vmem:[#allocation2 + $0x1d8] sm:$0xff] %vm2651_vm1, %v2647_v20  ;;  %v2650_v63 = vmax.f32 %v13894_v31, %v2600_v11  ;;  %11286 = vmatprep.mubr.msk.f32.mxu1 %vm2651_vm1, %v2907_v54  ;;  %11657 = vmatmul.mubr.msk.f32.gmra.mrb[112].mxu0 %vm2651_vm1, %v2907_v54  ;;  %v5387_v31 = vld [vmem:[#allocation2 + $0x190] sm:$0xff]  ;;  %v14307_v30 = vld [vmem:[#allocation2 + $0x7f] sm:$0xff]  ;;  %v14343_v11 = vld [vmem:[#allocation2 + $0xa7] sm:$0xff] }
 0x1f9   : > { %v2649_v51 = vmax.f32 %v13896_v4, %v2599_v47  ;;  %11659 = vmatprep.mubr.msk.f32.mxu0 %vm2651_vm1, %v5385_v15  ;;  %v5389_v4 = vld [vmem:[#allocation2 + $0x1a0] sm:$0xff]  ;;  %v5395_v35 = vld [vmem:[#allocation2 + $0x1d0] sm:$0xff] }
 0x1fa   : > { %2781 = vst.msk [vmem:[#allocation2 + $0x1f4] sm:$0xff] %vm2651_vm1, %v2650_v63  ;;  %v5393_v36 = vld [vmem:[#allocation2 + $0x1c0] sm:$0xff]  ;;  %v2917_v55 = vld [vmem:[#allocation2 + $0x1c8] sm:$0xff]  ;;  %v14319_v25 = vld [vmem:[#allocation2 + $0x91] sm:$0xff] }
 0x1fb   : > { %2780 = vst.msk [vmem:[#allocation2 + $0x1ec] sm:$0xff] %vm2651_vm1, %v2649_v51  ;;  %11287 = vmatmul.mubr.msk.f32.gmra.mrb[176].mxu1 %vm2651_vm1, %v5385_v15  ;;  %v14327_v50 = vld [vmem:[#allocation2 + $0x97] sm:$0xff]  ;;  %v14335_v20 = vld [vmem:[#allocation2 + $0xa1] sm:$0xff]  ;;  %v14345_v47 = vld [vmem:[#allocation2 + $0xa9] sm:$0xff] }
 0x1fc   : > { %11289 = vmatprep.mubr.msk.f32.mxu1 %vm2651_vm1, %v2909_v14  ;;  %11660 = vmatmul.mubr.msk.f32.gmra.mrb[114].mxu0 %vm2651_vm1, %v2909_v14  ;;  %v14329_v42 = vld [vmem:[#allocation2 + $0x99] sm:$0xff]  ;;  %v14351_v54 = vld [vmem:[#allocation2 + $0xb1] sm:$0xff]  ;;  %v14367_v14 = vld [vmem:[#allocation2 + $0xc1] sm:$0xff] }
 0x1fd   : > { %11662 = vmatprep.mubr.msk.f32.mxu0 %vm2651_vm1, %v5387_v31  ;;  %v5397_v56 = vld [vmem:[#allocation2 + $0x1e0] sm:$0xff]  ;;  %v14355_v63 = vld [vmem:[#allocation2 + $0xaf] sm:$0xff]  ;;  %v14359_v15 = vld [vmem:[#allocation2 + $0xb7] sm:$0xff] }
 0x1fe   : > { %v14339_v34 = vld [vmem:[#allocation2 + $0x9f] sm:$0xff]  ;;  %v14455_v39 = vld [vmem:[#allocation2 + $0x117] sm:$0xff] }
 0x1ff   : > { %11290 = vmatmul.mubr.msk.f32.gmra.mrb[178].mxu1 %vm2651_vm1, %v5387_v31  ;;  %v2919_v28 = vld [vmem:[#allocation2 + $0x1d8] sm:$0xff]  ;;  %15673 = vst [vmem:[#allocation20_spill] sm:$0xff] %v14455_v39 }
 0x200   : > { %11292 = vmatprep.mubr.msk.f32.mxu1 %vm2651_vm1, %v2911_v33  ;;  %11663 = vmatmul.mubr.msk.f32.gmra.mrb[116].mxu0 %vm2651_vm1, %v2911_v33  ;;  %v14361_v51 = vld [vmem:[#allocation2 + $0xb9] sm:$0xff]  ;;  %v14375_v33 = vld [vmem:[#allocation2 + $0xc7] sm:$0xff] }
 0x201   : > { %11665 = vmatprep.mubr.msk.f32.mxu0 %vm2651_vm1, %v5389_v4  ;;  %v5400_v58 = vld [vmem:[#allocation2 + $0x1f8] sm:$0xff] }
 0x202   : > { %v5398_v13 = vld [vmem:[#allocation2 + $0x1e8] sm:$0xff]  ;;  %v5399_v38 = vld [vmem:[#allocation2 + $0x1f0] sm:$0xff]  ;;  %v14371_v31 = vld [vmem:[#allocation2 + $0xbf] sm:$0xff] }
 0x203   : > { %11293 = vmatmul.mubr.msk.f32.gmra.mrb[180].mxu1 %vm2651_vm1, %v5389_v4  ;;  %v14377_v4 = vld [vmem:[#allocation2 + $0xc9] sm:$0xff] }
 0x204   : > { %11295 = vmatprep.mubr.msk.f32.mxu1 %vm2651_vm1, %v2913_v3  ;;  %11666 = vmatmul.mubr.msk.f32.gmra.mrb[118].mxu0 %vm2651_vm1, %v2913_v3  ;;  %v14383_v3 = vld [vmem:[#allocation2 + $0xd1] sm:$0xff] }
 0x205   : > { %11668 = vmatprep.mubr.msk.f32.mxu0 %vm2651_vm1, %v5391_v2 }
 0x207   : > { %11296 = vmatmul.mubr.msk.f32.gmra.mrb[182].mxu1 %vm2651_vm1, %v5391_v2  ;;  %v14387_v2 = vld [vmem:[#allocation2 + $0xcf] sm:$0xff] }
 0x208   : > { %11298 = vmatprep.mubr.msk.f32.mxu1 %vm2651_vm1, %v2915_v7  ;;  %11669 = vmatmul.mubr.msk.f32.gmra.mrb[120].mxu0 %vm2651_vm1, %v2915_v7  ;;  %v14391_v7 = vld [vmem:[#allocation2 + $0xd7] sm:$0xff] }
 0x209   : > { %11671 = vmatprep.mubr.msk.f32.mxu0 %vm2651_vm1, %v5393_v36 }
 0x20b   : > { %11299 = vmatmul.mubr.msk.f32.gmra.mrb[184].mxu1 %vm2651_vm1, %v5393_v36  ;;  %v14393_v36 = vld [vmem:[#allocation2 + $0xd9] sm:$0xff] }
 0x20c   : > { %11301 = vmatprep.mubr.msk.f32.mxu1 %vm2651_vm1, %v2917_v55  ;;  %11672 = vmatmul.mubr.msk.f32.gmra.mrb[122].mxu0 %vm2651_vm1, %v2917_v55  ;;  %v14407_v55 = vld [vmem:[#allocation2 + $0xe7] sm:$0xff] }
 0x20d   : > { %11674 = vmatprep.mubr.msk.f32.mxu0 %vm2651_vm1, %v5395_v35 }
 0x20f   : > { %11302 = vmatmul.mubr.msk.f32.gmra.mrb[186].mxu1 %vm2651_vm1, %v5395_v35  ;;  %v14415_v35 = vld [vmem:[#allocation2 + $0xf1] sm:$0xff] }
 0x210   : > { %11304 = vmatprep.mubr.msk.f32.mxu1 %vm2651_vm1, %v2919_v28  ;;  %11675 = vmatmul.mubr.msk.f32.gmra.mrb[124].mxu0 %vm2651_vm1, %v2919_v28  ;;  %v14419_v28 = vld [vmem:[#allocation2 + $0xef] sm:$0xff] }
 0x211   : > { %11677 = vmatprep.mubr.msk.f32.mxu0 %vm2651_vm1, %v5397_v56 }
 0x213   : > { %11305 = vmatmul.mubr.msk.f32.gmra.mrb[188].mxu1 %vm2651_vm1, %v5397_v56  ;;  %v14423_v56 = vld [vmem:[#allocation2 + $0xf7] sm:$0xff] }
 0x214   : > { %11678 = vmatmul.mubr.msk.f32.gmra.mrb[126].mxu0 %vm2651_vm1, %v5398_v13  ;;  %11311 = vmatprep.mubr.msk.f32.mxu1 %vm2651_vm1, %v2801_v0  ;;  %v14425_v0 = vld [vmem:[#allocation2 + $0xf9] sm:$0xff]  ;;  %v14431_v13 = vld [vmem:[#allocation2 + $0x101] sm:$0xff] }
 0x215   : > { %11680 = vmatprep.mubr.msk.f32.mxu0 %vm2651_vm1, %v5399_v38  ;;  %15668 = vst [vmem:[#allocation15_spill] sm:$0xff] %v14425_v0  ;;  %15669 = vst [vmem:[#allocation16_spill] sm:$0xff] %v14431_v13  ;;  %v14435_v38 = vld [vmem:[#allocation2 + $0xff] sm:$0xff] }
 0x217   : > { %11312 = vmatmul.mubr.msk.f32.vlgmr.msra.gmra.mrb[130].mxu1 %vm2651_vm1, %v2802_v26  ;;  %v14439_v26 = vld [vmem:[#allocation2 + $0x107] sm:$0xff] }
 0x218   : > { %11681 = vmatmul.mubr.msk.f32.gmra.mrb[128].mxu0 %vm2651_vm1, %v5400_v58  ;;  %11314 = vmatprep.mubr.msk.f32.mxu1 %vm2651_vm1, %v2803_v12  ;;  %v14441_v12 = vld [vmem:[#allocation2 + $0x109] sm:$0xff]  ;;  %v14447_v58 = vld [vmem:[#allocation2 + $0x111] sm:$0xff] }
 0x219   : > { %11687 = vmatprep.mubr.msk.f32.mxu0 %vm2651_vm1, %v14202_v49  ;;  %12134 = vmatpush3.bf16.msra.mxu1 %v12131_v48  ;;  %v14409_v48 = vld [vmem:[#allocation2 + $0xe9] sm:$0xff]  ;;  %15670 = vst [vmem:[#allocation17_spill] sm:$0xff] %v14441_v12  ;;  %15671 = vst [vmem:[#allocation18_spill] sm:$0xff] %v14447_v58 }
 0x21b   : > { %11315 = vmatmul.mubr.msk.f32.gmra.mrb[132].mxu1 %vm2651_vm1, %v14207_v41  ;;  %v14467_v41 = vld [vmem:[#allocation2 + $0x11f] sm:$0xff] }
 0x21c   : > { %11317 = vmatprep.mubr.msk.f32.mxu1 %vm2651_vm1, %v14213_v37  ;;  %11688 = vmatmul.mubr.msk.f32.vlgmr.msra.gmra.mrb[70].mxu0 %vm2651_vm1, %v14215_v23  ;;  %v14463_v37 = vld [vmem:[#allocation2 + $0x121] sm:$0xff]  ;;  %15676 = vst [vmem:[#allocation22_spill] sm:$0xff] %v14467_v41 }
 0x21d   : > { %11690 = vmatprep.mubr.msk.f32.mxu0 %vm2651_vm1, %v14221_v60  ;;  %12150 = vmatpush3.bf16.msra.mxu0 %v13927_v16  ;;  %v14243_v16 = vld [vmem:[#allocation2 + $0x3f] sm:$0xff]  ;;  %15675 = vst [vmem:[#allocation4_spill] sm:$0xff] %v14463_v37 }
 0x21e   : > { %12152 = vmatprep.subr.bf16.mxu0 %v14209_v59 }
 0x21f   : > { %11318 = vmatmul.mubr.msk.f32.gmra.mrb[134].mxu1 %vm2651_vm1, %v14226_v57  ;;  %v14457_v57 = vld [vmem:[#allocation2 + $0x119] sm:$0xff] }
 0x220   : > { %11320 = vmatprep.mubr.msk.f32.mxu1 %vm2651_vm1, %v14231_v61  ;;  %11691 = vmatmul.mubr.msk.f32.gmra.mrb[72].mxu0 %vm2651_vm1, %v14233_v5  ;;  %15674 = vst [vmem:[#allocation21_spill] sm:$0xff] %v14457_v57 }
 0x221   : > { %11693 = vmatprep.mubr.msk.f32.mxu0 %vm2651_vm1, %v14239_v53 }
 0x223   : > { %11321 = vmatmul.mubr.msk.f32.gmra.mrb[136].mxu1 %vm2651_vm1, %v14243_v16 }
 0x224   : > { %11323 = vmatprep.mubr.msk.f32.mxu1 %vm2651_vm1, %v14247_v44  ;;  %11694 = vmatmul.mubr.msk.f32.gmra.mrb[74].mxu0 %vm2651_vm1, %v14249_v62 }
 0x225   : > { %11696 = vmatprep.mubr.msk.f32.mxu0 %vm2651_vm1, %v14255_v10 }
 0x227   : > { %11324 = vmatmul.mubr.msk.f32.gmra.mrb[138].mxu1 %vm2651_vm1, %v14259_v45 }
 0x228   : > { %11326 = vmatprep.mubr.msk.f32.mxu1 %vm2651_vm1, %v14263_v1  ;;  %11697 = vmatmul.mubr.msk.f32.gmra.mrb[76].mxu0 %vm2651_vm1, %v14265_v40 }
 0x229   : > { %11699 = vmatprep.mubr.msk.f32.mxu0 %vm2651_vm1, %v14271_v24 }
 0x22b   : > { %11327 = vmatmul.mubr.msk.f32.gmra.mrb[140].mxu1 %vm2651_vm1, %v14275_v52 }
 0x22c   : > { %11329 = vmatprep.mubr.msk.f32.mxu1 %vm2651_vm1, %v14279_v6  ;;  %11700 = vmatmul.mubr.msk.f32.gmra.mrb[78].mxu0 %vm2651_vm1, %v14281_v17 }
 0x22d   : > { %11702 = vmatprep.mubr.msk.f32.mxu0 %vm2651_vm1, %v14287_v22 }
 0x22f   : > { %11330 = vmatmul.mubr.msk.f32.gmra.mrb[142].mxu1 %vm2651_vm1, %v14291_v8 }
 0x230   : > { %11332 = vmatprep.mubr.msk.f32.mxu1 %vm2651_vm1, %v14295_v19  ;;  %11703 = vmatmul.mubr.msk.f32.gmra.mrb[80].mxu0 %vm2651_vm1, %v14297_v43 }
 0x231   : > { %11705 = vmatprep.mubr.msk.f32.mxu0 %vm2651_vm1, %v14303_v9 }
 0x233   : > { %11333 = vmatmul.mubr.msk.f32.gmra.mrb[144].mxu1 %vm2651_vm1, %v14307_v30 }
 0x234   : > { %11335 = vmatprep.mubr.msk.f32.mxu1 %vm2651_vm1, %v14311_v46  ;;  %11706 = vmatmul.mubr.msk.f32.gmra.mrb[82].mxu0 %vm2651_vm1, %v14313_v27 }
 0x235   : > { %11708 = vmatprep.mubr.msk.f32.mxu0 %vm2651_vm1, %v14319_v25 }
 0x237   : > { %11336 = vmatmul.mubr.msk.f32.gmra.mrb[146].mxu1 %vm2651_vm1, %v14323_v29 }
 0x238   : > { %11338 = vmatprep.mubr.msk.f32.mxu1 %vm2651_vm1, %v14327_v50  ;;  %11709 = vmatmul.mubr.msk.f32.gmra.mrb[84].mxu0 %vm2651_vm1, %v14329_v42 }
 0x239   : > { %11711 = vmatprep.mubr.msk.f32.mxu0 %vm2651_vm1, %v14335_v20 }
 0x23b   : > { %11339 = vmatmul.mubr.msk.f32.gmra.mrb[148].mxu1 %vm2651_vm1, %v14339_v34 }
 0x23c   : > { %11341 = vmatprep.mubr.msk.f32.mxu1 %vm2651_vm1, %v14343_v11  ;;  %11712 = vmatmul.mubr.msk.f32.gmra.mrb[86].mxu0 %vm2651_vm1, %v14345_v47 }
 0x23d   : > { %11714 = vmatprep.mubr.msk.f32.mxu0 %vm2651_vm1, %v14351_v54 }
 0x23f   : > { %11342 = vmatmul.mubr.msk.f32.gmra.mrb[150].mxu1 %vm2651_vm1, %v14355_v63 }
 0x240   : > { %11344 = vmatprep.mubr.msk.f32.mxu1 %vm2651_vm1, %v14359_v15  ;;  %11715 = vmatmul.mubr.msk.f32.gmra.mrb[88].mxu0 %vm2651_vm1, %v14361_v51 }
 0x241   : > { %11717 = vmatprep.mubr.msk.f32.mxu0 %vm2651_vm1, %v14367_v14 }
 0x243   : > { %11345 = vmatmul.mubr.msk.f32.gmra.mrb[152].mxu1 %vm2651_vm1, %v14371_v31 }
 0x244   : > { %11347 = vmatprep.mubr.msk.f32.mxu1 %vm2651_vm1, %v14375_v33  ;;  %11718 = vmatmul.mubr.msk.f32.gmra.mrb[90].mxu0 %vm2651_vm1, %v14377_v4 }
 0x245   : > { %11720 = vmatprep.mubr.msk.f32.mxu0 %vm2651_vm1, %v14383_v3 }
 0x247   : > { %11348 = vmatmul.mubr.msk.f32.gmra.mrb[154].mxu1 %vm2651_vm1, %v14387_v2 }
 0x248   : > { %11350 = vmatprep.mubr.msk.f32.mxu1 %vm2651_vm1, %v14391_v7  ;;  %11721 = vmatmul.mubr.msk.f32.gmra.mrb[92].mxu0 %vm2651_vm1, %v14393_v36 }
 0x249   : > { %11723 = vmatprep.mubr.msk.f32.mxu0 %vm2651_vm1, %v14399_v18 }
 0x24b   : > { %11351 = vmatmul.mubr.msk.f32.gmra.mrb[156].mxu1 %vm2651_vm1, %v14403_v21 }
 0x24c   : > { %11353 = vmatprep.mubr.msk.f32.mxu1 %vm2651_vm1, %v14407_v55  ;;  %11724 = vmatmul.mubr.msk.f32.gmra.mrb[94].mxu0 %vm2651_vm1, %v14409_v48 }
 0x24d   : > { %11726 = vmatprep.mubr.msk.f32.mxu0 %vm2651_vm1, %v14415_v35 }
 0x24f   : > { %11354 = vmatmul.mubr.msk.f32.gmra.mrb[158].mxu1 %vm2651_vm1, %v14419_v28 }
 0x250   : > { %11356 = vmatprep.mubr.msk.f32.mxu1 %vm2651_vm1, %v14423_v56  ;;  %11727 = vmatmul.mubr.msk.f32.gmra.mrb[96].mxu0 %vm2651_vm1, %v14425_v0  ;;  %v6065_v0 = vld [vmem:[#allocation2 + $0x1f9] sm:$0xff] }
 0x251   : > { %11729 = vmatprep.mubr.msk.f32.mxu0 %vm2651_vm1, %v14431_v13  ;;  %v14489_v13 = vld [vmem:[#allocation2 + $0x139] sm:$0xff] }
 0x252   : > { %15682 = vst [vmem:[#allocation10_spill] sm:$0xff] %v14489_v13 }
 0x253   : > { %11357 = vmatmul.mubr.msk.f32.gmra.mrb[160].mxu1 %vm2651_vm1, %v14435_v38 }
 0x254   : > { %11359 = vmatprep.mubr.msk.f32.mxu1 %vm2651_vm1, %v14439_v26  ;;  %11730 = vmatmul.mubr.msk.f32.gmra.mrb[98].mxu0 %vm2651_vm1, %v14441_v12  ;;  %v14473_v12 = vld [vmem:[#allocation2 + $0x129] sm:$0xff] }
 0x255   : > { %11732 = vmatprep.mubr.msk.f32.mxu0 %vm2651_vm1, %v14447_v58  ;;  %v14471_v58 = vld [vmem:[#allocation2 + $0x127] sm:$0xff]  ;;  %15678 = vst [vmem:[#allocation6_spill] sm:$0xff] %v14473_v12 }
 0x256   : > { %15677 = vst [vmem:[#allocation5_spill] sm:$0xff] %v14471_v58 }
 0x257   : > { %11360 = vmatmul.mubr.msk.f32.gmra.mrb[162].mxu1 %vm2651_vm1, %v14451_v32  ;;  %v14649_v32 = vld [vmem:[#allocation2 + $0x1cf] sm:$0xff] }
 0x258   : > { %11362 = vmatprep.mubr.msk.f32.mxu1 %vm2651_vm1, %v14455_v39  ;;  %11733 = vmatmul.mubr.msk.f32.gmra.mrb[100].mxu0 %vm2651_vm1, %v14457_v57  ;;  %v14479_v57 = vld [vmem:[#allocation2 + $0x131] sm:$0xff]  ;;  %15720 = vst [vmem:[#allocation59_spill] sm:$0xff] %v14649_v32 }
 0x259   : > { %11735 = vmatprep.mubr.msk.f32.mxu0 %vm2651_vm1, %v14463_v37  ;;  %15679 = vst [vmem:[#allocation7_spill] sm:$0xff] %v14479_v57  ;;  %v14483_v37 = vld [vmem:[#allocation2 + $0x12f] sm:$0xff] }
 0x25a   : > { %15680 = vst [vmem:[#allocation8_spill] sm:$0xff] %v14483_v37 }
 0x25b   : > { %11363 = vmatmul.mubr.msk.f32.gmra.mrb[164].mxu1 %vm2651_vm1, %v14467_v41  ;;  %v14487_v41 = vld [vmem:[#allocation2 + $0x137] sm:$0xff] }
 0x25c   : > { %11365 = vmatprep.mubr.msk.f32.mxu1 %vm2651_vm1, %v14471_v58  ;;  %11736 = vmatmul.mubr.msk.f32.gmra.mrb[102].mxu0 %vm2651_vm1, %v14473_v12  ;;  %15681 = vst [vmem:[#allocation9_spill] sm:$0xff] %v14487_v41  ;;  %v14495_v12 = vld [vmem:[#allocation2 + $0x141] sm:$0xff]  ;;  %v14505_v58 = vld [vmem:[#allocation2 + $0x149] sm:$0xff] }
 0x25d   : > { %11738 = vmatprep.mubr.msk.f32.mxu0 %vm2651_vm1, %v14479_v57  ;;  %15683 = vst [vmem:[#allocation11_spill] sm:$0xff] %v14495_v12  ;;  %v14499_v57 = vld [vmem:[#allocation2 + $0x13f] sm:$0xff]  ;;  %15686 = vst [vmem:[#allocation25_spill] sm:$0xff] %v14505_v58 }
 0x25e   : > { %15684 = vst [vmem:[#allocation23_spill] sm:$0xff] %v14499_v57 }
 0x25f   : > { %11366 = vmatmul.mubr.msk.f32.gmra.mrb[166].mxu1 %vm2651_vm1, %v14483_v37  ;;  %v14503_v37 = vld [vmem:[#allocation2 + $0x147] sm:$0xff] }
 0x260   : > { %11368 = vmatprep.mubr.msk.f32.mxu1 %vm2651_vm1, %v14487_v41  ;;  %11739 = vmatmul.mubr.msk.f32.gmra.mrb[104].mxu0 %vm2651_vm1, %v14489_v13  ;;  %15685 = vst [vmem:[#allocation24_spill] sm:$0xff] %v14503_v37  ;;  %v14511_v13 = vld [vmem:[#allocation2 + $0x151] sm:$0xff]  ;;  %v14521_v41 = vld [vmem:[#allocation2 + $0x159] sm:$0xff] }
 0x261   : > { %11741 = vmatprep.mubr.msk.f32.mxu0 %vm2651_vm1, %v14495_v12  ;;  %15687 = vst [vmem:[#allocation26_spill] sm:$0xff] %v14511_v13  ;;  %v14515_v12 = vld [vmem:[#allocation2 + $0x14f] sm:$0xff]  ;;  %15690 = vst [vmem:[#allocation29_spill] sm:$0xff] %v14521_v41 }
 0x262   : > { %15688 = vst [vmem:[#allocation27_spill] sm:$0xff] %v14515_v12 }
 0x263   : > { %11369 = vmatmul.mubr.msk.f32.gmra.mrb[168].mxu1 %vm2651_vm1, %v14499_v57  ;;  %v14519_v57 = vld [vmem:[#allocation2 + $0x157] sm:$0xff] }
 0x264   : > { %11371 = vmatprep.mubr.msk.f32.mxu1 %vm2651_vm1, %v14503_v37  ;;  %11742 = vmatmul.mubr.msk.f32.gmra.mrb[106].mxu0 %vm2651_vm1, %v14505_v58  ;;  %15689 = vst [vmem:[#allocation28_spill] sm:$0xff] %v14519_v57  ;;  %v14527_v58 = vld [vmem:[#allocation2 + $0x161] sm:$0xff]  ;;  %v14537_v37 = vld [vmem:[#allocation2 + $0x169] sm:$0xff] }
 0x265   : > { %11744 = vmatprep.mubr.msk.f32.mxu0 %vm2651_vm1, %v14511_v13  ;;  %15691 = vst [vmem:[#allocation30_spill] sm:$0xff] %v14527_v58  ;;  %v14531_v13 = vld [vmem:[#allocation2 + $0x15f] sm:$0xff]  ;;  %15694 = vst [vmem:[#allocation33_spill] sm:$0xff] %v14537_v37 }
 0x266   : > { %15692 = vst [vmem:[#allocation31_spill] sm:$0xff] %v14531_v13 }
 0x267   : > { %11372 = vmatmul.mubr.msk.f32.gmra.mrb[170].mxu1 %vm2651_vm1, %v14515_v12  ;;  %v14535_v12 = vld [vmem:[#allocation2 + $0x167] sm:$0xff] }
 0x268   : > { %11374 = vmatprep.mubr.msk.f32.mxu1 %vm2651_vm1, %v14519_v57  ;;  %11745 = vmatmul.mubr.msk.f32.gmra.mrb[108].mxu0 %vm2651_vm1, %v14521_v41  ;;  %15693 = vst [vmem:[#allocation32_spill] sm:$0xff] %v14535_v12  ;;  %v14543_v41 = vld [vmem:[#allocation2 + $0x171] sm:$0xff]  ;;  %v14553_v57 = vld [vmem:[#allocation2 + $0x179] sm:$0xff] }
 0x269   : > { %11747 = vmatprep.mubr.msk.f32.mxu0 %vm2651_vm1, %v14527_v58  ;;  %15695 = vst [vmem:[#allocation34_spill] sm:$0xff] %v14543_v41  ;;  %v14547_v58 = vld [vmem:[#allocation2 + $0x16f] sm:$0xff]  ;;  %15698 = vst [vmem:[#allocation37_spill] sm:$0xff] %v14553_v57 }
 0x26a   : > { %15696 = vst [vmem:[#allocation35_spill] sm:$0xff] %v14547_v58 }
 0x26b   : > { %11375 = vmatmul.mubr.msk.f32.gmra.mrb[172].mxu1 %vm2651_vm1, %v14531_v13  ;;  %v14551_v13 = vld [vmem:[#allocation2 + $0x177] sm:$0xff] }
 0x26c   : > { %11377 = vmatprep.mubr.msk.f32.mxu1 %vm2651_vm1, %v14535_v12  ;;  %11748 = vmatmul.mubr.msk.f32.gmra.mrb[110].mxu0 %vm2651_vm1, %v14537_v37  ;;  %15697 = vst [vmem:[#allocation36_spill] sm:$0xff] %v14551_v13  ;;  %v14559_v37 = vld [vmem:[#allocation2 + $0x181] sm:$0xff]  ;;  %v14569_v12 = vld [vmem:[#allocation2 + $0x189] sm:$0xff] }
 0x26d   : > { %11750 = vmatprep.mubr.msk.f32.mxu0 %vm2651_vm1, %v14543_v41  ;;  %15699 = vst [vmem:[#allocation38_spill] sm:$0xff] %v14559_v37  ;;  %v14563_v41 = vld [vmem:[#allocation2 + $0x17f] sm:$0xff]  ;;  %15702 = vst [vmem:[#allocation41_spill] sm:$0xff] %v14569_v12 }
 0x26e   : > { %15700 = vst [vmem:[#allocation39_spill] sm:$0xff] %v14563_v41 }
 0x26f   : > { %11378 = vmatmul.mubr.msk.f32.gmra.mrb[174].mxu1 %vm2651_vm1, %v14547_v58  ;;  %v14567_v58 = vld [vmem:[#allocation2 + $0x187] sm:$0xff] }
 0x270   : > { %11380 = vmatprep.mubr.msk.f32.mxu1 %vm2651_vm1, %v14551_v13  ;;  %11751 = vmatmul.mubr.msk.f32.gmra.mrb[112].mxu0 %vm2651_vm1, %v14553_v57  ;;  %15701 = vst [vmem:[#allocation40_spill] sm:$0xff] %v14567_v58  ;;  %v14575_v57 = vld [vmem:[#allocation2 + $0x191] sm:$0xff]  ;;  %v14585_v13 = vld [vmem:[#allocation2 + $0x199] sm:$0xff] }
 0x271   : > { %11753 = vmatprep.mubr.msk.f32.mxu0 %vm2651_vm1, %v14559_v37  ;;  %15703 = vst [vmem:[#allocation42_spill] sm:$0xff] %v14575_v57  ;;  %v14579_v37 = vld [vmem:[#allocation2 + $0x18f] sm:$0xff]  ;;  %15706 = vst [vmem:[#allocation45_spill] sm:$0xff] %v14585_v13 }
 0x272   : > { %15704 = vst [vmem:[#allocation43_spill] sm:$0xff] %v14579_v37 }
 0x273   : > { %11381 = vmatmul.mubr.msk.f32.gmra.mrb[176].mxu1 %vm2651_vm1, %v14563_v41  ;;  %v14583_v41 = vld [vmem:[#allocation2 + $0x197] sm:$0xff] }
 0x274   : > { %11383 = vmatprep.mubr.msk.f32.mxu1 %vm2651_vm1, %v14567_v58  ;;  %11754 = vmatmul.mubr.msk.f32.gmra.mrb[114].mxu0 %vm2651_vm1, %v14569_v12  ;;  %15705 = vst [vmem:[#allocation44_spill] sm:$0xff] %v14583_v41  ;;  %v14591_v12 = vld [vmem:[#allocation2 + $0x1a1] sm:$0xff]  ;;  %v14601_v58 = vld [vmem:[#allocation2 + $0x1a9] sm:$0xff] }
 0x275   : > { %11756 = vmatprep.mubr.msk.f32.mxu0 %vm2651_vm1, %v14575_v57  ;;  %15707 = vst [vmem:[#allocation46_spill] sm:$0xff] %v14591_v12  ;;  %v14595_v57 = vld [vmem:[#allocation2 + $0x19f] sm:$0xff]  ;;  %15710 = vst [vmem:[#allocation49_spill] sm:$0xff] %v14601_v58 }
 0x276   : > { %15708 = vst [vmem:[#allocation47_spill] sm:$0xff] %v14595_v57 }
 0x277   : > { %11384 = vmatmul.mubr.msk.f32.gmra.mrb[178].mxu1 %vm2651_vm1, %v14579_v37  ;;  %v14599_v37 = vld [vmem:[#allocation2 + $0x1a7] sm:$0xff] }
 0x278   : > { %11386 = vmatprep.mubr.msk.f32.mxu1 %vm2651_vm1, %v14583_v41  ;;  %11757 = vmatmul.mubr.msk.f32.gmra.mrb[116].mxu0 %vm2651_vm1, %v14585_v13  ;;  %15709 = vst [vmem:[#allocation48_spill] sm:$0xff] %v14599_v37  ;;  %v14607_v13 = vld [vmem:[#allocation2 + $0x1b1] sm:$0xff]  ;;  %v14617_v41 = vld [vmem:[#allocation2 + $0x1b9] sm:$0xff] }
 0x279   : > { %11759 = vmatprep.mubr.msk.f32.mxu0 %vm2651_vm1, %v14591_v12  ;;  %15711 = vst [vmem:[#allocation50_spill] sm:$0xff] %v14607_v13  ;;  %v14611_v12 = vld [vmem:[#allocation2 + $0x1af] sm:$0xff]  ;;  %15714 = vst [vmem:[#allocation53_spill] sm:$0xff] %v14617_v41 }
 0x27a   : > { %15712 = vst [vmem:[#allocation51_spill] sm:$0xff] %v14611_v12 }
 0x27b   : > { %11387 = vmatmul.mubr.msk.f32.gmra.mrb[180].mxu1 %vm2651_vm1, %v14595_v57  ;;  %v14615_v57 = vld [vmem:[#allocation2 + $0x1b7] sm:$0xff] }
 0x27c   : > { %11389 = vmatprep.mubr.msk.f32.mxu1 %vm2651_vm1, %v14599_v37  ;;  %11760 = vmatmul.mubr.msk.f32.gmra.mrb[118].mxu0 %vm2651_vm1, %v14601_v58  ;;  %15713 = vst [vmem:[#allocation52_spill] sm:$0xff] %v14615_v57  ;;  %v14623_v58 = vld [vmem:[#allocation2 + $0x1c1] sm:$0xff]  ;;  %v2789_v37 = vld [vmem:[%s15518_s3 + $0x38] sm:$0xff] }
 0x27d   : > { %11762 = vmatprep.mubr.msk.f32.mxu0 %vm2651_vm1, %v14607_v13  ;;  %15715 = vst [vmem:[#allocation54_spill] sm:$0xff] %v14623_v58  ;;  %v14627_v13 = vld [vmem:[#allocation2 + $0x1bf] sm:$0xff] }
 0x27e   : > { %15716 = vst [vmem:[#allocation55_spill] sm:$0xff] %v14627_v13 }
 0x27f   : > { %11390 = vmatmul.mubr.msk.f32.gmra.mrb[182].mxu1 %vm2651_vm1, %v14611_v12  ;;  %v2788_v12 = vld [vmem:[%s15518_s3 + $0x30] sm:$0xff] }
 0x280   : > { %11392 = vmatprep.mubr.msk.f32.mxu1 %vm2651_vm1, %v14615_v57  ;;  %11763 = vmatmul.mubr.msk.f32.gmra.mrb[120].mxu0 %vm2651_vm1, %v14617_v41  ;;  %v14637_v57 = vld [vmem:[#allocation2 + $0x1c7] sm:$0xff]  ;;  %v12135_v39 = vpack.c.bf16 %v2789_v37, %v2788_v12  ;;  %v14655_v37 = vld [vmem:[#allocation2 + $0x1d9] sm:$0xff] }
 0x281   : > { %11765 = vmatprep.mubr.msk.f32.mxu0 %vm2651_vm1, %v14623_v58  ;;  %15717 = vst [vmem:[#allocation56_spill] sm:$0xff] %v14637_v57  ;;  %v14639_v41 = vld [vmem:[#allocation2 + $0x1c9] sm:$0xff]  ;;  %v14645_v58 = vld [vmem:[#allocation2 + $0x1d1] sm:$0xff]  ;;  %15722 = vst [vmem:[#allocation61_spill] sm:$0xff] %v14655_v37 }
 0x282   : > { %15718 = vst [vmem:[#allocation57_spill] sm:$0xff] %v14639_v41  ;;  %15719 = vst [vmem:[#allocation58_spill] sm:$0xff] %v14645_v58  ;;  %12136 = vmatprep.subr.bf16.mxu1 %v12135_v39  ;;  %v14661_v12 = vld [vmem:[#allocation2 + $0x1e1] sm:$0xff] }
 0x283   : > { %11393 = vmatmul.mubr.msk.f32.gmra.mrb[184].mxu1 %vm2651_vm1, %v14627_v13  ;;  %v14653_v13 = vld [vmem:[#allocation2 + $0x1d7] sm:$0xff]  ;;  %15723 = vst [vmem:[#allocation62_spill] sm:$0xff] %v14661_v12 }
 0x284   : > { %11395 = vmatprep.mubr.msk.f32.mxu1 %vm2651_vm1, %v14637_v57  ;;  %11766 = vmatmul.mubr.msk.f32.gmra.mrb[122].mxu0 %vm2651_vm1, %v14639_v41  ;;  %15721 = vst [vmem:[#allocation60_spill] sm:$0xff] %v14653_v13  ;;  %v14665_v41 = vld [vmem:[#allocation2 + $0x1df] sm:$0xff]  ;;  %v6064_v57 = vld [vmem:[#allocation2 + $0x1f1] sm:$0xff] }
 0x285   : > { %11768 = vmatprep.mubr.msk.f32.mxu0 %vm2651_vm1, %v14645_v58  ;;  %v4011_v58 = vld [vmem:[#allocation2 + $0x9] sm:$0xff]  ;;  %15724 = vst [vmem:[#allocation63_spill] sm:$0xff] %v14665_v41 }
 0x287   : > { %11396 = vmatmul.mubr.msk.f32.gmra.mrb[186].mxu1 %vm2651_vm1, %v14649_v32  ;;  %v6063_v32 = vld [vmem:[#allocation2 + $0x1e9] sm:$0xff] }
 0x288   : > { %11398 = vmatprep.mubr.msk.f32.mxu1 %vm2651_vm1, %v14653_v13  ;;  %11769 = vmatmul.mubr.msk.f32.gmra.mrb[124].mxu0 %vm2651_vm1, %v14655_v37  ;;  %v4012_v13 = vld [vmem:[#allocation2 + $0x11] sm:$0xff]  ;;  %v4013_v37 = vld [vmem:[#allocation2 + $0x19] sm:$0xff] }
 0x289   : > { %11771 = vmatprep.mubr.msk.f32.mxu0 %vm2651_vm1, %v14661_v12  ;;  %v2798_v12 = vld [vmem:[%s15518_s3 + $0x80] sm:$0xff] }
 0x28b   : > { %11399 = vmatmul.mubr.msk.f32.gmra.mrb[188].mxu1 %vm2651_vm1, %v14665_v41  ;;  %v2799_v41 = vld [vmem:[%s15518_s3 + $0x88] sm:$0xff] }
 0x28c   : > { %11772 = vmatmul.mubr.msk.f32.gmra.mrb[126].mxu0 %vm2651_vm1, %v6063_v32  ;;  %11405 = vmatprep.mubr.msk.f32.mxu1 %vm2651_vm1, %v4011_v58  ;;  %v15756_v58 = vld [vmem:[#allocation34_spill] sm:$0xff]  ;;  %v15757_v32 = vld [vmem:[#allocation37_spill] sm:$0xff] }
 0x28d   : > { %11774 = vmatprep.mubr.msk.f32.mxu0 %vm2651_vm1, %v6064_v57  ;;  %v14683_v57 = vpack.c.bf16 %v2799_v41, %v2798_v12  ;;  %v15726_v41 = vld [vmem:[#allocation19_spill] sm:$0xff]  ;;  %v15760_v12 = vld [vmem:[#allocation38_spill] sm:$0xff] }
 0x28f   : > { %11406 = vmatmul.mubr.msk.f32.vlgmr.msra.gmra.mrb[130].mxu1 %vm2651_vm1, %v4012_v13  ;;  %v15755_v13 = vld [vmem:[#allocation40_spill] sm:$0xff] }
 0x290   : > { %11408 = vmatprep.mubr.msk.f32.mxu1 %vm2651_vm1, %v4013_v37  ;;  %11775 = vmatmul.mubr.msk.f32.gmra.mrb[128].mxu0 %vm2651_vm1, %v6065_v0  ;;  %v15754_v0 = vld [vmem:[#allocation39_spill] sm:$0xff]  ;;  %v15759_v37 = vld [vmem:[#allocation44_spill] sm:$0xff] }
 0x291   : > { %11781 = vmatprep.mubr.msk.f32.mxu0 %vm2651_vm1, %v14231_v61  ;;  %12138 = vmatpush3.bf16.msra.mxu1 %v12135_v39  ;;  %v15758_v39 = vld [vmem:[#allocation43_spill] sm:$0xff] }
 0x293   : > { %11409 = vmatmul.mubr.msk.f32.gmra.mrb[132].mxu1 %vm2651_vm1, %v14202_v49  ;;  %v15725_v49 = vld [vmem:[#allocation15_spill] sm:$0xff] }
 0x294   : > { %11411 = vmatprep.mubr.msk.f32.mxu1 %vm2651_vm1, %v14215_v23  ;;  %11782 = vmatmul.mubr.msk.f32.vlgmr.msra.gmra.mrb[70].mxu0 %vm2651_vm1, %v14243_v16  ;;  %v15728_v23 = vld [vmem:[#allocation16_spill] sm:$0xff] }
 0x295   : > { %11784 = vmatprep.mubr.msk.f32.mxu0 %vm2651_vm1, %v14247_v44  ;;  %12154 = vmatpush3.bf16.msra.mxu0 %v14209_v59  ;;  %v15727_v59 = vld [vmem:[#allocation20_spill] sm:$0xff] }
 0x296   : > { %12156 = vmatprep.subr.bf16.mxu0 %v14683_v57 }
 0x297   : > { %11412 = vmatmul.mubr.msk.f32.gmra.mrb[134].mxu1 %vm2651_vm1, %v14221_v60  ;;  %v15729_v60 = vld [vmem:[#allocation17_spill] sm:$0xff] }
 0x298   : > { %11414 = vmatprep.mubr.msk.f32.mxu1 %vm2651_vm1, %v14233_v5  ;;  %11785 = vmatmul.mubr.msk.f32.gmra.mrb[72].mxu0 %vm2651_vm1, %v14259_v45  ;;  %v15730_v5 = vld [vmem:[#allocation22_spill] sm:$0xff] }
 0x299   : > { %11787 = vmatprep.mubr.msk.f32.mxu0 %vm2651_vm1, %v14263_v1 }
 0x29b   : > { %11415 = vmatmul.mubr.msk.f32.gmra.mrb[136].mxu1 %vm2651_vm1, %v14239_v53  ;;  %v15731_v53 = vld [vmem:[#allocation5_spill] sm:$0xff] }
 0x29c   : > { %11417 = vmatprep.mubr.msk.f32.mxu1 %vm2651_vm1, %v14249_v62  ;;  %11788 = vmatmul.mubr.msk.f32.gmra.mrb[74].mxu0 %vm2651_vm1, %v14275_v52  ;;  %v15732_v62 = vld [vmem:[#allocation18_spill] sm:$0xff] }
 0x29d   : > { %11790 = vmatprep.mubr.msk.f32.mxu0 %vm2651_vm1, %v14279_v6 }
 0x29f   : > { %11418 = vmatmul.mubr.msk.f32.gmra.mrb[138].mxu1 %vm2651_vm1, %v14255_v10  ;;  %v15733_v10 = vld [vmem:[#allocation21_spill] sm:$0xff] }
 0x2a0   : > { %11420 = vmatprep.mubr.msk.f32.mxu1 %vm2651_vm1, %v14265_v40  ;;  %11791 = vmatmul.mubr.msk.f32.gmra.mrb[76].mxu0 %vm2651_vm1, %v14291_v8  ;;  %v15734_v40 = vld [vmem:[#allocation8_spill] sm:$0xff] }
 0x2a1   : > { %11793 = vmatprep.mubr.msk.f32.mxu0 %vm2651_vm1, %v14295_v19 }
 0x2a3   : > { %11421 = vmatmul.mubr.msk.f32.gmra.mrb[140].mxu1 %vm2651_vm1, %v14271_v24  ;;  %v15735_v24 = vld [vmem:[#allocation9_spill] sm:$0xff] }
 0x2a4   : > { %11423 = vmatprep.mubr.msk.f32.mxu1 %vm2651_vm1, %v14281_v17  ;;  %11794 = vmatmul.mubr.msk.f32.gmra.mrb[78].mxu0 %vm2651_vm1, %v14307_v30  ;;  %v15736_v17 = vld [vmem:[#allocation4_spill] sm:$0xff] }
 0x2a5   : > { %11796 = vmatprep.mubr.msk.f32.mxu0 %vm2651_vm1, %v14311_v46 }
 0x2a7   : > { %11424 = vmatmul.mubr.msk.f32.gmra.mrb[142].mxu1 %vm2651_vm1, %v14287_v22  ;;  %v15737_v22 = vld [vmem:[#allocation6_spill] sm:$0xff] }
 0x2a8   : > { %11426 = vmatprep.mubr.msk.f32.mxu1 %vm2651_vm1, %v14297_v43  ;;  %11797 = vmatmul.mubr.msk.f32.gmra.mrb[80].mxu0 %vm2651_vm1, %v14323_v29  ;;  %v15738_v43 = vld [vmem:[#allocation23_spill] sm:$0xff] }
 0x2a9   : > { %11799 = vmatprep.mubr.msk.f32.mxu0 %vm2651_vm1, %v14327_v50 }
 0x2ab   : > { %11427 = vmatmul.mubr.msk.f32.gmra.mrb[144].mxu1 %vm2651_vm1, %v14303_v9  ;;  %v15739_v9 = vld [vmem:[#allocation24_spill] sm:$0xff] }
 0x2ac   : > { %11429 = vmatprep.mubr.msk.f32.mxu1 %vm2651_vm1, %v14313_v27  ;;  %11800 = vmatmul.mubr.msk.f32.gmra.mrb[82].mxu0 %vm2651_vm1, %v14339_v34  ;;  %v15740_v27 = vld [vmem:[#allocation7_spill] sm:$0xff] }
 0x2ad   : > { %11802 = vmatprep.mubr.msk.f32.mxu0 %vm2651_vm1, %v14343_v11 }
 0x2af   : > { %11430 = vmatmul.mubr.msk.f32.gmra.mrb[146].mxu1 %vm2651_vm1, %v14319_v25  ;;  %v15741_v25 = vld [vmem:[#allocation10_spill] sm:$0xff] }
 0x2b0   : > { %11432 = vmatprep.mubr.msk.f32.mxu1 %vm2651_vm1, %v14329_v42  ;;  %11803 = vmatmul.mubr.msk.f32.gmra.mrb[84].mxu0 %vm2651_vm1, %v14355_v63  ;;  %v15742_v42 = vld [vmem:[#allocation27_spill] sm:$0xff] }
 0x2b1   : > { %11805 = vmatprep.mubr.msk.f32.mxu0 %vm2651_vm1, %v14359_v15 }
 0x2b3   : > { %11433 = vmatmul.mubr.msk.f32.gmra.mrb[148].mxu1 %vm2651_vm1, %v14335_v20  ;;  %v15743_v20 = vld [vmem:[#allocation28_spill] sm:$0xff] }
 0x2b4   : > { %11435 = vmatprep.mubr.msk.f32.mxu1 %vm2651_vm1, %v14345_v47  ;;  %11806 = vmatmul.mubr.msk.f32.gmra.mrb[86].mxu0 %vm2651_vm1, %v14371_v31  ;;  %v15744_v47 = vld [vmem:[#allocation11_spill] sm:$0xff] }
 0x2b5   : > { %11808 = vmatprep.mubr.msk.f32.mxu0 %vm2651_vm1, %v14375_v33 }
 0x2b7   : > { %11436 = vmatmul.mubr.msk.f32.gmra.mrb[150].mxu1 %vm2651_vm1, %v14351_v54  ;;  %v15745_v54 = vld [vmem:[#allocation25_spill] sm:$0xff] }
 0x2b8   : > { %11438 = vmatprep.mubr.msk.f32.mxu1 %vm2651_vm1, %v14361_v51  ;;  %11809 = vmatmul.mubr.msk.f32.gmra.mrb[88].mxu0 %vm2651_vm1, %v14387_v2  ;;  %v15746_v51 = vld [vmem:[#allocation31_spill] sm:$0xff] }
 0x2b9   : > { %11811 = vmatprep.mubr.msk.f32.mxu0 %vm2651_vm1, %v14391_v7 }
 0x2bb   : > { %11439 = vmatmul.mubr.msk.f32.gmra.mrb[152].mxu1 %vm2651_vm1, %v14367_v14  ;;  %v15747_v14 = vld [vmem:[#allocation32_spill] sm:$0xff] }
 0x2bc   : > { %11441 = vmatprep.mubr.msk.f32.mxu1 %vm2651_vm1, %v14377_v4  ;;  %11812 = vmatmul.mubr.msk.f32.gmra.mrb[90].mxu0 %vm2651_vm1, %v14403_v21  ;;  %v15748_v4 = vld [vmem:[#allocation26_spill] sm:$0xff] }
 0x2bd   : > { %11814 = vmatprep.mubr.msk.f32.mxu0 %vm2651_vm1, %v14407_v55 }
 0x2bf   : > { %11442 = vmatmul.mubr.msk.f32.gmra.mrb[154].mxu1 %vm2651_vm1, %v14383_v3  ;;  %v15749_v3 = vld [vmem:[#allocation29_spill] sm:$0xff] }
 0x2c0   : > { %11444 = vmatprep.mubr.msk.f32.mxu1 %vm2651_vm1, %v14393_v36  ;;  %11815 = vmatmul.mubr.msk.f32.gmra.mrb[92].mxu0 %vm2651_vm1, %v14419_v28  ;;  %v15750_v36 = vld [vmem:[#allocation35_spill] sm:$0xff] }
 0x2c1   : > { %11817 = vmatprep.mubr.msk.f32.mxu0 %vm2651_vm1, %v14423_v56 }
 0x2c3   : > { %11445 = vmatmul.mubr.msk.f32.gmra.mrb[156].mxu1 %vm2651_vm1, %v14399_v18  ;;  %v15751_v18 = vld [vmem:[#allocation36_spill] sm:$0xff] }
 0x2c4   : > { %11447 = vmatprep.mubr.msk.f32.mxu1 %vm2651_vm1, %v14409_v48  ;;  %11818 = vmatmul.mubr.msk.f32.gmra.mrb[94].mxu0 %vm2651_vm1, %v14435_v38  ;;  %v15752_v48 = vld [vmem:[#allocation30_spill] sm:$0xff] }
 0x2c5   : > { %11820 = vmatprep.mubr.msk.f32.mxu0 %vm2651_vm1, %v14439_v26 }
 0x2c7   : > { %11448 = vmatmul.mubr.msk.f32.gmra.mrb[158].mxu1 %vm2651_vm1, %v14415_v35  ;;  %v15753_v35 = vld [vmem:[#allocation33_spill] sm:$0xff] }
 0x2c8   : > { %11450 = vmatprep.mubr.msk.f32.mxu1 %vm2651_vm1, %v15725_v49  ;;  %11821 = vmatmul.mubr.msk.f32.gmra.mrb[96].mxu0 %vm2651_vm1, %v15726_v41  ;;  %v15761_v49 = vld [vmem:[#allocation41_spill] sm:$0xff] }
 0x2c9   : > { %11823 = vmatprep.mubr.msk.f32.mxu0 %vm2651_vm1, %v15727_v59 }
 0x2cb   : > { %11451 = vmatmul.mubr.msk.f32.gmra.mrb[160].mxu1 %vm2651_vm1, %v15728_v23  ;;  %v15762_v23 = vld [vmem:[#allocation47_spill] sm:$0xff] }
 0x2cc   : > { %11453 = vmatprep.mubr.msk.f32.mxu1 %vm2651_vm1, %v15729_v60  ;;  %11824 = vmatmul.mubr.msk.f32.gmra.mrb[98].mxu0 %vm2651_vm1, %v15730_v5  ;;  %v15763_v60 = vld [vmem:[#allocation48_spill] sm:$0xff] }
 0x2cd   : > { %11826 = vmatprep.mubr.msk.f32.mxu0 %vm2651_vm1, %v15731_v53 }
 0x2cf   : > { %11454 = vmatmul.mubr.msk.f32.gmra.mrb[162].mxu1 %vm2651_vm1, %v15732_v62  ;;  %v15764_v62 = vld [vmem:[#allocation42_spill] sm:$0xff] }
 0x2d0   : > { %11456 = vmatprep.mubr.msk.f32.mxu1 %vm2651_vm1, %v15733_v10  ;;  %11827 = vmatmul.mubr.msk.f32.gmra.mrb[100].mxu0 %vm2651_vm1, %v15734_v40  ;;  %v15765_v10 = vld [vmem:[#allocation45_spill] sm:$0xff] }
 0x2d1   : > { %11829 = vmatprep.mubr.msk.f32.mxu0 %vm2651_vm1, %v15735_v24 }
 0x2d3   : > { %11457 = vmatmul.mubr.msk.f32.gmra.mrb[164].mxu1 %vm2651_vm1, %v15736_v17  ;;  %v15766_v17 = vld [vmem:[#allocation51_spill] sm:$0xff] }
 0x2d4   : > { %11459 = vmatprep.mubr.msk.f32.mxu1 %vm2651_vm1, %v15737_v22  ;;  %11830 = vmatmul.mubr.msk.f32.gmra.mrb[102].mxu0 %vm2651_vm1, %v15738_v43  ;;  %v15767_v22 = vld [vmem:[#allocation52_spill] sm:$0xff] }
 0x2d5   : > { %11832 = vmatprep.mubr.msk.f32.mxu0 %vm2651_vm1, %v15739_v9 }
 0x2d7   : > { %11460 = vmatmul.mubr.msk.f32.gmra.mrb[166].mxu1 %vm2651_vm1, %v15740_v27  ;;  %v15768_v27 = vld [vmem:[#allocation46_spill] sm:$0xff] }
 0x2d8   : > { %11462 = vmatprep.mubr.msk.f32.mxu1 %vm2651_vm1, %v15741_v25  ;;  %11833 = vmatmul.mubr.msk.f32.gmra.mrb[104].mxu0 %vm2651_vm1, %v15742_v42  ;;  %v15769_v25 = vld [vmem:[#allocation49_spill] sm:$0xff] }
 0x2d9   : > { %11835 = vmatprep.mubr.msk.f32.mxu0 %vm2651_vm1, %v15743_v20 }
 0x2db   : > { %11463 = vmatmul.mubr.msk.f32.gmra.mrb[168].mxu1 %vm2651_vm1, %v15744_v47  ;;  %v15770_v47 = vld [vmem:[#allocation55_spill] sm:$0xff] }
 0x2dc   : > { %11465 = vmatprep.mubr.msk.f32.mxu1 %vm2651_vm1, %v15745_v54  ;;  %11836 = vmatmul.mubr.msk.f32.gmra.mrb[106].mxu0 %vm2651_vm1, %v15746_v51  ;;  %v15771_v54 = vld [vmem:[#allocation56_spill] sm:$0xff] }
 0x2dd   : > { %11838 = vmatprep.mubr.msk.f32.mxu0 %vm2651_vm1, %v15747_v14 }
 0x2df   : > { %11466 = vmatmul.mubr.msk.f32.gmra.mrb[170].mxu1 %vm2651_vm1, %v15748_v4  ;;  %v15772_v4 = vld [vmem:[#allocation50_spill] sm:$0xff] }
 0x2e0   : > { %11468 = vmatprep.mubr.msk.f32.mxu1 %vm2651_vm1, %v15749_v3  ;;  %11839 = vmatmul.mubr.msk.f32.gmra.mrb[108].mxu0 %vm2651_vm1, %v15750_v36  ;;  %v15773_v3 = vld [vmem:[#allocation53_spill] sm:$0xff] }
 0x2e1   : > { %11841 = vmatprep.mubr.msk.f32.mxu0 %vm2651_vm1, %v15751_v18 }
 0x2e3   : > { %11469 = vmatmul.mubr.msk.f32.gmra.mrb[172].mxu1 %vm2651_vm1, %v15752_v48  ;;  %v15774_v48 = vld [vmem:[#allocation59_spill] sm:$0xff] }
 0x2e4   : > { %11471 = vmatprep.mubr.msk.f32.mxu1 %vm2651_vm1, %v15753_v35  ;;  %11842 = vmatmul.mubr.msk.f32.gmra.mrb[110].mxu0 %vm2651_vm1, %v15754_v0  ;;  %v15775_v35 = vld [vmem:[#allocation60_spill] sm:$0xff] }
 0x2e5   : > { %11844 = vmatprep.mubr.msk.f32.mxu0 %vm2651_vm1, %v15755_v13 }
 0x2e7   : > { %11472 = vmatmul.mubr.msk.f32.gmra.mrb[174].mxu1 %vm2651_vm1, %v15756_v58  ;;  %v15776_v58 = vld [vmem:[#allocation54_spill] sm:$0xff] }
 0x2e8   : > { %11474 = vmatprep.mubr.msk.f32.mxu1 %vm2651_vm1, %v15757_v32  ;;  %11845 = vmatmul.mubr.msk.f32.gmra.mrb[112].mxu0 %vm2651_vm1, %v15758_v39  ;;  %v15777_v32 = vld [vmem:[#allocation57_spill] sm:$0xff] }
 0x2e9   : > { %11847 = vmatprep.mubr.msk.f32.mxu0 %vm2651_vm1, %v15759_v37 }
 0x2eb   : > { %11475 = vmatmul.mubr.msk.f32.gmra.mrb[176].mxu1 %vm2651_vm1, %v15760_v12  ;;  %v15778_v12 = vld [vmem:[#allocation63_spill] sm:$0xff] }
 0x2ec   : > { %11477 = vmatprep.mubr.msk.f32.mxu1 %vm2651_vm1, %v15761_v49  ;;  %11848 = vmatmul.mubr.msk.f32.gmra.mrb[114].mxu0 %vm2651_vm1, %v15762_v23  ;;  %v14901_v49 = vld [vmem:[#allocation2 + $0x1e7] sm:$0xff] }
 0x2ed   : > { %11850 = vmatprep.mubr.msk.f32.mxu0 %vm2651_vm1, %v15763_v60 }
 0x2ef   : > { %11478 = vmatmul.mubr.msk.f32.gmra.mrb[178].mxu1 %vm2651_vm1, %v15764_v62  ;;  %v15779_v62 = vld [vmem:[#allocation58_spill] sm:$0xff] }
 0x2f0   : > { %11480 = vmatprep.mubr.msk.f32.mxu1 %vm2651_vm1, %v15765_v10  ;;  %11851 = vmatmul.mubr.msk.f32.gmra.mrb[116].mxu0 %vm2651_vm1, %v15766_v17  ;;  %v14907_v10 = vld [vmem:[#allocation2 + $0x1ef] sm:$0xff] }
 0x2f1   : > { %11853 = vmatprep.mubr.msk.f32.mxu0 %vm2651_vm1, %v15767_v22  ;;  %15780 = vst [vmem:[#allocation15_spill] sm:$0xff] %v14907_v10 }
 0x2f3   : > { %11481 = vmatmul.mubr.msk.f32.gmra.mrb[180].mxu1 %vm2651_vm1, %v15768_v27  ;;  %v15781_v27 = vld [vmem:[#allocation61_spill] sm:$0xff] }
 0x2f4   : > { %11483 = vmatprep.mubr.msk.f32.mxu1 %vm2651_vm1, %v15769_v25  ;;  %11854 = vmatmul.mubr.msk.f32.gmra.mrb[118].mxu0 %vm2651_vm1, %v15770_v47  ;;  %v14913_v25 = vld [vmem:[#allocation2 + $0x1f7] sm:$0xff] }
 0x2f5   : > { %11856 = vmatprep.mubr.msk.f32.mxu0 %vm2651_vm1, %v15771_v54  ;;  %15782 = vst [vmem:[#allocation19_spill] sm:$0xff] %v14913_v25 }
 0x2f7   : > { %11484 = vmatmul.mubr.msk.f32.gmra.mrb[182].mxu1 %vm2651_vm1, %v15772_v4  ;;  %v6728_v4 = vld [vmem:[#allocation2 + $0x1ff] sm:$0xff] }
 0x2f8   : > { %11486 = vmatprep.mubr.msk.f32.mxu1 %vm2651_vm1, %v15773_v3  ;;  %11857 = vmatmul.mubr.msk.f32.gmra.mrb[120].mxu0 %vm2651_vm1, %v15774_v48  ;;  %v6729_v3 = vld [vmem:[#allocation2 + $0x207] sm:$0xff] }
 0x2f9   : > { %11859 = vmatprep.mubr.msk.f32.mxu0 %vm2651_vm1, %v15775_v35 }
 0x2fb   : > { %11487 = vmatmul.mubr.msk.f32.gmra.mrb[184].mxu1 %vm2651_vm1, %v15776_v58  ;;  %v15783_v58 = vld [vmem:[#allocation62_spill] sm:$0xff] }
 0x2fc   : > { %11489 = vmatprep.mubr.msk.f32.mxu1 %vm2651_vm1, %v15777_v32  ;;  %11860 = vmatmul.mubr.msk.f32.gmra.mrb[122].mxu0 %vm2651_vm1, %v15778_v12  ;;  %v15784_v32 = vld [vmem:[#allocation12_spill] sm:$0xff] }
 0x2fd   : > { %11862 = vmatprep.mubr.msk.f32.mxu0 %vm2651_vm1, %v14901_v49 }
 0x2ff   : > { %11490 = vmatmul.mubr.msk.f32.gmra.mrb[186].mxu1 %vm2651_vm1, %v15779_v62  ;;  %v6730_v62 = vld [vmem:[#allocation2 + $0x20f] sm:$0xff] }
 0x300   : > { %11492 = vmatprep.mubr.msk.f32.mxu1 %vm2651_vm1, %v15781_v27  ;;  %11863 = vmatmul.mubr.msk.f32.gmra.mrb[124].mxu0 %vm2651_vm1, %v14907_v10  ;;  %v15785_v27 = vld [vmem:[#allocation13_spill] sm:$0xff]  ;;  %v15786_v10 = vld [vmem:[#allocation14_spill] sm:$0xff] }
 0x301   : > { %11865 = vmatprep.mubr.msk.f32.mxu0 %vm2651_vm1, %v14913_v25  ;;  %v7336_v25 = vld [vmem:[#allocation2 + $0x38] sm:$0xff] }
 0x303   : > { %11493 = vmatmul.mubr.msk.f32.gmra.mrb[188].mxu1 %vm2651_vm1, %v15783_v58  ;;  %v7337_v58 = vld [vmem:[#allocation2 + $0x40] sm:$0xff] }
 0x304   : > { %11499 = vmatprep.mubr.msk.f32.mxu1 %vm2651_vm1, %v15784_v32  ;;  %11866 = vmatmul.mubr.msk.f32.gmra.mrb[126].mxu0 %vm2651_vm1, %v6728_v4  ;;  %v7338_v4 = vld [vmem:[#allocation2 + $0x48] sm:$0xff]  ;;  %v7395_v32 = vld [vmem:[#allocation2 + $0x210] sm:$0xff] }
 0x305   : > { %11868 = vmatprep.mubr.msk.f32.mxu0 %vm2651_vm1, %v6729_v3  ;;  %v7394_v3 = vld [vmem:[#allocation2 + $0x208] sm:$0xff] }
 0x307   : > { %11500 = vmatmul.mubr.msk.f32.vlgmr.msra.gmra.mrb[130].mxu1 %vm2651_vm1, %v15785_v27  ;;  %v8003_v27 = vld [vmem:[#allocation2 + $0x49] sm:$0xff] }
 0x308   : > { %11502 = vmatprep.mubr.msk.f32.mxu1 %vm2651_vm1, %v15786_v10  ;;  %11869 = vmatmul.mubr.msk.f32.gmra.mrb[128].mxu0 %vm2651_vm1, %v6730_v62  ;;  %v7339_v10 = vld [vmem:[#allocation2 + $0x50] sm:$0xff]  ;;  %v8002_v62 = vld [vmem:[#allocation2 + $0x41] sm:$0xff] }
 0x309   : > { %11875 = vmatprep.mubr.msk.f32.mxu0 %vm2651_vm1, %v7336_v25  ;;  %v7392_v25 = vld [vmem:[#allocation2 + $0x1f8] sm:$0xff] }
 0x30b   : > { %11503 = vmatmul.mubr.msk.f32.gmra.mrb[132].mxu1 %vm2651_vm1, %v14231_v61  ;;  %v7340_v61 = vld [vmem:[#allocation2 + $0x58] sm:$0xff] }
 0x30c   : > { %11505 = vmatprep.mubr.msk.f32.mxu1 %vm2651_vm1, %v14243_v16  ;;  %11876 = vmatmul.mubr.msk.f32.vlgmr.msra.gmra.mrb[70].mxu0 %vm2651_vm1, %v7337_v58  ;;  %v7341_v16 = vld [vmem:[#allocation2 + $0x60] sm:$0xff]  ;;  %v8004_v58 = vld [vmem:[#allocation2 + $0x51] sm:$0xff] }
 0x30d   : > { %11878 = vmatprep.mubr.msk.f32.mxu0 %vm2651_vm1, %v7338_v4  ;;  %12158 = vmatpush3.bf16.msra.mxu0 %v14683_v57  ;;  %v7342_v57 = vld [vmem:[#allocation2 + $0x68] sm:$0xff]  ;;  %v8005_v4 = vld [vmem:[#allocation2 + $0x59] sm:$0xff] }
 0x30f   : > { %11506 = vmatmul.mubr.msk.f32.gmra.mrb[134].mxu1 %vm2651_vm1, %v14247_v44  ;;  %v7343_v44 = vld [vmem:[#allocation2 + $0x70] sm:$0xff] }
 0x310   : > { %11508 = vmatprep.mubr.msk.f32.mxu1 %vm2651_vm1, %v14259_v45  ;;  %11879 = vmatmul.mubr.msk.f32.gmra.mrb[72].mxu0 %vm2651_vm1, %v7339_v10  ;;  %v7344_v45 = vld [vmem:[#allocation2 + $0x78] sm:$0xff]  ;;  %v8006_v10 = vld [vmem:[#allocation2 + $0x61] sm:$0xff] }
 0x311   : > { %11881 = vmatprep.mubr.msk.f32.mxu0 %vm2651_vm1, %v7340_v61  ;;  %v8007_v61 = vld [vmem:[#allocation2 + $0x69] sm:$0xff] }
 0x313   : > { %11509 = vmatmul.mubr.msk.f32.gmra.mrb[136].mxu1 %vm2651_vm1, %v14263_v1  ;;  %v7345_v1 = vld [vmem:[#allocation2 + $0x80] sm:$0xff] }
 0x314   : > { %11511 = vmatprep.mubr.msk.f32.mxu1 %vm2651_vm1, %v14275_v52  ;;  %11882 = vmatmul.mubr.msk.f32.gmra.mrb[74].mxu0 %vm2651_vm1, %v7341_v16  ;;  %v7346_v52 = vld [vmem:[#allocation2 + $0x88] sm:$0xff]  ;;  %v8008_v16 = vld [vmem:[#allocation2 + $0x71] sm:$0xff] }
 0x315   : > { %11884 = vmatprep.mubr.msk.f32.mxu0 %vm2651_vm1, %v7342_v57  ;;  %v8009_v57 = vld [vmem:[#allocation2 + $0x79] sm:$0xff] }
 0x317   : > { %11512 = vmatmul.mubr.msk.f32.gmra.mrb[138].mxu1 %vm2651_vm1, %v14279_v6  ;;  %v7347_v6 = vld [vmem:[#allocation2 + $0x90] sm:$0xff] }
 0x318   : > { %11514 = vmatprep.mubr.msk.f32.mxu1 %vm2651_vm1, %v14291_v8  ;;  %11885 = vmatmul.mubr.msk.f32.gmra.mrb[76].mxu0 %vm2651_vm1, %v7343_v44  ;;  %v7348_v8 = vld [vmem:[#allocation2 + $0x98] sm:$0xff]  ;;  %v8010_v44 = vld [vmem:[#allocation2 + $0x81] sm:$0xff] }
 0x319   : > { %11887 = vmatprep.mubr.msk.f32.mxu0 %vm2651_vm1, %v7344_v45  ;;  %v8011_v45 = vld [vmem:[#allocation2 + $0x89] sm:$0xff] }
 0x31b   : > { %11515 = vmatmul.mubr.msk.f32.gmra.mrb[140].mxu1 %vm2651_vm1, %v14295_v19  ;;  %v7349_v19 = vld [vmem:[#allocation2 + $0xa0] sm:$0xff] }
 0x31c   : > { %11517 = vmatprep.mubr.msk.f32.mxu1 %vm2651_vm1, %v14307_v30  ;;  %11888 = vmatmul.mubr.msk.f32.gmra.mrb[78].mxu0 %vm2651_vm1, %v7345_v1  ;;  %v7350_v30 = vld [vmem:[#allocation2 + $0xa8] sm:$0xff]  ;;  %v8012_v1 = vld [vmem:[#allocation2 + $0x91] sm:$0xff] }
 0x31d   : > { %11890 = vmatprep.mubr.msk.f32.mxu0 %vm2651_vm1, %v7346_v52  ;;  %v8013_v52 = vld [vmem:[#allocation2 + $0x99] sm:$0xff] }
 0x31f   : > { %11518 = vmatmul.mubr.msk.f32.gmra.mrb[142].mxu1 %vm2651_vm1, %v14311_v46  ;;  %v7351_v46 = vld [vmem:[#allocation2 + $0xb0] sm:$0xff] }
 0x320   : > { %11520 = vmatprep.mubr.msk.f32.mxu1 %vm2651_vm1, %v14323_v29  ;;  %11891 = vmatmul.mubr.msk.f32.gmra.mrb[80].mxu0 %vm2651_vm1, %v7347_v6  ;;  %v7352_v29 = vld [vmem:[#allocation2 + $0xb8] sm:$0xff]  ;;  %v8014_v6 = vld [vmem:[#allocation2 + $0xa1] sm:$0xff] }
 0x321   : > { %11893 = vmatprep.mubr.msk.f32.mxu0 %vm2651_vm1, %v7348_v8  ;;  %v8015_v8 = vld [vmem:[#allocation2 + $0xa9] sm:$0xff] }
 0x323   : > { %11521 = vmatmul.mubr.msk.f32.gmra.mrb[144].mxu1 %vm2651_vm1, %v14327_v50  ;;  %v7353_v50 = vld [vmem:[#allocation2 + $0xc0] sm:$0xff] }
 0x324   : > { %11523 = vmatprep.mubr.msk.f32.mxu1 %vm2651_vm1, %v14339_v34  ;;  %11894 = vmatmul.mubr.msk.f32.gmra.mrb[82].mxu0 %vm2651_vm1, %v7349_v19  ;;  %v7354_v34 = vld [vmem:[#allocation2 + $0xc8] sm:$0xff]  ;;  %v8016_v19 = vld [vmem:[#allocation2 + $0xb1] sm:$0xff] }
 0x325   : > { %11896 = vmatprep.mubr.msk.f32.mxu0 %vm2651_vm1, %v7350_v30  ;;  %v8017_v30 = vld [vmem:[#allocation2 + $0xb9] sm:$0xff] }
 0x327   : > { %11524 = vmatmul.mubr.msk.f32.gmra.mrb[146].mxu1 %vm2651_vm1, %v14343_v11  ;;  %v7355_v11 = vld [vmem:[#allocation2 + $0xd0] sm:$0xff] }
 0x328   : > { %11526 = vmatprep.mubr.msk.f32.mxu1 %vm2651_vm1, %v14355_v63  ;;  %11897 = vmatmul.mubr.msk.f32.gmra.mrb[84].mxu0 %vm2651_vm1, %v7351_v46  ;;  %v7356_v63 = vld [vmem:[#allocation2 + $0xd8] sm:$0xff]  ;;  %v8018_v46 = vld [vmem:[#allocation2 + $0xc1] sm:$0xff] }
 0x329   : > { %11899 = vmatprep.mubr.msk.f32.mxu0 %vm2651_vm1, %v7352_v29  ;;  %v8019_v29 = vld [vmem:[#allocation2 + $0xc9] sm:$0xff] }
 0x32b   : > { %11527 = vmatmul.mubr.msk.f32.gmra.mrb[148].mxu1 %vm2651_vm1, %v14359_v15  ;;  %v7357_v15 = vld [vmem:[#allocation2 + $0xe0] sm:$0xff] }
 0x32c   : > { %11529 = vmatprep.mubr.msk.f32.mxu1 %vm2651_vm1, %v14371_v31  ;;  %11900 = vmatmul.mubr.msk.f32.gmra.mrb[86].mxu0 %vm2651_vm1, %v7353_v50  ;;  %v7358_v31 = vld [vmem:[#allocation2 + $0xe8] sm:$0xff]  ;;  %v8020_v50 = vld [vmem:[#allocation2 + $0xd1] sm:$0xff] }
 0x32d   : > { %11902 = vmatprep.mubr.msk.f32.mxu0 %vm2651_vm1, %v7354_v34  ;;  %v8021_v34 = vld [vmem:[#allocation2 + $0xd9] sm:$0xff] }
 0x32f   : > { %11530 = vmatmul.mubr.msk.f32.gmra.mrb[150].mxu1 %vm2651_vm1, %v14375_v33  ;;  %v7359_v33 = vld [vmem:[#allocation2 + $0xf0] sm:$0xff] }
 0x330   : > { %11532 = vmatprep.mubr.msk.f32.mxu1 %vm2651_vm1, %v14387_v2  ;;  %11903 = vmatmul.mubr.msk.f32.gmra.mrb[88].mxu0 %vm2651_vm1, %v7355_v11  ;;  %v7360_v2 = vld [vmem:[#allocation2 + $0xf8] sm:$0xff]  ;;  %v8022_v11 = vld [vmem:[#allocation2 + $0xe1] sm:$0xff] }
 0x331   : > { %11905 = vmatprep.mubr.msk.f32.mxu0 %vm2651_vm1, %v7356_v63  ;;  %v8023_v63 = vld [vmem:[#allocation2 + $0xe9] sm:$0xff] }
 0x333   : > { %11533 = vmatmul.mubr.msk.f32.gmra.mrb[152].mxu1 %vm2651_vm1, %v14391_v7  ;;  %v7361_v7 = vld [vmem:[#allocation2 + $0x100] sm:$0xff] }
 0x334   : > { %11535 = vmatprep.mubr.msk.f32.mxu1 %vm2651_vm1, %v14403_v21  ;;  %11906 = vmatmul.mubr.msk.f32.gmra.mrb[90].mxu0 %vm2651_vm1, %v7357_v15  ;;  %v7362_v21 = vld [vmem:[#allocation2 + $0x108] sm:$0xff]  ;;  %v8024_v15 = vld [vmem:[#allocation2 + $0xf1] sm:$0xff] }
 0x335   : > { %11908 = vmatprep.mubr.msk.f32.mxu0 %vm2651_vm1, %v7358_v31  ;;  %v8025_v31 = vld [vmem:[#allocation2 + $0xf9] sm:$0xff] }
 0x337   : > { %11536 = vmatmul.mubr.msk.f32.gmra.mrb[154].mxu1 %vm2651_vm1, %v14407_v55  ;;  %v7363_v55 = vld [vmem:[#allocation2 + $0x110] sm:$0xff] }
 0x338   : > { %11538 = vmatprep.mubr.msk.f32.mxu1 %vm2651_vm1, %v14419_v28  ;;  %11909 = vmatmul.mubr.msk.f32.gmra.mrb[92].mxu0 %vm2651_vm1, %v7359_v33  ;;  %v7364_v28 = vld [vmem:[#allocation2 + $0x118] sm:$0xff]  ;;  %v8026_v33 = vld [vmem:[#allocation2 + $0x101] sm:$0xff] }
 0x339   : > { %11911 = vmatprep.mubr.msk.f32.mxu0 %vm2651_vm1, %v7360_v2  ;;  %v8027_v2 = vld [vmem:[#allocation2 + $0x109] sm:$0xff] }
 0x33b   : > { %11539 = vmatmul.mubr.msk.f32.gmra.mrb[156].mxu1 %vm2651_vm1, %v14423_v56  ;;  %v7365_v56 = vld [vmem:[#allocation2 + $0x120] sm:$0xff] }
 0x33c   : > { %11541 = vmatprep.mubr.msk.f32.mxu1 %vm2651_vm1, %v14435_v38  ;;  %11912 = vmatmul.mubr.msk.f32.gmra.mrb[94].mxu0 %vm2651_vm1, %v7361_v7  ;;  %v7366_v38 = vld [vmem:[#allocation2 + $0x128] sm:$0xff]  ;;  %v8028_v7 = vld [vmem:[#allocation2 + $0x111] sm:$0xff] }
 0x33d   : > { %11914 = vmatprep.mubr.msk.f32.mxu0 %vm2651_vm1, %v7362_v21  ;;  %v8029_v21 = vld [vmem:[#allocation2 + $0x119] sm:$0xff] }
 0x33f   : > { %11542 = vmatmul.mubr.msk.f32.gmra.mrb[158].mxu1 %vm2651_vm1, %v14439_v26  ;;  %v7367_v26 = vld [vmem:[#allocation2 + $0x130] sm:$0xff] }
 0x340   : > { %11544 = vmatprep.mubr.msk.f32.mxu1 %vm2651_vm1, %v15726_v41  ;;  %11915 = vmatmul.mubr.msk.f32.gmra.mrb[96].mxu0 %vm2651_vm1, %v7363_v55  ;;  %v7368_v41 = vld [vmem:[#allocation2 + $0x138] sm:$0xff]  ;;  %v8030_v55 = vld [vmem:[#allocation2 + $0x121] sm:$0xff] }
 0x341   : > { %11917 = vmatprep.mubr.msk.f32.mxu0 %vm2651_vm1, %v7364_v28  ;;  %v8031_v28 = vld [vmem:[#allocation2 + $0x129] sm:$0xff] }
 0x343   : > { %11545 = vmatmul.mubr.msk.f32.gmra.mrb[160].mxu1 %vm2651_vm1, %v15727_v59  ;;  %v7369_v59 = vld [vmem:[#allocation2 + $0x140] sm:$0xff] }
 0x344   : > { %11547 = vmatprep.mubr.msk.f32.mxu1 %vm2651_vm1, %v15730_v5  ;;  %11918 = vmatmul.mubr.msk.f32.gmra.mrb[98].mxu0 %vm2651_vm1, %v7365_v56  ;;  %v7370_v5 = vld [vmem:[#allocation2 + $0x148] sm:$0xff]  ;;  %v8032_v56 = vld [vmem:[#allocation2 + $0x131] sm:$0xff] }
 0x345   : > { %11920 = vmatprep.mubr.msk.f32.mxu0 %vm2651_vm1, %v7366_v38  ;;  %v8033_v38 = vld [vmem:[#allocation2 + $0x139] sm:$0xff] }
 0x347   : > { %11548 = vmatmul.mubr.msk.f32.gmra.mrb[162].mxu1 %vm2651_vm1, %v15731_v53  ;;  %v7371_v53 = vld [vmem:[#allocation2 + $0x150] sm:$0xff] }
 0x348   : > { %11550 = vmatprep.mubr.msk.f32.mxu1 %vm2651_vm1, %v15734_v40  ;;  %11921 = vmatmul.mubr.msk.f32.gmra.mrb[100].mxu0 %vm2651_vm1, %v7367_v26  ;;  %v7372_v40 = vld [vmem:[#allocation2 + $0x158] sm:$0xff]  ;;  %v8034_v26 = vld [vmem:[#allocation2 + $0x141] sm:$0xff] }
 0x349   : > { %11923 = vmatprep.mubr.msk.f32.mxu0 %vm2651_vm1, %v7368_v41  ;;  %v8035_v41 = vld [vmem:[#allocation2 + $0x149] sm:$0xff] }
 0x34b   : > { %11551 = vmatmul.mubr.msk.f32.gmra.mrb[164].mxu1 %vm2651_vm1, %v15735_v24  ;;  %v7373_v24 = vld [vmem:[#allocation2 + $0x160] sm:$0xff] }
 0x34c   : > { %11553 = vmatprep.mubr.msk.f32.mxu1 %vm2651_vm1, %v15738_v43  ;;  %11924 = vmatmul.mubr.msk.f32.gmra.mrb[102].mxu0 %vm2651_vm1, %v7369_v59  ;;  %v7374_v43 = vld [vmem:[#allocation2 + $0x168] sm:$0xff]  ;;  %v8036_v59 = vld [vmem:[#allocation2 + $0x151] sm:$0xff] }
 0x34d   : > { %11926 = vmatprep.mubr.msk.f32.mxu0 %vm2651_vm1, %v7370_v5  ;;  %v8037_v5 = vld [vmem:[#allocation2 + $0x159] sm:$0xff] }
 0x34f   : > { %11554 = vmatmul.mubr.msk.f32.gmra.mrb[166].mxu1 %vm2651_vm1, %v15739_v9  ;;  %v7375_v9 = vld [vmem:[#allocation2 + $0x170] sm:$0xff] }
 0x350   : > { %11556 = vmatprep.mubr.msk.f32.mxu1 %vm2651_vm1, %v15742_v42  ;;  %11927 = vmatmul.mubr.msk.f32.gmra.mrb[104].mxu0 %vm2651_vm1, %v7371_v53  ;;  %v7376_v42 = vld [vmem:[#allocation2 + $0x178] sm:$0xff]  ;;  %v8038_v53 = vld [vmem:[#allocation2 + $0x161] sm:$0xff] }
 0x351   : > { %11929 = vmatprep.mubr.msk.f32.mxu0 %vm2651_vm1, %v7372_v40  ;;  %v8039_v40 = vld [vmem:[#allocation2 + $0x169] sm:$0xff] }
 0x353   : > { %11557 = vmatmul.mubr.msk.f32.gmra.mrb[168].mxu1 %vm2651_vm1, %v15743_v20  ;;  %v7377_v20 = vld [vmem:[#allocation2 + $0x180] sm:$0xff] }
 0x354   : > { %11559 = vmatprep.mubr.msk.f32.mxu1 %vm2651_vm1, %v15746_v51  ;;  %11930 = vmatmul.mubr.msk.f32.gmra.mrb[106].mxu0 %vm2651_vm1, %v7373_v24  ;;  %v7378_v51 = vld [vmem:[#allocation2 + $0x188] sm:$0xff]  ;;  %v8040_v24 = vld [vmem:[#allocation2 + $0x171] sm:$0xff] }
 0x355   : > { %11932 = vmatprep.mubr.msk.f32.mxu0 %vm2651_vm1, %v7374_v43  ;;  %v8041_v43 = vld [vmem:[#allocation2 + $0x179] sm:$0xff] }
 0x357   : > { %11560 = vmatmul.mubr.msk.f32.gmra.mrb[170].mxu1 %vm2651_vm1, %v15747_v14  ;;  %v7379_v14 = vld [vmem:[#allocation2 + $0x190] sm:$0xff] }
 0x358   : > { %11562 = vmatprep.mubr.msk.f32.mxu1 %vm2651_vm1, %v15750_v36  ;;  %11933 = vmatmul.mubr.msk.f32.gmra.mrb[108].mxu0 %vm2651_vm1, %v7375_v9  ;;  %v7380_v36 = vld [vmem:[#allocation2 + $0x198] sm:$0xff]  ;;  %v8042_v9 = vld [vmem:[#allocation2 + $0x181] sm:$0xff] }
 0x359   : > { %11935 = vmatprep.mubr.msk.f32.mxu0 %vm2651_vm1, %v7376_v42  ;;  %v8043_v42 = vld [vmem:[#allocation2 + $0x189] sm:$0xff] }
 0x35b   : > { %11563 = vmatmul.mubr.msk.f32.gmra.mrb[172].mxu1 %vm2651_vm1, %v15751_v18  ;;  %v7381_v18 = vld [vmem:[#allocation2 + $0x1a0] sm:$0xff] }
 0x35c   : > { %11565 = vmatprep.mubr.msk.f32.mxu1 %vm2651_vm1, %v15754_v0  ;;  %11936 = vmatmul.mubr.msk.f32.gmra.mrb[110].mxu0 %vm2651_vm1, %v7377_v20  ;;  %v7382_v0 = vld [vmem:[#allocation2 + $0x1a8] sm:$0xff]  ;;  %v8044_v20 = vld [vmem:[#allocation2 + $0x191] sm:$0xff] }
 0x35d   : > { %11938 = vmatprep.mubr.msk.f32.mxu0 %vm2651_vm1, %v7378_v51  ;;  %v8045_v51 = vld [vmem:[#allocation2 + $0x199] sm:$0xff] }
 0x35f   : > { %11566 = vmatmul.mubr.msk.f32.gmra.mrb[174].mxu1 %vm2651_vm1, %v15755_v13  ;;  %v7383_v13 = vld [vmem:[#allocation2 + $0x1b0] sm:$0xff] }
 0x360   : > { %11568 = vmatprep.mubr.msk.f32.mxu1 %vm2651_vm1, %v15758_v39  ;;  %11939 = vmatmul.mubr.msk.f32.gmra.mrb[112].mxu0 %vm2651_vm1, %v7379_v14  ;;  %v7384_v39 = vld [vmem:[#allocation2 + $0x1b8] sm:$0xff] }
 0x361   : > { %11941 = vmatprep.mubr.msk.f32.mxu0 %vm2651_vm1, %v7380_v36 }
 0x363   : > { %11569 = vmatmul.mubr.msk.f32.gmra.mrb[176].mxu1 %vm2651_vm1, %v15759_v37  ;;  %v7385_v37 = vld [vmem:[#allocation2 + $0x1c0] sm:$0xff] }
 0x364   : > { %11571 = vmatprep.mubr.msk.f32.mxu1 %vm2651_vm1, %v15762_v23  ;;  %11942 = vmatmul.mubr.msk.f32.gmra.mrb[114].mxu0 %vm2651_vm1, %v7381_v18  ;;  %v7386_v23 = vld [vmem:[#allocation2 + $0x1c8] sm:$0xff] }
 0x365   : > { %11944 = vmatprep.mubr.msk.f32.mxu0 %vm2651_vm1, %v7382_v0  ;;  %v8046_v18 = vld [vmem:[#allocation2 + $0x1a1] sm:$0xff]  ;;  %v8047_v0 = vld [vmem:[#allocation2 + $0x1a9] sm:$0xff] }
 0x367   : > { %11572 = vmatmul.mubr.msk.f32.gmra.mrb[178].mxu1 %vm2651_vm1, %v15763_v60  ;;  %v7387_v60 = vld [vmem:[#allocation2 + $0x1d0] sm:$0xff] }
 0x368   : > { %11574 = vmatprep.mubr.msk.f32.mxu1 %vm2651_vm1, %v15766_v17  ;;  %11945 = vmatmul.mubr.msk.f32.gmra.mrb[116].mxu0 %vm2651_vm1, %v7383_v13  ;;  %v7388_v17 = vld [vmem:[#allocation2 + $0x1d8] sm:$0xff] }
 0x369   : > { %11947 = vmatprep.mubr.msk.f32.mxu0 %vm2651_vm1, %v7384_v39 }
 0x36b   : > { %11575 = vmatmul.mubr.msk.f32.gmra.mrb[180].mxu1 %vm2651_vm1, %v15767_v22  ;;  %v7389_v22 = vld [vmem:[#allocation2 + $0x1e0] sm:$0xff] }
 0x36c   : > { %11577 = vmatprep.mubr.msk.f32.mxu1 %vm2651_vm1, %v15770_v47  ;;  %11948 = vmatmul.mubr.msk.f32.gmra.mrb[118].mxu0 %vm2651_vm1, %v7385_v37  ;;  %v7390_v47 = vld [vmem:[#allocation2 + $0x1e8] sm:$0xff]  ;;  %v8048_v37 = vld [vmem:[#allocation2 + $0x1b1] sm:$0xff] }
 0x36d   : > { %11950 = vmatprep.mubr.msk.f32.mxu0 %vm2651_vm1, %v7386_v23  ;;  %v8049_v23 = vld [vmem:[#allocation2 + $0x1b9] sm:$0xff] }
 0x36f   : > { %11578 = vmatmul.mubr.msk.f32.gmra.mrb[182].mxu1 %vm2651_vm1, %v15771_v54  ;;  %v7391_v54 = vld [vmem:[#allocation2 + $0x1f0] sm:$0xff] }
 0x370   : > { %11580 = vmatprep.mubr.msk.f32.mxu1 %vm2651_vm1, %v15774_v48  ;;  %11951 = vmatmul.mubr.msk.f32.gmra.mrb[120].mxu0 %vm2651_vm1, %v7387_v60  ;;  %v15787_v48 = vld [vmem:[#allocation15_spill] sm:$0xff] }
 0x371   : > { %11953 = vmatprep.mubr.msk.f32.mxu0 %vm2651_vm1, %v7388_v17 }
 0x373   : > { %11581 = vmatmul.mubr.msk.f32.gmra.mrb[184].mxu1 %vm2651_vm1, %v15775_v35  ;;  %v7393_v35 = vld [vmem:[#allocation2 + $0x200] sm:$0xff] }
 0x374   : > { %11583 = vmatprep.mubr.msk.f32.mxu1 %vm2651_vm1, %v15778_v12  ;;  %11954 = vmatmul.mubr.msk.f32.gmra.mrb[122].mxu0 %vm2651_vm1, %v7389_v22  ;;  %v15788_v12 = vld [vmem:[#allocation19_spill] sm:$0xff] }
 0x375   : > { %11956 = vmatprep.mubr.msk.f32.mxu0 %vm2651_vm1, %v7390_v47  ;;  %v8050_v22 = vld [vmem:[#allocation2 + $0x1c1] sm:$0xff]  ;;  %v8051_v47 = vld [vmem:[#allocation2 + $0x1c9] sm:$0xff] }
 0x377   : > { %11584 = vmatmul.mubr.msk.f32.gmra.mrb[186].mxu1 %vm2651_vm1, %v14901_v49  ;;  %v8001_v49 = vld [vmem:[#allocation2 + $0x39] sm:$0xff] }
 0x378   : > { %11586 = vmatprep.mubr.msk.f32.mxu1 %vm2651_vm1, %v15787_v48  ;;  %11957 = vmatmul.mubr.msk.f32.gmra.mrb[124].mxu0 %vm2651_vm1, %v7391_v54 }
 0x379   : > { %11959 = vmatprep.mubr.msk.f32.mxu0 %vm2651_vm1, %v7392_v25  ;;  %v8052_v25 = vld [vmem:[#allocation2 + $0x1d1] sm:$0xff] }
 0x37b   : > { %11587 = vmatmul.mubr.msk.f32.gmra.mrb[188].mxu1 %vm2651_vm1, %v15788_v12 }
 0x37c   : > { %11960 = vmatmul.mubr.msk.f32.gmra.mrb[126].mxu0 %vm2651_vm1, %v7393_v35  ;;  %v8053_v35 = vld [vmem:[#allocation2 + $0x1d9] sm:$0xff] }
 0x37d   : > { %11962 = vmatprep.mubr.msk.f32.mxu0 %vm2651_vm1, %v7394_v3 }
 0x380   : > { %11963 = vmatmul.mubr.msk.f32.gmra.mrb[128].mxu0 %vm2651_vm1, %v7395_v32  ;;  %v8054_v32 = vld [vmem:[#allocation2 + $0x1e1] sm:$0xff] }
 0x381   : > { %11969 = vmatprep.mubr.msk.f32.mxu0 %vm2651_vm1, %v8001_v49  ;;  %v8055_v49 = vld [vmem:[#allocation2 + $0x1e9] sm:$0xff] }
 0x384   : > { %11970 = vmatmul.mubr.msk.f32.vlgmr.msra.gmra.mrb[70].mxu0 %vm2651_vm1, %v8002_v62 }
 0x385   : > { %11972 = vmatprep.mubr.msk.f32.mxu0 %vm2651_vm1, %v8003_v27 }
 0x388   : > { %11973 = vmatmul.mubr.msk.f32.gmra.mrb[72].mxu0 %vm2651_vm1, %v8004_v58  ;;  %v8056_v58 = vld [vmem:[#allocation2 + $0x1f1] sm:$0xff] }
 0x389   : > { %11975 = vmatprep.mubr.msk.f32.mxu0 %vm2651_vm1, %v8005_v4  ;;  %v8057_v4 = vld [vmem:[#allocation2 + $0x1f9] sm:$0xff] }
 0x38c   : > { %11976 = vmatmul.mubr.msk.f32.gmra.mrb[74].mxu0 %vm2651_vm1, %v8006_v10  ;;  %v8058_v10 = vld [vmem:[#allocation2 + $0x201] sm:$0xff] }
 0x38d   : > { %11978 = vmatprep.mubr.msk.f32.mxu0 %vm2651_vm1, %v8007_v61 }
 0x390   : > { %11979 = vmatmul.mubr.msk.f32.gmra.mrb[76].mxu0 %vm2651_vm1, %v8008_v16  ;;  %v8059_v16 = vld [vmem:[#allocation2 + $0x209] sm:$0xff] }
 0x391   : > { %11981 = vmatprep.mubr.msk.f32.mxu0 %vm2651_vm1, %v8009_v57 }
 0x394   : > { %11982 = vmatmul.mubr.msk.f32.gmra.mrb[78].mxu0 %vm2651_vm1, %v8010_v44  ;;  %v8060_v44 = vld [vmem:[#allocation2 + $0x211] sm:$0xff] }
 0x395   : > { %11984 = vmatprep.mubr.msk.f32.mxu0 %vm2651_vm1, %v8011_v45 }
 0x398   : > { %11985 = vmatmul.mubr.msk.f32.gmra.mrb[80].mxu0 %vm2651_vm1, %v8012_v1 }
 0x399   : > { %11987 = vmatprep.mubr.msk.f32.mxu0 %vm2651_vm1, %v8013_v52 }
 0x39c   : > { %11988 = vmatmul.mubr.msk.f32.gmra.mrb[82].mxu0 %vm2651_vm1, %v8014_v6 }
 0x39d   : > { %11990 = vmatprep.mubr.msk.f32.mxu0 %vm2651_vm1, %v8015_v8 }
 0x3a0   : > { %11991 = vmatmul.mubr.msk.f32.gmra.mrb[84].mxu0 %vm2651_vm1, %v8016_v19 }
 0x3a1   : > { %11993 = vmatprep.mubr.msk.f32.mxu0 %vm2651_vm1, %v8017_v30 }
 0x3a4   : > { %11994 = vmatmul.mubr.msk.f32.gmra.mrb[86].mxu0 %vm2651_vm1, %v8018_v46 }
 0x3a5   : > { %11996 = vmatprep.mubr.msk.f32.mxu0 %vm2651_vm1, %v8019_v29 }
 0x3a8   : > { %11997 = vmatmul.mubr.msk.f32.gmra.mrb[88].mxu0 %vm2651_vm1, %v8020_v50 }
 0x3a9   : > { %11999 = vmatprep.mubr.msk.f32.mxu0 %vm2651_vm1, %v8021_v34 }
 0x3ac   : > { %12000 = vmatmul.mubr.msk.f32.gmra.mrb[90].mxu0 %vm2651_vm1, %v8022_v11 }
 0x3ad   : > { %12002 = vmatprep.mubr.msk.f32.mxu0 %vm2651_vm1, %v8023_v63 }
 0x3b0   : > { %12003 = vmatmul.mubr.msk.f32.gmra.mrb[92].mxu0 %vm2651_vm1, %v8024_v15 }
 0x3b1   : > { %12005 = vmatprep.mubr.msk.f32.mxu0 %vm2651_vm1, %v8025_v31 }
 0x3b4   : > { %12006 = vmatmul.mubr.msk.f32.gmra.mrb[94].mxu0 %vm2651_vm1, %v8026_v33 }
 0x3b5   : > { %12008 = vmatprep.mubr.msk.f32.mxu0 %vm2651_vm1, %v8027_v2 }
 0x3b8   : > { %12009 = vmatmul.mubr.msk.f32.gmra.mrb[96].mxu0 %vm2651_vm1, %v8028_v7 }
 0x3b9   : > { %12011 = vmatprep.mubr.msk.f32.mxu0 %vm2651_vm1, %v8029_v21 }
 0x3bc   : > { %12012 = vmatmul.mubr.msk.f32.gmra.mrb[98].mxu0 %vm2651_vm1, %v8030_v55 }
 0x3bd   : > { %12014 = vmatprep.mubr.msk.f32.mxu0 %vm2651_vm1, %v8031_v28 }
 0x3c0   : > { %12015 = vmatmul.mubr.msk.f32.gmra.mrb[100].mxu0 %vm2651_vm1, %v8032_v56 }
 0x3c1   : > { %12017 = vmatprep.mubr.msk.f32.mxu0 %vm2651_vm1, %v8033_v38 }
 0x3c4   : > { %12018 = vmatmul.mubr.msk.f32.gmra.mrb[102].mxu0 %vm2651_vm1, %v8034_v26 }
 0x3c5   : > { %12020 = vmatprep.mubr.msk.f32.mxu0 %vm2651_vm1, %v8035_v41 }
 0x3c8   : > { %12021 = vmatmul.mubr.msk.f32.gmra.mrb[104].mxu0 %vm2651_vm1, %v8036_v59 }
 0x3c9   : > { %12023 = vmatprep.mubr.msk.f32.mxu0 %vm2651_vm1, %v8037_v5 }
 0x3cc   : > { %12024 = vmatmul.mubr.msk.f32.gmra.mrb[106].mxu0 %vm2651_vm1, %v8038_v53 }
 0x3cd   : > { %12026 = vmatprep.mubr.msk.f32.mxu0 %vm2651_vm1, %v8039_v40 }
 0x3d0   : > { %12027 = vmatmul.mubr.msk.f32.gmra.mrb[108].mxu0 %vm2651_vm1, %v8040_v24 }
 0x3d1   : > { %12029 = vmatprep.mubr.msk.f32.mxu0 %vm2651_vm1, %v8041_v43 }
 0x3d4   : > { %12030 = vmatmul.mubr.msk.f32.gmra.mrb[110].mxu0 %vm2651_vm1, %v8042_v9 }
 0x3d5   : > { %12032 = vmatprep.mubr.msk.f32.mxu0 %vm2651_vm1, %v8043_v42 }
 0x3d8   : > { %12033 = vmatmul.mubr.msk.f32.gmra.mrb[112].mxu0 %vm2651_vm1, %v8044_v20 }
 0x3d9   : > { %12035 = vmatprep.mubr.msk.f32.mxu0 %vm2651_vm1, %v8045_v51 }
 0x3da   : > { %v15148_v14 = vpop.f32.mrb[130].mxu1 }
 0x3db   : > { %v15150_v36 = vpop.f32.mrb[131].mxu1 }
 0x3dc   : > { %12036 = vmatmul.mubr.msk.f32.gmra.mrb[114].mxu0 %vm2651_vm1, %v8046_v18 }
 0x3dd   : > { %12038 = vmatprep.mubr.msk.f32.mxu0 %vm2651_vm1, %v8047_v0 }
 0x3de   : > { %v15154_v13 = vpop.f32.mrb[132].mxu1 }
 0x3df   : > { %v15156_v39 = vpop.f32.mrb[133].mxu1 }
 0x3e0   : > { %12039 = vmatmul.mubr.msk.f32.gmra.mrb[116].mxu0 %vm2651_vm1, %v8048_v37 }
 0x3e1   : > { %12041 = vmatprep.mubr.msk.f32.mxu0 %vm2651_vm1, %v8049_v23 }
 0x3e2   : > { %v15160_v60 = vpop.f32.mrb[134].mxu1 }
 0x3e3   : > { %v15162_v17 = vpop.f32.mrb[135].mxu1 }
 0x3e4   : > { %12042 = vmatmul.mubr.msk.f32.gmra.mrb[118].mxu0 %vm2651_vm1, %v8050_v22 }
 0x3e5   : > { %12044 = vmatprep.mubr.msk.f32.mxu0 %vm2651_vm1, %v8051_v47 }
 0x3e6   : > { %v15166_v54 = vpop.f32.mrb[136].mxu1 }
 0x3e7   : > { %v15168_v48 = vpop.f32.mrb[137].mxu1 }
 0x3e8   : > { %12045 = vmatmul.mubr.msk.f32.gmra.mrb[120].mxu0 %vm2651_vm1, %v8052_v25 }
 0x3e9   : > { %12047 = vmatprep.mubr.msk.f32.mxu0 %vm2651_vm1, %v8053_v35 }
 0x3ea   : > { %v15172_v3 = vpop.f32.mrb[138].mxu1 }
 0x3eb   : > { %v15174_v12 = vpop.f32.mrb[139].mxu1 }
 0x3ec   : > { %12048 = vmatmul.mubr.msk.f32.gmra.mrb[122].mxu0 %vm2651_vm1, %v8054_v32 }
 0x3ed   : > { %12050 = vmatprep.mubr.msk.f32.mxu0 %vm2651_vm1, %v8055_v49 }
 0x3ee   : > { %v15178_v62 = vpop.f32.mrb[140].mxu1 }
 0x3ef   : > { %v15180_v27 = vpop.f32.mrb[141].mxu1 }
 0x3f0   : > { %12051 = vmatmul.mubr.msk.f32.gmra.mrb[124].mxu0 %vm2651_vm1, %v8056_v58 }
 0x3f1   : > { %12053 = vmatprep.mubr.msk.f32.mxu0 %vm2651_vm1, %v8057_v4 }
 0x3f2   : > { %v15184_v61 = vpop.f32.mrb[142].mxu1 }
 0x3f3   : > { %v15186_v57 = vpop.f32.mrb[143].mxu1 }
 0x3f4   : > { %12054 = vmatmul.mubr.msk.f32.gmra.mrb[126].mxu0 %vm2651_vm1, %v8058_v10 }
 0x3f5   : > { %12056 = vmatprep.mubr.msk.f32.mxu0 %vm2651_vm1, %v8059_v16 }
 0x3f6   : > { %v15190_v45 = vpop.f32.mrb[144].mxu1 }
 0x3f7   : > { %v15192_v1 = vpop.f32.mrb[145].mxu1 }
 0x3f8   : > { %12057 = vmatmul.mubr.msk.f32.gmra.mrb[128].mxu0 %vm2651_vm1, %v8060_v44  ;;  %v15287_v44 = vld [vmem:[%s15519_s4] ss:$0 sm:$0xff] }
 0x3fa   : > { %v15195_v52 = vpop.f32.mrb[146].mxu1 }
 0x3fb   : > { %v15197_v6 = vpop.f32.mrb[147].mxu1 }
 0x3fe   : > { %v15199_v8 = vpop.f32.mrb[148].mxu1 }
 0x3ff   : > { %v15201_v19 = vpop.f32.mrb[149].mxu1 }
 0x402   : > { %v15203_v30 = vpop.f32.mrb[150].mxu1 }
 0x403   : > { %v15205_v46 = vpop.f32.mrb[151].mxu1 }
 0x406   : > { %v15207_v29 = vpop.f32.mrb[152].mxu1 }
 0x407   : > { %v15209_v50 = vpop.f32.mrb[153].mxu1 }
 0x40a   : > { %v15211_v34 = vpop.f32.mrb[154].mxu1 }
 0x40b   : > { %v15213_v11 = vpop.f32.mrb[155].mxu1 }
 0x40e   : > { %v15215_v63 = vpop.f32.mrb[156].mxu1 }
 0x40f   : > { %v15217_v15 = vpop.f32.mrb[157].mxu1 }
 0x412   : > { %v15219_v31 = vpop.f32.mrb[158].mxu1 }
 0x413   : > { %v15221_v33 = vpop.f32.mrb[159].mxu1 }
 0x416   : > { %v15223_v2 = vpop.f32.mrb[160].mxu1 }
 0x417   : > { %v15225_v7 = vpop.f32.mrb[161].mxu1 }
 0x41a   : > { %v15227_v21 = vpop.f32.mrb[162].mxu1 }
 0x41b   : > { %v15229_v55 = vpop.f32.mrb[163].mxu1 }
 0x41e   : > { %v15231_v28 = vpop.f32.mrb[164].mxu1 }
 0x41f   : > { %v15233_v56 = vpop.f32.mrb[165].mxu1 }
 0x422   : > { %v15235_v38 = vpop.f32.mrb[166].mxu1 }
 0x423   : > { %v15237_v26 = vpop.f32.mrb[167].mxu1 }
 0x426   : > { %v15239_v41 = vpop.f32.mrb[168].mxu1 }
 0x427   : > { %v15241_v59 = vpop.f32.mrb[169].mxu1 }
 0x42a   : > { %v15243_v5 = vpop.f32.mrb[170].mxu1 }
 0x42b   : > { %v15245_v53 = vpop.f32.mrb[171].mxu1 }
 0x42e   : > { %v15247_v40 = vpop.f32.mrb[172].mxu1 }
 0x42f   : > { %v15249_v24 = vpop.f32.mrb[173].mxu1 }
 0x432   : > { %v15251_v43 = vpop.f32.mrb[174].mxu1 }
 0x433   : > { %v15253_v9 = vpop.f32.mrb[175].mxu1 }
 0x436   : > { %v15255_v42 = vpop.f32.mrb[176].mxu1 }
 0x437   : > { %v15257_v20 = vpop.f32.mrb[177].mxu1 }
 0x438   : > { %15789 = vst [vmem:[#allocation20_spill] sm:$0xff] %v15257_v20 }
 0x43a   : > { %v15259_v51 = vpop.f32.mrb[178].mxu1 }
 0x43b   : > { %15790 = vst [vmem:[#allocation16_spill] sm:$0xff] %v15259_v51  ;;  %v15261_v18 = vpop.f32.mrb[179].mxu1 }
 0x43c   : > { %15791 = vst [vmem:[#allocation17_spill] sm:$0xff] %v15261_v18 }
 0x43e   : > { %v15263_v0 = vpop.f32.mrb[180].mxu1 }
 0x43f   : > { %15792 = vst [vmem:[#allocation22_spill] sm:$0xff] %v15263_v0  ;;  %v15265_v37 = vpop.f32.mrb[181].mxu1 }
 0x440   : > { %15793 = vst [vmem:[#allocation5_spill] sm:$0xff] %v15265_v37 }
 0x442   : > { %v15267_v23 = vpop.f32.mrb[182].mxu1 }
 0x443   : > { %15794 = vst [vmem:[#allocation18_spill] sm:$0xff] %v15267_v23  ;;  %v15269_v22 = vpop.f32.mrb[183].mxu1 }
 0x444   : > { %15795 = vst [vmem:[#allocation21_spill] sm:$0xff] %v15269_v22 }
 0x446   : > { %v15271_v47 = vpop.f32.mrb[184].mxu1 }
 0x447   : > { %15796 = vst [vmem:[#allocation8_spill] sm:$0xff] %v15271_v47  ;;  %v15273_v25 = vpop.f32.mrb[185].mxu1 }
 0x448   : > { %15797 = vst [vmem:[#allocation9_spill] sm:$0xff] %v15273_v25 }
 0x44a   : > { %v15275_v35 = vpop.f32.mrb[186].mxu1 }
 0x44b   : > { %15798 = vst [vmem:[#allocation4_spill] sm:$0xff] %v15275_v35  ;;  %v15277_v32 = vpop.f32.mrb[187].mxu1 }
 0x44c   : > { %15799 = vst [vmem:[#allocation6_spill] sm:$0xff] %v15277_v32 }
 0x44e   : > { %v15279_v49 = vpop.f32.mrb[188].mxu1 }
 0x44f   : > { %15800 = vst [vmem:[#allocation23_spill] sm:$0xff] %v15279_v49  ;;  %v15281_v58 = vpop.f32.mrb[189].mxu1 }
 0x450   : > { %15801 = vst [vmem:[#allocation24_spill] sm:$0xff] %v15281_v58 }
 0x457   : > { %v11971_v4 = vpop.f32.mrb[70].mxu0 }
 0x458   : > { %v12167_v10 = vadd.f32 %v11971_v4, %v15148_v14  ;;  %v8307_v16 = vpop.f32.mrb[71].mxu0 }
 0x459   : > { %v12168_v47 = vadd.f32 %v8307_v16, %v15150_v36 }
 0x45a   : > { %v8673_v36 = vadd.f32 %v12167_v10, %v15287_v44 }
 0x45b   : > { %v11974_v25 = vpop.f32.mrb[72].mxu0  ;;  %v8672_v35 = vadd.f32 %v12168_v47, %v15287_v44 }
 0x45c   : > { %v12169_v32 = vadd.f32 %v11974_v25, %v15154_v13  ;;  %v8317_v22 = vpop.f32.mrb[73].mxu0  ;;  %v8733_v51 = vmax.f32 %v8673_v36, 0.0 }
 0x45d   : > { %v12170_v49 = vadd.f32 %v8317_v22, %v15156_v39  ;;  %v8732_v14 = vmax.f32 %v8672_v35, 0.0 }
 0x45e   : > { %v8675_v58 = vadd.f32 %v12169_v32, %v15287_v44 }
 0x45f   : > { %v11977_v23 = vpop.f32.mrb[74].mxu0  ;;  %v8674_v37 = vadd.f32 %v12170_v49, %v15287_v44 }
 0x460   : > { %v8735_v4 = vmax.f32 %v8675_v58, 0.0  ;;  %v12171_v0 = vadd.f32 %v11977_v23, %v15160_v60  ;;  %v8327_v18 = vpop.f32.mrb[75].mxu0 }
 0x461   : > { %v12172_v16 = vadd.f32 %v8327_v18, %v15162_v17  ;;  %v8734_v22 = vmax.f32 %v8674_v37, 0.0 }
 0x462   : > { %v8792_v47 = vmax.f32 %v8732_v14, %v8735_v4  ;;  %v8677_v13 = vadd.f32 %v12171_v0, %v15287_v44 }
 0x463   : > { %v8676_v25 = vadd.f32 %v12172_v16, %v15287_v44  ;;  %v11980_v39 = vpop.f32.mrb[76].mxu0 }
 0x464   : > { %v8737_v32 = vmax.f32 %v8677_v13, 0.0  ;;  %v12173_v35 = vadd.f32 %v11980_v39, %v15166_v54  ;;  %v8337_v58 = vpop.f32.mrb[77].mxu0  ;;  %v8907_v13 = vrot.slane %v8792_v47, 1 }
 0x465   : > { %v8736_v49 = vmax.f32 %v8676_v25, 0.0  ;;  %v12174_v60 = vadd.f32 %v8337_v58, %v15168_v48 }
 0x466   : > { %v8794_v23 = vmax.f32 %v8734_v22, %v8737_v32  ;;  %v8679_v10 = vadd.f32 %v12173_v35, %v15287_v44 }
 0x467   : > { %v8793_v20 = vmax.f32 %v8733_v51, %v8736_v49  ;;  %v8678_v17 = vadd.f32 %v12174_v60, %v15287_v44  ;;  %v11983_v18 = vpop.f32.mrb[78].mxu0 }
 0x468   : > { %v8910_v0 = vrot.slane %v8794_v23, 1  ;;  %v8739_v14 = vmax.f32 %v8679_v10, 0.0  ;;  %v12175_v37 = vadd.f32 %v11983_v18, %v15172_v3  ;;  %v8347_v16 = vpop.f32.mrb[79].mxu0 }
 0x469   : > { %v8908_v54 = vrot.slane %v8793_v20, 1  ;;  %v8738_v39 = vmax.f32 %v8678_v17, 0.0  ;;  %v12176_v36 = vadd.f32 %v8347_v16, %v15174_v12 }
 0x46a   : > { %v8681_v48 = vadd.f32 %v12175_v37, %v15287_v44 }
 0x46b   : > { %v8909_v25 = vsel %vm8906_vm4, %v8907_v13, %v8908_v54  ;;  %v8911_v51 = vsel %vm8906_vm4, %v8908_v54, %v8910_v0  ;;  %v8795_v22 = vmax.f32 %v8735_v4, %v8738_v39  ;;  %v8680_v32 = vadd.f32 %v12176_v36, %v15287_v44  ;;  %v11986_v35 = vpop.f32.mrb[80].mxu0 }
 0x46c   : > { %v9077_v58 = vmax.f32 %v8792_v47, %v8909_v25  ;;  %v9078_v3 = vmax.f32 %v8793_v20, %v8911_v51  ;;  %v8741_v49 = vmax.f32 %v8681_v48, 0.0  ;;  %v8357_v60 = vpop.f32.mrb[81].mxu0  ;;  %v12177_v12 = vadd.f32 %v11986_v35, %v15178_v62 }
 0x46d   : > { %v8912_v10 = vrot.slane %v8795_v22, 1  ;;  %v8740_v17 = vmax.f32 %v8680_v32, 0.0  ;;  %v12178_v18 = vadd.f32 %v8357_v60, %v15180_v27 }
 0x46e   : > { %9135 = vst.msk [vmem:[#allocation3] sm:$0xff] %vm9134_vm5, %v9077_v58  ;;  %9136 = vst.msk [vmem:[#allocation3 + $0x8] sm:$0xff] %vm9134_vm5, %v9078_v3  ;;  %v8798_v37 = vmax.f32 %v8738_v39, %v8741_v49  ;;  %v8683_v16 = vadd.f32 %v12177_v12, %v15287_v44 }
 0x46f   : > { %v8913_v4 = vsel %vm8906_vm4, %v8910_v0, %v8912_v10  ;;  %v11989_v47 = vpop.f32.mrb[82].mxu0  ;;  %v8682_v54 = vadd.f32 %v12178_v18, %v15287_v44 }
 0x470   : > { %v9079_v20 = vmax.f32 %v8794_v23, %v8913_v4  ;;  %v8918_v13 = vrot.slane %v8798_v37, 1  ;;  %v8367_v36 = vpop.f32.mrb[83].mxu0  ;;  %v8743_v48 = vmax.f32 %v8683_v16, 0.0  ;;  %v12179_v62 = vadd.f32 %v11989_v47, %v15184_v61 }
 0x471   : > { %v12180_v27 = vadd.f32 %v8367_v36, %v15186_v57  ;;  %v8742_v25 = vmax.f32 %v8682_v54, 0.0 }
 0x472   : > { %9137 = vst.msk [vmem:[#allocation3 + $0x10] sm:$0xff] %vm9134_vm5, %v9079_v20  ;;  %v8800_v0 = vmax.f32 %v8740_v17, %v8743_v48  ;;  %v8685_v23 = vadd.f32 %v12179_v62, %v15287_v44 }
 0x473   : > { %v11992_v39 = vpop.f32.mrb[84].mxu0  ;;  %v8799_v51 = vmax.f32 %v8739_v14, %v8742_v25  ;;  %v8684_v22 = vadd.f32 %v12180_v27, %v15287_v44 }
 0x474   : > { %v8377_v32 = vpop.f32.mrb[85].mxu0  ;;  %v8922_v35 = vrot.slane %v8800_v0, 1  ;;  %v8745_v57 = vmax.f32 %v8685_v23, 0.0  ;;  %v12181_v58 = vadd.f32 %v11992_v39, %v15190_v45 }
 0x475   : > { %v9193_v61 = vld [vmem:[#allocation3] ss:$2 sm:$0xff]  ;;  %v12182_v3 = vadd.f32 %v8377_v32, %v15192_v1  ;;  %v8920_v60 = vrot.slane %v8799_v51, 1  ;;  %v8744_v10 = vmax.f32 %v8684_v22, 0.0 }
 0x476   : > { %9196 = vst.msk [vmem:[%s15324_s13] sm:$0xff] %vm9134_vm5, %v9193_v61  ;;  %v8687_v17 = vadd.f32 %v12181_v58, %v15287_v44 }
 0x477   : > { %v8686_v14 = vadd.f32 %v12182_v3, %v15287_v44  ;;  %v11995_v12 = vpop.f32.mrb[86].mxu0  ;;  %v8921_v18 = vsel %vm8906_vm4, %v8918_v13, %v8920_v60  ;;  %v8923_v4 = vsel %vm8906_vm4, %v8920_v60, %v8922_v35  ;;  %v8801_v16 = vmax.f32 %v8741_v49, %v8744_v10 }
 0x478   : > { %v12183_v45 = vadd.f32 %v11995_v12, %v15195_v52  ;;  %v8387_v47 = vpop.f32.mrb[87].mxu0  ;;  %v9083_v20 = vmax.f32 %v8798_v37, %v8921_v18  ;;  %v9084_v54 = vmax.f32 %v8799_v51, %v8923_v4  ;;  %v8747_v36 = vmax.f32 %v8687_v17, 0.0 }
 0x479   : > { %v9195_v1 = vld [vmem:[#allocation3 + $0x10] ss:$2 sm:$0x3]  ;;  %v8924_v48 = vrot.slane %v8801_v16, 1  ;;  %v8746_v62 = vmax.f32 %v8686_v14, 0.0  ;;  %v12184_v25 = vadd.f32 %v8387_v47, %v15197_v6 }
 0x47a   : > { %9198 = vst.msk [vmem:[%s15324_s13 + $0x8] sm:$0x3] %vm9197_vm6, %v9195_v1  ;;  %v8689_v27 = vadd.f32 %v12183_v45, %v15287_v44  ;;  %v8804_v49 = vmax.f32 %v8744_v10, %v8747_v36 }
 0x47b   : > { %9141 = vst.msk [vmem:[#allocation3 + $0x30] sm:$0xff] %vm9134_vm5, %v9083_v20  ;;  %9142 = vst.msk [vmem:[#allocation3 + $0x38] sm:$0xff] %vm9134_vm5, %v9084_v54  ;;  %v11998_v13 = vpop.f32.mrb[88].mxu0  ;;  %v8925_v52 = vsel %vm8906_vm4, %v8922_v35, %v8924_v48  ;;  %v8688_v22 = vadd.f32 %v12184_v25, %v15287_v44 }
 0x47c   : > { %v8749_v23 = vmax.f32 %v8689_v27, 0.0  ;;  %v8397_v37 = vpop.f32.mrb[89].mxu0  ;;  %v9085_v39 = vmax.f32 %v8800_v0, %v8925_v52  ;;  %v8930_v51 = vrot.slane %v8804_v49, 1  ;;  %v12185_v61 = vadd.f32 %v11998_v13, %v15199_v8 }
 0x47d   : > { %v12186_v6 = vadd.f32 %v8397_v37, %v15201_v19  ;;  %v8748_v58 = vmax.f32 %v8688_v22, 0.0 }
 0x47e   : > { %v8806_v32 = vmax.f32 %v8746_v62, %v8749_v23  ;;  %9143 = vst.msk [vmem:[#allocation3 + $0x40] sm:$0xff] %vm9134_vm5, %v9085_v39  ;;  %v8691_v10 = vadd.f32 %v12185_v61, %v15287_v44 }
 0x47f   : > { %v12001_v3 = vpop.f32.mrb[90].mxu0  ;;  %v8805_v17 = vmax.f32 %v8745_v57, %v8748_v58  ;;  %v8690_v0 = vadd.f32 %v12186_v6, %v15287_v44 }
 0x480   : > { %v8934_v60 = vrot.slane %v8806_v32, 1  ;;  %v8407_v35 = vpop.f32.mrb[91].mxu0  ;;  %v8751_v12 = vmax.f32 %v8691_v10, 0.0  ;;  %v12187_v18 = vadd.f32 %v12001_v3, %v15203_v30 }
 0x481   : > { %v12188_v4 = vadd.f32 %v8407_v35, %v15205_v46  ;;  %v8932_v8 = vrot.slane %v8805_v17, 1  ;;  %v8750_v19 = vmax.f32 %v8690_v0, 0.0 }
 0x482   : > { %v9200_v14 = vld [vmem:[#allocation3 + $0x30] ss:$2 sm:$0xff]  ;;  %v8693_v45 = vadd.f32 %v12187_v18, %v15287_v44 }
 0x483   : > { %9203 = vst.msk [vmem:[%s15324_s13 + $0xa] sm:$0xff] %vm9134_vm5, %v9200_v14  ;;  %v12004_v16 = vpop.f32.mrb[92].mxu0  ;;  %v8692_v47 = vadd.f32 %v12188_v4, %v15287_v44  ;;  %v8933_v20 = vsel %vm8906_vm4, %v8930_v51, %v8932_v8  ;;  %v8935_v54 = vsel %vm8906_vm4, %v8932_v8, %v8934_v60  ;;  %v8807_v30 = vmax.f32 %v8747_v36, %v8750_v19 }
 0x484   : > { %v12189_v57 = vadd.f32 %v12004_v16, %v15207_v29  ;;  %v8417_v1 = vpop.f32.mrb[93].mxu0  ;;  %v9089_v62 = vmax.f32 %v8804_v49, %v8933_v20  ;;  %v9090_v27 = vmax.f32 %v8805_v17, %v8935_v54  ;;  %v8753_v25 = vmax.f32 %v8693_v45, 0.0 }
 0x485   : > { %v12190_v46 = vadd.f32 %v8417_v1, %v15209_v50  ;;  %v9202_v48 = vld [vmem:[#allocation3 + $0x40] ss:$2 sm:$0x3]  ;;  %v8936_v13 = vrot.slane %v8807_v30, 1  ;;  %v8752_v52 = vmax.f32 %v8692_v47, 0.0 }
 0x486   : > { %9204 = vst.msk [vmem:[%s15324_s13 + $0x12] sm:$0x3] %vm9197_vm6, %v9202_v48  ;;  %v8695_v23 = vadd.f32 %v12189_v57, %v15287_v44  ;;  %v8810_v36 = vmax.f32 %v8750_v19, %v8753_v25 }
 0x487   : > { %v8694_v29 = vadd.f32 %v12190_v46, %v15287_v44  ;;  %v12007_v37 = vpop.f32.mrb[94].mxu0  ;;  %9147 = vst.msk [vmem:[#allocation3 + $0x60] sm:$0xff] %vm9134_vm5, %v9089_v62  ;;  %9148 = vst.msk [vmem:[#allocation3 + $0x68] sm:$0xff] %vm9134_vm5, %v9090_v27  ;;  %v8937_v49 = vsel %vm8906_vm4, %v8934_v60, %v8936_v13 }
 0x488   : > { %v12191_v50 = vadd.f32 %v12007_v37, %v15211_v34  ;;  %v8427_v39 = vpop.f32.mrb[95].mxu0  ;;  %v8755_v51 = vmax.f32 %v8695_v23, 0.0  ;;  %v9091_v22 = vmax.f32 %v8806_v32, %v8937_v49  ;;  %v8942_v61 = vrot.slane %v8810_v36, 1 }
 0x489   : > { %v8754_v6 = vmax.f32 %v8694_v29, 0.0  ;;  %v12192_v10 = vadd.f32 %v8427_v39, %v15213_v11 }
 0x48a   : > { %v8812_v58 = vmax.f32 %v8752_v52, %v8755_v51  ;;  %v8697_v3 = vadd.f32 %v12191_v50, %v15287_v44  ;;  %9149 = vst.msk [vmem:[#allocation3 + $0x70] sm:$0xff] %vm9134_vm5, %v9091_v22 }
 0x48b   : > { %v12010_v35 = vpop.f32.mrb[96].mxu0  ;;  %v8811_v17 = vmax.f32 %v8751_v12, %v8754_v6  ;;  %v8696_v32 = vadd.f32 %v12192_v10, %v15287_v44 }
 0x48c   : > { %v12193_v0 = vadd.f32 %v12010_v35, %v15215_v63  ;;  %v8437_v34 = vpop.f32.mrb[97].mxu0  ;;  %v8946_v14 = vrot.slane %v8812_v58, 1  ;;  %v8757_v18 = vmax.f32 %v8697_v3, 0.0 }
 0x48d   : > { %v8944_v60 = vrot.slane %v8811_v17, 1  ;;  %v12194_v19 = vadd.f32 %v8437_v34, %v15217_v15  ;;  %v8756_v63 = vmax.f32 %v8696_v32, 0.0 }
 0x48e   : > { %v9206_v4 = vld [vmem:[#allocation3 + $0x60] ss:$2 sm:$0xff]  ;;  %v8699_v8 = vadd.f32 %v12193_v0, %v15287_v44 }
 0x48f   : > { %v12013_v16 = vpop.f32.mrb[98].mxu0  ;;  %9209 = vst.msk [vmem:[%s15324_s13 + $0x14] sm:$0xff] %vm9134_vm5, %v9206_v4  ;;  %v8945_v11 = vsel %vm8906_vm4, %v8942_v61, %v8944_v60  ;;  %v8947_v12 = vsel %vm8906_vm4, %v8944_v60, %v8946_v14  ;;  %v8813_v54 = vmax.f32 %v8753_v25, %v8756_v63  ;;  %v8698_v30 = vadd.f32 %v12194_v19, %v15287_v44 }
 0x490   : > { %v12195_v45 = vadd.f32 %v12013_v16, %v15219_v31  ;;  %v8447_v47 = vpop.f32.mrb[99].mxu0  ;;  %v9095_v57 = vmax.f32 %v8810_v36, %v8945_v11  ;;  %v9096_v1 = vmax.f32 %v8811_v17, %v8947_v12  ;;  %v8759_v20 = vmax.f32 %v8699_v8, 0.0 }
 0x491   : > { %v12196_v46 = vadd.f32 %v8447_v47, %v15221_v33  ;;  %v9208_v48 = vld [vmem:[#allocation3 + $0x70] ss:$2 sm:$0x3]  ;;  %v8948_v31 = vrot.slane %v8813_v54, 1  ;;  %v8758_v13 = vmax.f32 %v8698_v30, 0.0 }
 0x492   : > { %v8701_v15 = vadd.f32 %v12195_v45, %v15287_v44  ;;  %9153 = vst.msk [vmem:[#allocation3 + $0x90] sm:$0xff] %vm9134_vm5, %v9095_v57  ;;  %9154 = vst.msk [vmem:[#allocation3 + $0x98] sm:$0xff] %vm9134_vm5, %v9096_v1  ;;  %v8816_v62 = vmax.f32 %v8756_v63, %v8759_v20 }
 0x493   : > { %v12016_v27 = vpop.f32.mrb[100].mxu0  ;;  %9210 = vst.msk [vmem:[%s15324_s13 + $0x1c] sm:$0x3] %vm9197_vm6, %v9208_v48  ;;  %v8700_v25 = vadd.f32 %v12196_v46, %v15287_v44  ;;  %v8949_v36 = vsel %vm8906_vm4, %v8946_v14, %v8948_v31 }
 0x494   : > { %v8761_v52 = vmax.f32 %v8701_v15, 0.0  ;;  %v8457_v23 = vpop.f32.mrb[101].mxu0  ;;  %v8954_v29 = vrot.slane %v8816_v62, 1  ;;  %v12197_v37 = vadd.f32 %v12016_v27, %v15223_v2  ;;  %v9097_v39 = vmax.f32 %v8812_v58, %v8949_v36 }
 0x495   : > { %v12198_v33 = vadd.f32 %v8457_v23, %v15225_v7  ;;  %v8760_v49 = vmax.f32 %v8700_v25, 0.0 }
 0x496   : > { %v8818_v50 = vmax.f32 %v8758_v13, %v8761_v52  ;;  %v8703_v51 = vadd.f32 %v12197_v37, %v15287_v44  ;;  %9155 = vst.msk [vmem:[#allocation3 + $0xa0] sm:$0xff] %vm9134_vm5, %v9097_v39 }
 0x497   : > { %v12019_v22 = vpop.f32.mrb[102].mxu0  ;;  %v8702_v61 = vadd.f32 %v12198_v33, %v15287_v44  ;;  %v8817_v2 = vmax.f32 %v8757_v18, %v8760_v49 }
 0x498   : > { %v12199_v6 = vadd.f32 %v12019_v22, %v15227_v21  ;;  %v8467_v3 = vpop.f32.mrb[103].mxu0  ;;  %v8958_v10 = vrot.slane %v8818_v50, 1  ;;  %v8763_v35 = vmax.f32 %v8703_v51, 0.0 }
 0x499   : > { %v12200_v7 = vadd.f32 %v8467_v3, %v15229_v55  ;;  %v9212_v17 = vld [vmem:[#allocation3 + $0x90] ss:$2 sm:$0xff]  ;;  %v8762_v0 = vmax.f32 %v8702_v61, 0.0  ;;  %v8956_v34 = vrot.slane %v8817_v2, 1 }
 0x49a   : > { %v8705_v58 = vadd.f32 %v12199_v6, %v15287_v44  ;;  %9215 = vst.msk [vmem:[%s15324_s13 + $0x1e] sm:$0xff] %vm9134_vm5, %v9212_v17 }
 0x49b   : > { %v12022_v14 = vpop.f32.mrb[104].mxu0  ;;  %v8819_v60 = vmax.f32 %v8759_v20, %v8762_v0  ;;  %v8704_v21 = vadd.f32 %v12200_v7, %v15287_v44  ;;  %v8957_v18 = vsel %vm8906_vm4, %v8954_v29, %v8956_v34  ;;  %v8959_v19 = vsel %vm8906_vm4, %v8956_v34, %v8958_v10 }
 0x49c   : > { %v8765_v32 = vmax.f32 %v8705_v58, 0.0  ;;  %v12201_v4 = vadd.f32 %v12022_v14, %v15231_v28  ;;  %v8477_v8 = vpop.f32.mrb[105].mxu0  ;;  %v9101_v16 = vmax.f32 %v8816_v62, %v8957_v18  ;;  %v9102_v11 = vmax.f32 %v8817_v2, %v8959_v19 }
 0x49d   : > { %v12202_v55 = vadd.f32 %v8477_v8, %v15233_v56  ;;  %v8960_v12 = vrot.slane %v8819_v60, 1  ;;  %v8764_v45 = vmax.f32 %v8704_v21, 0.0  ;;  %v9214_v20 = vld [vmem:[#allocation3 + $0xa0] ss:$2 sm:$0x3] }
 0x49e   : > { %v8822_v63 = vmax.f32 %v8762_v0, %v8765_v32  ;;  %v8707_v47 = vadd.f32 %v12201_v4, %v15287_v44  ;;  %9159 = vst.msk [vmem:[#allocation3 + $0xc0] sm:$0xff] %vm9134_vm5, %v9101_v16  ;;  %9160 = vst.msk [vmem:[#allocation3 + $0xc8] sm:$0xff] %vm9134_vm5, %v9102_v11 }
 0x49f   : > { %v8706_v57 = vadd.f32 %v12202_v55, %v15287_v44  ;;  %v12025_v1 = vpop.f32.mrb[106].mxu0  ;;  %v8961_v28 = vsel %vm8906_vm4, %v8958_v10, %v8960_v12  ;;  %9216 = vst.msk [vmem:[%s15324_s13 + $0x26] sm:$0x3] %vm9197_vm6, %v9214_v20 }
 0x4a0   : > { %v8966_v54 = vrot.slane %v8822_v63, 1  ;;  %v12203_v56 = vadd.f32 %v12025_v1, %v15235_v38  ;;  %v8487_v30 = vpop.f32.mrb[107].mxu0  ;;  %v9103_v15 = vmax.f32 %v8818_v50, %v8961_v28  ;;  %v8767_v46 = vmax.f32 %v8707_v47, 0.0 }
 0x4a1   : > { %v8766_v48 = vmax.f32 %v8706_v57, 0.0  ;;  %v12204_v27 = vadd.f32 %v8487_v30, %v15237_v26 }
 0x4a2   : > { %v8709_v62 = vadd.f32 %v12203_v56, %v15287_v44  ;;  %9161 = vst.msk [vmem:[#allocation3 + $0xd0] sm:$0xff] %vm9134_vm5, %v9103_v15  ;;  %v8824_v31 = vmax.f32 %v8764_v45, %v8767_v46 }
 0x4a3   : > { %v12028_v13 = vpop.f32.mrb[108].mxu0  ;;  %v8823_v52 = vmax.f32 %v8763_v35, %v8766_v48  ;;  %v8708_v23 = vadd.f32 %v12204_v27, %v15287_v44 }
 0x4a4   : > { %v8769_v25 = vmax.f32 %v8709_v62, 0.0  ;;  %v12205_v38 = vadd.f32 %v12028_v13, %v15239_v41  ;;  %v8497_v29 = vpop.f32.mrb[109].mxu0  ;;  %v8970_v37 = vrot.slane %v8824_v31, 1 }
 0x4a5   : > { %v12206_v33 = vadd.f32 %v8497_v29, %v15241_v59  ;;  %v8968_v36 = vrot.slane %v8823_v52, 1  ;;  %v9218_v50 = vld [vmem:[#allocation3 + $0xc0] ss:$2 sm:$0xff]  ;;  %v8768_v39 = vmax.f32 %v8708_v23, 0.0 }
 0x4a6   : > { %v8711_v26 = vadd.f32 %v12205_v38, %v15287_v44  ;;  %9221 = vst.msk [vmem:[%s15324_s13 + $0x28] sm:$0xff] %vm9134_vm5, %v9218_v50 }
 0x4a7   : > { %v8710_v49 = vadd.f32 %v12206_v33, %v15287_v44  ;;  %v12031_v51 = vpop.f32.mrb[110].mxu0  ;;  %v8969_v22 = vsel %vm8906_vm4, %v8966_v54, %v8968_v36  ;;  %v8971_v61 = vsel %vm8906_vm4, %v8968_v36, %v8970_v37  ;;  %v8825_v10 = vmax.f32 %v8765_v32, %v8768_v39 }
 0x4a8   : > { %v12207_v41 = vadd.f32 %v12031_v51, %v15243_v5  ;;  %v8507_v6 = vpop.f32.mrb[111].mxu0  ;;  %v9107_v3 = vmax.f32 %v8822_v63, %v8969_v22  ;;  %v9108_v59 = vmax.f32 %v8823_v52, %v8971_v61  ;;  %v8771_v2 = vmax.f32 %v8711_v26, 0.0 }
 0x4a9   : > { %v9220_v35 = vld [vmem:[#allocation3 + $0xd0] ss:$2 sm:$0x3]  ;;  %v8770_v7 = vmax.f32 %v8710_v49, 0.0  ;;  %v12208_v0 = vadd.f32 %v8507_v6, %v15245_v53  ;;  %v8972_v58 = vrot.slane %v8825_v10, 1 }
 0x4aa   : > { %v8713_v17 = vadd.f32 %v12207_v41, %v15287_v44  ;;  %9222 = vst.msk [vmem:[%s15324_s13 + $0x30] sm:$0x3] %vm9197_vm6, %v9220_v35  ;;  %v8828_v34 = vmax.f32 %v8768_v39, %v8771_v2  ;;  %v15803_v39 = vld [vmem:[#allocation16_spill] sm:$0xff]  ;;  %v15804_v6 = vld [vmem:[#allocation17_spill] sm:$0xff] }
 0x4ab   : > { %9165 = vst.msk [vmem:[#allocation3 + $0xf0] sm:$0xff] %vm9134_vm5, %v9107_v3  ;;  %9166 = vst.msk [vmem:[#allocation3 + $0xf8] sm:$0xff] %vm9134_vm5, %v9108_v59  ;;  %v12034_v5 = vpop.f32.mrb[112].mxu0  ;;  %v8712_v60 = vadd.f32 %v12208_v0, %v15287_v44  ;;  %v8973_v4 = vsel %vm8906_vm4, %v8970_v37, %v8972_v58 }
 0x4ac   : > { %v8773_v14 = vmax.f32 %v8713_v17, 0.0  ;;  %v12209_v32 = vadd.f32 %v12034_v5, %v15247_v40  ;;  %v8517_v21 = vpop.f32.mrb[113].mxu0  ;;  %v8978_v8 = vrot.slane %v8828_v34, 1  ;;  %v9109_v18 = vmax.f32 %v8824_v31, %v8973_v4  ;;  %v15802_v31 = vld [vmem:[#allocation20_spill] sm:$0xff]  ;;  %v15805_v17 = vld [vmem:[#allocation22_spill] sm:$0xff]  ;;  %v15806_v5 = vld [vmem:[#allocation5_spill] sm:$0xff] }
 0x4ad   : > { %v12210_v53 = vadd.f32 %v8517_v21, %v15249_v24  ;;  %v8772_v55 = vmax.f32 %v8712_v60, 0.0 }
 0x4ae   : > { %v8830_v19 = vmax.f32 %v8770_v7, %v8773_v14  ;;  %v8715_v16 = vadd.f32 %v12209_v32, %v15287_v44  ;;  %9167 = vst.msk [vmem:[#allocation3 + $0x100] sm:$0xff] %vm9134_vm5, %v9109_v18 }
 0x4af   : > { %v8714_v11 = vadd.f32 %v12210_v53, %v15287_v44  ;;  %v12037_v12 = vpop.f32.mrb[114].mxu0  ;;  %v8829_v47 = vmax.f32 %v8769_v25, %v8772_v55  ;;  %v15807_v55 = vld [vmem:[#allocation18_spill] sm:$0xff] }
 0x4b0   : > { %v8982_v63 = vrot.slane %v8830_v19, 1  ;;  %v12211_v40 = vadd.f32 %v12037_v12, %v15251_v43  ;;  %v8527_v45 = vpop.f32.mrb[115].mxu0  ;;  %v8775_v57 = vmax.f32 %v8715_v16, 0.0 }
 0x4b1   : > { %v8774_v20 = vmax.f32 %v8714_v11, 0.0  ;;  %v12212_v28 = vadd.f32 %v8527_v45, %v15253_v9  ;;  %v8980_v54 = vrot.slane %v8829_v47, 1 }
 0x4b2   : > { %v9224_v1 = vld [vmem:[#allocation3 + $0xf0] ss:$2 sm:$0xff]  ;;  %v8717_v24 = vadd.f32 %v12211_v40, %v15287_v44 }
 0x4b3   : > { %9227 = vst.msk [vmem:[%s15324_s13 + $0x32] sm:$0xff] %vm9134_vm5, %v9224_v1  ;;  %v12040_v56 = vpop.f32.mrb[116].mxu0  ;;  %v8831_v30 = vmax.f32 %v8771_v2, %v8774_v20  ;;  %v8716_v46 = vadd.f32 %v12212_v28, %v15287_v44  ;;  %v8981_v62 = vsel %vm8906_vm4, %v8978_v8, %v8980_v54  ;;  %v8983_v27 = vsel %vm8906_vm4, %v8980_v54, %v8982_v63 }
 0x4b4   : > { %v8777_v15 = vmax.f32 %v8717_v24, 0.0  ;;  %v12213_v43 = vadd.f32 %v12040_v56, %v15255_v42  ;;  %v8537_v48 = vpop.f32.mrb[117].mxu0  ;;  %v9113_v52 = vmax.f32 %v8828_v34, %v8981_v62  ;;  %v9114_v9 = vmax.f32 %v8829_v47, %v8983_v27 }
 0x4b5   : > { %v12214_v13 = vadd.f32 %v8537_v48, %v15802_v31  ;;  %v8984_v25 = vrot.slane %v8831_v30, 1  ;;  %v9226_v38 = vld [vmem:[#allocation3 + $0x100] ss:$2 sm:$0x3]  ;;  %v8776_v29 = vmax.f32 %v8716_v46, 0.0  ;;  %v15810_v31 = vld [vmem:[#allocation9_spill] sm:$0xff] }
 0x4b6   : > { %v8834_v23 = vmax.f32 %v8774_v20, %v8777_v15  ;;  %v8719_v37 = vadd.f32 %v12213_v43, %v15287_v44  ;;  %9228 = vst.msk [vmem:[%s15324_s13 + $0x3a] sm:$0x3] %vm9197_vm6, %v9226_v38  ;;  %v15808_v20 = vld [vmem:[#allocation21_spill] sm:$0xff] }
 0x4b7   : > { %v8718_v33 = vadd.f32 %v12214_v13, %v15287_v44  ;;  %v12043_v36 = vpop.f32.mrb[118].mxu0  ;;  %9171 = vst.msk [vmem:[#allocation3 + $0x120] sm:$0xff] %vm9134_vm5, %v9113_v52  ;;  %9172 = vst.msk [vmem:[#allocation3 + $0x128] sm:$0xff] %vm9134_vm5, %v9114_v9  ;;  %v8985_v42 = vsel %vm8906_vm4, %v8982_v63, %v8984_v25 }
 0x4b8   : > { %v8990_v50 = vrot.slane %v8834_v23, 1  ;;  %v12215_v26 = vadd.f32 %v12043_v36, %v15803_v39  ;;  %v8547_v49 = vpop.f32.mrb[119].mxu0  ;;  %v9115_v51 = vmax.f32 %v8830_v19, %v8985_v42  ;;  %v8779_v22 = vmax.f32 %v8719_v37, 0.0 }
 0x4b9   : > { %v8778_v61 = vmax.f32 %v8718_v33, 0.0  ;;  %v12216_v3 = vadd.f32 %v8547_v49, %v15804_v6  ;;  %v15811_v33 = vld [vmem:[#allocation4_spill] sm:$0xff] }
 0x4ba   : > { %v8721_v41 = vadd.f32 %v12215_v26, %v15287_v44  ;;  %9173 = vst.msk [vmem:[#allocation3 + $0x130] sm:$0xff] %vm9134_vm5, %v9115_v51  ;;  %v8836_v59 = vmax.f32 %v8776_v29, %v8779_v22  ;;  %v15812_v22 = vld [vmem:[#allocation6_spill] sm:$0xff] }
 0x4bb   : > { %v12046_v10 = vpop.f32.mrb[120].mxu0  ;;  %v8835_v2 = vmax.f32 %v8775_v57, %v8778_v61  ;;  %v8720_v7 = vadd.f32 %v12216_v3, %v15287_v44 }
 0x4bc   : > { %v8781_v35 = vmax.f32 %v8721_v41, 0.0  ;;  %v12217_v0 = vadd.f32 %v12046_v10, %v15805_v17  ;;  %v8557_v58 = vpop.f32.mrb[121].mxu0  ;;  %v8994_v34 = vrot.slane %v8836_v59, 1  ;;  %v12659_v10 = vld [vmem:[%s15519_s4] ss:$0 sm:$0xff] }
 0x4bd   : > { %v12218_v14 = vadd.f32 %v8557_v58, %v15806_v5  ;;  %v8992_v60 = vrot.slane %v8835_v2, 1  ;;  %v8780_v21 = vmax.f32 %v8720_v7, 0.0  ;;  %v15814_v58 = vld [vmem:[#allocation24_spill] sm:$0xff] }
 0x4be   : > { %v9230_v32 = vld [vmem:[#allocation3 + $0x120] ss:$2 sm:$0xff]  ;;  %v8723_v4 = vadd.f32 %v12217_v0, %v15287_v44 }
 0x4bf   : > { %v8722_v8 = vadd.f32 %v12218_v14, %v15287_v44  ;;  %v12049_v53 = vpop.f32.mrb[122].mxu0  ;;  %9233 = vst.msk [vmem:[%s15324_s13 + $0x3c] sm:$0xff] %vm9134_vm5, %v9230_v32  ;;  %v8993_v18 = vsel %vm8906_vm4, %v8990_v50, %v8992_v60  ;;  %v8995_v19 = vsel %vm8906_vm4, %v8992_v60, %v8994_v34  ;;  %v8837_v40 = vmax.f32 %v8777_v15, %v8780_v21  ;;  %v15809_v15 = vld [vmem:[#allocation8_spill] sm:$0xff] }
 0x4c0   : > { %v12219_v16 = vadd.f32 %v12049_v53, %v15807_v55  ;;  %v8567_v11 = vpop.f32.mrb[123].mxu0  ;;  %v9119_v12 = vmax.f32 %v8834_v23, %v8993_v18  ;;  %v9120_v63 = vmax.f32 %v8835_v2, %v8995_v19  ;;  %v8783_v45 = vmax.f32 %v8723_v4, 0.0 }
 0x4c1   : > { %v9232_v47 = vld [vmem:[#allocation3 + $0x130] ss:$2 sm:$0x3]  ;;  %v8782_v57 = vmax.f32 %v8722_v8, 0.0  ;;  %v12220_v24 = vadd.f32 %v8567_v11, %v15808_v20  ;;  %v8996_v28 = vrot.slane %v8837_v40, 1 }
 0x4c2   : > { %v8725_v1 = vadd.f32 %v12219_v16, %v15287_v44  ;;  %9234 = vst.msk [vmem:[%s15324_s13 + $0x44] sm:$0x3] %vm9197_vm6, %v9232_v47  ;;  %v8840_v54 = vmax.f32 %v8780_v21, %v8783_v45 }
 0x4c3   : > { %9177 = vst.msk [vmem:[#allocation3 + $0x150] sm:$0xff] %vm9134_vm5, %v9119_v12  ;;  %9178 = vst.msk [vmem:[#allocation3 + $0x158] sm:$0xff] %vm9134_vm5, %v9120_v63  ;;  %v12052_v56 = vpop.f32.mrb[124].mxu0  ;;  %v8724_v46 = vadd.f32 %v12220_v24, %v15287_v44  ;;  %v8997_v62 = vsel %vm8906_vm4, %v8994_v34, %v8996_v28 }
 0x4c4   : > { %v8785_v30 = vmax.f32 %v8725_v1, 0.0  ;;  %v12221_v43 = vadd.f32 %v12052_v56, %v15809_v15  ;;  %v8577_v48 = vpop.f32.mrb[125].mxu0  ;;  %v9002_v27 = vrot.slane %v8840_v54, 1  ;;  %v9121_v52 = vmax.f32 %v8836_v59, %v8997_v62 }
 0x4c5   : > { %v12222_v13 = vadd.f32 %v8577_v48, %v15810_v31  ;;  %v8784_v25 = vmax.f32 %v8724_v46, 0.0 }
 0x4c6   : > { %v8842_v9 = vmax.f32 %v8782_v57, %v8785_v30  ;;  %v8727_v23 = vadd.f32 %v12221_v43, %v15287_v44  ;;  %9179 = vst.msk [vmem:[#allocation3 + $0x160] sm:$0xff] %vm9134_vm5, %v9121_v52 }
 0x4c7   : > { %v8726_v38 = vadd.f32 %v12222_v13, %v15287_v44  ;;  %v12055_v29 = vpop.f32.mrb[126].mxu0  ;;  %v8841_v50 = vmax.f32 %v8781_v35, %v8784_v25  ;;  %v15813_v35 = vld [vmem:[#allocation23_spill] sm:$0xff] }
 0x4c8   : > { %v9006_v37 = vrot.slane %v8842_v9, 1  ;;  %v12223_v36 = vadd.f32 %v12055_v29, %v15811_v33  ;;  %v8587_v42 = vpop.f32.mrb[127].mxu0  ;;  %v8787_v39 = vmax.f32 %v8727_v23, 0.0 }
 0x4c9   : > { %v8786_v49 = vmax.f32 %v8726_v38, 0.0  ;;  %v12224_v61 = vadd.f32 %v8587_v42, %v15812_v22  ;;  %v9004_v41 = vrot.slane %v8841_v50, 1 }
 0x4ca   : > { %v9236_v26 = vld [vmem:[#allocation3 + $0x150] ss:$2 sm:$0xff]  ;;  %v8729_v51 = vadd.f32 %v12223_v36, %v15287_v44 }
 0x4cb   : > { %9239 = vst.msk [vmem:[%s15324_s13 + $0x46] sm:$0xff] %vm9134_vm5, %v9236_v26  ;;  %v12058_v6 = vpop.f32.mrb[128].mxu0  ;;  %v8843_v3 = vmax.f32 %v8783_v45, %v8786_v49  ;;  %v8728_v2 = vadd.f32 %v12659_v10, %v12224_v61  ;;  %v9005_v0 = vsel %vm8906_vm4, %v9002_v27, %v9004_v41  ;;  %v9007_v44 = vsel %vm8906_vm4, %v9004_v41, %v9006_v37 }
 0x4cc   : > { %v8789_v59 = vmax.f32 %v8729_v51, 0.0  ;;  %v12225_v7 = vadd.f32 %v12058_v6, %v15813_v35  ;;  %v8597_v17 = vpop.f32.mrb[129].mxu0  ;;  %v9125_v5 = vmax.f32 %v8840_v54, %v9005_v0  ;;  %v9126_v14 = vmax.f32 %v8841_v50, %v9007_v44 }
 0x4cd   : > { %v12226_v34 = vadd.f32 %v8597_v17, %v15814_v58  ;;  %v9008_v60 = vrot.slane %v8843_v3, 1  ;;  %v9238_v21 = vld [vmem:[#allocation3 + $0x160] ss:$2 sm:$0x3]  ;;  %v8788_v4 = vmax.f32 %v8728_v2, 0.0 }
 0x4ce   : > { %v8846_v32 = vmax.f32 %v8786_v49, %v8789_v59  ;;  %v8731_v8 = vadd.f32 %v12659_v10, %v12225_v7  ;;  %9240 = vst.msk [vmem:[%s15324_s13 + $0x4e] sm:$0x3] %vm9197_vm6, %v9238_v21 }
 0x4cf   : > { %v8730_v53 = vadd.f32 %v12659_v10, %v12226_v34  ;;  %9183 = vst.msk [vmem:[#allocation3 + $0x180] sm:$0xff] %vm9134_vm5, %v9125_v5  ;;  %9184 = vst.msk [vmem:[#allocation3 + $0x188] sm:$0xff] %vm9134_vm5, %v9126_v14  ;;  %v9009_v18 = vsel %vm8906_vm4, %v9006_v37, %v9008_v60 }
 0x4d0   : > { %v9014_v19 = vrot.slane %v8846_v32, 1  ;;  %v9127_v55 = vmax.f32 %v8842_v9, %v9009_v18  ;;  %v8791_v16 = vmax.f32 %v8731_v8, 0.0 }
 0x4d1   : > { %v8790_v11 = vmax.f32 %v8730_v53, 0.0 }
 0x4d2   : > { %9185 = vst.msk [vmem:[#allocation3 + $0x190] sm:$0xff] %vm9134_vm5, %v9127_v55  ;;  %v8848_v12 = vmax.f32 %v8788_v4, %v8791_v16 }
 0x4d3   : > { %v8847_v63 = vmax.f32 %v8787_v39, %v8790_v11 }
 0x4d4   : > { %v9018_v40 = vrot.slane %v8848_v12, 1 }
 0x4d5   : > { %v9016_v45 = vrot.slane %v8847_v63, 1 }
 0x4d6   : > { %v9242_v47 = vld [vmem:[#allocation3 + $0x180] ss:$2 sm:$0xff]  ;;  %v9133_v57 = vmax.f32 %v8848_v12, %v9018_v40 }
 0x4d7   : > { %9245 = vst.msk [vmem:[%s15324_s13 + $0x50] sm:$0xff] %vm9134_vm5, %v9242_v47  ;;  %v9017_v1 = vsel %vm8906_vm4, %v9014_v19, %v9016_v45  ;;  %v9019_v20 = vsel %vm8906_vm4, %v9016_v45, %v9018_v40 }
 0x4d8   : > { %9192 = vst.msk [vmem:[#allocation3 + $0x1c0] sm:$0x7f] %vm9191_vm7, %v9133_v57  ;;  %v9131_v24 = vmax.f32 %v8846_v32, %v9017_v1  ;;  %v9132_v28 = vmax.f32 %v8847_v63, %v9019_v20 }
 0x4d9   : > { %v9244_v54 = vld [vmem:[#allocation3 + $0x190] ss:$2 sm:$0x3] }
 0x4da   : > { %9246 = vst.msk [vmem:[%s15324_s13 + $0x58] sm:$0x3] %vm9197_vm6, %v9244_v54 }
 0x4db   : > { %9189 = vst.msk [vmem:[#allocation3 + $0x1b0] sm:$0xff] %vm9134_vm5, %v9131_v24  ;;  %9190 = vst.msk [vmem:[#allocation3 + $0x1b8] sm:$0xff] %vm9134_vm5, %v9132_v28 }
 0x4df   : > { %v9250_v56 = vld [vmem:[#allocation3 + $0x1c0] ss:$2 sm:$0x3] }
 0x4e0   : > { %9252 = vst.msk [vmem:[%s15324_s13 + $0x62] sm:$0x3] %vm9197_vm6, %v9250_v56 }
 0x4e2   : > { %v9248_v30 = vld [vmem:[#allocation3 + $0x1b0] ss:$2 sm:$0xff] }
 0x4e3   : > { %9251 = vst.msk [vmem:[%s15324_s13 + $0x5a] sm:$0xff] %vm9134_vm5, %v9248_v30 }
 0x4e4 PF: > { %s15_s18 = sadd.s32 1, %s12666_s18  }
 0x4e5   : > { %p12_p4 = scmp.ge.s32.totalorder %s15_s18, 6  }
 0x4e7   :  { %14 = sbr.rel (!%p12_p4) target bundleno = 1 (0x1), region = 89 }

</bundles_post_ra>
